<compile_context>
chip_gen: v7x
topology: tpu7x:2x2x1
jax: 0.10.0
libtpu: 0.0.40
codegen_flags: <defaults>
</compile_context>

<pallas_src>
import functools

import jax
import jax.numpy as jnp
from jax.experimental import pallas as pl
from jax.experimental.pallas import tpu as pltpu


# ------------------------------ Pallas kernel --------------------------------
def _sep_gru_kernel(h_ref, x_ref, wx_ref, bx_ref, wzrh_ref, wqh_ref, o_ref,
                    *, conv_axis, ch):
    """One GRU half-step; depth-5 1-D conv (zero pad 2) along `conv_axis`.

    Block shapes (the leading size-1 grid dim is reshaped away):
      h_ref: (1, A0, A1, Ch)      x_ref: (1, A0, A1, Cx)
      wx_ref:   (5, Cx, 3*Ch)   x-path weights for [z | r | q]
      bx_ref:   (1, 3*Ch)       fused biases  [bz | br | bq]   (f32)
      wzrh_ref: (5, Ch, 2*Ch)   h-path weights for [z | r]
      wqh_ref:  (5, Ch, Ch)     h-path weights for q
      o_ref:    (1, A0, A1, Ch)
    """
    _, a0, a1, _ = h_ref.shape
    cx = x_ref.shape[-1]
    h = h_ref[...].reshape(a0, a1, ch)            # bf16
    x = x_ref[...].reshape(a0, a1, cx)            # bf16

    def conv1d(inp, w_ref):
        """5 shifted MXU matmuls over one zero-padded copy of `inp`."""
        cin = inp.shape[-1]
        zshape = list(inp.shape)
        zshape[conv_axis] = 2
        zeros = jnp.zeros(zshape, inp.dtype)
        padded = jnp.concatenate([zeros, inp, zeros], axis=conv_axis)
        acc = None
        for t in range(5):                        # unrolled taps, kernel=5, pad=2
            if conv_axis == 0:
                sh = padded[t:t + a0, :, :]
            else:
                sh = padded[:, t:t + a1, :]
            part = jnp.dot(sh.reshape(a0 * a1, cin), w_ref[t],
                           preferred_element_type=jnp.float32)
            acc = part if acc is None else acc + part
        return acc.reshape(a0, a1, w_ref.shape[-1])

    # x-path contributions of all three gates at once (independent of r) + biases.
    xc = conv1d(x, wx_ref) + bx_ref[...].reshape(1, 1, 3 * ch)       # f32
    # fused z/r gates on the h path.
    zr = jax.nn.sigmoid(conv1d(h, wzrh_ref) + xc[..., :2 * ch])
    z = zr[..., :ch]
    r = zr[..., ch:]
    hf = h.astype(jnp.float32)
    rh = (r * hf).astype(h.dtype)                 # back to bf16 for the MXU
    q = jnp.tanh(conv1d(rh, wqh_ref) + xc[..., 2 * ch:])
    h_new = (1.0 - z) * hf + z * q
    o_ref[...] = h_new.astype(o_ref.dtype).reshape(o_ref.shape)


# ------------------------------ host wrappers ---------------------------------
def _pick_tile(dim, row_elems, budget_bytes=2 << 20, elem_bytes=2):
    """Largest multiple-of-8 divisor of `dim` whose activation block fits budget."""
    cands = [t for t in range(8, dim + 1, 8) if dim % t == 0]
    fits = [t for t in cands if t * row_elems * elem_bytes <= budget_bytes]
    return fits[-1] if fits else cands[0]


def _fuse_gate_weights(wz, bz, wr, br, wq, bq, ch):
    """Tap-major (5, Cin, Ch) weights -> fused bf16 kernel layouts."""
    w_x = jnp.concatenate([wz[:, ch:, :], wr[:, ch:, :], wq[:, ch:, :]], axis=-1)
    b_x = jnp.concatenate([bz, br, bq]).reshape(1, -1).astype(jnp.float32)
    w_zr_h = jnp.concatenate([wz[:, :ch, :], wr[:, :ch, :]], axis=-1)
    w_q_h = wq[:, :ch, :]
    bf = jnp.bfloat16
    return w_x.astype(bf), b_x, w_zr_h.astype(bf), w_q_h.astype(bf)


def _gru_half(h, x, weights, conv_axis, out_dtype):
    """h: (B, H, W, Ch) bf16, x: (B, H, W, Cx) bf16.
    conv_axis=1 -> conv along W (pass 1), conv_axis=0 -> conv along H (pass 2)."""
    wx, bx, wzrh, wqh = weights
    B, H, W, Ch = h.shape
    Cx = x.shape[-1]
    if conv_axis == 1:                            # (1,5): conv along W, tile over H
        th = _pick_tile(H, W * (2 * Ch + Cx))
        grid = (B, H // th)
        blk = lambda c: (1, th, W, c)
        imap = lambda b, i: (b, i, 0, 0)
    else:                                         # (5,1): conv along H, tile over W
        tw = _pick_tile(W, H * (2 * Ch + Cx))
        grid = (B, W // tw)
        blk = lambda c: (1, H, tw, c)
        imap = lambda b, j: (b, 0, j, 0)

    const3 = lambda b, i: (0, 0, 0)
    const2 = lambda b, i: (0, 0)
    return pl.pallas_call(
        functools.partial(_sep_gru_kernel, conv_axis=conv_axis, ch=Ch),
        out_shape=jax.ShapeDtypeStruct((B, H, W, Ch), out_dtype),
        grid=grid,
        in_specs=[
            pl.BlockSpec(blk(Ch), imap),
            pl.BlockSpec(blk(Cx), imap),
            # Constant index_map -> weights/biases are DMA'd only once.
            pl.BlockSpec(wx.shape, const3),
            pl.BlockSpec(bx.shape, const2),
            pl.BlockSpec(wzrh.shape, const3),
            pl.BlockSpec(wqh.shape, const3),
        ],
        out_specs=pl.BlockSpec(blk(Ch), imap),
        compiler_params=pltpu.CompilerParams(
            dimension_semantics=("parallel", "parallel"),
            vmem_limit_bytes=48 * 1024 * 1024),
    )(h, x, wx, bx, wzrh, wqh)


def sepconv_gru_forward(h_nchw, x_nchw, P):
    """Exact SepConvGRU.forward semantics; inputs/outputs are NCHW float32.
    bf16 MXU operands with f32 accumulation."""
    out_dtype = h_nchw.dtype
    # NCHW -> NHWC once at the boundary (BlockSpec cannot permute axes); no other
    # HBM transposes remain -- pass 2 convolves along H via a different blocking.
    h = jnp.transpose(h_nchw, (0, 2, 3, 1)).astype(jnp.bfloat16)
    x = jnp.transpose(x_nchw, (0, 2, 3, 1)).astype(jnp.bfloat16)
    B, H, W, Ch = h.shape

    # Pad spatial dims to multiples of 8 (cheap sublane merges in the kernel).
    Hp, Wp = -(-H // 8) * 8, -(-W // 8) * 8
    if (Hp, Wp) != (H, W):
        pads = ((0, 0), (0, Hp - H), (0, Wp - W), (0, 0))
        h = jnp.pad(h, pads)
        x = jnp.pad(x, pads)

    w1 = _fuse_gate_weights(P["wz1"], P["bz1"], P["wr1"], P["br1"],
                            P["wq1"], P["bq1"], Ch)
    w2 = _fuse_gate_weights(P["wz2"], P["bz2"], P["wr2"], P["br2"],
                            P["wq2"], P["bq2"], Ch)

    # pass 1: (1,5) conv => 1-D conv along W
    h = _gru_half(h, x, w1, conv_axis=1, out_dtype=jnp.bfloat16)
    if Hp != H:
        # Keep padded rows exactly zero so pass 2's zero-halo semantics stay exact.
        h = h * (jnp.arange(Hp) < H).astype(h.dtype)[None, :, None, None]
    # pass 2: (5,1) conv => 1-D conv along H (no H<->W transpose)
    h = _gru_half(h, x, w2, conv_axis=0, out_dtype=jnp.float32)

    h = h[:, :H, :W, :]
    return jnp.transpose(h, (0, 3, 1, 2)).astype(out_dtype)


# ------------------------------- reference ------------------------------------
def _conv_ref(x, w_oihw, b, pad):
    y = jax.lax.conv_general_dilated(
        x, w_oihw, window_strides=(1, 1), padding=pad,
        dimension_numbers=("NCHW", "OIHW", "NCHW"),
        precision=jax.lax.Precision.HIGHEST)
    return y + b[None, :, None, None]


def sepconv_gru_reference(h, x, P):
    hx = jnp.concatenate([h, x], axis=1)
    z = jax.nn.sigmoid(_conv_ref(hx, P["wz1_oihw"], P["bz1"], ((0, 0), (2, 2))))
    r = jax.nn.sigmoid(_conv_ref(hx, P["wr1_oihw"], P["br1"], ((0, 0), (2, 2))))
    q = jnp.tanh(_conv_ref(jnp.concatenate([r * h, x], axis=1),
                           P["wq1_oihw"], P["bq1"], ((0, 0), (2, 2))))
    h = (1 - z) * h + z * q
    hx = jnp.concatenate([h, x], axis=1)
    z = jax.nn.sigmoid(_conv_ref(hx, P["wz2_oihw"], P["bz2"], ((2, 2), (0, 0))))
    r = jax.nn.sigmoid(_conv_ref(hx, P["wr2_oihw"], P["br2"], ((2, 2), (0, 0))))
    q = jnp.tanh(_conv_ref(jnp.concatenate([r * h, x], axis=1),
                           P["wq2_oihw"], P["bq2"], ((2, 2), (0, 0))))
    return (1 - z) * h + z * q


# --------------------------------- setup --------------------------------------
def make_params(key, hidden, inp):
    cin = hidden + inp
    names = ["z1", "r1", "q1", "z2", "r2", "q2"]
    keys = jax.random.split(key, 2 * len(names))
    P = {}
    for i, n in enumerate(names):
        kshape = (hidden, cin, 1, 5) if n.endswith("1") else (hidden, cin, 5, 1)
        w = jax.random.normal(keys[2 * i], kshape, jnp.float32) * 0.1
        b = jax.random.normal(keys[2 * i + 1], (hidden,), jnp.float32) * 0.1
        P[f"w{n}_oihw"] = w
        P[f"b{n}"] = b
        # tap-major (5, Cin, Cout) layout for the Pallas kernel
        if n.endswith("1"):
            P[f"w{n}"] = jnp.transpose(w[:, :, 0, :], (2, 1, 0))
        else:
            P[f"w{n}"] = jnp.transpose(w[:, :, :, 0], (2, 1, 0))
    return P


if __name__ == "__main__":
    # Small, deterministic test shapes (H deliberately not a multiple of 8 so the
    # pad/mask path between the two passes is exercised).
    B, HID, INP, H, W = 2, 32, 32, 12, 16
    key = jax.random.PRNGKey(0)
    kh, kx, kp = jax.random.split(key, 3)
    h0 = jax.random.normal(kh, (B, HID, H, W), jnp.float32)
    x0 = jax.random.normal(kx, (B, INP, H, W), jnp.float32)
    P = make_params(kp, HID, INP)

    fwd = jax.jit(sepconv_gru_forward)
    out = jax.block_until_ready(fwd(h0, x0, P))
    ref = jax.block_until_ready(sepconv_gru_reference(h0, x0, P))

    assert out.shape == (B, HID, H, W)
    max_err = float(jnp.max(jnp.abs(out - ref)))
    # bf16 MXU operands (f32 accumulation) vs the fp32 HIGHEST-precision reference.
    assert bool(jnp.allclose(out, ref, atol=1e-1, rtol=1e-1)), (
        f"mismatch vs reference: max abs err {max_err}")
    print("KERNEL_OK")
</pallas_src>

<mosaic_0001>
module attributes {stable_mosaic.version = 11 : i64} {
  func.func @_sep_gru_kernel(%arg0: i32, %arg1: i32, %arg2: memref<1x16x16x32xbf16, #tpu.memory_space<vmem>>, %arg3: memref<1x16x16x32xbf16, #tpu.memory_space<vmem>>, %arg4: memref<5x32x96xbf16, #tpu.memory_space<vmem>>, %arg5: memref<1x96xf32, #tpu.memory_space<vmem>>, %arg6: memref<5x32x64xbf16, #tpu.memory_space<vmem>>, %arg7: memref<5x32x32xbf16, #tpu.memory_space<vmem>>, %arg8: memref<1x16x16x32xbf16, #tpu.memory_space<vmem>>) attributes {dimension_semantics = [#tpu.dimension_semantics<parallel>, #tpu.dimension_semantics<parallel>], iteration_bounds = array<i64: 2, 1>, scalar_prefetch = 0 : i64, scratch_operands = 0 : i64, tpu.core_type = #tpu.core_type<tc>, window_params = [{transform_indices = @transform_0, window_bounds = array<i64: 1, 16, 16, 32>}, {transform_indices = @transform_1, window_bounds = array<i64: 1, 16, 16, 32>}, {pipeline_mode = #tpu.pipeline_mode<synchronous>, transform_indices = @transform_2, window_bounds = array<i64: 5, 32, 96>}, {pipeline_mode = #tpu.pipeline_mode<synchronous>, transform_indices = @transform_3, window_bounds = array<i64: 1, 96>}, {pipeline_mode = #tpu.pipeline_mode<synchronous>, transform_indices = @transform_4, window_bounds = array<i64: 5, 32, 64>}, {pipeline_mode = #tpu.pipeline_mode<synchronous>, transform_indices = @transform_5, window_bounds = array<i64: 5, 32, 32>}, {transform_indices = @transform_6, window_bounds = array<i64: 1, 16, 16, 32>}]} {
    %c0 = arith.constant 0 : index
    %c0_0 = arith.constant 0 : index
    %c0_1 = arith.constant 0 : index
    %c0_2 = arith.constant 0 : index
    %0 = vector.load %arg2[%c0, %c0_0, %c0_1, %c0_2] : memref<1x16x16x32xbf16, #tpu.memory_space<vmem>>, vector<1x16x16x32xbf16>
    %1 = vector.shape_cast %0 : vector<1x16x16x32xbf16> to vector<16x16x32xbf16>
    %c0_3 = arith.constant 0 : index
    %c0_4 = arith.constant 0 : index
    %c0_5 = arith.constant 0 : index
    %c0_6 = arith.constant 0 : index
    %2 = vector.load %arg3[%c0_3, %c0_4, %c0_5, %c0_6] : memref<1x16x16x32xbf16, #tpu.memory_space<vmem>>, vector<1x16x16x32xbf16>
    %3 = vector.shape_cast %2 : vector<1x16x16x32xbf16> to vector<16x16x32xbf16>
    %cst = arith.constant 0.000000e+00 : bf16
    %4 = vector.broadcast %cst : bf16 to vector<16x2x32xbf16>
    %5 = tpu.concatenate %4, %3, %4 in 1 : vector<16x2x32xbf16>, vector<16x16x32xbf16>, vector<16x2x32xbf16> -> vector<16x20x32xbf16>
    %6 = vector.extract_strided_slice %5 {offsets = [0, 0, 0], sizes = [16, 16, 32], strides = [1, 1, 1]} : vector<16x20x32xbf16> to vector<16x16x32xbf16>
    %7 = vector.shape_cast %6 : vector<16x16x32xbf16> to vector<256x32xbf16>
    %c0_7 = arith.constant 0 : index
    %c0_8 = arith.constant 0 : index
    %c0_9 = arith.constant 0 : index
    %8 = vector.load %arg4[%c0_7, %c0_8, %c0_9] : memref<5x32x96xbf16, #tpu.memory_space<vmem>>, vector<1x32x96xbf16>
    %9 = vector.shape_cast %8 : vector<1x32x96xbf16> to vector<32x96xbf16>
    %cst_10 = arith.constant dense<0.000000e+00> : vector<256x96xf32>
    %10 = tpu.matmul %7, %9, %cst_10 {dimension_numbers = #tpu.dot_dimension_numbers<[1], [0], [0], [1], [0, 0, 1, 1], [], []>} : vector<256x32xbf16>, vector<32x96xbf16>, vector<256x96xf32> -> vector<256x96xf32>
    %11 = vector.extract_strided_slice %5 {offsets = [0, 1, 0], sizes = [16, 16, 32], strides = [1, 1, 1]} : vector<16x20x32xbf16> to vector<16x16x32xbf16>
    %12 = vector.shape_cast %11 : vector<16x16x32xbf16> to vector<256x32xbf16>
    %c1 = arith.constant 1 : index
    %c0_11 = arith.constant 0 : index
    %c0_12 = arith.constant 0 : index
    %13 = vector.load %arg4[%c1, %c0_11, %c0_12] : memref<5x32x96xbf16, #tpu.memory_space<vmem>>, vector<1x32x96xbf16>
    %14 = vector.shape_cast %13 : vector<1x32x96xbf16> to vector<32x96xbf16>
    %cst_13 = arith.constant dense<0.000000e+00> : vector<256x96xf32>
    %15 = tpu.matmul %12, %14, %cst_13 {dimension_numbers = #tpu.dot_dimension_numbers<[1], [0], [0], [1], [0, 0, 1, 1], [], []>} : vector<256x32xbf16>, vector<32x96xbf16>, vector<256x96xf32> -> vector<256x96xf32>
    %16 = arith.addf %10, %15 : vector<256x96xf32>
    %17 = vector.extract_strided_slice %5 {offsets = [0, 2, 0], sizes = [16, 16, 32], strides = [1, 1, 1]} : vector<16x20x32xbf16> to vector<16x16x32xbf16>
    %18 = vector.shape_cast %17 : vector<16x16x32xbf16> to vector<256x32xbf16>
    %c2 = arith.constant 2 : index
    %c0_14 = arith.constant 0 : index
    %c0_15 = arith.constant 0 : index
    %19 = vector.load %arg4[%c2, %c0_14, %c0_15] : memref<5x32x96xbf16, #tpu.memory_space<vmem>>, vector<1x32x96xbf16>
    %20 = vector.shape_cast %19 : vector<1x32x96xbf16> to vector<32x96xbf16>
    %cst_16 = arith.constant dense<0.000000e+00> : vector<256x96xf32>
    %21 = tpu.matmul %18, %20, %cst_16 {dimension_numbers = #tpu.dot_dimension_numbers<[1], [0], [0], [1], [0, 0, 1, 1], [], []>} : vector<256x32xbf16>, vector<32x96xbf16>, vector<256x96xf32> -> vector<256x96xf32>
    %22 = arith.addf %16, %21 : vector<256x96xf32>
    %23 = vector.extract_strided_slice %5 {offsets = [0, 3, 0], sizes = [16, 16, 32], strides = [1, 1, 1]} : vector<16x20x32xbf16> to vector<16x16x32xbf16>
    %24 = vector.shape_cast %23 : vector<16x16x32xbf16> to vector<256x32xbf16>
    %c3 = arith.constant 3 : index
    %c0_17 = arith.constant 0 : index
    %c0_18 = arith.constant 0 : index
    %25 = vector.load %arg4[%c3, %c0_17, %c0_18] : memref<5x32x96xbf16, #tpu.memory_space<vmem>>, vector<1x32x96xbf16>
    %26 = vector.shape_cast %25 : vector<1x32x96xbf16> to vector<32x96xbf16>
    %cst_19 = arith.constant dense<0.000000e+00> : vector<256x96xf32>
    %27 = tpu.matmul %24, %26, %cst_19 {dimension_numbers = #tpu.dot_dimension_numbers<[1], [0], [0], [1], [0, 0, 1, 1], [], []>} : vector<256x32xbf16>, vector<32x96xbf16>, vector<256x96xf32> -> vector<256x96xf32>
    %28 = arith.addf %22, %27 : vector<256x96xf32>
    %29 = vector.extract_strided_slice %5 {offsets = [0, 4, 0], sizes = [16, 16, 32], strides = [1, 1, 1]} : vector<16x20x32xbf16> to vector<16x16x32xbf16>
    %30 = vector.shape_cast %29 : vector<16x16x32xbf16> to vector<256x32xbf16>
    %c4 = arith.constant 4 : index
    %c0_20 = arith.constant 0 : index
    %c0_21 = arith.constant 0 : index
    %31 = vector.load %arg4[%c4, %c0_20, %c0_21] : memref<5x32x96xbf16, #tpu.memory_space<vmem>>, vector<1x32x96xbf16>
    %32 = vector.shape_cast %31 : vector<1x32x96xbf16> to vector<32x96xbf16>
    %cst_22 = arith.constant dense<0.000000e+00> : vector<256x96xf32>
    %33 = tpu.matmul %30, %32, %cst_22 {dimension_numbers = #tpu.dot_dimension_numbers<[1], [0], [0], [1], [0, 0, 1, 1], [], []>} : vector<256x32xbf16>, vector<32x96xbf16>, vector<256x96xf32> -> vector<256x96xf32>
    %34 = arith.addf %28, %33 : vector<256x96xf32>
    %35 = vector.shape_cast %34 : vector<256x96xf32> to vector<16x16x96xf32>
    %c0_23 = arith.constant 0 : index
    %c0_24 = arith.constant 0 : index
    %36 = vector.load %arg5[%c0_23, %c0_24] : memref<1x96xf32, #tpu.memory_space<vmem>>, vector<1x96xf32>
    %37 = vector.shape_cast %36 : vector<1x96xf32> to vector<1x1x96xf32>
    %38 = vector.broadcast %37 : vector<1x1x96xf32> to vector<16x16x96xf32>
    %39 = arith.addf %35, %38 : vector<16x16x96xf32>
    %cst_25 = arith.constant 0.000000e+00 : bf16
    %40 = vector.broadcast %cst_25 : bf16 to vector<16x2x32xbf16>
    %41 = tpu.concatenate %40, %1, %40 in 1 : vector<16x2x32xbf16>, vector<16x16x32xbf16>, vector<16x2x32xbf16> -> vector<16x20x32xbf16>
    %42 = vector.extract_strided_slice %41 {offsets = [0, 0, 0], sizes = [16, 16, 32], strides = [1, 1, 1]} : vector<16x20x32xbf16> to vector<16x16x32xbf16>
    %43 = vector.shape_cast %42 : vector<16x16x32xbf16> to vector<256x32xbf16>
    %c0_26 = arith.constant 0 : index
    %c0_27 = arith.constant 0 : index
    %c0_28 = arith.constant 0 : index
    %44 = vector.load %arg6[%c0_26, %c0_27, %c0_28] : memref<5x32x64xbf16, #tpu.memory_space<vmem>>, vector<1x32x64xbf16>
    %45 = vector.shape_cast %44 : vector<1x32x64xbf16> to vector<32x64xbf16>
    %cst_29 = arith.constant dense<0.000000e+00> : vector<256x64xf32>
    %46 = tpu.matmul %43, %45, %cst_29 {dimension_numbers = #tpu.dot_dimension_numbers<[1], [0], [0], [1], [0, 0, 1, 1], [], []>} : vector<256x32xbf16>, vector<32x64xbf16>, vector<256x64xf32> -> vector<256x64xf32>
    %47 = vector.extract_strided_slice %41 {offsets = [0, 1, 0], sizes = [16, 16, 32], strides = [1, 1, 1]} : vector<16x20x32xbf16> to vector<16x16x32xbf16>
    %48 = vector.shape_cast %47 : vector<16x16x32xbf16> to vector<256x32xbf16>
    %c1_30 = arith.constant 1 : index
    %c0_31 = arith.constant 0 : index
    %c0_32 = arith.constant 0 : index
    %49 = vector.load %arg6[%c1_30, %c0_31, %c0_32] : memref<5x32x64xbf16, #tpu.memory_space<vmem>>, vector<1x32x64xbf16>
    %50 = vector.shape_cast %49 : vector<1x32x64xbf16> to vector<32x64xbf16>
    %cst_33 = arith.constant dense<0.000000e+00> : vector<256x64xf32>
    %51 = tpu.matmul %48, %50, %cst_33 {dimension_numbers = #tpu.dot_dimension_numbers<[1], [0], [0], [1], [0, 0, 1, 1], [], []>} : vector<256x32xbf16>, vector<32x64xbf16>, vector<256x64xf32> -> vector<256x64xf32>
    %52 = arith.addf %46, %51 : vector<256x64xf32>
    %53 = vector.extract_strided_slice %41 {offsets = [0, 2, 0], sizes = [16, 16, 32], strides = [1, 1, 1]} : vector<16x20x32xbf16> to vector<16x16x32xbf16>
    %54 = vector.shape_cast %53 : vector<16x16x32xbf16> to vector<256x32xbf16>
    %c2_34 = arith.constant 2 : index
    %c0_35 = arith.constant 0 : index
    %c0_36 = arith.constant 0 : index
    %55 = vector.load %arg6[%c2_34, %c0_35, %c0_36] : memref<5x32x64xbf16, #tpu.memory_space<vmem>>, vector<1x32x64xbf16>
    %56 = vector.shape_cast %55 : vector<1x32x64xbf16> to vector<32x64xbf16>
    %cst_37 = arith.constant dense<0.000000e+00> : vector<256x64xf32>
    %57 = tpu.matmul %54, %56, %cst_37 {dimension_numbers = #tpu.dot_dimension_numbers<[1], [0], [0], [1], [0, 0, 1, 1], [], []>} : vector<256x32xbf16>, vector<32x64xbf16>, vector<256x64xf32> -> vector<256x64xf32>
    %58 = arith.addf %52, %57 : vector<256x64xf32>
    %59 = vector.extract_strided_slice %41 {offsets = [0, 3, 0], sizes = [16, 16, 32], strides = [1, 1, 1]} : vector<16x20x32xbf16> to vector<16x16x32xbf16>
    %60 = vector.shape_cast %59 : vector<16x16x32xbf16> to vector<256x32xbf16>
    %c3_38 = arith.constant 3 : index
    %c0_39 = arith.constant 0 : index
    %c0_40 = arith.constant 0 : index
    %61 = vector.load %arg6[%c3_38, %c0_39, %c0_40] : memref<5x32x64xbf16, #tpu.memory_space<vmem>>, vector<1x32x64xbf16>
    %62 = vector.shape_cast %61 : vector<1x32x64xbf16> to vector<32x64xbf16>
    %cst_41 = arith.constant dense<0.000000e+00> : vector<256x64xf32>
    %63 = tpu.matmul %60, %62, %cst_41 {dimension_numbers = #tpu.dot_dimension_numbers<[1], [0], [0], [1], [0, 0, 1, 1], [], []>} : vector<256x32xbf16>, vector<32x64xbf16>, vector<256x64xf32> -> vector<256x64xf32>
    %64 = arith.addf %58, %63 : vector<256x64xf32>
    %65 = vector.extract_strided_slice %41 {offsets = [0, 4, 0], sizes = [16, 16, 32], strides = [1, 1, 1]} : vector<16x20x32xbf16> to vector<16x16x32xbf16>
    %66 = vector.shape_cast %65 : vector<16x16x32xbf16> to vector<256x32xbf16>
    %c4_42 = arith.constant 4 : index
    %c0_43 = arith.constant 0 : index
    %c0_44 = arith.constant 0 : index
    %67 = vector.load %arg6[%c4_42, %c0_43, %c0_44] : memref<5x32x64xbf16, #tpu.memory_space<vmem>>, vector<1x32x64xbf16>
    %68 = vector.shape_cast %67 : vector<1x32x64xbf16> to vector<32x64xbf16>
    %cst_45 = arith.constant dense<0.000000e+00> : vector<256x64xf32>
    %69 = tpu.matmul %66, %68, %cst_45 {dimension_numbers = #tpu.dot_dimension_numbers<[1], [0], [0], [1], [0, 0, 1, 1], [], []>} : vector<256x32xbf16>, vector<32x64xbf16>, vector<256x64xf32> -> vector<256x64xf32>
    %70 = arith.addf %64, %69 : vector<256x64xf32>
    %71 = vector.shape_cast %70 : vector<256x64xf32> to vector<16x16x64xf32>
    %72 = vector.extract_strided_slice %39 {offsets = [0, 0, 0], sizes = [16, 16, 64], strides = [1, 1, 1]} : vector<16x16x96xf32> to vector<16x16x64xf32>
    %73 = arith.addf %71, %72 : vector<16x16x64xf32>
    %74 = arith.negf %73 : vector<16x16x64xf32>
    %75 = math.exp %74 : vector<16x16x64xf32>
    %cst_46 = arith.constant 1.000000e+00 : f32
    %76 = vector.broadcast %cst_46 : f32 to vector<16x16x64xf32>
    %77 = arith.addf %76, %75 : vector<16x16x64xf32>
    %78 = arith.divf %76, %77 : vector<16x16x64xf32>
    %79 = vector.extract_strided_slice %78 {offsets = [0, 0, 0], sizes = [16, 16, 32], strides = [1, 1, 1]} : vector<16x16x64xf32> to vector<16x16x32xf32>
    %80 = vector.extract_strided_slice %78 {offsets = [0, 0, 32], sizes = [16, 16, 32], strides = [1, 1, 1]} : vector<16x16x64xf32> to vector<16x16x32xf32>
    %81 = arith.extf %1 : vector<16x16x32xbf16> to vector<16x16x32xf32>
    %82 = arith.mulf %80, %81 : vector<16x16x32xf32>
    %83 = arith.truncf %82 : vector<16x16x32xf32> to vector<16x16x32xbf16>
    %cst_47 = arith.constant 0.000000e+00 : bf16
    %84 = vector.broadcast %cst_47 : bf16 to vector<16x2x32xbf16>
    %85 = tpu.concatenate %84, %83, %84 in 1 : vector<16x2x32xbf16>, vector<16x16x32xbf16>, vector<16x2x32xbf16> -> vector<16x20x32xbf16>
    %86 = vector.extract_strided_slice %85 {offsets = [0, 0, 0], sizes = [16, 16, 32], strides = [1, 1, 1]} : vector<16x20x32xbf16> to vector<16x16x32xbf16>
    %87 = vector.shape_cast %86 : vector<16x16x32xbf16> to vector<256x32xbf16>
    %c0_48 = arith.constant 0 : index
    %c0_49 = arith.constant 0 : index
    %c0_50 = arith.constant 0 : index
    %88 = vector.load %arg7[%c0_48, %c0_49, %c0_50] : memref<5x32x32xbf16, #tpu.memory_space<vmem>>, vector<1x32x32xbf16>
    %89 = vector.shape_cast %88 : vector<1x32x32xbf16> to vector<32x32xbf16>
    %cst_51 = arith.constant dense<0.000000e+00> : vector<256x32xf32>
    %90 = tpu.matmul %87, %89, %cst_51 {dimension_numbers = #tpu.dot_dimension_numbers<[1], [0], [0], [1], [0, 0, 1, 1], [], []>} : vector<256x32xbf16>, vector<32x32xbf16>, vector<256x32xf32> -> vector<256x32xf32>
    %91 = vector.extract_strided_slice %85 {offsets = [0, 1, 0], sizes = [16, 16, 32], strides = [1, 1, 1]} : vector<16x20x32xbf16> to vector<16x16x32xbf16>
    %92 = vector.shape_cast %91 : vector<16x16x32xbf16> to vector<256x32xbf16>
    %c1_52 = arith.constant 1 : index
    %c0_53 = arith.constant 0 : index
    %c0_54 = arith.constant 0 : index
    %93 = vector.load %arg7[%c1_52, %c0_53, %c0_54] : memref<5x32x32xbf16, #tpu.memory_space<vmem>>, vector<1x32x32xbf16>
    %94 = vector.shape_cast %93 : vector<1x32x32xbf16> to vector<32x32xbf16>
    %cst_55 = arith.constant dense<0.000000e+00> : vector<256x32xf32>
    %95 = tpu.matmul %92, %94, %cst_55 {dimension_numbers = #tpu.dot_dimension_numbers<[1], [0], [0], [1], [0, 0, 1, 1], [], []>} : vector<256x32xbf16>, vector<32x32xbf16>, vector<256x32xf32> -> vector<256x32xf32>
    %96 = arith.addf %90, %95 : vector<256x32xf32>
    %97 = vector.extract_strided_slice %85 {offsets = [0, 2, 0], sizes = [16, 16, 32], strides = [1, 1, 1]} : vector<16x20x32xbf16> to vector<16x16x32xbf16>
    %98 = vector.shape_cast %97 : vector<16x16x32xbf16> to vector<256x32xbf16>
    %c2_56 = arith.constant 2 : index
    %c0_57 = arith.constant 0 : index
    %c0_58 = arith.constant 0 : index
    %99 = vector.load %arg7[%c2_56, %c0_57, %c0_58] : memref<5x32x32xbf16, #tpu.memory_space<vmem>>, vector<1x32x32xbf16>
    %100 = vector.shape_cast %99 : vector<1x32x32xbf16> to vector<32x32xbf16>
    %cst_59 = arith.constant dense<0.000000e+00> : vector<256x32xf32>
    %101 = tpu.matmul %98, %100, %cst_59 {dimension_numbers = #tpu.dot_dimension_numbers<[1], [0], [0], [1], [0, 0, 1, 1], [], []>} : vector<256x32xbf16>, vector<32x32xbf16>, vector<256x32xf32> -> vector<256x32xf32>
    %102 = arith.addf %96, %101 : vector<256x32xf32>
    %103 = vector.extract_strided_slice %85 {offsets = [0, 3, 0], sizes = [16, 16, 32], strides = [1, 1, 1]} : vector<16x20x32xbf16> to vector<16x16x32xbf16>
    %104 = vector.shape_cast %103 : vector<16x16x32xbf16> to vector<256x32xbf16>
    %c3_60 = arith.constant 3 : index
    %c0_61 = arith.constant 0 : index
    %c0_62 = arith.constant 0 : index
    %105 = vector.load %arg7[%c3_60, %c0_61, %c0_62] : memref<5x32x32xbf16, #tpu.memory_space<vmem>>, vector<1x32x32xbf16>
    %106 = vector.shape_cast %105 : vector<1x32x32xbf16> to vector<32x32xbf16>
    %cst_63 = arith.constant dense<0.000000e+00> : vector<256x32xf32>
    %107 = tpu.matmul %104, %106, %cst_63 {dimension_numbers = #tpu.dot_dimension_numbers<[1], [0], [0], [1], [0, 0, 1, 1], [], []>} : vector<256x32xbf16>, vector<32x32xbf16>, vector<256x32xf32> -> vector<256x32xf32>
    %108 = arith.addf %102, %107 : vector<256x32xf32>
    %109 = vector.extract_strided_slice %85 {offsets = [0, 4, 0], sizes = [16, 16, 32], strides = [1, 1, 1]} : vector<16x20x32xbf16> to vector<16x16x32xbf16>
    %110 = vector.shape_cast %109 : vector<16x16x32xbf16> to vector<256x32xbf16>
    %c4_64 = arith.constant 4 : index
    %c0_65 = arith.constant 0 : index
    %c0_66 = arith.constant 0 : index
    %111 = vector.load %arg7[%c4_64, %c0_65, %c0_66] : memref<5x32x32xbf16, #tpu.memory_space<vmem>>, vector<1x32x32xbf16>
    %112 = vector.shape_cast %111 : vector<1x32x32xbf16> to vector<32x32xbf16>
    %cst_67 = arith.constant dense<0.000000e+00> : vector<256x32xf32>
    %113 = tpu.matmul %110, %112, %cst_67 {dimension_numbers = #tpu.dot_dimension_numbers<[1], [0], [0], [1], [0, 0, 1, 1], [], []>} : vector<256x32xbf16>, vector<32x32xbf16>, vector<256x32xf32> -> vector<256x32xf32>
    %114 = arith.addf %108, %113 : vector<256x32xf32>
    %115 = vector.shape_cast %114 : vector<256x32xf32> to vector<16x16x32xf32>
    %116 = vector.extract_strided_slice %39 {offsets = [0, 0, 64], sizes = [16, 16, 32], strides = [1, 1, 1]} : vector<16x16x96xf32> to vector<16x16x32xf32>
    %117 = arith.addf %115, %116 : vector<16x16x32xf32>
    %118 = math.tanh %117 : vector<16x16x32xf32>
    %cst_68 = arith.constant 1.000000e+00 : f32
    %119 = vector.broadcast %cst_68 : f32 to vector<16x16x32xf32>
    %120 = arith.subf %119, %79 : vector<16x16x32xf32>
    %121 = arith.mulf %120, %81 : vector<16x16x32xf32>
    %122 = arith.mulf %79, %118 : vector<16x16x32xf32>
    %123 = arith.addf %121, %122 : vector<16x16x32xf32>
    %124 = arith.truncf %123 : vector<16x16x32xf32> to vector<16x16x32xbf16>
    %125 = vector.shape_cast %124 : vector<16x16x32xbf16> to vector<1x16x16x32xbf16>
    %c0_69 = arith.constant 0 : index
    %c0_70 = arith.constant 0 : index
    %c0_71 = arith.constant 0 : index
    %c0_72 = arith.constant 0 : index
    %126 = vector.load %arg8[%c0_69, %c0_70, %c0_71, %c0_72] : memref<1x16x16x32xbf16, #tpu.memory_space<vmem>>, vector<1x16x16x32xbf16>
    tpu.vector_store %arg8[%c0_69, %c0_70, %c0_71, %c0_72], %125 {strides = array<i32>} : memref<1x16x16x32xbf16, #tpu.memory_space<vmem>>, vector<1x16x16x32xbf16>,
    return
  }
  func.func @transform_0(%arg0: i32, %arg1: i32) -> (i32, i32, i32, i32) {
    %c0_i32 = arith.constant 0 : i32
    %c0_i32_0 = arith.constant 0 : i32
    %c0_i32_1 = arith.constant 0 : i32
    return %arg0, %arg1, %c0_i32, %c0_i32_0 : i32, i32, i32, i32
  }
  func.func @transform_1(%arg0: i32, %arg1: i32) -> (i32, i32, i32, i32) {
    %c0_i32 = arith.constant 0 : i32
    %c0_i32_0 = arith.constant 0 : i32
    %c0_i32_1 = arith.constant 0 : i32
    return %arg0, %arg1, %c0_i32, %c0_i32_0 : i32, i32, i32, i32
  }
  func.func @transform_2(%arg0: i32, %arg1: i32) -> (i32, i32, i32) {
    %c0_i32 = arith.constant 0 : i32
    %c0_i32_0 = arith.constant 0 : i32
    %c0_i32_1 = arith.constant 0 : i32
    %c0_i32_2 = arith.constant 0 : i32
    return %c0_i32, %c0_i32_0, %c0_i32_1 : i32, i32, i32
  }
  func.func @transform_3(%arg0: i32, %arg1: i32) -> (i32, i32) {
    %c0_i32 = arith.constant 0 : i32
    %c0_i32_0 = arith.constant 0 : i32
    %c0_i32_1 = arith.constant 0 : i32
    return %c0_i32, %c0_i32_0 : i32, i32
  }
  func.func @transform_4(%arg0: i32, %arg1: i32) -> (i32, i32, i32) {
    %c0_i32 = arith.constant 0 : i32
    %c0_i32_0 = arith.constant 0 : i32
    %c0_i32_1 = arith.constant 0 : i32
    %c0_i32_2 = arith.constant 0 : i32
    return %c0_i32, %c0_i32_0, %c0_i32_1 : i32, i32, i32
  }
  func.func @transform_5(%arg0: i32, %arg1: i32) -> (i32, i32, i32) {
    %c0_i32 = arith.constant 0 : i32
    %c0_i32_0 = arith.constant 0 : i32
    %c0_i32_1 = arith.constant 0 : i32
    %c0_i32_2 = arith.constant 0 : i32
    return %c0_i32, %c0_i32_0, %c0_i32_1 : i32, i32, i32
  }
  func.func @transform_6(%arg0: i32, %arg1: i32) -> (i32, i32, i32, i32) {
    %c0_i32 = arith.constant 0 : i32
    %c0_i32_0 = arith.constant 0 : i32
    %c0_i32_1 = arith.constant 0 : i32
    return %arg0, %arg1, %c0_i32, %c0_i32_0 : i32, i32, i32, i32
  }
}

module attributes {stable_mosaic.version = 11 : i64} {
  func.func @_sep_gru_kernel(%arg0: i32, %arg1: i32, %arg2: memref<1x16x16x32xbf16, #tpu.memory_space<vmem>>, %arg3: memref<1x16x16x32xbf16, #tpu.memory_space<vmem>>, %arg4: memref<5x32x96xbf16, #tpu.memory_space<vmem>>, %arg5: memref<1x96xf32, #tpu.memory_space<vmem>>, %arg6: memref<5x32x64xbf16, #tpu.memory_space<vmem>>, %arg7: memref<5x32x32xbf16, #tpu.memory_space<vmem>>, %arg8: memref<1x16x16x32xf32, #tpu.memory_space<vmem>>) attributes {dimension_semantics = [#tpu.dimension_semantics<parallel>, #tpu.dimension_semantics<parallel>], iteration_bounds = array<i64: 2, 1>, scalar_prefetch = 0 : i64, scratch_operands = 0 : i64, tpu.core_type = #tpu.core_type<tc>, window_params = [{transform_indices = @transform_0, window_bounds = array<i64: 1, 16, 16, 32>}, {transform_indices = @transform_1, window_bounds = array<i64: 1, 16, 16, 32>}, {pipeline_mode = #tpu.pipeline_mode<synchronous>, transform_indices = @transform_2, window_bounds = array<i64: 5, 32, 96>}, {pipeline_mode = #tpu.pipeline_mode<synchronous>, transform_indices = @transform_3, window_bounds = array<i64: 1, 96>}, {pipeline_mode = #tpu.pipeline_mode<synchronous>, transform_indices = @transform_4, window_bounds = array<i64: 5, 32, 64>}, {pipeline_mode = #tpu.pipeline_mode<synchronous>, transform_indices = @transform_5, window_bounds = array<i64: 5, 32, 32>}, {transform_indices = @transform_6, window_bounds = array<i64: 1, 16, 16, 32>}]} {
    %c0 = arith.constant 0 : index
    %c0_0 = arith.constant 0 : index
    %c0_1 = arith.constant 0 : index
    %c0_2 = arith.constant 0 : index
    %0 = vector.load %arg2[%c0, %c0_0, %c0_1, %c0_2] : memref<1x16x16x32xbf16, #tpu.memory_space<vmem>>, vector<1x16x16x32xbf16>
    %1 = vector.shape_cast %0 : vector<1x16x16x32xbf16> to vector<16x16x32xbf16>
    %c0_3 = arith.constant 0 : index
    %c0_4 = arith.constant 0 : index
    %c0_5 = arith.constant 0 : index
    %c0_6 = arith.constant 0 : index
    %2 = vector.load %arg3[%c0_3, %c0_4, %c0_5, %c0_6] : memref<1x16x16x32xbf16, #tpu.memory_space<vmem>>, vector<1x16x16x32xbf16>
    %3 = vector.shape_cast %2 : vector<1x16x16x32xbf16> to vector<16x16x32xbf16>
    %cst = arith.constant 0.000000e+00 : bf16
    %4 = vector.broadcast %cst : bf16 to vector<2x16x32xbf16>
    %5 = tpu.concatenate %4, %3, %4 in 0 : vector<2x16x32xbf16>, vector<16x16x32xbf16>, vector<2x16x32xbf16> -> vector<20x16x32xbf16>
    %6 = vector.extract_strided_slice %5 {offsets = [0, 0, 0], sizes = [16, 16, 32], strides = [1, 1, 1]} : vector<20x16x32xbf16> to vector<16x16x32xbf16>
    %7 = vector.shape_cast %6 : vector<16x16x32xbf16> to vector<256x32xbf16>
    %c0_7 = arith.constant 0 : index
    %c0_8 = arith.constant 0 : index
    %c0_9 = arith.constant 0 : index
    %8 = vector.load %arg4[%c0_7, %c0_8, %c0_9] : memref<5x32x96xbf16, #tpu.memory_space<vmem>>, vector<1x32x96xbf16>
    %9 = vector.shape_cast %8 : vector<1x32x96xbf16> to vector<32x96xbf16>
    %cst_10 = arith.constant dense<0.000000e+00> : vector<256x96xf32>
    %10 = tpu.matmul %7, %9, %cst_10 {dimension_numbers = #tpu.dot_dimension_numbers<[1], [0], [0], [1], [0, 0, 1, 1], [], []>} : vector<256x32xbf16>, vector<32x96xbf16>, vector<256x96xf32> -> vector<256x96xf32>
    %11 = vector.extract_strided_slice %5 {offsets = [1, 0, 0], sizes = [16, 16, 32], strides = [1, 1, 1]} : vector<20x16x32xbf16> to vector<16x16x32xbf16>
    %12 = vector.shape_cast %11 : vector<16x16x32xbf16> to vector<256x32xbf16>
    %c1 = arith.constant 1 : index
    %c0_11 = arith.constant 0 : index
    %c0_12 = arith.constant 0 : index
    %13 = vector.load %arg4[%c1, %c0_11, %c0_12] : memref<5x32x96xbf16, #tpu.memory_space<vmem>>, vector<1x32x96xbf16>
    %14 = vector.shape_cast %13 : vector<1x32x96xbf16> to vector<32x96xbf16>
    %cst_13 = arith.constant dense<0.000000e+00> : vector<256x96xf32>
    %15 = tpu.matmul %12, %14, %cst_13 {dimension_numbers = #tpu.dot_dimension_numbers<[1], [0], [0], [1], [0, 0, 1, 1], [], []>} : vector<256x32xbf16>, vector<32x96xbf16>, vector<256x96xf32> -> vector<256x96xf32>
    %16 = arith.addf %10, %15 : vector<256x96xf32>
    %17 = vector.extract_strided_slice %5 {offsets = [2, 0, 0], sizes = [16, 16, 32], strides = [1, 1, 1]} : vector<20x16x32xbf16> to vector<16x16x32xbf16>
    %18 = vector.shape_cast %17 : vector<16x16x32xbf16> to vector<256x32xbf16>
    %c2 = arith.constant 2 : index
    %c0_14 = arith.constant 0 : index
    %c0_15 = arith.constant 0 : index
    %19 = vector.load %arg4[%c2, %c0_14, %c0_15] : memref<5x32x96xbf16, #tpu.memory_space<vmem>>, vector<1x32x96xbf16>
    %20 = vector.shape_cast %19 : vector<1x32x96xbf16> to vector<32x96xbf16>
    %cst_16 = arith.constant dense<0.000000e+00> : vector<256x96xf32>
    %21 = tpu.matmul %18, %20, %cst_16 {dimension_numbers = #tpu.dot_dimension_numbers<[1], [0], [0], [1], [0, 0, 1, 1], [], []>} : vector<256x32xbf16>, vector<32x96xbf16>, vector<256x96xf32> -> vector<256x96xf32>
    %22 = arith.addf %16, %21 : vector<256x96xf32>
    %23 = vector.extract_strided_slice %5 {offsets = [3, 0, 0], sizes = [16, 16, 32], strides = [1, 1, 1]} : vector<20x16x32xbf16> to vector<16x16x32xbf16>
    %24 = vector.shape_cast %23 : vector<16x16x32xbf16> to vector<256x32xbf16>
    %c3 = arith.constant 3 : index
    %c0_17 = arith.constant 0 : index
    %c0_18 = arith.constant 0 : index
    %25 = vector.load %arg4[%c3, %c0_17, %c0_18] : memref<5x32x96xbf16, #tpu.memory_space<vmem>>, vector<1x32x96xbf16>
    %26 = vector.shape_cast %25 : vector<1x32x96xbf16> to vector<32x96xbf16>
    %cst_19 = arith.constant dense<0.000000e+00> : vector<256x96xf32>
    %27 = tpu.matmul %24, %26, %cst_19 {dimension_numbers = #tpu.dot_dimension_numbers<[1], [0], [0], [1], [0, 0, 1, 1], [], []>} : vector<256x32xbf16>, vector<32x96xbf16>, vector<256x96xf32> -> vector<256x96xf32>
    %28 = arith.addf %22, %27 : vector<256x96xf32>
    %29 = vector.extract_strided_slice %5 {offsets = [4, 0, 0], sizes = [16, 16, 32], strides = [1, 1, 1]} : vector<20x16x32xbf16> to vector<16x16x32xbf16>
    %30 = vector.shape_cast %29 : vector<16x16x32xbf16> to vector<256x32xbf16>
    %c4 = arith.constant 4 : index
    %c0_20 = arith.constant 0 : index
    %c0_21 = arith.constant 0 : index
    %31 = vector.load %arg4[%c4, %c0_20, %c0_21] : memref<5x32x96xbf16, #tpu.memory_space<vmem>>, vector<1x32x96xbf16>
    %32 = vector.shape_cast %31 : vector<1x32x96xbf16> to vector<32x96xbf16>
    %cst_22 = arith.constant dense<0.000000e+00> : vector<256x96xf32>
    %33 = tpu.matmul %30, %32, %cst_22 {dimension_numbers = #tpu.dot_dimension_numbers<[1], [0], [0], [1], [0, 0, 1, 1], [], []>} : vector<256x32xbf16>, vector<32x96xbf16>, vector<256x96xf32> -> vector<256x96xf32>
    %34 = arith.addf %28, %33 : vector<256x96xf32>
    %35 = vector.shape_cast %34 : vector<256x96xf32> to vector<16x16x96xf32>
    %c0_23 = arith.constant 0 : index
    %c0_24 = arith.constant 0 : index
    %36 = vector.load %arg5[%c0_23, %c0_24] : memref<1x96xf32, #tpu.memory_space<vmem>>, vector<1x96xf32>
    %37 = vector.shape_cast %36 : vector<1x96xf32> to vector<1x1x96xf32>
    %38 = vector.broadcast %37 : vector<1x1x96xf32> to vector<16x16x96xf32>
    %39 = arith.addf %35, %38 : vector<16x16x96xf32>
    %cst_25 = arith.constant 0.000000e+00 : bf16
    %40 = vector.broadcast %cst_25 : bf16 to vector<2x16x32xbf16>
    %41 = tpu.concatenate %40, %1, %40 in 0 : vector<2x16x32xbf16>, vector<16x16x32xbf16>, vector<2x16x32xbf16> -> vector<20x16x32xbf16>
    %42 = vector.extract_strided_slice %41 {offsets = [0, 0, 0], sizes = [16, 16, 32], strides = [1, 1, 1]} : vector<20x16x32xbf16> to vector<16x16x32xbf16>
    %43 = vector.shape_cast %42 : vector<16x16x32xbf16> to vector<256x32xbf16>
    %c0_26 = arith.constant 0 : index
    %c0_27 = arith.constant 0 : index
    %c0_28 = arith.constant 0 : index
    %44 = vector.load %arg6[%c0_26, %c0_27, %c0_28] : memref<5x32x64xbf16, #tpu.memory_space<vmem>>, vector<1x32x64xbf16>
    %45 = vector.shape_cast %44 : vector<1x32x64xbf16> to vector<32x64xbf16>
    %cst_29 = arith.constant dense<0.000000e+00> : vector<256x64xf32>
    %46 = tpu.matmul %43, %45, %cst_29 {dimension_numbers = #tpu.dot_dimension_numbers<[1], [0], [0], [1], [0, 0, 1, 1], [], []>} : vector<256x32xbf16>, vector<32x64xbf16>, vector<256x64xf32> -> vector<256x64xf32>
    %47 = vector.extract_strided_slice %41 {offsets = [1, 0, 0], sizes = [16, 16, 32], strides = [1, 1, 1]} : vector<20x16x32xbf16> to vector<16x16x32xbf16>
    %48 = vector.shape_cast %47 : vector<16x16x32xbf16> to vector<256x32xbf16>
    %c1_30 = arith.constant 1 : index
    %c0_31 = arith.constant 0 : index
    %c0_32 = arith.constant 0 : index
    %49 = vector.load %arg6[%c1_30, %c0_31, %c0_32] : memref<5x32x64xbf16, #tpu.memory_space<vmem>>, vector<1x32x64xbf16>
    %50 = vector.shape_cast %49 : vector<1x32x64xbf16> to vector<32x64xbf16>
    %cst_33 = arith.constant dense<0.000000e+00> : vector<256x64xf32>
    %51 = tpu.matmul %48, %50, %cst_33 {dimension_numbers = #tpu.dot_dimension_numbers<[1], [0], [0], [1], [0, 0, 1, 1], [], []>} : vector<256x32xbf16>, vector<32x64xbf16>, vector<256x64xf32> -> vector<256x64xf32>
    %52 = arith.addf %46, %51 : vector<256x64xf32>
    %53 = vector.extract_strided_slice %41 {offsets = [2, 0, 0], sizes = [16, 16, 32], strides = [1, 1, 1]} : vector<20x16x32xbf16> to vector<16x16x32xbf16>
    %54 = vector.shape_cast %53 : vector<16x16x32xbf16> to vector<256x32xbf16>
    %c2_34 = arith.constant 2 : index
    %c0_35 = arith.constant 0 : index
    %c0_36 = arith.constant 0 : index
    %55 = vector.load %arg6[%c2_34, %c0_35, %c0_36] : memref<5x32x64xbf16, #tpu.memory_space<vmem>>, vector<1x32x64xbf16>
    %56 = vector.shape_cast %55 : vector<1x32x64xbf16> to vector<32x64xbf16>
    %cst_37 = arith.constant dense<0.000000e+00> : vector<256x64xf32>
    %57 = tpu.matmul %54, %56, %cst_37 {dimension_numbers = #tpu.dot_dimension_numbers<[1], [0], [0], [1], [0, 0, 1, 1], [], []>} : vector<256x32xbf16>, vector<32x64xbf16>, vector<256x64xf32> -> vector<256x64xf32>
    %58 = arith.addf %52, %57 : vector<256x64xf32>
    %59 = vector.extract_strided_slice %41 {offsets = [3, 0, 0], sizes = [16, 16, 32], strides = [1, 1, 1]} : vector<20x16x32xbf16> to vector<16x16x32xbf16>
    %60 = vector.shape_cast %59 : vector<16x16x32xbf16> to vector<256x32xbf16>
    %c3_38 = arith.constant 3 : index
    %c0_39 = arith.constant 0 : index
    %c0_40 = arith.constant 0 : index
    %61 = vector.load %arg6[%c3_38, %c0_39, %c0_40] : memref<5x32x64xbf16, #tpu.memory_space<vmem>>, vector<1x32x64xbf16>
    %62 = vector.shape_cast %61 : vector<1x32x64xbf16> to vector<32x64xbf16>
    %cst_41 = arith.constant dense<0.000000e+00> : vector<256x64xf32>
    %63 = tpu.matmul %60, %62, %cst_41 {dimension_numbers = #tpu.dot_dimension_numbers<[1], [0], [0], [1], [0, 0, 1, 1], [], []>} : vector<256x32xbf16>, vector<32x64xbf16>, vector<256x64xf32> -> vector<256x64xf32>
    %64 = arith.addf %58, %63 : vector<256x64xf32>
    %65 = vector.extract_strided_slice %41 {offsets = [4, 0, 0], sizes = [16, 16, 32], strides = [1, 1, 1]} : vector<20x16x32xbf16> to vector<16x16x32xbf16>
    %66 = vector.shape_cast %65 : vector<16x16x32xbf16> to vector<256x32xbf16>
    %c4_42 = arith.constant 4 : index
    %c0_43 = arith.constant 0 : index
    %c0_44 = arith.constant 0 : index
    %67 = vector.load %arg6[%c4_42, %c0_43, %c0_44] : memref<5x32x64xbf16, #tpu.memory_space<vmem>>, vector<1x32x64xbf16>
    %68 = vector.shape_cast %67 : vector<1x32x64xbf16> to vector<32x64xbf16>
    %cst_45 = arith.constant dense<0.000000e+00> : vector<256x64xf32>
    %69 = tpu.matmul %66, %68, %cst_45 {dimension_numbers = #tpu.dot_dimension_numbers<[1], [0], [0], [1], [0, 0, 1, 1], [], []>} : vector<256x32xbf16>, vector<32x64xbf16>, vector<256x64xf32> -> vector<256x64xf32>
    %70 = arith.addf %64, %69 : vector<256x64xf32>
    %71 = vector.shape_cast %70 : vector<256x64xf32> to vector<16x16x64xf32>
    %72 = vector.extract_strided_slice %39 {offsets = [0, 0, 0], sizes = [16, 16, 64], strides = [1, 1, 1]} : vector<16x16x96xf32> to vector<16x16x64xf32>
    %73 = arith.addf %71, %72 : vector<16x16x64xf32>
    %74 = arith.negf %73 : vector<16x16x64xf32>
    %75 = math.exp %74 : vector<16x16x64xf32>
    %cst_46 = arith.constant 1.000000e+00 : f32
    %76 = vector.broadcast %cst_46 : f32 to vector<16x16x64xf32>
    %77 = arith.addf %76, %75 : vector<16x16x64xf32>
    %78 = arith.divf %76, %77 : vector<16x16x64xf32>
    %79 = vector.extract_strided_slice %78 {offsets = [0, 0, 0], sizes = [16, 16, 32], strides = [1, 1, 1]} : vector<16x16x64xf32> to vector<16x16x32xf32>
    %80 = vector.extract_strided_slice %78 {offsets = [0, 0, 32], sizes = [16, 16, 32], strides = [1, 1, 1]} : vector<16x16x64xf32> to vector<16x16x32xf32>
    %81 = arith.extf %1 : vector<16x16x32xbf16> to vector<16x16x32xf32>
    %82 = arith.mulf %80, %81 : vector<16x16x32xf32>
    %83 = arith.truncf %82 : vector<16x16x32xf32> to vector<16x16x32xbf16>
    %cst_47 = arith.constant 0.000000e+00 : bf16
    %84 = vector.broadcast %cst_47 : bf16 to vector<2x16x32xbf16>
    %85 = tpu.concatenate %84, %83, %84 in 0 : vector<2x16x32xbf16>, vector<16x16x32xbf16>, vector<2x16x32xbf16> -> vector<20x16x32xbf16>
    %86 = vector.extract_strided_slice %85 {offsets = [0, 0, 0], sizes = [16, 16, 32], strides = [1, 1, 1]} : vector<20x16x32xbf16> to vector<16x16x32xbf16>
    %87 = vector.shape_cast %86 : vector<16x16x32xbf16> to vector<256x32xbf16>
    %c0_48 = arith.constant 0 : index
    %c0_49 = arith.constant 0 : index
    %c0_50 = arith.constant 0 : index
    %88 = vector.load %arg7[%c0_48, %c0_49, %c0_50] : memref<5x32x32xbf16, #tpu.memory_space<vmem>>, vector<1x32x32xbf16>
    %89 = vector.shape_cast %88 : vector<1x32x32xbf16> to vector<32x32xbf16>
    %cst_51 = arith.constant dense<0.000000e+00> : vector<256x32xf32>
    %90 = tpu.matmul %87, %89, %cst_51 {dimension_numbers = #tpu.dot_dimension_numbers<[1], [0], [0], [1], [0, 0, 1, 1], [], []>} : vector<256x32xbf16>, vector<32x32xbf16>, vector<256x32xf32> -> vector<256x32xf32>
    %91 = vector.extract_strided_slice %85 {offsets = [1, 0, 0], sizes = [16, 16, 32], strides = [1, 1, 1]} : vector<20x16x32xbf16> to vector<16x16x32xbf16>
    %92 = vector.shape_cast %91 : vector<16x16x32xbf16> to vector<256x32xbf16>
    %c1_52 = arith.constant 1 : index
    %c0_53 = arith.constant 0 : index
    %c0_54 = arith.constant 0 : index
    %93 = vector.load %arg7[%c1_52, %c0_53, %c0_54] : memref<5x32x32xbf16, #tpu.memory_space<vmem>>, vector<1x32x32xbf16>
    %94 = vector.shape_cast %93 : vector<1x32x32xbf16> to vector<32x32xbf16>
    %cst_55 = arith.constant dense<0.000000e+00> : vector<256x32xf32>
    %95 = tpu.matmul %92, %94, %cst_55 {dimension_numbers = #tpu.dot_dimension_numbers<[1], [0], [0], [1], [0, 0, 1, 1], [], []>} : vector<256x32xbf16>, vector<32x32xbf16>, vector<256x32xf32> -> vector<256x32xf32>
    %96 = arith.addf %90, %95 : vector<256x32xf32>
    %97 = vector.extract_strided_slice %85 {offsets = [2, 0, 0], sizes = [16, 16, 32], strides = [1, 1, 1]} : vector<20x16x32xbf16> to vector<16x16x32xbf16>
    %98 = vector.shape_cast %97 : vector<16x16x32xbf16> to vector<256x32xbf16>
    %c2_56 = arith.constant 2 : index
    %c0_57 = arith.constant 0 : index
    %c0_58 = arith.constant 0 : index
    %99 = vector.load %arg7[%c2_56, %c0_57, %c0_58] : memref<5x32x32xbf16, #tpu.memory_space<vmem>>, vector<1x32x32xbf16>
    %100 = vector.shape_cast %99 : vector<1x32x32xbf16> to vector<32x32xbf16>
    %cst_59 = arith.constant dense<0.000000e+00> : vector<256x32xf32>
    %101 = tpu.matmul %98, %100, %cst_59 {dimension_numbers = #tpu.dot_dimension_numbers<[1], [0], [0], [1], [0, 0, 1, 1], [], []>} : vector<256x32xbf16>, vector<32x32xbf16>, vector<256x32xf32> -> vector<256x32xf32>
    %102 = arith.addf %96, %101 : vector<256x32xf32>
    %103 = vector.extract_strided_slice %85 {offsets = [3, 0, 0], sizes = [16, 16, 32], strides = [1, 1, 1]} : vector<20x16x32xbf16> to vector<16x16x32xbf16>
    %104 = vector.shape_cast %103 : vector<16x16x32xbf16> to vector<256x32xbf16>
    %c3_60 = arith.constant 3 : index
    %c0_61 = arith.constant 0 : index
    %c0_62 = arith.constant 0 : index
    %105 = vector.load %arg7[%c3_60, %c0_61, %c0_62] : memref<5x32x32xbf16, #tpu.memory_space<vmem>>, vector<1x32x32xbf16>
    %106 = vector.shape_cast %105 : vector<1x32x32xbf16> to vector<32x32xbf16>
    %cst_63 = arith.constant dense<0.000000e+00> : vector<256x32xf32>
    %107 = tpu.matmul %104, %106, %cst_63 {dimension_numbers = #tpu.dot_dimension_numbers<[1], [0], [0], [1], [0, 0, 1, 1], [], []>} : vector<256x32xbf16>, vector<32x32xbf16>, vector<256x32xf32> -> vector<256x32xf32>
    %108 = arith.addf %102, %107 : vector<256x32xf32>
    %109 = vector.extract_strided_slice %85 {offsets = [4, 0, 0], sizes = [16, 16, 32], strides = [1, 1, 1]} : vector<20x16x32xbf16> to vector<16x16x32xbf16>
    %110 = vector.shape_cast %109 : vector<16x16x32xbf16> to vector<256x32xbf16>
    %c4_64 = arith.constant 4 : index
    %c0_65 = arith.constant 0 : index
    %c0_66 = arith.constant 0 : index
    %111 = vector.load %arg7[%c4_64, %c0_65, %c0_66] : memref<5x32x32xbf16, #tpu.memory_space<vmem>>, vector<1x32x32xbf16>
    %112 = vector.shape_cast %111 : vector<1x32x32xbf16> to vector<32x32xbf16>
    %cst_67 = arith.constant dense<0.000000e+00> : vector<256x32xf32>
    %113 = tpu.matmul %110, %112, %cst_67 {dimension_numbers = #tpu.dot_dimension_numbers<[1], [0], [0], [1], [0, 0, 1, 1], [], []>} : vector<256x32xbf16>, vector<32x32xbf16>, vector<256x32xf32> -> vector<256x32xf32>
    %114 = arith.addf %108, %113 : vector<256x32xf32>
    %115 = vector.shape_cast %114 : vector<256x32xf32> to vector<16x16x32xf32>
    %116 = vector.extract_strided_slice %39 {offsets = [0, 0, 64], sizes = [16, 16, 32], strides = [1, 1, 1]} : vector<16x16x96xf32> to vector<16x16x32xf32>
    %117 = arith.addf %115, %116 : vector<16x16x32xf32>
    %118 = math.tanh %117 : vector<16x16x32xf32>
    %cst_68 = arith.constant 1.000000e+00 : f32
    %119 = vector.broadcast %cst_68 : f32 to vector<16x16x32xf32>
    %120 = arith.subf %119, %79 : vector<16x16x32xf32>
    %121 = arith.mulf %120, %81 : vector<16x16x32xf32>
    %122 = arith.mulf %79, %118 : vector<16x16x32xf32>
    %123 = arith.addf %121, %122 : vector<16x16x32xf32>
    %124 = vector.shape_cast %123 : vector<16x16x32xf32> to vector<1x16x16x32xf32>
    %c0_69 = arith.constant 0 : index
    %c0_70 = arith.constant 0 : index
    %c0_71 = arith.constant 0 : index
    %c0_72 = arith.constant 0 : index
    %125 = vector.load %arg8[%c0_69, %c0_70, %c0_71, %c0_72] : memref<1x16x16x32xf32, #tpu.memory_space<vmem>>, vector<1x16x16x32xf32>
    tpu.vector_store %arg8[%c0_69, %c0_70, %c0_71, %c0_72], %124 {strides = array<i32>} : memref<1x16x16x32xf32, #tpu.memory_space<vmem>>, vector<1x16x16x32xf32>,
    return
  }
  func.func @transform_0(%arg0: i32, %arg1: i32) -> (i32, i32, i32, i32) {
    %c0_i32 = arith.constant 0 : i32
    %c0_i32_0 = arith.constant 0 : i32
    %c0_i32_1 = arith.constant 0 : i32
    return %arg0, %c0_i32, %arg1, %c0_i32_0 : i32, i32, i32, i32
  }
  func.func @transform_1(%arg0: i32, %arg1: i32) -> (i32, i32, i32, i32) {
    %c0_i32 = arith.constant 0 : i32
    %c0_i32_0 = arith.constant 0 : i32
    %c0_i32_1 = arith.constant 0 : i32
    return %arg0, %c0_i32, %arg1, %c0_i32_0 : i32, i32, i32, i32
  }
  func.func @transform_2(%arg0: i32, %arg1: i32) -> (i32, i32, i32) {
    %c0_i32 = arith.constant 0 : i32
    %c0_i32_0 = arith.constant 0 : i32
    %c0_i32_1 = arith.constant 0 : i32
    %c0_i32_2 = arith.constant 0 : i32
    return %c0_i32, %c0_i32_0, %c0_i32_1 : i32, i32, i32
  }
  func.func @transform_3(%arg0: i32, %arg1: i32) -> (i32, i32) {
    %c0_i32 = arith.constant 0 : i32
    %c0_i32_0 = arith.constant 0 : i32
    %c0_i32_1 = arith.constant 0 : i32
    return %c0_i32, %c0_i32_0 : i32, i32
  }
  func.func @transform_4(%arg0: i32, %arg1: i32) -> (i32, i32, i32) {
    %c0_i32 = arith.constant 0 : i32
    %c0_i32_0 = arith.constant 0 : i32
    %c0_i32_1 = arith.constant 0 : i32
    %c0_i32_2 = arith.constant 0 : i32
    return %c0_i32, %c0_i32_0, %c0_i32_1 : i32, i32, i32
  }
  func.func @transform_5(%arg0: i32, %arg1: i32) -> (i32, i32, i32) {
    %c0_i32 = arith.constant 0 : i32
    %c0_i32_0 = arith.constant 0 : i32
    %c0_i32_1 = arith.constant 0 : i32
    %c0_i32_2 = arith.constant 0 : i32
    return %c0_i32, %c0_i32_0, %c0_i32_1 : i32, i32, i32
  }
  func.func @transform_6(%arg0: i32, %arg1: i32) -> (i32, i32, i32, i32) {
    %c0_i32 = arith.constant 0 : i32
    %c0_i32_0 = arith.constant 0 : i32
    %c0_i32_1 = arith.constant 0 : i32
    return %arg0, %c0_i32, %arg1, %c0_i32_0 : i32, i32, i32, i32
  }
}

</mosaic_0001>

<bundles_post_ra>
// kernel: sepconv_gru_forward.3
= control target key start
LH: loop header
LB: loop body
LE: loop exit
PB: predicated region body
PF: predicated region fallthrough
CT: control target
= control target key end

     0   :  { %s6652_s21 = smov 0   ;;  %s6654_s22 = smov 0   ;;  %s8128_s0 = inlined_call_operand.vmem [shape: bf16[2,16,16,32], index: 0, kind: input, shape index: {}]   ;;  %s8129_s1 = inlined_call_operand.vmem [shape: bf16[2,16,16,32], index: 1, kind: input, shape index: {}]   ;;  %s8130_s2 = inlined_call_operand.vmem [shape: bf16[5,32,96], index: 2, kind: input, shape index: {}]   ;;  %s8131_s3 = inlined_call_operand.vmem [shape: f32[1,96], index: 3, kind: input, shape index: {}]   ;;  %s8132_s4 = inlined_call_operand.vmem [shape: bf16[5,32,64], index: 4, kind: input, shape index: {}]   ;;  %s8133_s5 = inlined_call_operand.vmem [shape: bf16[5,32,32], index: 5, kind: input, shape index: {}]   ;;  %s8134_s6 = inlined_call_operand.vmem [shape: f32[2,16,16,32], index: 6, kind: output, shape index: {}]  }
   0x1   :  { %s6656_s23 = smov 0  }
   0x2 LB: > { %s28_s24 = sadd.s32 1, %s6607_s22  ;;  %p4635_p0 = scmp.ge.s32.totalorder %s6611_s23, 1  ;;  %s6611_s23 = sphi %s6656_s23, %s16_s23   ;;  %s6607_s22 = sphi %s6654_s22, %s8323_s22   ;;  %s6603_s21 = sphi %s6652_s21, %s8322_s21  }
   0x3   : > { %p30_p1 = scmp.ge.s32.totalorder %s28_s24, 2  ;;  %p250_p2 = scmp.lt.s32.totalorder %s6611_s23, 3 }
   0x5   : > { %s8325_s24 = smov (%p30_p1, %s28_s24), 0  ;;  %p251_p3 = pnand %p4635_p0, %p250_p2 }
   0x7   : > { %254 = sbr.rel (%p251_p3) target bundleno = 1349 (0x545), region = 44 }
   0xe   : > { %v6318_v0 = vld [vmem:[%s8130_s2 + $0x10] sm:$0xff]   ;;  %v6676_v1 = vld [vmem:[%s8130_s2 + $0x20] sm:$0xff]   ;;  %v8165_v2 = vmov 0   ;;  %p298_p4 = scmp.lt.s32.totalorder %s6603_s21, 1  ;;  %v6320_v3 = vld [vmem:[%s8130_s2 + $0x18] sm:$0xff]   ;;  %vm493_vm0 = vcmask 261120  }
   0xf   : > { %5286 = vmatprep.mubr.bf16.mxu1 %v8165_v2  ;;  %5282 = vmatprep.subr.bf16.mxu1 %v6318_v0  ;;  %v6686_v4 = vld [vmem:[%s8130_s2 + $0x28] sm:$0xff]   ;;  %v6323_v5 = vld [vmem:[%s8130_s2] sm:$0xff]   ;;  %v6331_v6 = vld [vmem:[%s8130_s2 + $0x30] sm:$0xff]   ;;  %s6614_s30 = smov 32   ;;  %s6615_s18 = smov 96  }
  0x10   : > { %5354 = vmatprep.subr.bf16.mxu0 %v6676_v1  ;;  %5283 = vmatpush3.bf16.msra.mxu1 %v6318_v0  ;;  %s8327_s21 = smov (!%p298_p4, %s6603_s21), 1  ;;  %v6332_v11 = vld [vmem:[%s8130_s2 + $0x38] sm:$0xff]   ;;  %v6334_v13 = vld [vmem:[%s8130_s2 + $0x8] sm:$0xff]   ;;  %v6342_v16 = vld [vmem:[%s8130_s2 + $0x40] sm:$0xff]  }
  0x11   : > { %5355 = vmatpush3.bf16.msra.mxu0 %v6676_v1  ;;  %5284 = vmatprep.subr.bf16.mxu1 %v6320_v3  ;;  %s5009_s11 = sshll.u32 %s8327_s21, 7  ;;  %v6343_v20 = vld [vmem:[%s8130_s2 + $0x48] sm:$0xff]   ;;  %v6344_v26 = vld [vmem:[%s8132_s4 + $0x10] sm:$0xff]   ;;  %v6345_v28 = vld [vmem:[%s8132_s4 + $0x18] sm:$0xff]  }
  0x12   : > { %5356 = vmatprep.subr.bf16.mxu0 %v6686_v4  ;;  %s6701_s14 = scalar_lea.vmem %s8129_s1, %s5009_s11  ;;  %v6347_v29 = vld [vmem:[%s8132_s4] sm:$0xff]   ;;  %v6356_v32 = vld [vmem:[%s8132_s4 + $0x8] sm:$0xff]   ;;  %v6365_v48 = vld [vmem:[%s8132_s4 + $0x30] sm:$0xff]  }
  0x13   : > { %v6707_v7 = vld [vmem:[%s6701_s14] sm:$0xff]   ;;  %v6711_v8 = vld [vmem:[%s6701_s14 + $0x8] sm:$0xff]   ;;  %v6716_v9 = vld [vmem:[%s6701_s14 + $0x10] sm:$0xff]  }
  0x14   : > { %5285 = vmatpush3.bf16.msra.mxu1 %v6320_v3  ;;  %5358 = vmatprep.mubr.msk.bf16.mxu0 %vm493_vm0, %v6707_v7  ;;  %v6727_v10 = vld [vmem:[%s6701_s14 + $0x18] sm:$0xff]   ;;  %v6733_v12 = vld [vmem:[%s6701_s14 + $0x20] sm:$0xff]   ;;  %v6748_v14 = vld [vmem:[%s6701_s14 + $0x28] sm:$0xff]  }
  0x15   : > { %5357 = vmatpush3.bf16.msra.mxu0 %v6686_v4  ;;  %5318 = vmatprep.subr.bf16.mxu1 %v6323_v5  ;;  %v6751_v15 = vld [vmem:[%s6701_s14 + $0x30] sm:$0xff]   ;;  %v6765_v17 = vld [vmem:[%s6701_s14 + $0x38] sm:$0xff]   ;;  %v6776_v18 = vld [vmem:[%s6701_s14 + $0x40] sm:$0xff]  }
  0x16   : > { %5390 = vmatprep.subr.bf16.mxu0 %v6331_v6  ;;  %v6779_v19 = vld [vmem:[%s6701_s14 + $0x48] sm:$0xff]   ;;  %v6336_v21 = vld [vmem:[%s6701_s14 + $0x50] sm:$0xff]   ;;  %v6794_v22 = vld [vmem:[%s6701_s14 + $0x58] sm:$0xff]  }
  0x17   : > { %5287 = vmatmul.mubr.msk.bf16.vlgmr.msra.gmra.mrb[0].mxu1 %vm493_vm0, %v6707_v7  ;;  %v6338_v23 = vld [vmem:[%s6701_s14 + $0x60] sm:$0xff]   ;;  %v6339_v24 = vld [vmem:[%s6701_s14 + $0x68] sm:$0xff]   ;;  %v6340_v25 = vld [vmem:[%s6701_s14 + $0x70] sm:$0xff]  }
  0x18   : > { %5359 = vmatmul.mubr.msk.bf16.vlgmr.msra.gmra.mrb[0].mxu0 %vm493_vm0, %v6711_v8  ;;  %5319 = vmatpush3.bf16.msra.mxu1 %v6323_v5  ;;  %v6341_v27 = vld [vmem:[%s6701_s14 + $0x78] sm:$0xff]   ;;  %s6904_s14 = scalar_lea.vmem %s8128_s0, %s5009_s11  ;;  %v6363_v35 = vld [vmem:[%s8132_s4 + $0x20] sm:$0xff]   ;;  %v6364_v47 = vld [vmem:[%s8132_s4 + $0x28] sm:$0xff]   ;;  %s5011_s11 = sshll.u32 %s8327_s21, 8 }
  0x19   : > { %5290 = vmatprep.mubr.msk.bf16.mxu1 %vm493_vm0, %v6711_v8  ;;  %5362 = vmatprep.mubr.msk.bf16.mxu0 %vm493_vm0, %v6716_v9  ;;  %v6910_v30 = vld [vmem:[%s6904_s14] sm:$0xff]   ;;  %v6913_v31 = vld [vmem:[%s6904_s14 + $0x8] sm:$0xff]   ;;  %v6924_v33 = vld [vmem:[%s6904_s14 + $0x10] sm:$0xff]   ;;  %s7907_s16 = scalar_lea.vmem %s8134_s6, %s5011_s11 }
  0x1a   : > { %5391 = vmatpush3.bf16.msra.mxu0 %v6331_v6  ;;  %5320 = vmatprep.subr.bf16.mxu1 %v6334_v13  ;;  %8229 = vst [vmem:[#allocation2_spill] sm:$0xff] %v6910_v30  ;;  %8230 = vst [vmem:[#allocation3_spill] sm:$0xff] %v6913_v31  ;;  %v6927_v34 = vld [vmem:[%s6904_s14 + $0x18] sm:$0xff]   ;;  %v6937_v36 = vld [vmem:[%s6904_s14 + $0x20] sm:$0xff]  }
  0x1b   : > { %5392 = vmatprep.subr.bf16.mxu0 %v6332_v11  ;;  %8231 = vst [vmem:[#allocation4_spill] sm:$0xff] %v6924_v33  ;;  %8232 = vst [vmem:[#allocation5_spill] sm:$0xff] %v6927_v34  ;;  %v6940_v37 = vld [vmem:[%s6904_s14 + $0x28] sm:$0xff]   ;;  %v6947_v38 = vld [vmem:[%s6904_s14 + $0x30] sm:$0xff]  }
  0x1c   : > { %5321 = vmatpush3.bf16.msra.mxu1 %v6334_v13  ;;  %8233 = vst [vmem:[#allocation6_spill] sm:$0xff] %v6937_v36  ;;  %8234 = vst [vmem:[#allocation7_spill] sm:$0xff] %v6940_v37  ;;  %v6950_v39 = vld [vmem:[%s6904_s14 + $0x38] sm:$0xff]   ;;  %v6957_v40 = vld [vmem:[%s6904_s14 + $0x40] sm:$0xff]  }
  0x1d   : > { %5822 = vmatprep.subr.bf16.mxu1 %v6676_v1  ;;  %8235 = vst [vmem:[#allocation8_spill] sm:$0xff] %v6947_v38  ;;  %8236 = vst [vmem:[#allocation9_spill] sm:$0xff] %v6950_v39  ;;  %v6960_v41 = vld [vmem:[%s6904_s14 + $0x48] sm:$0xff]   ;;  %v6967_v42 = vld [vmem:[%s6904_s14 + $0x50] sm:$0xff]  }
  0x1e   : > { %5393 = vmatpush3.bf16.msra.mxu0 %v6332_v11  ;;  %8237 = vst [vmem:[#allocation10_spill] sm:$0xff] %v6957_v40  ;;  %8238 = vst [vmem:[#allocation11_spill] sm:$0xff] %v6960_v41  ;;  %v6970_v43 = vld [vmem:[%s6904_s14 + $0x58] sm:$0xff]   ;;  %v6977_v44 = vld [vmem:[%s6904_s14 + $0x60] sm:$0xff]  }
  0x1f   : > { %5291 = vmatmul.mubr.msk.bf16.gmra.mrb[4].mxu1 %vm493_vm0, %v6716_v9  ;;  %5426 = vmatprep.subr.bf16.mxu0 %v6342_v16  ;;  %8239 = vst [vmem:[#allocation12_spill] sm:$0xff] %v6967_v42  ;;  %8240 = vst [vmem:[#allocation13_spill] sm:$0xff] %v6970_v43  ;;  %v6980_v45 = vld [vmem:[%s6904_s14 + $0x68] sm:$0xff]   ;;  %v6987_v46 = vld [vmem:[%s6904_s14 + $0x70] sm:$0xff]  }
  0x20   : > { %5363 = vmatmul.mubr.msk.bf16.gmra.mrb[4].mxu0 %vm493_vm0, %v6727_v10  ;;  %5294 = vmatprep.mubr.msk.bf16.mxu1 %vm493_vm0, %v6727_v10  ;;  %8241 = vst [vmem:[#allocation14_spill] sm:$0xff] %v6977_v44  ;;  %8242 = vst [vmem:[#allocation15_spill] sm:$0xff] %v6980_v45  ;;  %v6366_v57 = vld [vmem:[%s8132_s4 + $0x38] sm:$0xff]   ;;  %v7039_v58 = vld [vmem:[%s8132_s4 + $0x40] sm:$0xff]  }
  0x21   : > { %5366 = vmatprep.mubr.msk.bf16.mxu0 %vm493_vm0, %v6733_v12  ;;  %8243 = vst [vmem:[#allocation16_spill] sm:$0xff] %v6987_v46 }
  0x27   : > { %5295 = vmatmul.mubr.msk.bf16.gmra.mrb[8].mxu1 %vm493_vm0, %v6733_v12 }
  0x28   : > { %5367 = vmatmul.mubr.msk.bf16.gmra.mrb[8].mxu0 %vm493_vm0, %v6748_v14  ;;  %5298 = vmatprep.mubr.msk.bf16.mxu1 %vm493_vm0, %v6748_v14 }
  0x29   : > { %5370 = vmatprep.mubr.msk.bf16.mxu0 %vm493_vm0, %v6751_v15 }
  0x2f   : > { %5299 = vmatmul.mubr.msk.bf16.gmra.mrb[12].mxu1 %vm493_vm0, %v6751_v15 }
  0x30   : > { %5371 = vmatmul.mubr.msk.bf16.gmra.mrb[12].mxu0 %vm493_vm0, %v6765_v17  ;;  %5302 = vmatprep.mubr.msk.bf16.mxu1 %vm493_vm0, %v6765_v17 }
  0x31   : > { %5394 = vmatprep.mubr.msk.bf16.mxu0 %vm493_vm0, %v6711_v8 }
  0x37   : > { %5303 = vmatmul.mubr.msk.bf16.gmra.mrb[16].mxu1 %vm493_vm0, %v6776_v18 }
  0x38   : > { %5395 = vmatmul.mubr.msk.bf16.vlgmr.msra.gmra.mrb[0].mxu0 %vm493_vm0, %v6716_v9  ;;  %5306 = vmatprep.mubr.msk.bf16.mxu1 %vm493_vm0, %v6779_v19 }
  0x39   : > { %5398 = vmatprep.mubr.msk.bf16.mxu0 %vm493_vm0, %v6727_v10  ;;  %5427 = vmatpush3.bf16.msra.mxu0 %v6342_v16 }
  0x3a   : > { %5428 = vmatprep.subr.bf16.mxu0 %v6343_v20 }
  0x3d   : > { %5429 = vmatpush3.bf16.msra.mxu0 %v6343_v20 }
  0x3f   : > { %5307 = vmatmul.mubr.msk.bf16.gmra.mrb[20].mxu1 %vm493_vm0, %v6336_v21 }
  0x40   : > { %5399 = vmatmul.mubr.msk.bf16.gmra.mrb[4].mxu0 %vm493_vm0, %v6733_v12  ;;  %5310 = vmatprep.mubr.msk.bf16.mxu1 %vm493_vm0, %v6794_v22 }
  0x41   : > { %5402 = vmatprep.mubr.msk.bf16.mxu0 %vm493_vm0, %v6748_v14 }
  0x47   : > { %5311 = vmatmul.mubr.msk.bf16.gmra.mrb[24].mxu1 %vm493_vm0, %v6338_v23 }
  0x48   : > { %5403 = vmatmul.mubr.msk.bf16.gmra.mrb[8].mxu0 %vm493_vm0, %v6751_v15  ;;  %5314 = vmatprep.mubr.msk.bf16.mxu1 %vm493_vm0, %v6339_v24 }
  0x49   : > { %5406 = vmatprep.mubr.msk.bf16.mxu0 %vm493_vm0, %v6765_v17 }
  0x4f   : > { %5315 = vmatmul.mubr.msk.bf16.gmra.mrb[28].mxu1 %vm493_vm0, %v6340_v25 }
  0x50   : > { %5407 = vmatmul.mubr.msk.bf16.gmra.mrb[12].mxu0 %vm493_vm0, %v6776_v18  ;;  %5322 = vmatprep.mubr.bf16.mxu1 %v8165_v2 }
  0x51   : > { %5410 = vmatprep.mubr.msk.bf16.mxu0 %vm493_vm0, %v6779_v19 }
  0x57   : > { %5323 = vmatmul.mubr.bf16.vlgmr.msra.gmra.mrb[0].mxu1 %v8165_v2 }
  0x58   : > { %5411 = vmatmul.mubr.msk.bf16.gmra.mrb[16].mxu0 %vm493_vm0, %v6336_v21  ;;  %5824 = vmatpush3.bf16.msra.mxu1 %v6676_v1 }
  0x59   : > { %5326 = vmatprep.mubr.msk.bf16.mxu1 %vm493_vm0, %v6707_v7  ;;  %5414 = vmatprep.mubr.msk.bf16.mxu0 %vm493_vm0, %v6794_v22 }
  0x5a   : > { %5823 = vmatprep.subr.bf16.mxu1 %v6686_v4 }
  0x5c   : > { %5825 = vmatpush3.bf16.msra.mxu1 %v6686_v4 }
  0x5d   : > { %5462 = vmatprep.subr.bf16.mxu1 %v6344_v26 }
  0x5f   : > { %5327 = vmatmul.mubr.msk.bf16.gmra.mrb[4].mxu1 %vm493_vm0, %v6711_v8 }
  0x60   : > { %5415 = vmatmul.mubr.msk.bf16.gmra.mrb[20].mxu0 %vm493_vm0, %v6338_v23  ;;  %5330 = vmatprep.mubr.msk.bf16.mxu1 %vm493_vm0, %v6716_v9 }
  0x61   : > { %5418 = vmatprep.mubr.msk.bf16.mxu0 %vm493_vm0, %v6339_v24 }
  0x67   : > { %5331 = vmatmul.mubr.msk.bf16.gmra.mrb[8].mxu1 %vm493_vm0, %v6727_v10 }
  0x68   : > { %5419 = vmatmul.mubr.msk.bf16.gmra.mrb[24].mxu0 %vm493_vm0, %v6340_v25  ;;  %5334 = vmatprep.mubr.msk.bf16.mxu1 %vm493_vm0, %v6733_v12 }
  0x69   : > { %5422 = vmatprep.mubr.msk.bf16.mxu0 %vm493_vm0, %v6341_v27 }
  0x6f   : > { %5335 = vmatmul.mubr.msk.bf16.gmra.mrb[12].mxu1 %vm493_vm0, %v6748_v14 }
  0x70   : > { %5423 = vmatmul.mubr.bf16.gmra.mrb[28].mxu0 %v8165_v2  ;;  %5338 = vmatprep.mubr.msk.bf16.mxu1 %vm493_vm0, %v6751_v15 }
  0x71   : > { %5430 = vmatprep.mubr.msk.bf16.mxu0 %vm493_vm0, %v6716_v9 }
  0x77   : > { %5339 = vmatmul.mubr.msk.bf16.gmra.mrb[16].mxu1 %vm493_vm0, %v6765_v17 }
  0x78   : > { %5431 = vmatmul.mubr.msk.bf16.vlgmr.msra.gmra.mrb[0].mxu0 %vm493_vm0, %v6727_v10  ;;  %5342 = vmatprep.mubr.msk.bf16.mxu1 %vm493_vm0, %v6776_v18 }
  0x79   : > { %5434 = vmatprep.mubr.msk.bf16.mxu0 %vm493_vm0, %v6733_v12 }
  0x7f   : > { %5343 = vmatmul.mubr.msk.bf16.gmra.mrb[20].mxu1 %vm493_vm0, %v6779_v19 }
  0x80   : > { %5435 = vmatmul.mubr.msk.bf16.gmra.mrb[4].mxu0 %vm493_vm0, %v6748_v14  ;;  %5346 = vmatprep.mubr.msk.bf16.mxu1 %vm493_vm0, %v6336_v21 }
  0x81   : > { %5438 = vmatprep.mubr.msk.bf16.mxu0 %vm493_vm0, %v6751_v15 }
  0x87   : > { %5347 = vmatmul.mubr.msk.bf16.gmra.mrb[24].mxu1 %vm493_vm0, %v6794_v22 }
  0x88   : > { %5439 = vmatmul.mubr.msk.bf16.gmra.mrb[8].mxu0 %vm493_vm0, %v6765_v17  ;;  %5350 = vmatprep.mubr.msk.bf16.mxu1 %vm493_vm0, %v6338_v23 }
  0x89   : > { %5442 = vmatprep.mubr.msk.bf16.mxu0 %vm493_vm0, %v6776_v18 }
  0x8f   : > { %5351 = vmatmul.mubr.msk.bf16.gmra.mrb[28].mxu1 %vm493_vm0, %v6339_v24 }
  0x90   : > { %5443 = vmatmul.mubr.msk.bf16.gmra.mrb[12].mxu0 %vm493_vm0, %v6779_v19  ;;  %5374 = vmatprep.mubr.msk.bf16.mxu1 %vm493_vm0, %v6776_v18 }
  0x91   : > { %5446 = vmatprep.mubr.msk.bf16.mxu0 %vm493_vm0, %v6336_v21 }
  0x97   : > { %5375 = vmatmul.mubr.msk.bf16.vlgmr.msra.gmra.mrb[16].mxu1 %vm493_vm0, %v6779_v19 }
  0x98   : > { %5447 = vmatmul.mubr.msk.bf16.gmra.mrb[16].mxu0 %vm493_vm0, %v6794_v22  ;;  %5463 = vmatpush3.bf16.msra.mxu1 %v6344_v26 }
  0x99   : > { %5378 = vmatprep.mubr.msk.bf16.mxu1 %vm493_vm0, %v6336_v21  ;;  %5450 = vmatprep.mubr.msk.bf16.mxu0 %vm493_vm0, %v6338_v23 }
  0x9a   : > { %5464 = vmatprep.subr.bf16.mxu1 %v6345_v28 }
  0x9c   : > { %5465 = vmatpush3.bf16.msra.mxu1 %v6345_v28 }
  0x9d   : > { %5498 = vmatprep.subr.bf16.mxu1 %v6347_v29 }
  0x9f   : > { %5379 = vmatmul.mubr.msk.bf16.gmra.mrb[20].mxu1 %vm493_vm0, %v6794_v22 }
  0xa0   : > { %5451 = vmatmul.mubr.msk.bf16.gmra.mrb[20].mxu0 %vm493_vm0, %v6339_v24  ;;  %5382 = vmatprep.mubr.msk.bf16.mxu1 %vm493_vm0, %v6338_v23 }
  0xa1   : > { %5454 = vmatprep.mubr.msk.bf16.mxu0 %vm493_vm0, %v6340_v25 }
  0xa7   : > { %5383 = vmatmul.mubr.msk.bf16.gmra.mrb[24].mxu1 %vm493_vm0, %v6339_v24 }
  0xa8   : > { %5455 = vmatmul.mubr.msk.bf16.gmra.mrb[24].mxu0 %vm493_vm0, %v6341_v27  ;;  %5386 = vmatprep.mubr.msk.bf16.mxu1 %vm493_vm0, %v6340_v25 }
  0xa9   : > { %5458 = vmatprep.mubr.bf16.mxu0 %v8165_v2 }
  0xaf   : > { %5387 = vmatmul.mubr.msk.bf16.gmra.mrb[28].mxu1 %vm493_vm0, %v6341_v27 }
  0xb0   : > { %5459 = vmatmul.mubr.bf16.gmra.mrb[28].mxu0 %v8165_v2  ;;  %5466 = vmatprep.mubr.bf16.mxu1 %v8165_v2 }
  0xb1   : > { %5646 = vmatprep.mubr.bf16.mxu0 %v8165_v2 }
  0xb7   : > { %5467 = vmatmul.mubr.msk.bf16.vlgmr.msra.gmra.mrb[32].mxu1 %vm493_vm0, %v6910_v30 }
  0xb8   : > { %5499 = vmatpush3.bf16.msra.mxu1 %v6347_v29  ;;  %5470 = vmatprep.mubr.msk.bf16.mxu1 %vm493_vm0, %v6913_v31 }
  0xb9   : > { %5500 = vmatprep.subr.bf16.mxu1 %v6356_v32 }
  0xbc   : > { %5501 = vmatpush3.bf16.msra.mxu1 %v6356_v32 }
  0xbd   : > { %5534 = vmatprep.subr.bf16.mxu1 %v6363_v35 }
  0xbf   : > { %5471 = vmatmul.mubr.msk.bf16.gmra.mrb[36].mxu1 %vm493_vm0, %v6924_v33 }
  0xc0   : > { %5474 = vmatprep.mubr.msk.bf16.mxu1 %vm493_vm0, %v6927_v34 }
  0xc7   : > { %5475 = vmatmul.mubr.msk.bf16.gmra.mrb[40].mxu1 %vm493_vm0, %v6937_v36 }
  0xc8   : > { %5478 = vmatprep.mubr.msk.bf16.mxu1 %vm493_vm0, %v6940_v37 }
  0xcf   : > { %5479 = vmatmul.mubr.msk.bf16.gmra.mrb[44].mxu1 %vm493_vm0, %v6947_v38 }
  0xd0   : > { %5482 = vmatprep.mubr.msk.bf16.mxu1 %vm493_vm0, %v6950_v39 }
  0xd7   : > { %5483 = vmatmul.mubr.msk.bf16.gmra.mrb[48].mxu1 %vm493_vm0, %v6957_v40 }
  0xd8   : > { %5486 = vmatprep.mubr.msk.bf16.mxu1 %vm493_vm0, %v6960_v41 }
  0xdf   : > { %5487 = vmatmul.mubr.msk.bf16.gmra.mrb[52].mxu1 %vm493_vm0, %v6967_v42 }
  0xe0   : > { %5490 = vmatprep.mubr.msk.bf16.mxu1 %vm493_vm0, %v6970_v43 }
  0xe7   : > { %5491 = vmatmul.mubr.msk.bf16.gmra.mrb[56].mxu1 %vm493_vm0, %v6977_v44 }
  0xe8   : > { %5494 = vmatprep.mubr.msk.bf16.mxu1 %vm493_vm0, %v6980_v45 }
  0xef   : > { %5495 = vmatmul.mubr.msk.bf16.gmra.mrb[60].mxu1 %vm493_vm0, %v6987_v46 }
  0xf0   : > { %5502 = vmatprep.mubr.bf16.mxu1 %v8165_v2 }
  0xf7   : > { %5503 = vmatmul.mubr.bf16.vlgmr.msra.gmra.mrb[32].mxu1 %v8165_v2 }
  0xf8   : > { %5535 = vmatpush3.bf16.msra.mxu1 %v6363_v35  ;;  %5506 = vmatprep.mubr.msk.bf16.mxu1 %vm493_vm0, %v6910_v30 }
  0xf9   : > { %5536 = vmatprep.subr.bf16.mxu1 %v6364_v47 }
  0xfc   : > { %5537 = vmatpush3.bf16.msra.mxu1 %v6364_v47 }
  0xfd   : > { %5570 = vmatprep.subr.bf16.mxu1 %v6365_v48 }
  0xff   : > { %5507 = vmatmul.mubr.msk.bf16.gmra.mrb[36].mxu1 %vm493_vm0, %v6913_v31 }
 0x100   : > { %5510 = vmatprep.mubr.msk.bf16.mxu1 %vm493_vm0, %v6924_v33 }
 0x107   : > { %5511 = vmatmul.mubr.msk.bf16.gmra.mrb[40].mxu1 %vm493_vm0, %v6927_v34 }
 0x108   : > { %5514 = vmatprep.mubr.msk.bf16.mxu1 %vm493_vm0, %v6937_v36 }
 0x10f   : > { %5515 = vmatmul.mubr.msk.bf16.gmra.mrb[44].mxu1 %vm493_vm0, %v6940_v37 }
 0x110   : > { %5518 = vmatprep.mubr.msk.bf16.mxu1 %vm493_vm0, %v6947_v38 }
 0x117   : > { %5519 = vmatmul.mubr.msk.bf16.gmra.mrb[48].mxu1 %vm493_vm0, %v6950_v39 }
 0x118   : > { %5522 = vmatprep.mubr.msk.bf16.mxu1 %vm493_vm0, %v6957_v40 }
 0x11f   : > { %5523 = vmatmul.mubr.msk.bf16.gmra.mrb[52].mxu1 %vm493_vm0, %v6960_v41 }
 0x120   : > { %5526 = vmatprep.mubr.msk.bf16.mxu1 %vm493_vm0, %v6967_v42 }
 0x127   : > { %5527 = vmatmul.mubr.msk.bf16.gmra.mrb[56].mxu1 %vm493_vm0, %v6970_v43 }
 0x128   : > { %5530 = vmatprep.mubr.msk.bf16.mxu1 %vm493_vm0, %v6977_v44 }
 0x12a   : > { %v5324_v49 = vpop.f32.mrb[0].mxu1 }
 0x12b   : > { %v749_v50 = vpop.f32.mrb[1].mxu1 }
 0x12c   : > { %v5325_v51 = vpop.f32.mrb[2].mxu1 }
 0x12d   : > { %v752_v52 = vpop.f32.mrb[3].mxu1 }
 0x12f   : > { %5531 = vmatmul.mubr.msk.bf16.gmra.mrb[60].mxu1 %vm493_vm0, %v6980_v45 }
 0x130   : > { %5538 = vmatprep.mubr.msk.bf16.mxu1 %vm493_vm0, %v6910_v30 }
 0x132   : > { %v5328_v53 = vpop.f32.mrb[4].mxu1 }
 0x133   : > { %v765_v54 = vpop.f32.mrb[5].mxu1 }
 0x134   : > { %v5329_v55 = vpop.f32.mrb[6].mxu1 }
 0x135   : > { %v768_v56 = vpop.f32.mrb[7].mxu1 }
 0x137   : > { %5539 = vmatmul.mubr.msk.bf16.vlgmr.msra.gmra.mrb[32].mxu1 %vm493_vm0, %v6913_v31 }
 0x138   : > { %5571 = vmatpush3.bf16.msra.mxu1 %v6365_v48  ;;  %5542 = vmatprep.mubr.msk.bf16.mxu1 %vm493_vm0, %v6924_v33 }
 0x139   : > { %5572 = vmatprep.subr.bf16.mxu1 %v6366_v57 }
 0x13a   : > { %v5332_v59 = vpop.f32.mrb[8].mxu1 }
 0x13b   : > { %v781_v60 = vpop.f32.mrb[9].mxu1 }
 0x13c   : > { %v5333_v61 = vpop.f32.mrb[10].mxu1  ;;  %5573 = vmatpush3.bf16.msra.mxu1 %v6366_v57 }
 0x13d   : > { %v784_v62 = vpop.f32.mrb[11].mxu1  ;;  %5606 = vmatprep.subr.bf16.mxu1 %v7039_v58 }
 0x13f   : > { %5543 = vmatmul.mubr.msk.bf16.gmra.mrb[36].mxu1 %vm493_vm0, %v6927_v34 }
 0x140   : > { %5546 = vmatprep.mubr.msk.bf16.mxu1 %vm493_vm0, %v6937_v36 }
 0x142   : > { %v5336_v63 = vpop.f32.mrb[12].mxu1 }
 0x143   : > { %v797_v0 = vpop.f32.mrb[13].mxu1 }
 0x144   : > { %v5337_v1 = vpop.f32.mrb[14].mxu1 }
 0x145   : > { %v800_v3 = vpop.f32.mrb[15].mxu1 }
 0x147   : > { %5547 = vmatmul.mubr.msk.bf16.gmra.mrb[40].mxu1 %vm493_vm0, %v6940_v37 }
 0x148   : > { %5550 = vmatprep.mubr.msk.bf16.mxu1 %vm493_vm0, %v6947_v38 }
 0x14b   : > { %v5432_v4 = vpop.f32.mrb[0].mxu0 }
 0x14c   : > { %v7050_v5 = vadd.f32 %v5432_v4, %v5324_v49  ;;  %v1350_v6 = vpop.f32.mrb[1].mxu0  ;;  %v8164_v4 = vunpack.c.l.bf16 %v6913_v31 }
 0x14d   : > { %v7052_v7 = vadd.f32 %v1350_v6, %v749_v50  ;;  %v5433_v8 = vpop.f32.mrb[2].mxu0  ;;  %v8152_v6 = vunpack.c.h.bf16 %v6913_v31 }
 0x14e   : > { %v7054_v9 = vadd.f32 %v5433_v8, %v5325_v51  ;;  %v1353_v10 = vpop.f32.mrb[3].mxu0  ;;  %v7099_v51 = vld [vmem:[%s6904_s14 + $0x78] sm:$0xff]   ;;  %v8141_v8 = vunpack.c.l.bf16 %v6924_v33 }
 0x14f   : > { %v7056_v11 = vadd.f32 %v1353_v10, %v752_v52  ;;  %5551 = vmatmul.mubr.msk.bf16.gmra.mrb[44].mxu1 %vm493_vm0, %v6950_v39  ;;  %v8137_v10 = vunpack.c.h.bf16 %v6924_v33 }
 0x150   : > { %5554 = vmatprep.mubr.msk.bf16.mxu1 %vm493_vm0, %v6957_v40 }
 0x153   : > { %v5436_v12 = vpop.f32.mrb[4].mxu0 }
 0x154   : > { %v7062_v13 = vadd.f32 %v5436_v12, %v5328_v53  ;;  %v1366_v14 = vpop.f32.mrb[5].mxu0 }
 0x155   : > { %v7064_v15 = vadd.f32 %v1366_v14, %v765_v54  ;;  %v5437_v16 = vpop.f32.mrb[6].mxu0  ;;  %v8142_v14 = vunpack.c.l.bf16 %v6927_v34 }
 0x156   : > { %v7066_v17 = vadd.f32 %v5437_v16, %v5329_v55  ;;  %v1369_v18 = vpop.f32.mrb[7].mxu0  ;;  %v8140_v16 = vunpack.c.h.bf16 %v6927_v34 }
 0x157   : > { %v7068_v19 = vadd.f32 %v1369_v18, %v768_v56  ;;  %5555 = vmatmul.mubr.msk.bf16.gmra.mrb[48].mxu1 %vm493_vm0, %v6960_v41 }
 0x158   : > { %5558 = vmatprep.mubr.msk.bf16.mxu1 %vm493_vm0, %v6967_v42 }
 0x15b   : > { %v5440_v20 = vpop.f32.mrb[8].mxu0 }
 0x15c   : > { %v7074_v21 = vadd.f32 %v5440_v20, %v5332_v59  ;;  %v1382_v22 = vpop.f32.mrb[9].mxu0  ;;  %v6248_v20 = vpack.i.bf16 %v8137_v10, %v8141_v8 }
 0x15d   : > { %v7076_v23 = vadd.f32 %v1382_v22, %v781_v60  ;;  %v5441_v24 = vpop.f32.mrb[10].mxu0 }
 0x15e   : > { %v7078_v25 = vadd.f32 %v5441_v24, %v5333_v61  ;;  %v1385_v26 = vpop.f32.mrb[11].mxu0  ;;  %6249 = vrot.lane.b32.xlu1 %v6248_v20, %s6614_s30 }
 0x15f   : > { %v7080_v27 = vadd.f32 %v1385_v26, %v784_v62  ;;  %5559 = vmatmul.mubr.msk.bf16.gmra.mrb[52].mxu1 %vm493_vm0, %v6970_v43  ;;  %v6243_v26 = vpack.i.bf16 %v8152_v6, %v8164_v4 }
 0x160   : > { %5562 = vmatprep.mubr.msk.bf16.mxu1 %vm493_vm0, %v6977_v44 }
 0x163   : > { %v5444_v28 = vpop.f32.mrb[12].mxu0 }
 0x164   : > { %v7086_v29 = vadd.f32 %v5444_v28, %v5336_v63  ;;  %v1398_v32 = vpop.f32.mrb[13].mxu0  ;;  %v8136_v28 = vunpack.c.l.bf16 %v6937_v36 }
 0x165   : > { %v7088_v35 = vadd.f32 %v1398_v32, %v797_v0  ;;  %v5445_v47 = vpop.f32.mrb[14].mxu0  ;;  %v8135_v32 = vunpack.c.h.bf16 %v6937_v36 }
 0x166   : > { %v7090_v48 = vadd.f32 %v5445_v47, %v5337_v1  ;;  %v1401_v49 = vpop.f32.mrb[15].mxu0  ;;  %v8153_v1 = vunpack.c.l.bf16 %v6910_v30 }
 0x167   : > { %v7092_v50 = vadd.f32 %v1401_v49, %v800_v3  ;;  %5563 = vmatmul.mubr.msk.bf16.gmra.mrb[56].mxu1 %vm493_vm0, %v6980_v45  ;;  %v8145_v3 = vunpack.c.h.bf16 %v6910_v30 }
 0x168   : > { %5566 = vmatprep.mubr.msk.bf16.mxu1 %vm493_vm0, %v6987_v46 }
 0x169   : > { %v6238_v12 = vpack.i.bf16 %v8145_v3, %v8153_v1 }
 0x16a   : > { %v5376_v52 = vpop.f32.mrb[16].mxu1 }
 0x16b   : > { %v5448_v53 = vpop.f32.mrb[16].mxu0  ;;  %v994_v54 = vpop.f32.mrb[17].mxu1  ;;  %6239 = vrot.lane.b32.xlu0 %v6238_v12, %s6614_s30 }
 0x16c   : > { %v7101_v55 = vadd.f32 %v5448_v53, %v5376_v52  ;;  %v1414_v56 = vpop.f32.mrb[17].mxu0  ;;  %v5377_v57 = vpop.f32.mrb[18].mxu1 }
 0x16d   : > { %v7103_v59 = vadd.f32 %v1414_v56, %v994_v54  ;;  %v5449_v60 = vpop.f32.mrb[18].mxu0  ;;  %v997_v61 = vpop.f32.mrb[19].mxu1 }
 0x16e   : > { %v7105_v62 = vadd.f32 %v5449_v60, %v5377_v57  ;;  %v1417_v63 = vpop.f32.mrb[19].mxu0  ;;  %v6369_v57 = vld [vmem:[%s8132_s4 + $0x48] sm:$0xff]   ;;  %v6253_v60 = vpack.i.bf16 %v8140_v16, %v8142_v14 }
 0x16f   : > { %v7107_v0 = vadd.f32 %v1417_v63, %v997_v61  ;;  %5567 = vmatmul.mubr.msk.bf16.gmra.mrb[60].mxu1 %vm493_vm0, %v7099_v51  ;;  %v8139_v61 = vunpack.c.l.bf16 %v6940_v37  ;;  %v8138_v63 = vunpack.c.h.bf16 %v6940_v37  ;;  %6244 = vrot.lane.b32.xlu0 %v6243_v26, %s6614_s30 }
 0x170   : > { %5574 = vmatprep.mubr.msk.bf16.mxu1 %vm493_vm0, %v6913_v31  ;;  %6254 = vrot.lane.b32.xlu1 %v6253_v60, %s6614_s30  ;;  %v8147_v60 = vunpack.c.l.bf16 %v6957_v40 }
 0x171   : > { %v6263_v26 = vpack.i.bf16 %v8138_v63, %v8139_v61 }
 0x172   : > { %v5380_v18 = vpop.f32.mrb[20].mxu1 }
 0x173   : > { %v5452_v22 = vpop.f32.mrb[20].mxu0  ;;  %v1010_v24 = vpop.f32.mrb[21].mxu1 }
 0x174   : > { %v7136_v47 = vadd.f32 %v5452_v22, %v5380_v18  ;;  %v1430_v49 = vpop.f32.mrb[21].mxu0  ;;  %v5381_v52 = vpop.f32.mrb[22].mxu1  ;;  %v6258_v22 = vpack.i.bf16 %v8135_v32, %v8136_v28  ;;  %v8146_v28 = vunpack.c.h.bf16 %v6957_v40  ;;  %6264 = vrot.lane.b32.xlu1 %v6263_v26, %s6614_s30 }
 0x175   : > { %v7139_v53 = vadd.f32 %v1430_v49, %v1010_v24  ;;  %v5453_v54 = vpop.f32.mrb[22].mxu0  ;;  %v1013_v56 = vpop.f32.mrb[23].mxu1  ;;  %v8144_v24 = vunpack.c.l.bf16 %v6947_v38  ;;  %v8143_v49 = vunpack.c.h.bf16 %v6947_v38 }
 0x176   : > { %v7150_v12 = vadd.f32 %v5453_v54, %v5381_v52  ;;  %v1433_v18 = vpop.f32.mrb[23].mxu0  ;;  %v8151_v52 = vunpack.c.l.bf16 %v6950_v39  ;;  %v8148_v54 = vunpack.c.h.bf16 %v6950_v39  ;;  %6259 = vrot.lane.b32.xlu0 %v6258_v22, %s6614_s30 }
 0x177   : > { %v7152_v20 = vadd.f32 %v1433_v18, %v1013_v56  ;;  %5575 = vmatmul.mubr.msk.bf16.vlgmr.msra.gmra.mrb[32].mxu1 %vm493_vm0, %v6924_v33 }
 0x178   : > { %5607 = vmatpush3.bf16.msra.mxu1 %v7039_v58  ;;  %5578 = vmatprep.mubr.msk.bf16.mxu1 %vm493_vm0, %v6927_v34  ;;  %v6268_v58 = vpack.i.bf16 %v8143_v49, %v8144_v24  ;;  %v6273_v22 = vpack.i.bf16 %v8148_v54, %v8151_v52  ;;  %v8150_v49 = vunpack.c.l.bf16 %v6960_v41  ;;  %v8149_v24 = vunpack.c.h.bf16 %v6960_v41 }
 0x179   : > { %5608 = vmatprep.subr.bf16.mxu1 %v6369_v57 }
 0x17a   : > { %v5384_v56 = vpop.f32.mrb[24].mxu1  ;;  %6269 = vrot.lane.b32.xlu0 %v6268_v58, %s6614_s30  ;;  %6274 = vrot.lane.b32.xlu1 %v6273_v22, %s6614_s30  ;;  %v8162_v22 = vunpack.c.l.bf16 %v6977_v44 }
 0x17b   : > { %v5456_v18 = vpop.f32.mrb[24].mxu0  ;;  %v1026_v32 = vpop.f32.mrb[25].mxu1 }
 0x17c   : > { %v7180_v10 = vadd.f32 %v5456_v18, %v5384_v56  ;;  %v1446_v63 = vpop.f32.mrb[25].mxu0  ;;  %v5385_v61 = vpop.f32.mrb[26].mxu1  ;;  %5609 = vmatpush3.bf16.msra.mxu1 %v6369_v57  ;;  %v8155_v57 = vunpack.c.l.bf16 %v6967_v42 }
 0x17d   : > { %v7182_v16 = vadd.f32 %v1446_v63, %v1026_v32  ;;  %v5457_v8 = vpop.f32.mrb[26].mxu0  ;;  %v1029_v14 = vpop.f32.mrb[27].mxu1  ;;  %v6278_v32 = vpack.i.bf16 %v8146_v28, %v8147_v60  ;;  %v8154_v63 = vunpack.c.h.bf16 %v6967_v42  ;;  %v8160_v60 = vunpack.c.h.bf16 %v6977_v44 }
 0x17e   : > { %v7191_v56 = vadd.f32 %v5457_v8, %v5385_v61  ;;  %v1449_v18 = vpop.f32.mrb[27].mxu0  ;;  %v6283_v8 = vpack.i.bf16 %v8149_v24, %v8150_v49  ;;  %v8156_v61 = vunpack.c.h.bf16 %v6970_v43 }
 0x17f   : > { %v7193_v3 = vadd.f32 %v1449_v18, %v1029_v14  ;;  %5579 = vmatmul.mubr.msk.bf16.gmra.mrb[36].mxu1 %vm493_vm0, %v6937_v36  ;;  %v8157_v14 = vunpack.c.l.bf16 %v6970_v43  ;;  %6279 = vrot.lane.b32.xlu0 %v6278_v32, %s6614_s30  ;;  %v6288_v28 = vpack.i.bf16 %v8154_v63, %v8155_v57  ;;  %v8163_v63 = vunpack.c.l.bf16 %v6980_v45 }
 0x180   : > { %5582 = vmatprep.mubr.msk.bf16.mxu1 %vm493_vm0, %v6940_v37  ;;  %6284 = vrot.lane.b32.xlu1 %v6283_v8, %s6614_s30  ;;  %v8161_v57 = vunpack.c.h.bf16 %v6980_v45 }
 0x181   : > { %v6293_v32 = vpack.i.bf16 %v8156_v61, %v8157_v14  ;;  %v6298_v61 = vpack.i.bf16 %v8160_v60, %v8162_v22  ;;  %v8159_v14 = vunpack.c.l.bf16 %v6987_v46 }
 0x182   : > { %v5388_v26 = vpop.f32.mrb[28].mxu1 }
 0x183   : > { %v5460_v58 = vpop.f32.mrb[28].mxu0  ;;  %v1042_v18 = vpop.f32.mrb[29].mxu1  ;;  %6289 = vrot.lane.b32.xlu0 %v6288_v28, %s6614_s30  ;;  %v6303_v28 = vpack.i.bf16 %v8161_v57, %v8163_v63 }
 0x184   : > { %v5854_v54 = vadd.f32 %v5460_v58, %v5388_v26  ;;  %v1462_v24 = vpop.f32.mrb[29].mxu0  ;;  %v5389_v49 = vpop.f32.mrb[30].mxu1  ;;  %v7232_v26 = vld [vmem:[%s8131_s3] ss:$0 sm:$0xff]  ;;  %6294 = vrot.lane.b32.xlu1 %v6293_v32, %s6614_s30 }
 0x185   : > { %v7220_v52 = vadd.f32 %v1462_v24, %v1042_v18  ;;  %v5461_v6 = vpop.f32.mrb[30].mxu0  ;;  %v1045_v1 = vpop.f32.mrb[31].mxu1  ;;  %v7320_v32 = vadd.f32 %v7050_v5, %v7232_v26  ;;  %v7376_v4 = vadd.f32 %v7080_v27, %v7232_v26 }
 0x186   : > { %v5856_v24 = vadd.f32 %v5461_v6, %v5389_v49  ;;  %v1465_v58 = vpop.f32.mrb[31].mxu0  ;;  %v7235_v18 = vadd.f32 %v5854_v54, %v7232_v26  ;;  %v8158_v6 = vunpack.c.h.bf16 %v6987_v46  ;;  %v6370_v54 = vld [vmem:[%s8133_s5 + $0x10] sm:$0xff]  }
 0x187   : > { %v7237_v8 = vadd.f32 %v1465_v58, %v1045_v1  ;;  %5583 = vmatmul.mubr.msk.bf16.gmra.mrb[40].mxu1 %vm493_vm0, %v6947_v38  ;;  %6299 = vrot.lane.b32.xlu0 %v6298_v61, %s6614_s30  ;;  %v6371_v61 = vld [vmem:[%s8133_s5 + $0x18] sm:$0xff]  }
 0x188   : > { %5586 = vmatprep.mubr.msk.bf16.mxu1 %vm493_vm0, %v6950_v39  ;;  %v7251_v1 = vadd.f32 %v5856_v24, %v7232_v26  ;;  %v6308_v49 = vpack.i.bf16 %v8158_v6, %v8159_v14  ;;  %6304 = vrot.lane.b32.xlu1 %v6303_v28, %s6614_s30  ;;  %v7324_v24 = vadd.f32 %v7052_v7, %v7232_v26 }
 0x189   : > { %5642 = vmatprep.subr.bf16.mxu0 %v6370_v54 }
 0x18a   : > { %5643 = vmatpush3.bf16.msra.mxu0 %v6370_v54 }
 0x18b   : > { %6309 = vrot.lane.b32.xlu0 %v6308_v49, %s6614_s30  ;;  %5644 = vmatprep.subr.bf16.mxu0 %v6371_v61  ;;  %v7329_v49 = vadd.f32 %v7054_v9, %v7232_v26  ;;  %v7340_v9 = vadd.f32 %v7062_v13, %v7232_v26  ;;  %v7354_v13 = vadd.f32 %v7068_v19, %v7232_v26 }
 0x18e   : > { %5645 = vmatpush3.bf16.msra.mxu0 %v6371_v61  ;;  %v7334_v61 = vadd.f32 %v7056_v11, %v7232_v26  ;;  %v7344_v11 = vadd.f32 %v7064_v15, %v7232_v26 }
 0x18f   : > { %5587 = vmatmul.mubr.msk.bf16.gmra.mrb[44].mxu1 %vm493_vm0, %v6957_v40 }
 0x190   : > { %5590 = vmatprep.mubr.msk.bf16.mxu1 %vm493_vm0, %v6960_v41 }
 0x197   : > { %5591 = vmatmul.mubr.msk.bf16.gmra.mrb[48].mxu1 %vm493_vm0, %v6967_v42 }
 0x198   : > { %5594 = vmatprep.mubr.msk.bf16.mxu1 %vm493_vm0, %v6970_v43 }
 0x19f   : > { %5595 = vmatmul.mubr.msk.bf16.gmra.mrb[52].mxu1 %vm493_vm0, %v6977_v44 }
 0x1a0   : > { %5598 = vmatprep.mubr.msk.bf16.mxu1 %vm493_vm0, %v6980_v45 }
 0x1a7   : > { %5599 = vmatmul.mubr.msk.bf16.gmra.mrb[56].mxu1 %vm493_vm0, %v6987_v46 }
 0x1a8   : > { %5602 = vmatprep.mubr.msk.bf16.mxu1 %vm493_vm0, %v7099_v51 }
 0x1af   : > { %5603 = vmatmul.mubr.bf16.gmra.mrb[60].mxu1 %v8165_v2 }
 0x1b0   : > { %5610 = vmatprep.mubr.msk.bf16.mxu1 %vm493_vm0, %v6924_v33 }
 0x1b7   : > { %5611 = vmatmul.mubr.msk.bf16.vlgmr.msra.gmra.mrb[32].mxu1 %vm493_vm0, %v6927_v34 }
 0x1b8   : > { %5614 = vmatprep.mubr.msk.bf16.mxu1 %vm493_vm0, %v6937_v36 }
 0x1bf   : > { %5615 = vmatmul.mubr.msk.bf16.gmra.mrb[36].mxu1 %vm493_vm0, %v6940_v37 }
 0x1c0   : > { %5618 = vmatprep.mubr.msk.bf16.mxu1 %vm493_vm0, %v6947_v38 }
 0x1c7   : > { %5619 = vmatmul.mubr.msk.bf16.gmra.mrb[40].mxu1 %vm493_vm0, %v6950_v39 }
 0x1c8   : > { %5622 = vmatprep.mubr.msk.bf16.mxu1 %vm493_vm0, %v6957_v40 }
 0x1cf   : > { %5623 = vmatmul.mubr.msk.bf16.gmra.mrb[44].mxu1 %vm493_vm0, %v6960_v41 }
 0x1d0   : > { %5626 = vmatprep.mubr.msk.bf16.mxu1 %vm493_vm0, %v6967_v42 }
 0x1d7   : > { %5627 = vmatmul.mubr.msk.bf16.gmra.mrb[48].mxu1 %vm493_vm0, %v6970_v43 }
 0x1d8   : > { %5630 = vmatprep.mubr.msk.bf16.mxu1 %vm493_vm0, %v6977_v44  ;;  %v7382_v44 = vadd.f32 %v7086_v29, %v7232_v26  ;;  %v7401_v29 = vld [vmem:[%s8133_s5] sm:$0xff]  }
 0x1d9   : > { %5678 = vmatprep.subr.bf16.mxu0 %v7401_v29 }
 0x1dd   : > { %v7362_v63 = vpop.permute.xlu0 %6239 }
 0x1df   : > { %5631 = vmatmul.mubr.msk.bf16.gmra.mrb[52].mxu1 %vm493_vm0, %v6980_v45 }
 0x1e0   : > { %5634 = vmatprep.mubr.msk.bf16.mxu1 %vm493_vm0, %v6987_v46 }
 0x1e7   : > { %5635 = vmatmul.mubr.msk.bf16.gmra.mrb[56].mxu1 %vm493_vm0, %v7099_v51 }
 0x1e8   : > { %5638 = vmatprep.mubr.bf16.mxu1 %v8165_v2 }
 0x1ef   : > { %5639 = vmatmul.mubr.bf16.gmra.mrb[60].mxu1 %v8165_v2 }
 0x28a   : > { %v5612_v51 = vpop.f32.mrb[32].mxu1 }
 0x28b   : > { %v2663_v58 = vadd.f32 %v5612_v51, %v7320_v32  ;;  %v2502_v28 = vpop.f32.mrb[33].mxu1 }
 0x28c   : > { %v2661_v54 = vadd.f32 %v2502_v28, %v7324_v24  ;;  %v5613_v6 = vpop.f32.mrb[34].mxu1 }
 0x28d   : > { %v4877_v5 = vmul.f32 -1.442695, %v2663_v58  ;;  %v2664_v14 = vadd.f32 %v5613_v6, %v7329_v49  ;;  %v2505_v60 = vpop.f32.mrb[35].mxu1 }
 0x28e   : > { %v4875_v7 = vmul.f32 -1.442695, %v2661_v54  ;;  %v2662_v57 = vadd.f32 %v2505_v60, %v7334_v61  ;;  %v7349_v60 = vadd.f32 %v7066_v17, %v7232_v26 }
 0x28f   : > { %6396 = vpow2.f32 %v4877_v5  ;;  %v4878_v51 = vmul.f32 -1.442695, %v2664_v14 }
 0x290   : > { %6398 = vpow2.f32 %v4875_v7  ;;  %v4876_v22 = vmul.f32 -1.442695, %v2662_v57 }
 0x291   : > { %6400 = vpow2.f32 %v4878_v51 }
 0x292   : > { %6402 = vpow2.f32 %v4876_v22  ;;  %v5616_v28 = vpop.f32.mrb[36].mxu1 }
 0x293   : > { %v2667_v6 = vadd.f32 %v5616_v28, %v7340_v9  ;;  %v2518_v58 = vpop.f32.mrb[37].mxu1 }
 0x294   : > { %v2665_v57 = vadd.f32 %v2518_v58, %v7344_v11  ;;  %v5617_v14 = vpop.f32.mrb[38].mxu1  ;;  %v7360_v58 = vadd.f32 %v7074_v21, %v7232_v26 }
 0x295   : > { %v4881_v22 = vmul.f32 -1.442695, %v2667_v6  ;;  %v2668_v54 = vadd.f32 %v5617_v14, %v7349_v60  ;;  %v2521_v5 = vpop.f32.mrb[39].mxu1 }
 0x296   : > { %v4879_v15 = vmul.f32 -1.442695, %v2665_v57  ;;  %v2666_v7 = vadd.f32 %v2521_v5, %v7354_v13  ;;  %v7366_v57 = vadd.f32 %v7076_v23, %v7232_v26 }
 0x297   : > { %6404 = vpow2.f32 %v4881_v22  ;;  %v4882_v51 = vmul.f32 -1.442695, %v2668_v54 }
 0x298   : > { %6406 = vpow2.f32 %v4879_v15  ;;  %v4880_v28 = vmul.f32 -1.442695, %v2666_v7  ;;  %v7371_v7 = vadd.f32 %v7078_v25, %v7232_v26 }
 0x299   : > { %v6397_v17 = vpop.eup %6396  ;;  %6408 = vpow2.f32 %v4882_v51 }
 0x29a   : > { %v6399_v19 = vpop.eup %6398  ;;  %v2791_v6 = vadd.f32 1.0, %v6397_v17  ;;  %6410 = vpow2.f32 %v4880_v28  ;;  %v5620_v14 = vpop.f32.mrb[40].mxu1 }
 0x29b   : > { %v6401_v22 = vpop.eup %6400  ;;  %v2789_v54 = vadd.f32 1.0, %v6399_v19  ;;  %v2671_v5 = vadd.f32 %v5620_v14, %v7360_v58  ;;  %v2534_v15 = vpop.f32.mrb[41].mxu1 }
 0x29c   : > { %v6403_v21 = vpop.eup %6402  ;;  %6412 = vrcp.f32 %v2791_v6  ;;  %v2792_v51 = vadd.f32 1.0, %v6401_v22  ;;  %v2669_v17 = vadd.f32 %v2534_v15, %v7366_v57  ;;  %v5621_v28 = vpop.f32.mrb[42].mxu1 }
 0x29d   : > { %6414 = vrcp.f32 %v2789_v54  ;;  %v2790_v23 = vadd.f32 1.0, %v6403_v21  ;;  %v4885_v19 = vmul.f32 -1.442695, %v2671_v5  ;;  %v2672_v14 = vadd.f32 %v5621_v28, %v7371_v7  ;;  %v2537_v2 = vpop.f32.mrb[43].mxu1  ;;  %v6245_v22 = vpop.permute.xlu0 %6244 }
 0x29e   : > { %6416 = vrcp.f32 %v2792_v51  ;;  %v4883_v46 = vmul.f32 -1.442695, %v2669_v17  ;;  %v2670_v25 = vadd.f32 %v2537_v2, %v7376_v4  ;;  %v7386_v54 = vadd.f32 %v7088_v35, %v7232_v26  ;;  %v7396_v21 = vpop.permute.xlu1 %6249 }
 0x29f   : > { %6418 = vrcp.f32 %v2790_v23  ;;  %v4886_v6 = vmul.f32 -1.442695, %v2672_v14  ;;  %v7390_v5 = vadd.f32 %v7090_v48, %v7232_v26  ;;  %v7394_v2 = vadd.f32 %v7092_v50, %v7232_v26 }
 0x2a0   : > { %6420 = vpow2.f32 %v4885_v19  ;;  %v4884_v15 = vmul.f32 -1.442695, %v2670_v25  ;;  %v6246_v17 = vunpack.i.l.bf16 %v6245_v22  ;;  %v7405_v48 = vadd.f32 %v7101_v55, %v7232_v26 }
 0x2a1   : > { %v6405_v27 = vpop.eup %6404  ;;  %6422 = vpow2.f32 %v4883_v46  ;;  %v6241_v50 = vunpack.i.l.bf16 %v7362_v63  ;;  %v6247_v45 = vunpack.i.h.bf16 %v6245_v22  ;;  %v7420_v22 = vadd.f32 %v7103_v59, %v7232_v26 }
 0x2a2   : > { %v6407_v46 = vpop.eup %6406  ;;  %v2795_v51 = vadd.f32 1.0, %v6405_v27  ;;  %6424 = vpow2.f32 %v4886_v6  ;;  %v5624_v35 = vpop.f32.mrb[44].mxu1 }
 0x2a3   : > { %v6409_v28 = vpop.eup %6408  ;;  %v2793_v23 = vadd.f32 1.0, %v6407_v46  ;;  %6426 = vpow2.f32 %v4884_v15  ;;  %v2675_v19 = vadd.f32 %v5624_v35, %v7382_v44  ;;  %v2550_v14 = vpop.f32.mrb[45].mxu1  ;;  %v6242_v35 = vunpack.i.h.bf16 %v7362_v63 }
 0x2a4   : > { %v6411_v25 = vpop.eup %6410  ;;  %6428 = vrcp.f32 %v2795_v51  ;;  %v2796_v27 = vadd.f32 1.0, %v6409_v28  ;;  %v2673_v6 = vadd.f32 %v2550_v14, %v7386_v54  ;;  %v5625_v42 = vpop.f32.mrb[46].mxu1  ;;  %v6251_v14 = vunpack.i.l.bf16 %v7396_v21 }
 0x2a5   : > { %6430 = vrcp.f32 %v2793_v23  ;;  %v2794_v55 = vadd.f32 1.0, %v6411_v25  ;;  %v4889_v43 = vmul.f32 -1.442695, %v2675_v19  ;;  %v2676_v46 = vadd.f32 %v5625_v42, %v7390_v5  ;;  %v2553_v15 = vpop.f32.mrb[47].mxu1  ;;  %v6255_v23 = vpop.permute.xlu1 %6254 }
 0x2a6   : > { %v7412_v40 = vpop.eup %6412  ;;  %6432 = vrcp.f32 %v2796_v27  ;;  %v4887_v41 = vmul.f32 -1.442695, %v2673_v6  ;;  %v2674_v38 = vadd.f32 %v2553_v15, %v7394_v2  ;;  %v7424_v42 = vadd.f32 %v7105_v62, %v7232_v26 }
 0x2a7   : > { %v7416_v51 = vpop.eup %6414  ;;  %6434 = vrcp.f32 %v2794_v55  ;;  %v4890_v28 = vmul.f32 -1.442695, %v2676_v46  ;;  %v7431_v25 = vadd.f32 %v7107_v0, %v7232_v26  ;;  %v3047_v59 = vmul.f32 %v7412_v40, %v6246_v17 }
 0x2a8   : > { %v7426_v19 = vpop.eup %6416  ;;  %6436 = vpow2.f32 %v4889_v43  ;;  %v4888_v63 = vmul.f32 -1.442695, %v2674_v38  ;;  %v6252_v62 = vunpack.i.h.bf16 %v7396_v21  ;;  %v3045_v46 = vmul.f32 %v7416_v51, %v6241_v50 }
 0x2a9   : > { %v7433_v27 = vpop.eup %6418  ;;  %6438 = vpow2.f32 %v4887_v41  ;;  %v3048_v6 = vmul.f32 %v7426_v19, %v6247_v45  ;;  %v6256_v15 = vunpack.i.l.bf16 %v6255_v23  ;;  %v6257_v21 = vunpack.i.h.bf16 %v6255_v23  ;;  %v7448_v23 = vpop.permute.xlu1 %6264 }
 0x2aa   : > { %v6421_v55 = vpop.eup %6420  ;;  %v3046_v38 = vmul.f32 %v7433_v27, %v6242_v35  ;;  %6440 = vpow2.f32 %v4890_v28  ;;  %v5628_v43 = vpop.f32.mrb[48].mxu1 }
 0x2ab   : > { %v6423_v39 = vpop.eup %6422  ;;  %v2799_v0 = vadd.f32 1.0, %v6421_v55  ;;  %6442 = vpow2.f32 %v4888_v63  ;;  %v2679_v36 = vadd.f32 %v5628_v43, %v7405_v48  ;;  %v2566_v41 = vpop.f32.mrb[49].mxu1  ;;  %v3078_v37 = vpack.c.bf16 %v3048_v6, %v3047_v59 }
 0x2ac   : > { %v6425_v17 = vpop.eup %6424  ;;  %v2797_v33 = vadd.f32 1.0, %v6423_v39  ;;  %v2677_v45 = vadd.f32 %v2566_v41, %v7420_v22  ;;  %v5629_v34 = vpop.f32.mrb[50].mxu1  ;;  %v3077_v30 = vpack.c.bf16 %v3046_v38, %v3045_v46  ;;  %v7468_v43 = vadd.f32 %v7152_v20, %v7232_v26 }
 0x2ad   : > { %v6427_v50 = vpop.eup %6426  ;;  %6444 = vrcp.f32 %v2799_v0  ;;  %v2800_v35 = vadd.f32 1.0, %v6425_v17  ;;  %v4893_v28 = vmul.f32 -1.442695, %v2679_v36  ;;  %v2680_v31 = vadd.f32 %v5629_v34, %v7424_v42  ;;  %3111 = vrot.lane.b32.xlu0 %v3078_v37, %s6615_s18  ;;  %v2569_v63 = vpop.f32.mrb[51].mxu1 }
 0x2ae   : > { %v7444_v55 = vpop.eup %6428  ;;  %6446 = vrcp.f32 %v2797_v33  ;;  %v2798_v59 = vadd.f32 1.0, %v6427_v50  ;;  %v4891_v39 = vmul.f32 -1.442695, %v2677_v45  ;;  %v2678_v6 = vadd.f32 %v2569_v63, %v7431_v25  ;;  %3109 = vrot.lane.b32.xlu1 %v3077_v30, %s6615_s18 }
 0x2af   : > { %8244 = vst [vmem:[#allocation17_spill] sm:$0xff] %v7444_v55  ;;  %v7450_v46 = vpop.eup %6430  ;;  %6448 = vrcp.f32 %v2800_v35  ;;  %v4894_v36 = vmul.f32 -1.442695, %v2680_v31  ;;  %v7454_v34 = vadd.f32 %v7136_v47, %v7232_v26  ;;  %v7458_v37 = vadd.f32 %v7139_v53, %v7232_v26 }
 0x2b0   : > { %8245 = vst [vmem:[#allocation18_spill] sm:$0xff] %v7450_v46  ;;  %v7460_v33 = vpop.eup %6432  ;;  %6450 = vrcp.f32 %v2798_v59  ;;  %v4892_v38 = vmul.f32 -1.442695, %v2678_v6  ;;  %v7464_v30 = vadd.f32 %v7150_v12, %v7232_v26  ;;  %v3051_v47 = vmul.f32 %v7444_v55, %v6256_v15 }
 0x2b1   : > { %8246 = vst [vmem:[#allocation19_spill] sm:$0xff] %v7460_v33  ;;  %v7470_v31 = vpop.eup %6434  ;;  %6452 = vpow2.f32 %v4893_v28  ;;  %v3052_v53 = vmul.f32 %v7460_v33, %v6257_v21  ;;  %v6266_v0 = vunpack.i.l.bf16 %v7448_v23  ;;  %v3049_v17 = vmul.f32 %v7450_v46, %v6251_v14  ;;  %v6260_v14 = vpop.permute.xlu0 %6259 }
 0x2b2   : > { %8247 = vst [vmem:[#allocation20_spill] sm:$0xff] %v7470_v31  ;;  %v6437_v41 = vpop.eup %6436  ;;  %v3050_v45 = vmul.f32 %v7470_v31, %v6252_v62  ;;  %6454 = vpow2.f32 %v4891_v39  ;;  %v5632_v12 = vpop.f32.mrb[52].mxu1  ;;  %v6267_v50 = vunpack.i.h.bf16 %v7448_v23 }
 0x2b3   : > { %v6439_v20 = vpop.eup %6438  ;;  %v2803_v35 = vadd.f32 1.0, %v6437_v41  ;;  %6456 = vpow2.f32 %v4894_v36  ;;  %v2683_v28 = vadd.f32 %v5632_v12, %v7454_v34  ;;  %v2582_v63 = vpop.f32.mrb[53].mxu1  ;;  %v3080_v15 = vpack.c.bf16 %v3052_v53, %v3051_v47 }
 0x2b4   : > { %v6441_v59 = vpop.eup %6440  ;;  %v2801_v21 = vadd.f32 1.0, %v6439_v20  ;;  %6458 = vpow2.f32 %v4892_v38  ;;  %v2681_v6 = vadd.f32 %v2582_v63, %v7458_v37  ;;  %v5633_v33 = vpop.f32.mrb[54].mxu1  ;;  %v3079_v46 = vpack.c.bf16 %v3050_v45, %v3049_v17 }
 0x2b5   : > { %v6443_v62 = vpop.eup %6442  ;;  %6460 = vrcp.f32 %v2803_v35  ;;  %v2804_v39 = vadd.f32 1.0, %v6441_v59  ;;  %v4897_v31 = vmul.f32 -1.442695, %v2683_v28  ;;  %v2684_v23 = vadd.f32 %v5633_v33, %v7464_v30  ;;  %3115 = vrot.lane.b32.xlu0 %v3080_v15, %s6615_s18  ;;  %v2585_v36 = vpop.f32.mrb[55].mxu1 }
 0x2b6   : > { %6462 = vrcp.f32 %v2801_v21  ;;  %v2802_v41 = vadd.f32 1.0, %v6443_v62  ;;  %v4895_v47 = vmul.f32 -1.442695, %v2681_v6  ;;  %v2682_v53 = vadd.f32 %v2585_v36, %v7468_v43  ;;  %3113 = vrot.lane.b32.xlu1 %v3079_v46, %s6615_s18  ;;  %v6275_v20 = vpop.permute.xlu1 %6274 }
 0x2b7   : > { %v7484_v38 = vpop.eup %6444  ;;  %6464 = vrcp.f32 %v2804_v39  ;;  %v4898_v17 = vmul.f32 -1.442695, %v2684_v23  ;;  %v6262_v45 = vunpack.i.h.bf16 %v6260_v14  ;;  %v6261_v12 = vunpack.i.l.bf16 %v6260_v14 }
 0x2b8   : > { %8248 = vst [vmem:[#allocation21_spill] sm:$0xff] %v7484_v38  ;;  %v7486_v35 = vpop.eup %6446  ;;  %6466 = vrcp.f32 %v2802_v41  ;;  %v4896_v33 = vmul.f32 -1.442695, %v2682_v53  ;;  %v7490_v28 = vadd.f32 %v7180_v10, %v7232_v26  ;;  %v7496_v46 = vadd.f32 %v7182_v16, %v7232_v26 }
 0x2b9   : > { %v7492_v63 = vpop.eup %6448  ;;  %6468 = vpow2.f32 %v4897_v31  ;;  %v7500_v15 = vadd.f32 %v7191_v56, %v7232_v26  ;;  %v7504_v59 = vadd.f32 %v7193_v3, %v7232_v26  ;;  %v3055_v10 = vmul.f32 %v7484_v38, %v6266_v0 }
 0x2ba   : > { %8249 = vst [vmem:[#allocation22_spill] sm:$0xff] %v7492_v63  ;;  %v7506_v21 = vpop.eup %6450  ;;  %6470 = vpow2.f32 %v4895_v47  ;;  %v3056_v6 = vmul.f32 %v7492_v63, %v6267_v50  ;;  %v5636_v31 = vpop.f32.mrb[56].mxu1  ;;  %v6276_v14 = vunpack.i.l.bf16 %v6275_v20  ;;  %v3053_v16 = vmul.f32 %v7486_v35, %v6261_v12 }
 0x2bb   : > { %8250 = vst [vmem:[#allocation23_spill] sm:$0xff] %v7506_v21  ;;  %v6453_v62 = vpop.eup %6452  ;;  %6472 = vpow2.f32 %v4898_v17  ;;  %v3054_v56 = vmul.f32 %v7506_v21, %v6262_v45  ;;  %v2687_v39 = vadd.f32 %v5636_v31, %v7490_v28  ;;  %v2598_v23 = vpop.f32.mrb[57].mxu1  ;;  %v6277_v63 = vunpack.i.h.bf16 %v6275_v20 }
 0x2bc   : > { %v6455_v3 = vpop.eup %6454  ;;  %v2807_v36 = vadd.f32 1.0, %v6453_v62  ;;  %6474 = vpow2.f32 %v4896_v33  ;;  %v2685_v41 = vadd.f32 %v2598_v23, %v7496_v46  ;;  %v5637_v47 = vpop.f32.mrb[58].mxu1  ;;  %v3082_v0 = vpack.c.bf16 %v3056_v6, %v3055_v10 }
 0x2bd   : > { %v6457_v53 = vpop.eup %6456  ;;  %v2805_v50 = vadd.f32 1.0, %v6455_v3  ;;  %v2688_v38 = vadd.f32 %v5637_v47, %v7500_v15  ;;  %v2601_v17 = vpop.f32.mrb[59].mxu1  ;;  %v3081_v55 = vpack.c.bf16 %v3054_v56, %v3053_v16  ;;  %v4901_v21 = vmul.f32 -1.442695, %v2687_v39 }
 0x2be   : > { %v6459_v12 = vpop.eup %6458  ;;  %6476 = vrcp.f32 %v2807_v36  ;;  %v2808_v45 = vadd.f32 1.0, %v6457_v53  ;;  %v6270_v31 = vpop.permute.xlu0 %6269  ;;  %3119 = vrot.lane.b32.xlu0 %v3082_v0, %s6615_s18  ;;  %v2686_v33 = vadd.f32 %v2601_v17, %v7504_v59  ;;  %v4899_v6 = vmul.f32 -1.442695, %v2685_v41 }
 0x2bf   : > { %v7517_v62 = vpop.eup %6460  ;;  %6478 = vrcp.f32 %v2805_v50  ;;  %v2806_v10 = vadd.f32 1.0, %v6459_v12  ;;  %v6272_v23 = vunpack.i.h.bf16 %v6270_v31  ;;  %3117 = vrot.lane.b32.xlu1 %v3081_v55, %s6615_s18  ;;  %v4902_v16 = vmul.f32 -1.442695, %v2688_v38  ;;  %v6285_v53 = vpop.permute.xlu1 %6284 }
 0x2c0   : > { %8251 = vst [vmem:[#allocation24_spill] sm:$0xff] %v7517_v62  ;;  %v7520_v20 = vpop.eup %6462  ;;  %6480 = vrcp.f32 %v2808_v45  ;;  %v6271_v39 = vunpack.i.l.bf16 %v6270_v31  ;;  %v4900_v3 = vmul.f32 -1.442695, %v2686_v33  ;;  %v3059_v47 = vmul.f32 %v7517_v62, %v6276_v14 }
 0x2c1   : > { %8252 = vst [vmem:[#allocation25_spill] sm:$0xff] %v7520_v20  ;;  %v7522_v56 = vpop.eup %6464  ;;  %6482 = vrcp.f32 %v2806_v10  ;;  %v7530_v55 = vadd.f32 %v7220_v52, %v7232_v26 }
 0x2c2   : > { %8253 = vst [vmem:[#allocation26_spill] sm:$0xff] %v7522_v56  ;;  %v7524_v36 = vpop.eup %6466  ;;  %6484 = vpow2.f32 %v4901_v21  ;;  %v3060_v0 = vmul.f32 %v7522_v56, %v6277_v63  ;;  %v5640_v41 = vpop.f32.mrb[60].mxu1  ;;  %v7538_v21 = vadd.f32 %v7237_v8, %v7232_v26  ;;  %v6287_v8 = vunpack.i.h.bf16 %v6285_v53 }
 0x2c3   : > { %8254 = vst [vmem:[#allocation27_spill] sm:$0xff] %v7524_v36  ;;  %v6469_v50 = vpop.eup %6468  ;;  %6486 = vpow2.f32 %v4899_v6  ;;  %v3058_v38 = vmul.f32 %v7524_v36, %v6272_v23  ;;  %v7534_v17 = vadd.f32 %v5640_v41, %v7235_v18  ;;  %v2614_v12 = vpop.f32.mrb[61].mxu1  ;;  %v3057_v6 = vmul.f32 %v7520_v20, %v6271_v39 }
 0x2c4   : > { %v6471_v14 = vpop.eup %6470  ;;  %v2811_v63 = vadd.f32 1.0, %v6469_v50  ;;  %6488 = vpow2.f32 %v4902_v16  ;;  %v2689_v45 = vadd.f32 %v2614_v12, %v7530_v55  ;;  %v7541_v52 = vpop.f32.mrb[62].mxu1  ;;  %v3084_v31 = vpack.c.bf16 %v3060_v0, %v3059_v47 }
 0x2c5   : > { %v6473_v33 = vpop.eup %6472  ;;  %v2809_v10 = vadd.f32 1.0, %v6471_v14  ;;  %6490 = vpow2.f32 %v4900_v3  ;;  %v6286_v23 = vunpack.i.l.bf16 %v6285_v53  ;;  %v6280_v41 = vpop.permute.xlu0 %6279  ;;  %v3083_v47 = vpack.c.bf16 %v3058_v38, %v3057_v6 }
 0x2c6   : > { %v2617_v36 = vpop.f32.mrb[63].mxu1  ;;  %v6475_v56 = vpop.eup %6474  ;;  %6492 = vrcp.f32 %v2811_v63  ;;  %v2812_v26 = vadd.f32 1.0, %v6473_v33  ;;  %3123 = vrot.lane.b32.xlu0 %v3084_v31, %s6615_s18  ;;  %v4903_v12 = vmul.f32 -1.442695, %v2689_v45  ;;  %v6282_v39 = vunpack.i.h.bf16 %v6280_v41 }
 0x2c7   : > { %v2690_v16 = vadd.f32 %v2617_v36, %v7538_v21  ;;  %6494 = vrcp.f32 %v2809_v10  ;;  %v2810_v50 = vadd.f32 1.0, %v6475_v56  ;;  %v6281_v3 = vunpack.i.l.bf16 %v6280_v41  ;;  %3121 = vrot.lane.b32.xlu1 %v3083_v47, %s6615_s18  ;;  %v6295_v33 = vpop.permute.xlu1 %6294 }
 0x2c8   : > { %v7546_v0 = vpop.eup %6476  ;;  %6496 = vrcp.f32 %v2812_v26 }
 0x2c9   : > { %8255 = vst [vmem:[#allocation28_spill] sm:$0xff] %v7546_v0  ;;  %v7548_v14 = vpop.eup %6478  ;;  %6498 = vrcp.f32 %v2810_v50  ;;  %v4904_v20 = vmul.f32 -1.442695, %v2690_v16  ;;  %v3063_v56 = vmul.f32 %v7546_v0, %v6286_v23  ;;  %v6290_v41 = vpop.permute.xlu0 %6289  ;;  %v6297_v23 = vunpack.i.h.bf16 %v6295_v33 }
 0x2ca   : > { %v7551_v53 = vpop.eup %6480  ;;  %6500 = vpow2.f32 %v4903_v12  ;;  %v3061_v45 = vmul.f32 %v7548_v14, %v6281_v3  ;;  %v6296_v0 = vunpack.i.l.bf16 %v6295_v33  ;;  %v6292_v3 = vunpack.i.h.bf16 %v6290_v41 }
 0x2cb   : > { %v7553_v63 = vpop.eup %6482  ;;  %v3064_v36 = vmul.f32 %v7551_v53, %v6287_v8  ;;  %6502 = vpow2.f32 %v4904_v20 }
 0x2cc   : > { %8256 = vst [vmem:[#allocation29_spill] sm:$0xff] %v7553_v63  ;;  %v6485_v38 = vpop.eup %6484  ;;  %v3062_v31 = vmul.f32 %v7553_v63, %v6282_v39  ;;  %v6291_v63 = vunpack.i.l.bf16 %v6290_v41 }
 0x2cd   : > { %v6487_v10 = vpop.eup %6486  ;;  %v2815_v6 = vadd.f32 1.0, %v6485_v38  ;;  %v3086_v26 = vpack.c.bf16 %v3064_v36, %v3063_v56 }
 0x2ce   : > { %v6489_v16 = vpop.eup %6488  ;;  %v2813_v50 = vadd.f32 1.0, %v6487_v10  ;;  %v3085_v47 = vpack.c.bf16 %v3062_v31, %v3061_v45  ;;  %v6305_v10 = vpop.permute.xlu1 %6304 }
 0x2cf   : > { %v6491_v62 = vpop.eup %6490  ;;  %6504 = vrcp.f32 %v2815_v6  ;;  %v2816_v12 = vadd.f32 1.0, %v6489_v16  ;;  %3127 = vrot.lane.b32.xlu0 %v3086_v26, %s6615_s18  ;;  %v6300_v26 = vpop.permute.xlu0 %6299 }
 0x2d0   : > { %v7560_v8 = vpop.eup %6492  ;;  %6506 = vrcp.f32 %v2813_v50  ;;  %v2814_v39 = vadd.f32 1.0, %v6491_v62  ;;  %3125 = vrot.lane.b32.xlu1 %v3085_v47, %s6615_s18 }
 0x2d1   : > { %v7563_v20 = vpop.eup %6494  ;;  %6508 = vrcp.f32 %v2816_v12  ;;  %v3067_v38 = vmul.f32 %v7560_v8, %v6296_v0  ;;  %v6307_v12 = vunpack.i.h.bf16 %v6305_v10  ;;  %v6306_v0 = vunpack.i.l.bf16 %v6305_v10 }
 0x2d2   : > { %v7565_v56 = vpop.eup %6496  ;;  %6510 = vrcp.f32 %v2814_v39  ;;  %v3065_v31 = vmul.f32 %v7563_v20, %v6291_v63  ;;  %v6302_v63 = vunpack.i.h.bf16 %v6300_v26  ;;  %v6301_v39 = vunpack.i.l.bf16 %v6300_v26 }
 0x2d3   : > { %v7567_v36 = vpop.eup %6498  ;;  %v3068_v45 = vmul.f32 %v7565_v56, %v6297_v23 }
 0x2d4   : > { %8257 = vst [vmem:[#allocation30_spill] sm:$0xff] %v7567_v36  ;;  %v3066_v62 = vmul.f32 %v7567_v36, %v6292_v3  ;;  %v6501_v33 = vpop.eup %6500 }
 0x2d5   : > { %v3088_v6 = vpack.c.bf16 %v3068_v45, %v3067_v38  ;;  %v2817_v41 = vadd.f32 1.0, %v6501_v33  ;;  %v6503_v50 = vpop.eup %6502  ;;  %v7586_v33 = vld [vmem:[%s6904_s14 + $0x78] sm:$0xff]   ;;  %s6616_s14 = smov 64  }
 0x2d6   : > { %v3087_v16 = vpack.c.bf16 %v3066_v62, %v3065_v31  ;;  %v2818_v47 = vadd.f32 1.0, %v6503_v50  ;;  %v2915_v10 = vunpack.c.l.bf16 %v7586_v33 }
 0x2d7   : > { %3131 = vrot.lane.b32.xlu0 %v3088_v6, %s6615_s18  ;;  %6512 = vrcp.f32 %v2817_v41  ;;  %v2916_v6 = vunpack.c.h.bf16 %v7586_v33 }
 0x2d8   : > { %3129 = vrot.lane.b32.xlu1 %v3087_v16, %s6615_s18  ;;  %6514 = vrcp.f32 %v2818_v47  ;;  %v6310_v16 = vpop.permute.xlu0 %6309 }
 0x2d9   : > { %v7575_v23 = vpop.eup %6504 }
 0x2da   : > { %8258 = vst [vmem:[#allocation31_spill] sm:$0xff] %v7575_v23  ;;  %v7577_v3 = vpop.eup %6506  ;;  %v3071_v31 = vmul.f32 %v7575_v23, %v6306_v0  ;;  %v6312_v0 = vunpack.i.h.bf16 %v6310_v16 }
 0x2db   : > { %v7579_v38 = vpop.eup %6508  ;;  %v3069_v41 = vmul.f32 %v7577_v3, %v6301_v39 }
 0x2dc   : > { %8259 = vst [vmem:[#allocation32_spill] sm:$0xff] %v7579_v38  ;;  %v7581_v45 = vpop.eup %6510  ;;  %v3072_v62 = vmul.f32 %v7579_v38, %v6307_v12  ;;  %v6313_v12 = vpack.i.bf16 %v2916_v6, %v2915_v10  ;;  %v6311_v38 = vunpack.i.l.bf16 %v6310_v16 }
 0x2dd   : > { %v3070_v26 = vmul.f32 %v7581_v45, %v6302_v63 }
 0x2de   : > { %v3090_v50 = vpack.c.bf16 %v3072_v62, %v3071_v31 }
 0x2df   : > { %v3089_v47 = vpack.c.bf16 %v3070_v26, %v3069_v41 }
 0x2e0   : > { %3135 = vrot.lane.b32.xlu0 %v3090_v50, %s6615_s18 }
 0x2e1   : > { %3133 = vrot.lane.b32.xlu1 %v3089_v47, %s6615_s18  ;;  %v7598_v23 = vpop.eup %6512 }
 0x2e2   : > { %v7600_v36 = vpop.eup %6514  ;;  %v3073_v63 = vmul.f32 %v7598_v23, %v6311_v38 }
 0x2e3   : > { %v3074_v39 = vmul.f32 %v7600_v36, %v6312_v0 }
 0x2e4   : > { %6314 = vrot.lane.b32.xlu0 %v6313_v12, %s6614_s30 }
 0x2e5   : > { %v3091_v31 = vpack.c.bf16 %v3074_v39, %v3073_v63 }
 0x2e7   : > { %3137 = vrot.lane.b32.xlu1 %v3091_v31, %s6615_s18 }
 0x2e8   : > { %4206 = vrot.lane.b32.xlu0 %v7324_v24, %s6616_s14 }
 0x2ec   : > { %4210 = vrot.lane.b32.xlu0 %v7320_v32, %s6616_s14 }
 0x2f0   : > { %4214 = vrot.lane.b32.xlu0 %v7344_v11, %s6616_s14 }
 0x2f4   : > { %4218 = vrot.lane.b32.xlu0 %v7340_v9, %s6616_s14  ;;  %v6374_v9 = vld [vmem:[%s8133_s5 + $0x20] sm:$0xff]  }
 0x2f8   : > { %4222 = vrot.lane.b32.xlu0 %v7366_v57, %s6616_s14 }
 0x2fc   : > { %4226 = vrot.lane.b32.xlu0 %v7360_v58, %s6616_s14 }
 0x300   : > { %4230 = vrot.lane.b32.xlu0 %v7386_v54, %s6616_s14 }
 0x304   : > { %4234 = vrot.lane.b32.xlu0 %v7382_v44, %s6616_s14  ;;  %v6373_v44 = vld [vmem:[%s8133_s5 + $0x8] sm:$0xff]  }
 0x308   : > { %4238 = vrot.lane.b32.xlu0 %v7420_v22, %s6616_s14 }
 0x30c   : > { %4242 = vrot.lane.b32.xlu0 %v7405_v48, %s6616_s14 }
 0x310   : > { %4246 = vrot.lane.b32.xlu0 %v7458_v37, %s6616_s14 }
 0x314   : > { %4250 = vrot.lane.b32.xlu0 %v7454_v34, %s6616_s14 }
 0x318   : > { %4254 = vrot.lane.b32.xlu0 %v7496_v46, %s6616_s14 }
 0x31c   : > { %4258 = vrot.lane.b32.xlu0 %v7490_v28, %s6616_s14 }
 0x31f   : > { %v7641_v24 = vpop.permute.xlu0 %3111 }
 0x320   : > { %4262 = vrot.lane.b32.xlu0 %v7530_v55, %s6616_s14  ;;  %v7639_v32 = vpop.permute.xlu1 %3109 }
 0x321   : > { %5647 = vmatmul.mubr.msk.bf16.vlgmr.msra.gmra.mrb[32].mxu0 %vm493_vm0, %v7639_v32 }
 0x322   : > { %5650 = vmatprep.mubr.msk.bf16.mxu0 %vm493_vm0, %v7641_v24  ;;  %5679 = vmatpush3.bf16.msra.mxu0 %v7401_v29  ;;  %v4905_v29 = vmul.f32 -1.442695, %v7534_v17 }
 0x323   : > { %5680 = vmatprep.subr.bf16.mxu0 %v6373_v44 }
 0x324   : > { %4266 = vrot.lane.b32.xlu0 %v7235_v18, %s6616_s14  ;;  %v2692_v18 = vadd.f32 %v7541_v52, %v7251_v1  ;;  %6516 = vpow2.f32 %v4905_v29  ;;  %v6375_v29 = vld [vmem:[%s8133_s5 + $0x28] sm:$0xff]  }
 0x326   : > { %5681 = vmatpush3.bf16.msra.mxu0 %v6373_v44  ;;  %v4906_v48 = vmul.f32 -1.442695, %v2692_v18  ;;  %v8260_v18 = vmov 0  }
 0x327   : > { %5714 = vmatprep.subr.bf16.mxu0 %v6374_v9  ;;  %v7655_v58 = vpop.permute.xlu0 %3115 }
 0x328   : > { %v7653_v11 = vpop.permute.xlu1 %3113  ;;  %6518 = vpow2.f32 %v4906_v48  ;;  %v6376_v48 = vld [vmem:[%s8133_s5 + $0x30] sm:$0xff]  }
 0x329   : > { %5651 = vmatmul.mubr.msk.bf16.gmra.mrb[36].mxu0 %vm493_vm0, %v7653_v11 }
 0x32a   : > { %5654 = vmatprep.mubr.msk.bf16.mxu0 %vm493_vm0, %v7655_v58 }
 0x32e   : > { %v6517_v46 = vpop.eup %6516 }
 0x32f   : > { %v2819_v17 = vadd.f32 1.0, %v6517_v46 }
 0x330   : > { %v7663_v54 = vpop.permute.xlu0 %3119 }
 0x331   : > { %v7661_v57 = vpop.permute.xlu1 %3117  ;;  %6520 = vrcp.f32 %v2819_v17 }
 0x332   : > { %5655 = vmatmul.mubr.msk.bf16.gmra.mrb[40].mxu0 %vm493_vm0, %v7661_v57  ;;  %v6519_v55 = vpop.eup %6518 }
 0x333   : > { %5658 = vmatprep.mubr.msk.bf16.mxu0 %vm493_vm0, %v7663_v54  ;;  %v2820_v52 = vadd.f32 1.0, %v6519_v55 }
 0x335   : > { %6522 = vrcp.f32 %v2820_v52 }
 0x338   : > { %v7674_v34 = vpop.permute.xlu0 %3123 }
 0x339   : > { %v7672_v22 = vpop.permute.xlu1 %3121 }
 0x33a   : > { %5659 = vmatmul.mubr.msk.bf16.gmra.mrb[44].mxu0 %vm493_vm0, %v7672_v22 }
 0x33b   : > { %5662 = vmatprep.mubr.msk.bf16.mxu0 %vm493_vm0, %v7674_v34  ;;  %v7704_v50 = vpop.eup %6520 }
 0x33f   : > { %v7706_v0 = vpop.eup %6522 }
 0x341   : > { %v7682_v28 = vpop.permute.xlu0 %3127 }
 0x342   : > { %v7680_v37 = vpop.permute.xlu1 %3125 }
 0x343   : > { %5663 = vmatmul.mubr.msk.bf16.gmra.mrb[48].mxu0 %vm493_vm0, %v7680_v37 }
 0x344   : > { %5666 = vmatprep.mubr.msk.bf16.mxu0 %vm493_vm0, %v7682_v28 }
 0x349   : > { %v7690_v62 = vpop.permute.xlu0 %3131 }
 0x34a   : > { %v7688_v38 = vpop.permute.xlu1 %3129 }
 0x34b   : > { %5667 = vmatmul.mubr.msk.bf16.gmra.mrb[52].mxu0 %vm493_vm0, %v7688_v38 }
 0x34c   : > { %5670 = vmatprep.mubr.msk.bf16.mxu0 %vm493_vm0, %v7690_v62 }
 0x352   : > { %v7696_v41 = vpop.permute.xlu0 %3135 }
 0x353   : > { %v7698_v26 = vpop.permute.xlu1 %3133 }
 0x354   : > { %5671 = vmatmul.mubr.msk.bf16.gmra.mrb[56].mxu0 %vm493_vm0, %v7698_v26 }
 0x355   : > { %5674 = vmatprep.mubr.msk.bf16.mxu0 %vm493_vm0, %v7696_v41 }
 0x356   : > { %v6315_v16 = vpop.permute.xlu0 %6314 }
 0x357   : > { %v6317_v47 = vunpack.i.h.bf16 %v6315_v16  ;;  %v6316_v12 = vunpack.i.l.bf16 %v6315_v16 }
 0x359   : > { %v3075_v63 = vmul.f32 %v7704_v50, %v6316_v12  ;;  %v3076_v39 = vmul.f32 %v7706_v0, %v6317_v47  ;;  %v7710_v31 = vpop.permute.xlu1 %3137  ;;  %v4369_v12 = vsub.f32 1.0, %v7426_v19 }
 0x35b   : > { %v3092_v44 = vpack.c.bf16 %v3076_v39, %v3075_v63 }
 0x35c   : > { %5675 = vmatmul.mubr.msk.bf16.gmra.mrb[60].mxu0 %vm493_vm0, %v7710_v31 }
 0x35d   : > { %3139 = vrot.lane.b32.xlu1 %v3092_v44, %s6615_s18  ;;  %5682 = vmatprep.mubr.bf16.mxu0 %v8260_v18 }
 0x361   : > { %4208 = vrot.lane.b32.xlu1 %v7334_v61, %s6616_s14  ;;  %v6379_v61 = vld [vmem:[%s8133_s5 + $0x48] sm:$0xff]  }
 0x364   : > { %5683 = vmatmul.mubr.bf16.vlgmr.msra.gmra.mrb[32].mxu0 %v8260_v18 }
 0x365   : > { %4212 = vrot.lane.b32.xlu1 %v7329_v49, %s6616_s14  ;;  %5686 = vmatprep.mubr.msk.bf16.mxu0 %vm493_vm0, %v7639_v32  ;;  %v6378_v49 = vld [vmem:[%s8133_s5 + $0x40] sm:$0xff]  }
 0x366   : > { %5715 = vmatpush3.bf16.msra.mxu0 %v6374_v9 }
 0x367   : > { %5716 = vmatprep.subr.bf16.mxu0 %v6375_v29 }
 0x369   : > { %4216 = vrot.lane.b32.xlu1 %v7354_v13, %s6616_s14 }
 0x36a   : > { %5717 = vmatpush3.bf16.msra.mxu0 %v6375_v29  ;;  %v8261_v29 = vld [vmem:[#allocation3_spill] sm:$0xff] }
 0x36b   : > { %5750 = vmatprep.subr.bf16.mxu0 %v6376_v48 }
 0x36c   : > { %5687 = vmatmul.mubr.msk.bf16.gmra.mrb[36].mxu0 %vm493_vm0, %v7641_v24 }
 0x36d   : > { %4220 = vrot.lane.b32.xlu1 %v7349_v60, %s6616_s14  ;;  %5690 = vmatprep.mubr.msk.bf16.mxu0 %vm493_vm0, %v7653_v11  ;;  %v4207_v60 = vpop.permute.xlu0 %4206 }
 0x371   : > { %4224 = vrot.lane.b32.xlu1 %v7376_v4, %s6616_s14  ;;  %v6377_v4 = vld [vmem:[%s8133_s5 + $0x38] sm:$0xff]  }
 0x374   : > { %5691 = vmatmul.mubr.msk.bf16.gmra.mrb[40].mxu0 %vm493_vm0, %v7655_v58 }
 0x375   : > { %4228 = vrot.lane.b32.xlu1 %v7371_v7, %s6616_s14  ;;  %5694 = vmatprep.mubr.msk.bf16.mxu0 %vm493_vm0, %v7661_v57  ;;  %v4211_v7 = vpop.permute.xlu0 %4210 }
 0x379   : > { %4232 = vrot.lane.b32.xlu1 %v7394_v2, %s6616_s14  ;;  %v4215_v2 = vpop.permute.xlu0 %4214 }
 0x37c   : > { %5695 = vmatmul.mubr.msk.bf16.gmra.mrb[44].mxu0 %vm493_vm0, %v7663_v54 }
 0x37d   : > { %4236 = vrot.lane.b32.xlu1 %v7390_v5, %s6616_s14  ;;  %5698 = vmatprep.mubr.msk.bf16.mxu0 %vm493_vm0, %v7672_v22 }
 0x381   : > { %4240 = vrot.lane.b32.xlu1 %v7431_v25, %s6616_s14  ;;  %v4219_v25 = vpop.permute.xlu0 %4218 }
 0x384   : > { %5699 = vmatmul.mubr.msk.bf16.gmra.mrb[48].mxu0 %vm493_vm0, %v7674_v34 }
 0x385   : > { %4244 = vrot.lane.b32.xlu1 %v7424_v42, %s6616_s14  ;;  %5702 = vmatprep.mubr.msk.bf16.mxu0 %vm493_vm0, %v7680_v37 }
 0x389   : > { %4248 = vrot.lane.b32.xlu1 %v7468_v43, %s6616_s14  ;;  %v4223_v43 = vpop.permute.xlu0 %4222 }
 0x38c   : > { %5703 = vmatmul.mubr.msk.bf16.gmra.mrb[52].mxu0 %vm493_vm0, %v7682_v28 }
 0x38d   : > { %4252 = vrot.lane.b32.xlu1 %v7464_v30, %s6616_s14  ;;  %5706 = vmatprep.mubr.msk.bf16.mxu0 %vm493_vm0, %v7688_v38 }
 0x391   : > { %4256 = vrot.lane.b32.xlu1 %v7504_v59, %s6616_s14  ;;  %v4227_v59 = vpop.permute.xlu0 %4226 }
 0x394   : > { %5707 = vmatmul.mubr.msk.bf16.gmra.mrb[56].mxu0 %vm493_vm0, %v7690_v62 }
 0x395   : > { %4260 = vrot.lane.b32.xlu1 %v7500_v15, %s6616_s14  ;;  %5710 = vmatprep.mubr.msk.bf16.mxu0 %vm493_vm0, %v7698_v26 }
 0x399   : > { %4264 = vrot.lane.b32.xlu1 %v7538_v21, %s6616_s14 }
 0x39c   : > { %5711 = vmatmul.mubr.msk.bf16.gmra.mrb[60].mxu0 %vm493_vm0, %v7696_v41 }
 0x39d   : > { %4268 = vrot.lane.b32.xlu1 %v7251_v1, %s6616_s14  ;;  %5718 = vmatprep.mubr.msk.bf16.mxu0 %vm493_vm0, %v7639_v32 }
 0x3a4   : > { %5719 = vmatmul.mubr.msk.bf16.vlgmr.msra.gmra.mrb[32].mxu0 %vm493_vm0, %v7641_v24 }
 0x3a5   : > { %5722 = vmatprep.mubr.msk.bf16.mxu0 %vm493_vm0, %v7653_v11  ;;  %5751 = vmatpush3.bf16.msra.mxu0 %v6376_v48  ;;  %v8262_v48 = vunpack.c.l.bf16 %v8261_v29 }
 0x3a6   : > { %5752 = vmatprep.subr.bf16.mxu0 %v6377_v4 }
 0x3a9   : > { %5753 = vmatpush3.bf16.msra.mxu0 %v6377_v4 }
 0x3aa   : > { %5786 = vmatprep.subr.bf16.mxu0 %v6378_v49 }
 0x3ac   : > { %5723 = vmatmul.mubr.msk.bf16.gmra.mrb[36].mxu0 %vm493_vm0, %v7655_v58 }
 0x3ad   : > { %5726 = vmatprep.mubr.msk.bf16.mxu0 %vm493_vm0, %v7661_v57 }
 0x3b4   : > { %5727 = vmatmul.mubr.msk.bf16.gmra.mrb[40].mxu0 %vm493_vm0, %v7663_v54 }
 0x3b5   : > { %5730 = vmatprep.mubr.msk.bf16.mxu0 %vm493_vm0, %v7672_v22 }
 0x3bc   : > { %5731 = vmatmul.mubr.msk.bf16.gmra.mrb[44].mxu0 %vm493_vm0, %v7674_v34 }
 0x3bd   : > { %5734 = vmatprep.mubr.msk.bf16.mxu0 %vm493_vm0, %v7680_v37 }
 0x3c4   : > { %5735 = vmatmul.mubr.msk.bf16.gmra.mrb[48].mxu0 %vm493_vm0, %v7682_v28 }
 0x3c5   : > { %5738 = vmatprep.mubr.msk.bf16.mxu0 %vm493_vm0, %v7688_v38 }
 0x3cc   : > { %5739 = vmatmul.mubr.msk.bf16.gmra.mrb[52].mxu0 %vm493_vm0, %v7690_v62 }
 0x3cd   : > { %5742 = vmatprep.mubr.msk.bf16.mxu0 %vm493_vm0, %v7698_v26 }
 0x3cf   : > { %v3140_v1 = vpop.permute.xlu1 %3139 }
 0x3d3   : > { %v4209_v13 = vpop.permute.xlu1 %4208 }
 0x3d4   : > { %5743 = vmatmul.mubr.msk.bf16.gmra.mrb[56].mxu0 %vm493_vm0, %v7696_v41 }
 0x3d5   : > { %5746 = vmatprep.mubr.msk.bf16.mxu0 %vm493_vm0, %v7710_v31 }
 0x3d7   : > { %v4213_v5 = vpop.permute.xlu1 %4212 }
 0x3db   : > { %v4217_v42 = vpop.permute.xlu1 %4216 }
 0x3dc   : > { %5747 = vmatmul.mubr.msk.bf16.gmra.mrb[60].mxu0 %vm493_vm0, %v3140_v1 }
 0x3dd   : > { %5754 = vmatprep.mubr.msk.bf16.mxu0 %vm493_vm0, %v7641_v24 }
 0x3df   : > { %v4221_v30 = vpop.permute.xlu1 %4220 }
 0x3e3   : > { %v7882_v15 = vpop.permute.xlu1 %4224 }
 0x3e4   : > { %5755 = vmatmul.mubr.msk.bf16.vlgmr.msra.gmra.mrb[32].mxu0 %vm493_vm0, %v7653_v11 }
 0x3e5   : > { %5758 = vmatprep.mubr.msk.bf16.mxu0 %vm493_vm0, %v7655_v58  ;;  %5787 = vmatpush3.bf16.msra.mxu0 %v6378_v49 }
 0x3e6   : > { %5788 = vmatprep.subr.bf16.mxu0 %v6379_v61 }
 0x3e7   : > { %v7884_v21 = vpop.permute.xlu1 %4228 }
 0x3e9   : > { %5789 = vmatpush3.bf16.msra.mxu0 %v6379_v61  ;;  %v8263_v61 = vld [vmem:[#allocation2_spill] sm:$0xff] }
 0x3ec   : > { %5759 = vmatmul.mubr.msk.bf16.gmra.mrb[36].mxu0 %vm493_vm0, %v7661_v57 }
 0x3ed   : > { %5762 = vmatprep.mubr.msk.bf16.mxu0 %vm493_vm0, %v7663_v54 }
 0x3f4   : > { %5763 = vmatmul.mubr.msk.bf16.gmra.mrb[40].mxu0 %vm493_vm0, %v7672_v22 }
 0x3f5   : > { %5766 = vmatprep.mubr.msk.bf16.mxu0 %vm493_vm0, %v7674_v34 }
 0x3fc   : > { %5767 = vmatmul.mubr.msk.bf16.gmra.mrb[44].mxu0 %vm493_vm0, %v7680_v37 }
 0x3fd   : > { %5770 = vmatprep.mubr.msk.bf16.mxu0 %vm493_vm0, %v7682_v28 }
 0x404   : > { %5771 = vmatmul.mubr.msk.bf16.gmra.mrb[48].mxu0 %vm493_vm0, %v7688_v38 }
 0x405   : > { %5774 = vmatprep.mubr.msk.bf16.mxu0 %vm493_vm0, %v7690_v62 }
 0x40c   : > { %5775 = vmatmul.mubr.msk.bf16.gmra.mrb[52].mxu0 %vm493_vm0, %v7698_v26 }
 0x40d   : > { %5778 = vmatprep.mubr.msk.bf16.mxu0 %vm493_vm0, %v7696_v41 }
 0x414   : > { %5779 = vmatmul.mubr.msk.bf16.gmra.mrb[56].mxu0 %vm493_vm0, %v7710_v31 }
 0x415   : > { %5782 = vmatprep.mubr.msk.bf16.mxu0 %vm493_vm0, %v3140_v1 }
 0x41c   : > { %5783 = vmatmul.mubr.bf16.gmra.mrb[60].mxu0 %v8260_v18 }
 0x41d   : > { %5790 = vmatprep.mubr.msk.bf16.mxu0 %vm493_vm0, %v7653_v11  ;;  %v7886_v11 = vpop.permute.xlu0 %4230 }
 0x424   : > { %5791 = vmatmul.mubr.msk.bf16.vlgmr.msra.gmra.mrb[32].mxu0 %vm493_vm0, %v7655_v58 }
 0x425   : > { %5794 = vmatprep.mubr.msk.bf16.mxu0 %vm493_vm0, %v7661_v57 }
 0x42c   : > { %5795 = vmatmul.mubr.msk.bf16.gmra.mrb[36].mxu0 %vm493_vm0, %v7663_v54 }
 0x42d   : > { %5798 = vmatprep.mubr.msk.bf16.mxu0 %vm493_vm0, %v7672_v22 }
 0x434   : > { %5799 = vmatmul.mubr.msk.bf16.gmra.mrb[40].mxu0 %vm493_vm0, %v7674_v34  ;;  %v7888_v34 = vpop.permute.xlu1 %4232 }
 0x435   : > { %5802 = vmatprep.mubr.msk.bf16.mxu0 %vm493_vm0, %v7680_v37 }
 0x438   : > { %v7892_v52 = vpop.permute.xlu1 %4236 }
 0x43c   : > { %5803 = vmatmul.mubr.msk.bf16.gmra.mrb[44].mxu0 %vm493_vm0, %v7682_v28  ;;  %v7890_v28 = vpop.permute.xlu0 %4234 }
 0x43d   : > { %5806 = vmatprep.mubr.msk.bf16.mxu0 %vm493_vm0, %v7688_v38  ;;  %v4368_v38 = vsub.f32 1.0, %v7412_v40 }
 0x43f   : > { %v4400_v4 = vmul.f32 %v4368_v38, %v8262_v48  ;;  %v8268_v38 = vld [vmem:[#allocation18_spill] sm:$0xff] }
 0x444   : > { %5807 = vmatmul.mubr.msk.bf16.gmra.mrb[48].mxu0 %vm493_vm0, %v7690_v62 }
 0x445   : > { %5810 = vmatprep.mubr.msk.bf16.mxu0 %vm493_vm0, %v7698_v26  ;;  %v4366_v26 = vsub.f32 1.0, %v7416_v51 }
 0x44c   : > { %5811 = vmatmul.mubr.msk.bf16.gmra.mrb[52].mxu0 %vm493_vm0, %v7696_v41 }
 0x44d   : > { %5814 = vmatprep.mubr.msk.bf16.mxu0 %vm493_vm0, %v7710_v31  ;;  %v4367_v31 = vsub.f32 1.0, %v7433_v27 }
 0x454   : > { %5815 = vmatmul.mubr.msk.bf16.gmra.mrb[56].mxu0 %vm493_vm0, %v3140_v1 }
 0x455   : > { %5818 = vmatprep.mubr.bf16.mxu0 %v8260_v18 }
 0x45c   : > { %5819 = vmatmul.mubr.bf16.gmra.mrb[60].mxu0 %v8260_v18  ;;  %v7899_v18 = vpop.permute.xlu0 %4238 }
 0x4f7   : > { %v5792_v32 = vpop.f32.mrb[32].mxu0 }
 0x4f8   : > { %v4304_v24 = vadd.f32 %v5792_v32, %v4211_v7  ;;  %v4015_v9 = vpop.f32.mrb[33].mxu0 }
 0x4f9   : > { %v4302_v58 = vadd.f32 %v4207_v60, %v4015_v9  ;;  %v5793_v57 = vpop.f32.mrb[34].mxu0  ;;  %v8264_v60 = vunpack.c.l.bf16 %v8263_v61  ;;  %v8266_v9 = vunpack.c.h.bf16 %v8263_v61 }
 0x4fa   : > { %6524 = vtanh.f32 %v4304_v24  ;;  %v4305_v54 = vadd.f32 %v5793_v57, %v4213_v5  ;;  %v4018_v22 = vpop.f32.mrb[35].mxu0 }
 0x4fb   : > { %6526 = vtanh.f32 %v4302_v58  ;;  %v4303_v37 = vadd.f32 %v4209_v13, %v4018_v22  ;;  %v4398_v13 = vmul.f32 %v4366_v26, %v8264_v60  ;;  %v4399_v58 = vmul.f32 %v4367_v31, %v8266_v9 }
 0x4fc   : > { %6528 = vtanh.f32 %v4305_v54 }
 0x4fd   : > { %6530 = vtanh.f32 %v4303_v37  ;;  %v8267_v37 = vld [vmem:[#allocation17_spill] sm:$0xff] }
 0x4ff   : > { %v5796_v46 = vpop.f32.mrb[36].mxu0 }
 0x500   : > { %v4308_v55 = vadd.f32 %v5796_v46, %v4219_v25  ;;  %v4031_v17 = vpop.f32.mrb[37].mxu0  ;;  %v4372_v46 = vsub.f32 1.0, %v8267_v37 }
 0x501   : > { %v4306_v62 = vadd.f32 %v4215_v2, %v4031_v17  ;;  %v5797_v41 = vpop.f32.mrb[38].mxu0  ;;  %v7912_v2 = vpop.permute.xlu1 %4240 }
 0x502   : > { %6532 = vtanh.f32 %v4308_v55  ;;  %v4309_v16 = vadd.f32 %v5797_v41, %v4221_v30  ;;  %v4034_v47 = vpop.f32.mrb[39].mxu0 }
 0x503   : > { %6534 = vtanh.f32 %v4306_v62  ;;  %v4307_v63 = vadd.f32 %v4217_v42, %v4034_v47  ;;  %v4370_v62 = vsub.f32 1.0, %v8268_v38 }
 0x504   : > { %v6525_v39 = vpop.eup %6524  ;;  %6536 = vtanh.f32 %v4309_v16 }
 0x505   : > { %v6527_v44 = vpop.eup %6526  ;;  %v4432_v49 = vmul.f32 %v6525_v39, %v7412_v40  ;;  %6538 = vtanh.f32 %v4307_v63  ;;  %v8265_v40 = vunpack.c.h.bf16 %v8261_v29  ;;  %v7936_v31 = vpop.permute.xlu1 %4244 }
 0x506   : > { %v6529_v1 = vpop.eup %6528  ;;  %v4430_v7 = vmul.f32 %v6527_v44, %v7416_v51 }
 0x507   : > { %v6531_v5 = vpop.eup %6530  ;;  %v4464_v42 = vadd.f32 %v4432_v49, %v4400_v4  ;;  %v4401_v25 = vmul.f32 %v4369_v12, %v8265_v40  ;;  %v4433_v30 = vmul.f32 %v6529_v1, %v7426_v19  ;;  %v5800_v32 = vpop.f32.mrb[40].mxu0  ;;  %v8270_v12 = vld [vmem:[#allocation20_spill] sm:$0xff] }
 0x508   : > { %v4462_v24 = vadd.f32 %v4430_v7, %v4398_v13  ;;  %v4431_v57 = vmul.f32 %v6531_v5, %v7433_v27  ;;  %v4312_v54 = vadd.f32 %v5800_v32, %v4227_v59  ;;  %v4047_v51 = vpop.f32.mrb[41].mxu0  ;;  %v7927_v27 = vpop.permute.xlu0 %4242  ;;  %v8269_v59 = vld [vmem:[#allocation19_spill] sm:$0xff]  ;;  %v4371_v63 = vsub.f32 1.0, %v8270_v12  ;;  %v8273_v49 = vld [vmem:[#allocation4_spill] sm:$0xff] }
 0x509   : > { %4496 = vst.msk [vmem:[%s7907_s16 + $0x10] sm:$0xff] %vm493_vm0, %v4464_v42  ;;  %v4465_v22 = vadd.f32 %v4433_v30, %v4401_v25  ;;  %v4310_v55 = vadd.f32 %v4223_v43, %v4047_v51  ;;  %v5801_v17 = vpop.f32.mrb[42].mxu0  ;;  %v4373_v16 = vsub.f32 1.0, %v8269_v59  ;;  %v8274_v1 = vunpack.c.l.bf16 %v8273_v49  ;;  %v8277_v51 = vld [vmem:[#allocation21_spill] sm:$0xff] }
 0x50a   : > { %4494 = vst.msk [vmem:[%s7907_s16] sm:$0xff] %vm493_vm0, %v4462_v24  ;;  %v4463_v19 = vadd.f32 %v4431_v57, %v4399_v58  ;;  %6540 = vtanh.f32 %v4312_v54  ;;  %v4313_v41 = vadd.f32 %v5801_v17, %v7884_v21  ;;  %v4050_v26 = vpop.f32.mrb[43].mxu0  ;;  %v8271_v21 = vld [vmem:[#allocation5_spill] sm:$0xff]  ;;  %v8276_v30 = vunpack.c.h.bf16 %v8273_v49 }
 0x50b   : > { %4497 = vst.msk [vmem:[%s7907_s16 + $0x18] sm:$0xff] %vm493_vm0, %v4465_v22  ;;  %6542 = vtanh.f32 %v4310_v55  ;;  %v4311_v47 = vadd.f32 %v7882_v15, %v4050_v26  ;;  %v8272_v44 = vunpack.c.l.bf16 %v8271_v21  ;;  %v4402_v15 = vmul.f32 %v4370_v62, %v8274_v1  ;;  %v8278_v62 = vld [vmem:[#allocation22_spill] sm:$0xff] }
 0x50c   : > { %v6533_v43 = vpop.eup %6532  ;;  %4495 = vst.msk [vmem:[%s7907_s16 + $0x8] sm:$0xff] %vm493_vm0, %v4463_v19  ;;  %6544 = vtanh.f32 %v4313_v41  ;;  %v8275_v7 = vunpack.c.h.bf16 %v8271_v21  ;;  %v4403_v32 = vmul.f32 %v4371_v63, %v8276_v30  ;;  %v7951_v57 = vpop.permute.xlu0 %4246  ;;  %v4376_v22 = vsub.f32 1.0, %v8277_v51  ;;  %v8282_v21 = vld [vmem:[#allocation6_spill] sm:$0xff] }
 0x50d   : > { %v6535_v39 = vpop.eup %6534  ;;  %v4404_v29 = vmul.f32 %v4372_v46, %v8272_v44  ;;  %v4436_v48 = vmul.f32 %v6533_v43, %v8267_v37  ;;  %6546 = vtanh.f32 %v4311_v47  ;;  %v4374_v17 = vsub.f32 1.0, %v7486_v35  ;;  %v8280_v43 = vld [vmem:[#allocation7_spill] sm:$0xff] }
 0x50e   : > { %v6537_v4 = vpop.eup %6536  ;;  %v4434_v61 = vmul.f32 %v6535_v39, %v8268_v38  ;;  %v4405_v5 = vmul.f32 %v4373_v16, %v8275_v7  ;;  %v7961_v38 = vpop.permute.xlu1 %4248  ;;  %v4377_v41 = vsub.f32 1.0, %v8278_v62  ;;  %v8283_v44 = vunpack.c.l.bf16 %v8282_v21 }
 0x50f   : > { %v6539_v60 = vpop.eup %6538  ;;  %v4468_v13 = vadd.f32 %v4436_v48, %v4404_v29  ;;  %v4437_v42 = vmul.f32 %v6537_v4, %v8269_v59  ;;  %v5804_v40 = vpop.f32.mrb[44].mxu0  ;;  %v8279_v59 = vld [vmem:[#allocation23_spill] sm:$0xff]  ;;  %v8284_v1 = vunpack.c.h.bf16 %v8280_v43  ;;  %v8285_v7 = vunpack.c.h.bf16 %v8282_v21 }
 0x510   : > { %v4466_v25 = vadd.f32 %v4434_v61, %v4402_v15  ;;  %v4435_v24 = vmul.f32 %v6539_v60, %v8270_v12  ;;  %v4316_v9 = vadd.f32 %v5804_v40, %v7890_v28  ;;  %v4063_v58 = vpop.f32.mrb[45].mxu0  ;;  %v4375_v16 = vsub.f32 1.0, %v8279_v59  ;;  %v4251_v4 = vpop.permute.xlu0 %4250 }
 0x511   : > { %4500 = vst.msk [vmem:[%s7907_s16 + $0x30] sm:$0xff] %vm493_vm0, %v4468_v13  ;;  %v4469_v54 = vadd.f32 %v4437_v42, %v4405_v5  ;;  %v4314_v37 = vadd.f32 %v7886_v11, %v4063_v58  ;;  %v5805_v46 = vpop.f32.mrb[46].mxu0  ;;  %v8281_v12 = vunpack.c.l.bf16 %v8280_v43  ;;  %v4406_v29 = vmul.f32 %v4374_v17, %v8283_v44 }
 0x512   : > { %4498 = vst.msk [vmem:[%s7907_s16 + $0x20] sm:$0xff] %vm493_vm0, %v4466_v25  ;;  %v4467_v55 = vadd.f32 %v4435_v24, %v4403_v32  ;;  %6548 = vtanh.f32 %v4316_v9  ;;  %v4317_v28 = vadd.f32 %v5805_v46, %v7892_v52  ;;  %v4066_v19 = vpop.f32.mrb[47].mxu0  ;;  %v4409_v15 = vmul.f32 %v4377_v41, %v8284_v1  ;;  %v4253_v25 = vpop.permute.xlu1 %4252  ;;  %v8286_v32 = vld [vmem:[#allocation24_spill] sm:$0xff]  ;;  %v8288_v46 = vld [vmem:[#allocation26_spill] sm:$0xff] }
 0x513   : > { %4501 = vst.msk [vmem:[%s7907_s16 + $0x38] sm:$0xff] %vm493_vm0, %v4469_v54  ;;  %6550 = vtanh.f32 %v4314_v37  ;;  %v4315_v26 = vadd.f32 %v7888_v34, %v4066_v19  ;;  %v4408_v52 = vmul.f32 %v4376_v22, %v8281_v12  ;;  %v4407_v5 = vmul.f32 %v4375_v16, %v8285_v7  ;;  %v8296_v7 = vld [vmem:[#allocation28_spill] sm:$0xff] }
 0x514   : > { %v6541_v11 = vpop.eup %6540  ;;  %4499 = vst.msk [vmem:[%s7907_s16 + $0x28] sm:$0xff] %vm493_vm0, %v4467_v55  ;;  %6552 = vtanh.f32 %v4317_v28  ;;  %v4380_v24 = vsub.f32 1.0, %v8286_v32  ;;  %v4381_v55 = vsub.f32 1.0, %v8288_v46  ;;  %v4255_v41 = vpop.permute.xlu0 %4254 }
 0x515   : > { %v6543_v47 = vpop.eup %6542  ;;  %v4440_v63 = vmul.f32 %v6541_v11, %v8277_v51  ;;  %6554 = vtanh.f32 %v4315_v26  ;;  %v8287_v51 = vld [vmem:[#allocation25_spill] sm:$0xff] }
 0x516   : > { %v6545_v39 = vpop.eup %6544  ;;  %v4438_v34 = vmul.f32 %v6543_v47, %v7486_v35  ;;  %v4378_v22 = vsub.f32 1.0, %v8287_v51  ;;  %v8290_v26 = vld [vmem:[#allocation9_spill] sm:$0xff]  ;;  %v8292_v47 = vld [vmem:[#allocation8_spill] sm:$0xff] }
 0x517   : > { %v6547_v48 = vpop.eup %6546  ;;  %v4472_v49 = vadd.f32 %v4440_v63, %v4408_v52  ;;  %v4441_v61 = vmul.f32 %v6545_v39, %v8278_v62  ;;  %v5808_v60 = vpop.f32.mrb[48].mxu0  ;;  %v8291_v11 = vunpack.c.l.bf16 %v8290_v26  ;;  %v8293_v43 = vunpack.c.l.bf16 %v8292_v47 }
 0x518   : > { %v4470_v13 = vadd.f32 %v4438_v34, %v4406_v29  ;;  %v4439_v42 = vmul.f32 %v6547_v48, %v8279_v59  ;;  %v4320_v40 = vadd.f32 %v5808_v60, %v7927_v27  ;;  %v4079_v35 = vpop.f32.mrb[49].mxu0  ;;  %v8004_v63 = vpop.permute.xlu1 %4256  ;;  %v8294_v21 = vunpack.c.h.bf16 %v8290_v26 }
 0x519   : > { %4504 = vst.msk [vmem:[%s7907_s16 + $0x50] sm:$0xff] %vm493_vm0, %v4472_v49  ;;  %v4473_v30 = vadd.f32 %v4441_v61, %v4409_v15  ;;  %v4318_v9 = vadd.f32 %v7899_v18, %v4079_v35  ;;  %v5809_v58 = vpop.f32.mrb[50].mxu0  ;;  %v8289_v18 = vld [vmem:[#allocation27_spill] sm:$0xff]  ;;  %v4412_v59 = vmul.f32 %v4380_v24, %v8291_v11  ;;  %v4410_v12 = vmul.f32 %v4378_v22, %v8293_v43 }
 0x51a   : > { %4502 = vst.msk [vmem:[%s7907_s16 + $0x40] sm:$0xff] %vm493_vm0, %v4470_v13  ;;  %v4471_v54 = vadd.f32 %v4439_v42, %v4407_v5  ;;  %6556 = vtanh.f32 %v4320_v40  ;;  %v4321_v37 = vadd.f32 %v5809_v58, %v7936_v31  ;;  %v4082_v27 = vpop.f32.mrb[51].mxu0  ;;  %v4379_v19 = vsub.f32 1.0, %v8289_v18 }
 0x51b   : > { %4505 = vst.msk [vmem:[%s7907_s16 + $0x58] sm:$0xff] %vm493_vm0, %v4473_v30  ;;  %6558 = vtanh.f32 %v4318_v9  ;;  %v4319_v17 = vadd.f32 %v7912_v2, %v4082_v27  ;;  %v4413_v44 = vmul.f32 %v4381_v55, %v8294_v21  ;;  %v8295_v49 = vunpack.c.h.bf16 %v8292_v47  ;;  %v4259_v9 = vpop.permute.xlu0 %4258  ;;  %v8298_v27 = vld [vmem:[#allocation11_spill] sm:$0xff] }
 0x51c   : > { %v6549_v28 = vpop.eup %6548  ;;  %4503 = vst.msk [vmem:[%s7907_s16 + $0x48] sm:$0xff] %vm493_vm0, %v4471_v54  ;;  %6560 = vtanh.f32 %v4321_v37  ;;  %v4384_v5 = vsub.f32 1.0, %v8296_v7  ;;  %v4382_v30 = vsub.f32 1.0, %v7548_v14  ;;  %v4261_v37 = vpop.permute.xlu1 %4260  ;;  %v8302_v11 = vunpack.c.h.bf16 %v8298_v27 }
 0x51d   : > { %v6551_v62 = vpop.eup %6550  ;;  %v4444_v31 = vmul.f32 %v6549_v28, %v8286_v32  ;;  %6562 = vtanh.f32 %v4319_v17  ;;  %v4411_v1 = vmul.f32 %v4379_v19, %v8295_v49  ;;  %v8300_v28 = vld [vmem:[#allocation10_spill] sm:$0xff] }
 0x51e   : > { %v6553_v16 = vpop.eup %6552  ;;  %v4442_v2 = vmul.f32 %v6551_v62, %v8287_v51  ;;  %v8303_v43 = vunpack.c.h.bf16 %v8300_v28 }
 0x51f   : > { %v6555_v52 = vpop.eup %6554  ;;  %v4476_v39 = vadd.f32 %v4444_v31, %v4412_v59  ;;  %v4445_v29 = vmul.f32 %v6553_v16, %v8288_v46  ;;  %v5812_v34 = vpop.f32.mrb[52].mxu0  ;;  %v8299_v46 = vunpack.c.l.bf16 %v8298_v27 }
 0x520   : > { %v4474_v48 = vadd.f32 %v4442_v2, %v4410_v12  ;;  %v4443_v15 = vmul.f32 %v6555_v52, %v8289_v18  ;;  %v4324_v61 = vadd.f32 %v5812_v34, %v4251_v4  ;;  %v4095_v60 = vpop.f32.mrb[53].mxu0  ;;  %v4385_v4 = vsub.f32 1.0, %v7551_v53  ;;  %v4263_v21 = vpop.permute.xlu0 %4262 }
 0x521   : > { %4508 = vst.msk [vmem:[%s7907_s16 + $0x70] sm:$0xff] %vm493_vm0, %v4476_v39  ;;  %v4477_v13 = vadd.f32 %v4445_v29, %v4413_v44  ;;  %v4322_v42 = vadd.f32 %v7951_v57, %v4095_v60  ;;  %v5813_v40 = vpop.f32.mrb[54].mxu0  ;;  %v8297_v57 = vld [vmem:[#allocation29_spill] sm:$0xff]  ;;  %v8301_v18 = vunpack.c.l.bf16 %v8300_v28  ;;  %v4388_v44 = vsub.f32 1.0, %v7560_v8 }
 0x522   : > { %4506 = vst.msk [vmem:[%s7907_s16 + $0x60] sm:$0xff] %vm493_vm0, %v4474_v48  ;;  %v4475_v35 = vadd.f32 %v4443_v15, %v4411_v1  ;;  %6564 = vtanh.f32 %v4324_v61  ;;  %v4325_v32 = vadd.f32 %v5813_v40, %v4253_v25  ;;  %v4098_v24 = vpop.f32.mrb[55].mxu0  ;;  %v4383_v51 = vsub.f32 1.0, %v8297_v57  ;;  %v4265_v15 = vpop.permute.xlu1 %4264 }
 0x523   : > { %4509 = vst.msk [vmem:[%s7907_s16 + $0x78] sm:$0xff] %vm493_vm0, %v4477_v13  ;;  %6566 = vtanh.f32 %v4322_v42  ;;  %v4323_v58 = vadd.f32 %v7961_v38, %v4098_v24  ;;  %v4416_v25 = vmul.f32 %v4384_v5, %v8299_v46  ;;  %v4414_v19 = vmul.f32 %v4382_v30, %v8301_v18  ;;  %v8305_v42 = vld [vmem:[#allocation13_spill] sm:$0xff]  ;;  %v8307_v24 = vld [vmem:[#allocation12_spill] sm:$0xff] }
 0x524   : > { %v6557_v54 = vpop.eup %6556  ;;  %4507 = vst.msk [vmem:[%s7907_s16 + $0x68] sm:$0xff] %vm493_vm0, %v4475_v35  ;;  %6568 = vtanh.f32 %v4325_v32  ;;  %v4417_v59 = vmul.f32 %v4385_v4, %v8302_v11  ;;  %v4415_v12 = vmul.f32 %v4383_v51, %v8303_v43  ;;  %v4386_v48 = vsub.f32 1.0, %v7563_v20 }
 0x525   : > { %v6559_v22 = vpop.eup %6558  ;;  %v4448_v55 = vmul.f32 %v6557_v54, %v8296_v7  ;;  %6570 = vtanh.f32 %v4323_v58  ;;  %v4389_v61 = vsub.f32 1.0, %v7565_v56  ;;  %v8306_v40 = vunpack.c.l.bf16 %v8305_v42  ;;  %v4267_v54 = vpop.permute.xlu0 %4266 }
 0x526   : > { %v6561_v17 = vpop.eup %6560  ;;  %v4446_v38 = vmul.f32 %v6559_v22, %v7548_v14  ;;  %v8309_v51 = vunpack.c.h.bf16 %v8305_v42  ;;  %v4390_v11 = vsub.f32 1.0, %v7577_v3 }
 0x527   : > { %v6563_v62 = vpop.eup %6562  ;;  %v4480_v26 = vadd.f32 %v4448_v55, %v4416_v25  ;;  %v4449_v31 = vmul.f32 %v6561_v17, %v7551_v53  ;;  %v5816_v16 = vpop.f32.mrb[56].mxu0  ;;  %v4420_v35 = vmul.f32 %v4388_v44, %v8306_v40  ;;  %v4396_v40 = vsub.f32 1.0, %v7704_v50 }
 0x528   : > { %v4478_v47 = vadd.f32 %v4446_v38, %v4414_v19  ;;  %v4447_v2 = vmul.f32 %v6563_v62, %v8297_v57  ;;  %v4328_v52 = vadd.f32 %v5816_v16, %v4259_v9  ;;  %v4111_v39 = vpop.f32.mrb[57].mxu0  ;;  %v8308_v9 = vunpack.c.l.bf16 %v8307_v24  ;;  %v8311_v19 = vld [vmem:[#allocation31_spill] sm:$0xff]  ;;  %v8312_v16 = vld [vmem:[#allocation32_spill] sm:$0xff] }
 0x529   : > { %4512 = vst.msk [vmem:[%s7907_s16 + $0x90] sm:$0xff] %vm493_vm0, %v4480_v26  ;;  %v4481_v14 = vadd.f32 %v4449_v31, %v4417_v59  ;;  %v4326_v29 = vadd.f32 %v4255_v41, %v4111_v39  ;;  %v5817_v34 = vpop.f32.mrb[58].mxu0  ;;  %v8304_v41 = vld [vmem:[#allocation30_spill] sm:$0xff]  ;;  %v4421_v22 = vmul.f32 %v4389_v61, %v8309_v51  ;;  %v4392_v38 = vsub.f32 1.0, %v8311_v19  ;;  %v8313_v39 = vld [vmem:[#allocation15_spill] sm:$0xff] }
 0x52a   : > { %4510 = vst.msk [vmem:[%s7907_s16 + $0x80] sm:$0xff] %vm493_vm0, %v4478_v47  ;;  %v4479_v53 = vadd.f32 %v4447_v2, %v4415_v12  ;;  %6572 = vtanh.f32 %v4328_v52  ;;  %v4329_v49 = vadd.f32 %v5817_v34, %v4261_v37  ;;  %v4114_v1 = vpop.f32.mrb[59].mxu0  ;;  %v4387_v7 = vsub.f32 1.0, %v8304_v41  ;;  %v8315_v34 = vld [vmem:[#allocation14_spill] sm:$0xff] }
 0x52b   : > { %4513 = vst.msk [vmem:[%s7907_s16 + $0x98] sm:$0xff] %vm493_vm0, %v4481_v14  ;;  %6574 = vtanh.f32 %v4326_v29  ;;  %v4327_v60 = vadd.f32 %v8004_v63, %v4114_v1  ;;  %v4418_v4 = vmul.f32 %v4386_v48, %v8308_v9  ;;  %v4393_v47 = vsub.f32 1.0, %v8312_v16 }
 0x52c   : > { %v6565_v13 = vpop.eup %6564  ;;  %4511 = vst.msk [vmem:[%s7907_s16 + $0x88] sm:$0xff] %vm493_vm0, %v4479_v53  ;;  %6576 = vtanh.f32 %v4329_v49  ;;  %v4391_v2 = vsub.f32 1.0, %v7581_v45  ;;  %v8316_v53 = vunpack.c.l.bf16 %v8315_v34  ;;  %v8317_v61 = vunpack.c.h.bf16 %v8313_v39 }
 0x52d   : > { %v6567_v5 = vpop.eup %6566  ;;  %v4452_v30 = vmul.f32 %v6565_v13, %v7560_v8  ;;  %6578 = vtanh.f32 %v4327_v60  ;;  %v8310_v8 = vunpack.c.h.bf16 %v8307_v24 }
 0x52e   : > { %v6569_v32 = vpop.eup %6568  ;;  %v4450_v63 = vmul.f32 %v6567_v5, %v7563_v20  ;;  %v4269_v20 = vpop.permute.xlu1 %4268  ;;  %v4422_v48 = vmul.f32 %v4390_v11, %v8316_v53  ;;  %v4425_v60 = vmul.f32 %v4393_v47, %v8317_v61 }
 0x52f   : > { %v6571_v58 = vpop.eup %6570  ;;  %v4484_v57 = vadd.f32 %v4452_v30, %v4420_v35  ;;  %v4453_v37 = vmul.f32 %v6569_v32, %v7565_v56  ;;  %v5820_v27 = vpop.f32.mrb[60].mxu0  ;;  %v4419_v25 = vmul.f32 %v4387_v7, %v8310_v8  ;;  %v8318_v7 = vunpack.c.h.bf16 %v8315_v34 }
 0x530   : > { %v4482_v46 = vadd.f32 %v4450_v63, %v4418_v4  ;;  %v4451_v55 = vmul.f32 %v6571_v58, %v8304_v41  ;;  %v4332_v17 = vadd.f32 %v5820_v27, %v4267_v54  ;;  %v4127_v28 = vpop.f32.mrb[61].mxu0  ;;  %v4394_v30 = vsub.f32 1.0, %v7598_v23  ;;  %v8319_v54 = vld [vmem:[#allocation16_spill] sm:$0xff] }
 0x531   : > { %4516 = vst.msk [vmem:[%s7907_s16 + $0xb0] sm:$0xff] %vm493_vm0, %v4484_v57  ;;  %v4485_v18 = vadd.f32 %v4453_v37, %v4421_v22  ;;  %v4330_v62 = vadd.f32 %v4263_v21, %v4127_v28  ;;  %v5821_v26 = vpop.f32.mrb[62].mxu0  ;;  %v8314_v21 = vunpack.c.l.bf16 %v8313_v39  ;;  %v4423_v5 = vmul.f32 %v4391_v2, %v8318_v7 }
 0x532   : > { %4514 = vst.msk [vmem:[%s7907_s16 + $0xa0] sm:$0xff] %vm493_vm0, %v4482_v46  ;;  %v4483_v56 = vadd.f32 %v4451_v55, %v4419_v25  ;;  %6580 = vtanh.f32 %v4332_v17  ;;  %v4333_v59 = vadd.f32 %v5821_v26, %v4269_v20  ;;  %v4130_v31 = vpop.f32.mrb[63].mxu0  ;;  %v4397_v32 = vsub.f32 1.0, %v7706_v0 }
 0x533   : > { %4517 = vst.msk [vmem:[%s7907_s16 + $0xb8] sm:$0xff] %vm493_vm0, %v4485_v18  ;;  %6582 = vtanh.f32 %v4330_v62  ;;  %v4331_v43 = vadd.f32 %v4265_v15, %v4130_v31  ;;  %v4424_v14 = vmul.f32 %v4392_v38, %v8314_v21  ;;  %v4428_v4 = vmul.f32 %v4396_v40, %v2915_v10 }
 0x534   : > { %v6573_v12 = vpop.eup %6572  ;;  %4515 = vst.msk [vmem:[%s7907_s16 + $0xa8] sm:$0xff] %vm493_vm0, %v4483_v56  ;;  %6584 = vtanh.f32 %v4333_v59  ;;  %v8320_v57 = vunpack.c.l.bf16 %v8319_v54  ;;  %v4429_v27 = vmul.f32 %v4397_v32, %v2916_v6  ;;  %v8321_v10 = vunpack.c.h.bf16 %v8319_v54 }
 0x535   : > { %v6575_v52 = vpop.eup %6574  ;;  %v4456_v44 = vmul.f32 %v6573_v12, %v8311_v19  ;;  %6586 = vtanh.f32 %v4331_v43 }
 0x536   : > { %v6577_v29 = vpop.eup %6576  ;;  %v4454_v49 = vmul.f32 %v6575_v52, %v7577_v3  ;;  %v4426_v51 = vmul.f32 %v4394_v30, %v8320_v57 }
 0x537   : > { %v6579_v1 = vpop.eup %6578  ;;  %v4488_v15 = vadd.f32 %v4456_v44, %v4424_v14  ;;  %v4457_v13 = vmul.f32 %v6577_v29, %v8312_v16 }
 0x538   : > { %v4486_v41 = vadd.f32 %v4454_v49, %v4422_v48  ;;  %v4455_v42 = vmul.f32 %v6579_v1, %v7581_v45  ;;  %v4395_v45 = vsub.f32 1.0, %v7600_v36 }
 0x539   : > { %4520 = vst.msk [vmem:[%s7907_s16 + $0xd0] sm:$0xff] %vm493_vm0, %v4488_v15  ;;  %v4489_v35 = vadd.f32 %v4457_v13, %v4425_v60 }
 0x53a   : > { %4518 = vst.msk [vmem:[%s7907_s16 + $0xc0] sm:$0xff] %vm493_vm0, %v4486_v41  ;;  %v4487_v3 = vadd.f32 %v4455_v42, %v4423_v5  ;;  %v4427_v55 = vmul.f32 %v4395_v45, %v8321_v10 }
 0x53b   : > { %4521 = vst.msk [vmem:[%s7907_s16 + $0xd8] sm:$0xff] %vm493_vm0, %v4489_v35 }
 0x53c   : > { %v6581_v24 = vpop.eup %6580  ;;  %4519 = vst.msk [vmem:[%s7907_s16 + $0xc8] sm:$0xff] %vm493_vm0, %v4487_v3 }
 0x53d   : > { %v6583_v9 = vpop.eup %6582  ;;  %v4460_v63 = vmul.f32 %v6581_v24, %v7704_v50 }
 0x53e   : > { %v6585_v58 = vpop.eup %6584  ;;  %v4458_v22 = vmul.f32 %v6583_v9, %v7598_v23 }
 0x53f   : > { %v6587_v37 = vpop.eup %6586  ;;  %v4492_v46 = vadd.f32 %v4460_v63, %v4428_v4  ;;  %v4461_v8 = vmul.f32 %v6585_v58, %v7706_v0 }
 0x540   : > { %v4490_v25 = vadd.f32 %v4458_v22, %v4426_v51  ;;  %v4459_v50 = vmul.f32 %v6587_v37, %v7600_v36 }
 0x541   : > { %4524 = vst.msk [vmem:[%s7907_s16 + $0xf0] sm:$0xff] %vm493_vm0, %v4492_v46  ;;  %v4493_v17 = vadd.f32 %v4461_v8, %v4429_v27 }
 0x542   : > { %4522 = vst.msk [vmem:[%s7907_s16 + $0xe0] sm:$0xff] %vm493_vm0, %v4490_v25  ;;  %v4491_v28 = vadd.f32 %v4459_v50, %v4427_v55 }
 0x543   : > { %4525 = vst.msk [vmem:[%s7907_s16 + $0xf8] sm:$0xff] %vm493_vm0, %v4493_v17 }
 0x544   : > { %4523 = vst.msk [vmem:[%s7907_s16 + $0xe8] sm:$0xff] %vm493_vm0, %v4491_v28 }
 0x545 PF: > { %s16_s23 = sadd.s32 1, %s6611_s23   ;;  %s8322_s21 = smov %s6607_s22 }
 0x546   : > { %p13_p5 = scmp.ge.s32.totalorder %s16_s23, 4   ;;  %s8323_s22 = smov %s8325_s24 }
 0x548   :  { %15 = sbr.rel (!%p13_p5) target bundleno = 2 (0x2), region = 89 }

// kernel: sepconv_gru_forward.2
= control target key start
LH: loop header
LB: loop body
LE: loop exit
PB: predicated region body
PF: predicated region fallthrough
CT: control target
= control target key end

     0   :  { %s8899_s21 = smov 0   ;;  %s8901_s22 = smov 0   ;;  %s11806_s0 = inlined_call_operand.vmem [shape: bf16[2,16,16,32], index: 0, kind: input, shape index: {}]   ;;  %s11807_s1 = inlined_call_operand.vmem [shape: bf16[2,16,16,32], index: 1, kind: input, shape index: {}]   ;;  %s11808_s2 = inlined_call_operand.vmem [shape: bf16[5,32,96], index: 2, kind: input, shape index: {}]   ;;  %s11809_s3 = inlined_call_operand.vmem [shape: f32[1,96], index: 3, kind: input, shape index: {}]   ;;  %s11810_s4 = inlined_call_operand.vmem [shape: bf16[5,32,64], index: 4, kind: input, shape index: {}]   ;;  %s11811_s5 = inlined_call_operand.vmem [shape: bf16[5,32,32], index: 5, kind: input, shape index: {}]   ;;  %s11812_s6 = inlined_call_operand.vmem [shape: bf16[2,16,16,32], index: 6, kind: output, shape index: {}]  }
   0x1   :  { %s8903_s23 = smov 0  }
   0x2 LB: > { %s28_s24 = sadd.s32 1, %s8855_s22  ;;  %p6803_p0 = scmp.ge.s32.totalorder %s8859_s23, 1  ;;  %s8859_s23 = sphi %s8903_s23, %s16_s23   ;;  %s8855_s22 = sphi %s8901_s22, %s12414_s22   ;;  %s8851_s21 = sphi %s8899_s21, %s12413_s21  }
   0x3   : > { %p30_p1 = scmp.ge.s32.totalorder %s28_s24, 2  ;;  %p252_p2 = scmp.lt.s32.totalorder %s8859_s23, 3 }
   0x5   : > { %s12416_s24 = smov (%p30_p1, %s28_s24), 0  ;;  %p253_p3 = pnand %p6803_p0, %p252_p2 }
   0x7   : > { %256 = sbr.rel (%p253_p3) target bundleno = 1374 (0x55e), region = 44 }
   0xe   : > { %v8920_v0 = vld [vmem:[%s11808_s2 + $0x20] sm:$0xff]   ;;  %p303_p4 = scmp.lt.s32.totalorder %s8851_s21, 1  ;;  %v8568_v1 = vld [vmem:[%s11808_s2 + $0x10] sm:$0xff]   ;;  %v8929_v2 = vld [vmem:[%s11808_s2 + $0x28] sm:$0xff]   ;;  %vm496_vm0 = vcmask 1040384   ;;  %vm728_vm2 = vcmask 261120  }
   0xf   : > { %7604 = vmatprep.subr.bf16.mxu0 %v8920_v0  ;;  %7532 = vmatprep.subr.bf16.mxu1 %v8568_v1  ;;  %v8570_v3 = vld [vmem:[%s11808_s2 + $0x18] sm:$0xff]   ;;  %v8947_v4 = vld [vmem:[%s11808_s2] sm:$0xff]   ;;  %vm550_vm1 = vsmask.f32 7424  ;;  %vm1175_vm3 = vcmask 1046528   ;;  %v8580_v44 = vld [vmem:[%s11808_s2 + $0x30] sm:$0xff]  }
  0x10   : > { %s12418_s21 = smov (!%p303_p4, %s8851_s21), 1  ;;  %7605 = vmatpush3.bf16.msra.mxu0 %v8920_v0  ;;  %7533 = vmatpush3.bf16.msra.mxu1 %v8568_v1  ;;  %v8581_v49 = vld [vmem:[%s11808_s2 + $0x38] sm:$0xff]   ;;  %v8583_v59 = vld [vmem:[%s11808_s2 + $0x8] sm:$0xff]   ;;  %vm1482_vm4 = vsmask.f32 6400  ;;  %vm1885_vm5 = vcmask 1045504  }
  0x11   : > { %7606 = vmatprep.subr.bf16.mxu0 %v8929_v2  ;;  %s8936_s9 = sshll.u32 %s12418_s21, 7  ;;  %7534 = vmatprep.subr.bf16.mxu1 %v8570_v3  ;;  %s8861_s29 = smov 32   ;;  %vm6649_vm6 = vcmask 257024  }
  0x12   : > { %s8942_s12 = scalar_lea.vmem %s11807_s1, %s8936_s9  ;;  %s9519_s8 = scalar_lea.vmem %s11806_s0, %s8936_s9 }
  0x13   : > { %v8571_v5 = vld [vmem:[%s8942_s12] sm:$0xff]   ;;  %v8572_v6 = vld [vmem:[%s8942_s12 + $0x8] sm:$0xff]   ;;  %v8574_v8 = vld [vmem:[%s8942_s12 + $0x10] sm:$0xff]   ;;  %s8862_s15 = smov 96   ;;  %s8863_s18 = smov 64  }
  0x14   : > { %7607 = vmatpush3.bf16.msra.mxu0 %v8929_v2  ;;  %v480_v7 = vrot.slane %v8571_v5, 7  ;;  %7535 = vmatpush3.bf16.msra.mxu1 %v8570_v3  ;;  %v481_v9 = vrot.slane %v8572_v6, 7  ;;  %v482_v12 = vrot.slane %v8574_v8, 7  ;;  %v8575_v25 = vld [vmem:[%s8942_s12 + $0x18] sm:$0xff]   ;;  %v8576_v38 = vld [vmem:[%s8942_s12 + $0x20] sm:$0xff]   ;;  %v8577_v39 = vld [vmem:[%s8942_s12 + $0x28] sm:$0xff]  }
  0x15   : > { %7568 = vmatprep.subr.bf16.mxu1 %v8947_v4  ;;  %v483_v43 = vrot.slane %v8575_v25, 7  ;;  %v8578_v54 = vld [vmem:[%s8942_s12 + $0x30] sm:$0xff]   ;;  %7640 = vmatprep.subr.bf16.mxu0 %v8580_v44  ;;  %v484_v5 = vrot.slane %v8576_v38, 7  ;;  %v485_v6 = vrot.slane %v8577_v39, 7 }
  0x16   : > { %v8955_v10 = vsel %vm496_vm0, 0, %v480_v7  ;;  %v8958_v11 = vsel %vm496_vm0, %v480_v7, 0  ;;  %v8963_v15 = vsel %vm496_vm0, 0, %v481_v9  ;;  %v8966_v16 = vsel %vm496_vm0, %v481_v9, 0 }
  0x17   : > { %v1176_v13 = vrot.slane %v8955_v10, 1  ;;  %v1177_v14 = vrot.slane %v8958_v11, 1  ;;  %v1179_v17 = vrot.slane %v8963_v15, 1  ;;  %v1180_v18 = vrot.slane %v8966_v16, 1 }
  0x18   : > { %v551_v19 = vshrl.u32 %v8955_v10, 16  ;;  %v553_v20 = vshll.u32 %v8955_v10, 16  ;;  %v557_v22 = vshll.u32 %v8958_v11, 16  ;;  %v561_v23 = vshrl.u32 %v8963_v15, 16 }
  0x19   : > { %v1178_v21 = vsel %vm1175_vm3, %v1176_v13, %v1177_v14  ;;  %v563_v24 = vshll.u32 %v8963_v15, 16  ;;  %v1181_v26 = vsel %vm1175_vm3, %v1179_v17, %v1180_v18  ;;  %v567_v29 = vshll.u32 %v8966_v16, 16 }
  0x1a   : > { %7608 = vmatprep.mubr.msk.bf16.mxu0 %vm728_vm2, %v1178_v21  ;;  %v555_v27 = vrot.slane %v553_v20, 1  ;;  %v8981_v28 = vrot.slane %v551_v19, 1  ;;  %v559_v30 = vrot.slane %v557_v22, 1  ;;  %v8985_v31 = vrot.slane %v557_v22, 2 }
  0x1b   : > { %7609 = vmatmul.mubr.msk.bf16.vlgmr.msra.gmra.mrb[0].mxu0 %vm728_vm2, %v1181_v26  ;;  %v565_v32 = vrot.slane %v563_v24, 1  ;;  %v8987_v33 = vrot.slane %v561_v23, 1  ;;  %v569_v35 = vrot.slane %v567_v29, 1  ;;  %v8989_v36 = vrot.slane %v563_v24, 2 }
  0x1c   : > { %v556_v34 = vor.u32 %v555_v27, %v551_v19  ;;  %v8991_v37 = vrot.slane %v567_v29, 2  ;;  %v8996_v41 = vsel %vm496_vm0, 0, %v482_v12  ;;  %v8999_v42 = vsel %vm496_vm0, %v482_v12, 0  ;;  %7641 = vmatpush3.bf16.msra.mxu0 %v8580_v44  ;;  %v8579_v12 = vld [vmem:[%s8942_s12 + $0x38] sm:$0xff]  }
  0x1d   : > { %v566_v40 = vor.u32 %v565_v32, %v561_v23  ;;  %v1182_v46 = vrot.slane %v8996_v41, 1  ;;  %v1183_v47 = vrot.slane %v8999_v42, 1  ;;  %v571_v48 = vshrl.u32 %v8996_v41, 16  ;;  %7642 = vmatprep.subr.bf16.mxu0 %v8581_v49 }
  0x1e   : > { %v560_v45 = vsel %vm550_vm1, %v556_v34, %v559_v30  ;;  %v9014_v51 = vsel %vm496_vm0, 0, %v483_v43  ;;  %v9017_v52 = vsel %vm496_vm0, %v483_v43, 0  ;;  %v573_v53 = vshll.u32 %v8996_v41, 16 }
  0x1f   : > { %7536 = vmatprep.mubr.msk.bf16.mxu1 %vm728_vm2, %v560_v45  ;;  %v570_v50 = vsel %vm550_vm1, %v566_v40, %v569_v35  ;;  %v1184_v55 = vsel %vm1175_vm3, %v1182_v46, %v1183_v47  ;;  %v1185_v56 = vrot.slane %v9014_v51, 1  ;;  %v1186_v57 = vrot.slane %v9017_v52, 1 }
  0x20   : > { %7537 = vmatmul.mubr.msk.bf16.vlgmr.msra.gmra.mrb[0].mxu1 %vm728_vm2, %v570_v50  ;;  %v577_v58 = vshll.u32 %v8999_v42, 16  ;;  %7612 = vmatprep.mubr.msk.bf16.mxu0 %vm728_vm2, %v1184_v55  ;;  %v575_v60 = vrot.slane %v573_v53, 1  ;;  %v581_v61 = vshrl.u32 %v9014_v51, 16  ;;  %v583_v62 = vshll.u32 %v9014_v51, 16 }
  0x21   : > { %7569 = vmatpush3.bf16.msra.mxu1 %v8947_v4  ;;  %v587_v63 = vshll.u32 %v9017_v52, 16  ;;  %v1187_v1 = vsel %vm1175_vm3, %v1185_v56, %v1186_v57  ;;  %v486_v9 = vrot.slane %v8578_v54, 7  ;;  %v9048_v13 = vsel %vm496_vm0, 0, %v484_v5  ;;  %7643 = vmatpush3.bf16.msra.mxu0 %v8581_v49 }
  0x22   : > { %v579_v3 = vrot.slane %v577_v58, 1  ;;  %7570 = vmatprep.subr.bf16.mxu1 %v8583_v59  ;;  %v576_v4 = vor.u32 %v575_v60, %v571_v48  ;;  %v585_v7 = vrot.slane %v583_v62, 1  ;;  %v9051_v14 = vsel %vm496_vm0, %v484_v5, 0 }
  0x23   : > { %7613 = vmatmul.mubr.msk.bf16.gmra.mrb[4].mxu0 %vm728_vm2, %v1187_v1  ;;  %v589_v8 = vrot.slane %v587_v63, 1  ;;  %v9054_v17 = vsel %vm496_vm0, 0, %v485_v6  ;;  %v9057_v18 = vsel %vm496_vm0, %v485_v6, 0  ;;  %v1188_v22 = vrot.slane %v9048_v13, 1  ;;  %v8582_v6 = vld [vmem:[%s8942_s12 + $0x40] sm:$0xff]  }
  0x24   : > { %v580_v19 = vsel %vm550_vm1, %v576_v4, %v579_v3  ;;  %v586_v21 = vor.u32 %v585_v7, %v581_v61  ;;  %v1189_v23 = vrot.slane %v9051_v14, 1  ;;  %v1191_v24 = vrot.slane %v9054_v17, 1 }
  0x25   : > { %7571 = vmatpush3.bf16.msra.mxu1 %v8583_v59  ;;  %7540 = vmatprep.mubr.msk.bf16.mxu1 %vm728_vm2, %v580_v19  ;;  %v1192_v25 = vrot.slane %v9057_v18, 1  ;;  %v591_v26 = vshrl.u32 %v9048_v13, 16  ;;  %v593_v27 = vshll.u32 %v9048_v13, 16  ;;  %v597_v32 = vshll.u32 %v9051_v14, 16 }
  0x26   : > { %8072 = vmatprep.subr.bf16.mxu1 %v8920_v0  ;;  %v590_v29 = vsel %vm550_vm1, %v586_v21, %v589_v8  ;;  %v1190_v30 = vsel %vm1175_vm3, %v1188_v22, %v1189_v23  ;;  %v601_v34 = vshrl.u32 %v9054_v17, 16  ;;  %v603_v39 = vshll.u32 %v9054_v17, 16 }
  0x27   : > { %7616 = vmatprep.mubr.msk.bf16.mxu0 %vm728_vm2, %v1190_v30  ;;  %v1193_v35 = vsel %vm1175_vm3, %v1191_v24, %v1192_v25  ;;  %v595_v38 = vrot.slane %v593_v27, 1  ;;  %v607_v40 = vshll.u32 %v9057_v18, 16  ;;  %v599_v43 = vrot.slane %v597_v32, 1  ;;  %v9131_v30 = vld [vmem:[%s11808_s2 + $0x40] sm:$0xff]  }
  0x28   : > { %7541 = vmatmul.mubr.msk.bf16.gmra.mrb[4].mxu1 %vm728_vm2, %v590_v29  ;;  %v9084_v44 = vsel %vm496_vm0, 0, %v486_v9  ;;  %v9087_v45 = vsel %vm496_vm0, %v486_v9, 0  ;;  %v487_v46 = vrot.slane %v8579_v12, 7  ;;  %v605_v49 = vrot.slane %v603_v39, 1  ;;  %v8584_v12 = vld [vmem:[%s8942_s12 + $0x48] sm:$0xff]   ;;  %7676 = vmatprep.subr.bf16.mxu0 %v9131_v30 }
  0x29   : > { %v596_v47 = vor.u32 %v595_v38, %v591_v26  ;;  %v609_v50 = vrot.slane %v607_v40, 1  ;;  %v1194_v54 = vrot.slane %v9084_v44, 1  ;;  %v1195_v55 = vrot.slane %v9087_v45, 1 }
  0x2a   : > { %v9099_v56 = vsel %vm496_vm0, 0, %v487_v46  ;;  %v9102_v57 = vsel %vm496_vm0, %v487_v46, 0  ;;  %v611_v59 = vshrl.u32 %v9084_v44, 16  ;;  %v606_v1 = vor.u32 %v605_v49, %v601_v34 }
  0x2b   : > { %7617 = vmatmul.mubr.msk.bf16.gmra.mrb[8].mxu0 %vm728_vm2, %v1193_v35  ;;  %v600_v60 = vsel %vm550_vm1, %v596_v47, %v599_v43  ;;  %v1197_v3 = vrot.slane %v9099_v56, 1  ;;  %v1198_v5 = vrot.slane %v9102_v57, 1  ;;  %v1196_v4 = vsel %vm1175_vm3, %v1194_v54, %v1195_v55 }
  0x2c   : > { %7544 = vmatprep.mubr.msk.bf16.mxu1 %vm728_vm2, %v600_v60  ;;  %v613_v7 = vshll.u32 %v9084_v44, 16  ;;  %v617_v8 = vshll.u32 %v9087_v45, 16  ;;  %v621_v9 = vshrl.u32 %v9099_v56, 16  ;;  %v610_v19 = vsel %vm550_vm1, %v606_v1, %v609_v50  ;;  %7620 = vmatprep.mubr.msk.bf16.mxu0 %vm728_vm2, %v1196_v4 }
  0x2d   : > { %v1199_v21 = vsel %vm1175_vm3, %v1197_v3, %v1198_v5  ;;  %v623_v22 = vshll.u32 %v9099_v56, 16  ;;  %v627_v23 = vshll.u32 %v9102_v57, 16  ;;  %v1484_v29 = vrot.slane %v553_v20, 2 }
  0x2e   : > { %v615_v24 = vrot.slane %v613_v7, 1  ;;  %v619_v25 = vrot.slane %v617_v8, 1  ;;  %v1486_v43 = vshrl.u32 %v8958_v11, 16  ;;  %v1494_v46 = vor.u32 %v8989_v36, %v8987_v33 }
  0x2f   : > { %v625_v35 = vrot.slane %v623_v22, 1  ;;  %v629_v38 = vrot.slane %v627_v23, 1  ;;  %v1485_v47 = vor.u32 %v1484_v29, %v8981_v28  ;;  %v1495_v49 = vshrl.u32 %v8966_v16, 16 }
  0x30   : > { %7545 = vmatmul.mubr.msk.bf16.gmra.mrb[8].mxu1 %vm728_vm2, %v610_v19  ;;  %v616_v20 = vor.u32 %v615_v24, %v611_v59  ;;  %v488_v50 = vrot.slane %v8582_v6, 7  ;;  %v1488_v55 = vrot.slane %v1486_v43, 1  ;;  %v489_v60 = vrot.slane %v8584_v12, 7 }
  0x31   : > { %v626_v54 = vor.u32 %v625_v35, %v621_v9  ;;  %v1501_v1 = vrot.slane %v571_v48, 1  ;;  %v1497_v36 = vrot.slane %v1495_v49, 1  ;;  %v8586_v49 = vld [vmem:[%s8942_s12 + $0x58] sm:$0xff]  }
  0x32   : > { %v620_v33 = vsel %vm550_vm1, %v616_v20, %v619_v25  ;;  %v9153_v28 = vsel %vm496_vm0, 0, %v488_v50  ;;  %v9156_v3 = vsel %vm496_vm0, %v488_v50, 0  ;;  %v1490_v6 = vor.u32 %v8985_v31, %v1488_v55 }
  0x33   : > { %7621 = vmatmul.mubr.msk.bf16.gmra.mrb[12].mxu0 %vm728_vm2, %v1199_v21  ;;  %7548 = vmatprep.mubr.msk.bf16.mxu1 %vm728_vm2, %v620_v33  ;;  %v630_v5 = vsel %vm550_vm1, %v626_v54, %v629_v38  ;;  %v631_v48 = vshrl.u32 %v9153_v28, 16  ;;  %v633_v4 = vshll.u32 %v9153_v28, 16  ;;  %v1499_v12 = vor.u32 %v8991_v37, %v1497_v36  ;;  %v8585_v38 = vld [vmem:[%s8942_s12 + $0x50] sm:$0xff]  }
  0x34   : > { %v637_v19 = vshll.u32 %v9156_v3, 16  ;;  %v9166_v21 = vsel %vm496_vm0, 0, %v489_v60  ;;  %v9169_v24 = vsel %vm496_vm0, %v489_v60, 0  ;;  %v1491_v25 = vsel %vm1482_vm4, %v1485_v47, %v1490_v6 }
  0x35   : > { %v635_v31 = vrot.slane %v633_v4, 1  ;;  %v641_v29 = vshrl.u32 %v9166_v21, 16  ;;  %v643_v35 = vshll.u32 %v9166_v21, 16  ;;  %7644 = vmatprep.mubr.msk.bf16.mxu0 %vm728_vm2, %v1491_v25  ;;  %v1500_v37 = vsel %vm1482_vm4, %v1494_v46, %v1499_v12 }
  0x36   : > { %v639_v43 = vrot.slane %v637_v19, 1  ;;  %v647_v20 = vshll.u32 %v9169_v24, 16  ;;  %v1502_v47 = vrot.slane %v573_v53, 2  ;;  %v1504_v55 = vshrl.u32 %v8999_v42, 16 }
  0x37   : > { %v636_v50 = vor.u32 %v635_v31, %v631_v48  ;;  %v645_v54 = vrot.slane %v643_v35, 1  ;;  %v1507_v46 = vrot.slane %v577_v58, 2  ;;  %v1510_v53 = vrot.slane %v581_v61, 1 }
  0x38   : > { %7549 = vmatmul.mubr.msk.bf16.gmra.mrb[12].mxu1 %vm728_vm2, %v630_v5  ;;  %v649_v60 = vrot.slane %v647_v20, 1  ;;  %v1503_v33 = vor.u32 %v1502_v47, %v1501_v1  ;;  %v1511_v36 = vrot.slane %v583_v62, 2  ;;  %v8592_v5 = vld [vmem:[%s11808_s2 + $0x48] sm:$0xff]   ;;  %v1506_v58 = vrot.slane %v1504_v55, 1 }
  0x39   : > { %v640_v6 = vsel %vm550_vm1, %v636_v50, %v639_v43  ;;  %v646_v12 = vor.u32 %v645_v54, %v641_v29  ;;  %v1513_v25 = vshrl.u32 %v9017_v52, 16  ;;  %v1516_v62 = vrot.slane %v587_v63, 2 }
  0x3a   : > { %7552 = vmatprep.mubr.msk.bf16.mxu1 %vm728_vm2, %v640_v6  ;;  %v1512_v61 = vor.u32 %v1511_v36, %v1510_v53  ;;  %v490_v1 = vrot.slane %v8585_v38, 7  ;;  %v491_v31 = vrot.slane %v8586_v49, 7  ;;  %v1508_v43 = vor.u32 %v1507_v46, %v1506_v58 }
  0x3b   : > { %7645 = vmatmul.mubr.msk.bf16.vlgmr.msra.gmra.mrb[0].mxu0 %vm728_vm2, %v1500_v37  ;;  %v650_v47 = vsel %vm550_vm1, %v646_v12, %v649_v60  ;;  %v1515_v50 = vrot.slane %v1513_v25, 1  ;;  %v1519_v54 = vrot.slane %v591_v26, 1  ;;  %v8587_v60 = vld [vmem:[%s8942_s12 + $0x60] sm:$0xff]   ;;  %v1520_v25 = vrot.slane %v593_v27, 2 }
  0x3c   : > { %7677 = vmatpush3.bf16.msra.mxu0 %v9131_v30  ;;  %v9215_v37 = vsel %vm496_vm0, 0, %v490_v1  ;;  %v9218_v55 = vsel %vm496_vm0, %v490_v1, 0  ;;  %v9221_v63 = vsel %vm496_vm0, 0, %v491_v31  ;;  %v9224_v38 = vsel %vm496_vm0, %v491_v31, 0  ;;  %v8588_v1 = vld [vmem:[%s8942_s12 + $0x68] sm:$0xff]  }
  0x3d   : > { %7678 = vmatprep.subr.bf16.mxu0 %v8592_v5  ;;  %v1509_v49 = vsel %vm1482_vm4, %v1503_v33, %v1508_v43  ;;  %v1517_v46 = vor.u32 %v1516_v62, %v1515_v50  ;;  %v651_v26 = vshrl.u32 %v9215_v37, 16  ;;  %v653_v30 = vshll.u32 %v9215_v37, 16 }
  0x3e   : > { %7648 = vmatprep.mubr.msk.bf16.mxu0 %vm728_vm2, %v1509_v49  ;;  %v11816_v53 = vshll.u32 %v9218_v55, 16  ;;  %v11815_v36 = vshrl.u32 %v9221_v63, 16  ;;  %v11813_v6 = vshll.u32 %v9221_v63, 16  ;;  %v11814_v12 = vshll.u32 %v9224_v38, 16 }
  0x3f   : > { %v1518_v33 = vsel %vm1482_vm4, %v1512_v61, %v1517_v46  ;;  %v655_v58 = vrot.slane %v653_v30, 1  ;;  %v1522_v62 = vshrl.u32 %v9051_v14, 16  ;;  %v1525_v61 = vrot.slane %v597_v32, 2 }
  0x40   : > { %7553 = vmatmul.mubr.msk.bf16.gmra.mrb[16].mxu1 %vm728_vm2, %v650_v47  ;;  %7679 = vmatpush3.bf16.msra.mxu0 %v8592_v5  ;;  %v659_v31 = vrot.slane %v11816_v53, 1  ;;  %v665_v43 = vrot.slane %v11813_v6, 1  ;;  %v669_v47 = vrot.slane %v11814_v12, 1  ;;  %v1521_v27 = vor.u32 %v1520_v25, %v1519_v54 }
  0x41   : > { %v656_v50 = vor.u32 %v655_v58, %v651_v26  ;;  %v1524_v49 = vrot.slane %v1522_v62, 1  ;;  %v1528_v5 = vrot.slane %v601_v34, 1  ;;  %v1529_v6 = vrot.slane %v603_v39, 2 }
  0x42   : > { %v666_v46 = vor.u32 %v665_v43, %v11815_v36  ;;  %v1531_v12 = vshrl.u32 %v9057_v18, 16  ;;  %v1534_v32 = vrot.slane %v607_v40, 2  ;;  %v492_v25 = vrot.slane %v8587_v60, 7 }
  0x43   : > { %7649 = vmatmul.mubr.msk.bf16.gmra.mrb[4].mxu0 %vm728_vm2, %v1518_v33  ;;  %v660_v58 = vsel %vm550_vm1, %v656_v50, %v659_v31  ;;  %v1526_v54 = vor.u32 %v1525_v61, %v1524_v49  ;;  %v493_v62 = vrot.slane %v8588_v1, 7  ;;  %v1530_v33 = vor.u32 %v1529_v6, %v1528_v5  ;;  %v8589_v31 = vld [vmem:[%s8942_s12 + $0x70] sm:$0xff]  }
  0x44   : > { %7556 = vmatprep.mubr.msk.bf16.mxu1 %vm728_vm2, %v660_v58  ;;  %v670_v34 = vsel %vm550_vm1, %v666_v46, %v669_v47  ;;  %v1533_v43 = vrot.slane %v1531_v12, 1  ;;  %v1537_v39 = vrot.slane %v611_v59, 1  ;;  %v9270_v53 = vsel %vm496_vm0, 0, %v492_v25 }
  0x45   : > { %v1527_v36 = vsel %vm1482_vm4, %v1521_v27, %v1526_v54  ;;  %v9273_v40 = vsel %vm496_vm0, %v492_v25, 0  ;;  %v9276_v60 = vsel %vm496_vm0, 0, %v493_v62  ;;  %v671_v6 = vshrl.u32 %v9270_v53, 16 }
  0x46   : > { %7652 = vmatprep.mubr.msk.bf16.mxu0 %vm728_vm2, %v1527_v36  ;;  %v1535_v1 = vor.u32 %v1534_v32, %v1533_v43  ;;  %v673_v12 = vshll.u32 %v9270_v53, 16  ;;  %v11819_v59 = vshll.u32 %v9273_v40, 16  ;;  %v9285_v47 = vsel %vm496_vm0, %v493_v62, 0  ;;  %v8590_v32 = vld [vmem:[%s8942_s12 + $0x78] sm:$0xff]  }
  0x47   : > { %v11820_v61 = vshrl.u32 %v9276_v60, 16  ;;  %v11817_v50 = vshll.u32 %v9276_v60, 16  ;;  %v1538_v36 = vrot.slane %v613_v7, 2  ;;  %v11818_v46 = vshll.u32 %v9285_v47, 16 }
  0x48   : > { %7557 = vmatmul.mubr.msk.bf16.gmra.mrb[20].mxu1 %vm728_vm2, %v670_v34  ;;  %v1536_v27 = vsel %vm1482_vm4, %v1530_v33, %v1535_v1  ;;  %v675_v49 = vrot.slane %v673_v12, 1  ;;  %v679_v5 = vrot.slane %v11819_v59, 1  ;;  %v1540_v25 = vshrl.u32 %v9087_v45, 16 }
  0x49   : > { %v685_v58 = vrot.slane %v11817_v50, 1  ;;  %v1539_v54 = vor.u32 %v1538_v36, %v1537_v39  ;;  %v1543_v7 = vrot.slane %v617_v8, 2  ;;  %v689_v34 = vrot.slane %v11818_v46, 1 }
  0x4a   : > { %v676_v62 = vor.u32 %v675_v49, %v671_v6  ;;  %v1546_v33 = vrot.slane %v621_v9, 1  ;;  %v1547_v43 = vrot.slane %v623_v22, 2  ;;  %v1542_v1 = vrot.slane %v1540_v25, 1 }
  0x4b   : > { %7653 = vmatmul.mubr.msk.bf16.gmra.mrb[8].mxu0 %vm728_vm2, %v1536_v27  ;;  %v686_v39 = vor.u32 %v685_v58, %v11820_v61  ;;  %v1549_v8 = vshrl.u32 %v9102_v57, 16  ;;  %v1552_v36 = vrot.slane %v627_v23, 2  ;;  %v494_v50 = vrot.slane %v8589_v31, 7 }
  0x4c   : > { %v680_v27 = vsel %vm550_vm1, %v676_v62, %v679_v5  ;;  %v1548_v49 = vor.u32 %v1547_v43, %v1546_v33  ;;  %v495_v46 = vrot.slane %v8590_v32, 7  ;;  %v1544_v59 = vor.u32 %v1543_v7, %v1542_v1 }
  0x4d   : > { %7560 = vmatprep.mubr.msk.bf16.mxu1 %vm728_vm2, %v680_v27  ;;  %v690_v9 = vsel %vm550_vm1, %v686_v39, %v689_v34  ;;  %v1551_v22 = vrot.slane %v1549_v8, 1  ;;  %v1555_v58 = vrot.slane %v631_v48, 1  ;;  %v9323_v25 = vsel %vm496_vm0, 0, %v494_v50 }
  0x4e   : > { %v9326_v61 = vsel %vm496_vm0, %v494_v50, 0  ;;  %v9329_v23 = vsel %vm496_vm0, 0, %v495_v46  ;;  %v9332_v31 = vsel %vm496_vm0, %v495_v46, 0  ;;  %v1545_v5 = vsel %vm1482_vm4, %v1539_v54, %v1544_v59 }
  0x4f   : > { %v1553_v32 = vor.u32 %v1552_v36, %v1551_v22  ;;  %v691_v7 = vshrl.u32 %v9323_v25, 16  ;;  %v693_v48 = vshll.u32 %v9323_v25, 16  ;;  %7656 = vmatprep.mubr.msk.bf16.mxu0 %vm728_vm2, %v1545_v5  ;;  %v697_v50 = vshll.u32 %v9326_v61, 16 }
  0x50   : > { %7561 = vmatmul.mubr.msk.bf16.gmra.mrb[24].mxu1 %vm728_vm2, %v690_v9  ;;  %v701_v62 = vshrl.u32 %v9329_v23, 16  ;;  %v703_v34 = vshll.u32 %v9329_v23, 16  ;;  %v11821_v46 = vshll.u32 %v9332_v31, 16  ;;  %v1556_v54 = vrot.slane %v633_v4, 2 }
  0x51   : > { %v1554_v33 = vsel %vm1482_vm4, %v1548_v49, %v1553_v32  ;;  %v695_v59 = vrot.slane %v693_v48, 1  ;;  %v1558_v43 = vshrl.u32 %v9156_v3, 16  ;;  %v699_v39 = vrot.slane %v697_v50, 1 }
  0x52   : > { %v705_v1 = vrot.slane %v703_v34, 1  ;;  %v709_v8 = vrot.slane %v11821_v46, 1  ;;  %v1561_v36 = vrot.slane %v637_v19, 2  ;;  %v1557_v4 = vor.u32 %v1556_v54, %v1555_v58 }
  0x53   : > { %7657 = vmatmul.mubr.msk.bf16.gmra.mrb[12].mxu0 %vm728_vm2, %v1554_v33  ;;  %v696_v27 = vor.u32 %v695_v59, %v691_v7  ;;  %v1560_v49 = vrot.slane %v1558_v43, 1  ;;  %v1564_v9 = vrot.slane %v641_v29, 1  ;;  %v1565_v5 = vrot.slane %v643_v35, 2 }
  0x54   : > { %v706_v22 = vor.u32 %v705_v1, %v701_v62  ;;  %v1567_v32 = vshrl.u32 %v9169_v24, 16  ;;  %v1570_v33 = vrot.slane %v647_v20, 2  ;;  %v1573_v58 = vrot.slane %v651_v26, 1 }
  0x55   : > { %v700_v19 = vsel %vm550_vm1, %v696_v27, %v699_v39  ;;  %v1562_v46 = vor.u32 %v1561_v36, %v1560_v49  ;;  %v1574_v29 = vrot.slane %v653_v30, 2  ;;  %v1566_v54 = vor.u32 %v1565_v5, %v1564_v9 }
  0x56   : > { %7564 = vmatprep.mubr.msk.bf16.mxu1 %vm728_vm2, %v700_v19  ;;  %v710_v59 = vsel %vm550_vm1, %v706_v22, %v709_v8  ;;  %v1569_v35 = vrot.slane %v1567_v32, 1  ;;  %v1576_v43 = vshrl.u32 %v9218_v55, 16  ;;  %v12049_v1 = vshll.u32 %v9218_v55, 16 }
  0x57   : > { %v1563_v20 = vsel %vm1482_vm4, %v1557_v4, %v1562_v46  ;;  %v1575_v39 = vor.u32 %v1574_v29, %v1573_v58  ;;  %v12050_v26 = vshrl.u32 %v9221_v63, 16  ;;  %v12051_v49 = vshll.u32 %v9221_v63, 16 }
  0x58   : > { %7565 = vmatmul.mubr.msk.bf16.gmra.mrb[28].mxu1 %vm728_vm2, %v710_v59  ;;  %v1579_v36 = vrot.slane %v12049_v1, 2  ;;  %7660 = vmatprep.mubr.msk.bf16.mxu0 %vm728_vm2, %v1563_v20  ;;  %v1571_v30 = vor.u32 %v1570_v33, %v1569_v35  ;;  %v1578_v8 = vrot.slane %v1576_v43, 1  ;;  %v1585_v22 = vshrl.u32 %v9224_v38, 16 }
  0x59   : > { %v1582_v27 = vrot.slane %v12050_v26, 1  ;;  %7572 = vmatprep.mubr.msk.bf16.mxu1 %vm728_vm2, %v8955_v10  ;;  %v1583_v9 = vrot.slane %v12051_v49, 2  ;;  %v12052_v46 = vshll.u32 %v9224_v38, 16  ;;  %v1591_v5 = vrot.slane %v671_v6, 1 }
  0x5a   : > { %v1592_v32 = vrot.slane %v673_v12, 2  ;;  %v1594_v33 = vshrl.u32 %v9273_v40, 16  ;;  %v1572_v19 = vsel %vm1482_vm4, %v1566_v54, %v1571_v30  ;;  %v1580_v58 = vor.u32 %v1579_v36, %v1578_v8 }
  0x5b   : > { %v1588_v4 = vrot.slane %v12052_v46, 2  ;;  %v1587_v29 = vrot.slane %v1585_v22, 1  ;;  %7661 = vmatmul.mubr.msk.bf16.gmra.mrb[16].mxu0 %vm728_vm2, %v1572_v19  ;;  %v12053_v35 = vshll.u32 %v9273_v40, 16  ;;  %v1584_v1 = vor.u32 %v1583_v9, %v1582_v27  ;;  %v9427_v19 = vld [vmem:[%s11810_s4 + $0x10] sm:$0xff]  }
  0x5c   : > { %v1596_v59 = vrot.slane %v1594_v33, 1  ;;  %v1581_v20 = vsel %vm1482_vm4, %v1575_v39, %v1580_v58  ;;  %v1603_v6 = vshrl.u32 %v9285_v47, 16  ;;  %v1593_v12 = vor.u32 %v1592_v32, %v1591_v5 }
  0x5d   : > { %v1597_v43 = vrot.slane %v12053_v35, 2  ;;  %v1589_v26 = vor.u32 %v1588_v4, %v1587_v29  ;;  %7664 = vmatprep.mubr.msk.bf16.mxu0 %vm728_vm2, %v1581_v20  ;;  %v1612_v54 = vshrl.u32 %v9326_v61, 16  ;;  %v12054_v36 = vshrl.u32 %v9276_v60, 16 }
  0x5e   : > { %v12055_v8 = vshll.u32 %v9276_v60, 16  ;;  %v1605_v27 = vrot.slane %v1603_v6, 1  ;;  %v12056_v9 = vshll.u32 %v9285_v47, 16  ;;  %v1609_v4 = vrot.slane %v691_v7, 1 }
  0x5f   : > { %v1598_v49 = vor.u32 %v1597_v43, %v1596_v59  ;;  %v1600_v30 = vrot.slane %v12054_v36, 1  ;;  %v1590_v39 = vsel %vm1482_vm4, %v1584_v1, %v1589_v26  ;;  %v1610_v32 = vrot.slane %v693_v48, 2 }
  0x60   : > { %7573 = vmatmul.mubr.msk.bf16.vlgmr.msra.gmra.mrb[0].mxu1 %vm728_vm2, %v8963_v15  ;;  %v1601_v22 = vrot.slane %v12055_v8, 2  ;;  %v1606_v46 = vrot.slane %v12056_v9, 2  ;;  %v1614_v33 = vrot.slane %v1612_v54, 1  ;;  %v1621_v29 = vshrl.u32 %v9332_v31, 16 }
  0x61   : > { %8074 = vmatpush3.bf16.msra.mxu1 %v8920_v0  ;;  %7576 = vmatprep.mubr.msk.bf16.mxu1 %vm728_vm2, %v8996_v41  ;;  %v1599_v5 = vsel %vm1482_vm4, %v1593_v12, %v1598_v49  ;;  %v1615_v0 = vrot.slane %v697_v50, 2  ;;  %v1611_v48 = vor.u32 %v1610_v32, %v1609_v4  ;;  %v1618_v50 = vrot.slane %v701_v62, 1 }
  0x62   : > { %8073 = vmatprep.subr.bf16.mxu1 %v8929_v2  ;;  %v1602_v7 = vor.u32 %v1601_v22, %v1600_v30  ;;  %v1607_v58 = vor.u32 %v1606_v46, %v1605_v27  ;;  %v1619_v43 = vrot.slane %v703_v34, 2  ;;  %v1623_v20 = vrot.slane %v1621_v29, 1 }
  0x63   : > { %7665 = vmatmul.mubr.msk.bf16.gmra.mrb[20].mxu0 %vm728_vm2, %v1590_v39  ;;  %v1616_v59 = vor.u32 %v1615_v0, %v1614_v33  ;;  %v1886_v12 = vrot.slane %v8955_v10, 2  ;;  %v1887_v49 = vrot.slane %v8958_v11, 2  ;;  %v1889_v36 = vrot.slane %v8963_v15, 2 }
  0x64   : > { %7668 = vmatprep.mubr.msk.bf16.mxu0 %vm728_vm2, %v1599_v5  ;;  %v1608_v35 = vsel %vm1482_vm4, %v1602_v7, %v1607_v58  ;;  %v1620_v6 = vor.u32 %v1619_v43, %v1618_v50  ;;  %v1890_v10 = vrot.slane %v8966_v16, 2  ;;  %v1892_v11 = vrot.slane %v8996_v41, 2 }
  0x65   : > { %8075 = vmatpush3.bf16.msra.mxu1 %v8929_v2  ;;  %v12057_v2 = vshll.u32 %v9332_v31, 16  ;;  %v1617_v26 = vsel %vm1482_vm4, %v1611_v48, %v1616_v59  ;;  %v1888_v54 = vsel %vm1885_vm5, %v1886_v12, %v1887_v49  ;;  %v1893_v30 = vrot.slane %v8999_v42, 2 }
  0x66   : > { %7712 = vmatprep.subr.bf16.mxu1 %v9427_v19  ;;  %v1891_v8 = vsel %vm1885_vm5, %v1889_v36, %v1890_v10  ;;  %v1895_v15 = vrot.slane %v9014_v51, 2  ;;  %v1896_v16 = vrot.slane %v9017_v52, 2  ;;  %v1898_v41 = vrot.slane %v9048_v13, 2 }
  0x67   : > { %v1624_v1 = vrot.slane %v12057_v2, 2  ;;  %v1894_v22 = vsel %vm1885_vm5, %v1892_v11, %v1893_v30  ;;  %v1899_v42 = vrot.slane %v9051_v14, 2  ;;  %v1902_v52 = vrot.slane %v9057_v18, 2  ;;  %v8594_v2 = vld [vmem:[%s11810_s4 + $0x18] sm:$0xff]  }
  0x68   : > { %7577 = vmatmul.mubr.msk.bf16.gmra.mrb[4].mxu1 %vm728_vm2, %v9014_v51  ;;  %v1897_v39 = vsel %vm1885_vm5, %v1895_v15, %v1896_v16  ;;  %v1901_v51 = vrot.slane %v9054_v17, 2  ;;  %v1905_v14 = vrot.slane %v9087_v45, 2  ;;  %v1908_v18 = vrot.slane %v9102_v57, 2 }
  0x69   : > { %7580 = vmatprep.mubr.msk.bf16.mxu1 %vm728_vm2, %v9048_v13  ;;  %v1625_v62 = vor.u32 %v1624_v1, %v1623_v20  ;;  %v1900_v27 = vsel %vm1885_vm5, %v1898_v41, %v1899_v42  ;;  %v1904_v13 = vrot.slane %v9084_v44, 2  ;;  %v1911_v45 = vrot.slane %v9156_v3, 2 }
  0x6a   : > { %v1903_v9 = vsel %vm1885_vm5, %v1901_v51, %v1902_v52  ;;  %v1200_v5 = vrot.slane %v9153_v28, 1  ;;  %v1201_v32 = vrot.slane %v9156_v3, 1  ;;  %v1913_v57 = vrot.slane %v9166_v21, 2  ;;  %v9587_v52 = vld [vmem:[%s9519_s8 + $0x18] sm:$0xff]  }
  0x6b   : > { %7669 = vmatmul.mubr.msk.bf16.gmra.mrb[24].mxu0 %vm728_vm2, %v1608_v35  ;;  %v1626_v34 = vsel %vm1482_vm4, %v1620_v6, %v1625_v62  ;;  %v1906_v46 = vsel %vm1885_vm5, %v1904_v13, %v1905_v14  ;;  %v1914_v33 = vrot.slane %v9169_v24, 2  ;;  %v1916_v7 = vrot.slane %v9215_v37, 2  ;;  %v9530_v35 = vld [vmem:[%s9519_s8] sm:$0xff]   ;;  %12061 = vst [vmem:[#allocation5_spill] sm:$0xff] %v9587_v52 }
  0x6c   : > { %7672 = vmatprep.mubr.msk.bf16.mxu0 %vm728_vm2, %v1617_v26  ;;  %v1202_v0 = vsel %vm1175_vm3, %v1200_v5, %v1201_v32  ;;  %v1917_v58 = vrot.slane %v9218_v55, 2  ;;  %v1204_v3 = vrot.slane %v9169_v24, 1  ;;  %v1206_v48 = vrot.slane %v9215_v37, 1  ;;  %12058 = vst [vmem:[#allocation2_spill] sm:$0xff] %v9530_v35 }
  0x6d   : > { %v1915_v29 = vsel %vm1885_vm5, %v1913_v57, %v1914_v33  ;;  %v1207_v59 = vrot.slane %v9218_v55, 1  ;;  %v1920_v24 = vrot.slane %v9224_v38, 2  ;;  %v1923_v55 = vrot.slane %v9273_v40, 2 }
  0x6e   : > { %v1918_v50 = vsel %vm1885_vm5, %v1916_v7, %v1917_v58  ;;  %v1209_v1 = vrot.slane %v9221_v63, 1  ;;  %v1210_v26 = vrot.slane %v9224_v38, 1  ;;  %v1212_v62 = vrot.slane %v9270_v53, 1 }
  0x6f   : > { %v1208_v20 = vsel %vm1175_vm3, %v1206_v48, %v1207_v59  ;;  %v1213_v12 = vrot.slane %v9273_v40, 1  ;;  %v1926_v40 = vrot.slane %v9285_v47, 2  ;;  %v1928_v10 = vrot.slane %v9323_v25, 2 }
  0x70   : > { %7581 = vmatmul.mubr.msk.bf16.gmra.mrb[8].mxu1 %vm728_vm2, %v9054_v17  ;;  %v1907_v17 = vrot.slane %v9099_v56, 2  ;;  %v1211_v38 = vsel %vm1175_vm3, %v1209_v1, %v1210_v26  ;;  %v1929_v11 = vrot.slane %v9326_v61, 2  ;;  %v1218_v16 = vrot.slane %v9323_v25, 1 }
  0x71   : > { %7584 = vmatprep.mubr.msk.bf16.mxu1 %vm728_vm2, %v9084_v44  ;;  %v1910_v44 = vrot.slane %v9153_v28, 2  ;;  %v1214_v36 = vsel %vm1175_vm3, %v1212_v62, %v1213_v12  ;;  %v1219_v41 = vrot.slane %v9326_v61, 1  ;;  %v9596_v61 = vld [vmem:[%s9519_s8 + $0x20] sm:$0xff]   ;;  %v2314_v33 = vrot.slane %v9587_v52, 7 }
  0x72   : > { %v1909_v4 = vsel %vm1885_vm5, %v1907_v17, %v1908_v18  ;;  %12062 = vst [vmem:[#allocation6_spill] sm:$0xff] %v9596_v61 }
  0x73   : > { %7673 = vmatmul.mubr.msk.bf16.gmra.mrb[28].mxu0 %vm728_vm2, %v1626_v34  ;;  %v9554_v34 = vld [vmem:[%s11810_s4] sm:$0xff]   ;;  %v1220_v14 = vsel %vm1175_vm3, %v1218_v16, %v1219_v41 }
  0x74   : > { %7680 = vmatprep.mubr.msk.bf16.mxu0 %vm728_vm2, %v1888_v54  ;;  %v9561_v54 = vld [vmem:[%s9519_s8 + $0x10] sm:$0xff]  }
  0x75   : > { %12060 = vst [vmem:[#allocation4_spill] sm:$0xff] %v9561_v54  ;;  %v2313_v51 = vrot.slane %v9561_v54, 7 }
  0x77   : > { %v9630_v7 = vsel %vm496_vm0, %v2313_v51, 0 }
  0x78   : > { %7585 = vmatmul.mubr.msk.bf16.gmra.mrb[12].mxu1 %vm728_vm2, %v9099_v56  ;;  %v1912_v56 = vsel %vm1885_vm5, %v1910_v44, %v1911_v45  ;;  %v9609_v44 = vsel %vm496_vm0, 0, %v2313_v51  ;;  %v1221_v45 = vrot.slane %v9329_v23, 1  ;;  %v8605_v51 = vld [vmem:[%s11810_s4 + $0x8] sm:$0xff]  }
  0x79   : > { %7588 = vmatprep.mubr.msk.bf16.mxu1 %vm728_vm2, %v9153_v28  ;;  %v1203_v28 = vrot.slane %v9166_v21, 1  ;;  %v11847_v57 = vshll.u32 %v9609_v44, 16  ;;  %v11848_v59 = vshrl.u32 %v9609_v44, 16 }
  0x7b   : > { %7681 = vmatmul.mubr.msk.bf16.vlgmr.msra.gmra.mrb[0].mxu0 %vm728_vm2, %v1891_v8  ;;  %v1205_v43 = vsel %vm1175_vm3, %v1203_v28, %v1204_v3  ;;  %v1215_v8 = vrot.slane %v9276_v60, 1  ;;  %v2315_v28 = vrot.slane %v9596_v61, 7  ;;  %v9635_v3 = vld [vmem:[%s9519_s8 + $0x30] sm:$0xff]  }
  0x7c   : > { %7684 = vmatprep.mubr.msk.bf16.mxu0 %vm728_vm2, %v1894_v22  ;;  %v1216_v22 = vrot.slane %v9285_v47, 1  ;;  %v1931_v47 = vrot.slane %v9329_v23, 2  ;;  %12064 = vst [vmem:[#allocation8_spill] sm:$0xff] %v9635_v3 }
  0x7e   : > { %v1217_v13 = vsel %vm1175_vm3, %v1215_v8, %v1216_v22 }
  0x80   : > { %7589 = vmatmul.mubr.msk.bf16.gmra.mrb[16].mxu1 %vm728_vm2, %v9166_v21  ;;  %v1919_v21 = vrot.slane %v9221_v63, 2 }
  0x81   : > { %7592 = vmatprep.mubr.msk.bf16.mxu1 %vm728_vm2, %v9215_v37  ;;  %v1922_v37 = vrot.slane %v9270_v53, 2 }
  0x82   : > { %v1921_v6 = vsel %vm1885_vm5, %v1919_v21, %v1920_v24  ;;  %v11842_v21 = vshll.u32 %v9630_v7, 16  ;;  %v9647_v24 = vsel %vm496_vm0, 0, %v2314_v33 }
  0x83   : > { %7685 = vmatmul.mubr.msk.bf16.gmra.mrb[4].mxu0 %vm728_vm2, %v1897_v39  ;;  %v1924_v49 = vsel %vm1885_vm5, %v1922_v37, %v1923_v55  ;;  %v1930_v39 = vsel %vm1885_vm5, %v1928_v10, %v1929_v11  ;;  %v9651_v37 = vsel %vm496_vm0, 0, %v2315_v28  ;;  %v11838_v1 = vshll.u32 %v9647_v24, 16  ;;  %v9681_v11 = vld [vmem:[%s9519_s8 + $0x40] sm:$0xff]  }
  0x84   : > { %7688 = vmatprep.mubr.msk.bf16.mxu0 %vm728_vm2, %v1900_v27  ;;  %v2407_v62 = vrot.slane %v11842_v21, 1  ;;  %12066 = vst [vmem:[#allocation10_spill] sm:$0xff] %v9681_v11  ;;  %v9843_v21 = vld [vmem:[%s9519_s8 + $0x78] sm:$0xff]  }
  0x85   : > { %12076 = vst [vmem:[#allocation20_spill] sm:$0xff] %v9843_v21 }
  0x88   : > { %7593 = vmatmul.mubr.msk.bf16.gmra.mrb[20].mxu1 %vm728_vm2, %v9221_v63  ;;  %v2311_v63 = vrot.slane %v9530_v35, 7 }
  0x89   : > { %7596 = vmatprep.mubr.msk.bf16.mxu1 %vm728_vm2, %v9270_v53  ;;  %v1925_v53 = vrot.slane %v9276_v60, 2 }
  0x8a   : > { %v9573_v30 = vsel %vm496_vm0, 0, %v2311_v63 }
  0x8b   : > { %7689 = vmatmul.mubr.msk.bf16.gmra.mrb[8].mxu0 %vm728_vm2, %v1903_v9  ;;  %v1927_v15 = vsel %vm1885_vm5, %v1925_v53, %v1926_v40  ;;  %v11859_v27 = vshll.u32 %v9573_v30, 16  ;;  %v9674_v53 = vld [vmem:[%s9519_s8 + $0x38] sm:$0xff]   ;;  %v11839_v40 = vshrl.u32 %v9647_v24, 16 }
  0x8c   : > { %7692 = vmatprep.mubr.msk.bf16.mxu0 %vm728_vm2, %v1906_v46  ;;  %v11869_v46 = vshrl.u32 %v9573_v30, 16  ;;  %12065 = vst [vmem:[#allocation9_spill] sm:$0xff] %v9674_v53 }
  0x8d   : > { %v2383_v17 = vrot.slane %v11859_v27, 1 }
  0x90   : > { %7597 = vmatmul.mubr.msk.bf16.gmra.mrb[24].mxu1 %vm728_vm2, %v9276_v60  ;;  %v9590_v60 = vsel %vm496_vm0, %v2311_v63, 0  ;;  %v2317_v63 = vrot.slane %v9635_v3, 7 }
  0x91   : > { %7600 = vmatprep.mubr.msk.bf16.mxu1 %vm728_vm2, %v9323_v25  ;;  %v1932_v25 = vrot.slane %v9332_v31, 2  ;;  %v11856_v18 = vshll.u32 %v9590_v60, 16 }
  0x93   : > { %7693 = vmatmul.mubr.msk.bf16.gmra.mrb[12].mxu0 %vm728_vm2, %v1909_v4  ;;  %v1222_v4 = vrot.slane %v9332_v31, 1  ;;  %v1933_v5 = vsel %vm1885_vm5, %v1931_v47, %v1932_v25  ;;  %v2387_v31 = vrot.slane %v11856_v18, 1 }
  0x94   : > { %7696 = vmatprep.mubr.msk.bf16.mxu0 %vm728_vm2, %v1912_v56 }
  0x95   : > { %v1223_v58 = vsel %vm1175_vm3, %v1221_v45, %v1222_v4 }
  0x98   : > { %7601 = vmatmul.mubr.msk.bf16.gmra.mrb[28].mxu1 %vm728_vm2, %v9329_v23  ;;  %v2384_v23 = vor.u32 %v2383_v17, %v11869_v46 }
  0x99   : > { %7624 = vmatprep.mubr.msk.bf16.mxu1 %vm728_vm2, %v1202_v0  ;;  %v9623_v0 = vld [vmem:[%s9519_s8 + $0x28] sm:$0xff]  }
  0x9a   : > { %12063 = vst [vmem:[#allocation7_spill] sm:$0xff] %v9623_v0  ;;  %v2316_v12 = vrot.slane %v9623_v0, 7 }
  0x9b   : > { %7697 = vmatmul.mubr.msk.bf16.gmra.mrb[16].mxu0 %vm728_vm2, %v1915_v29 }
  0x9c   : > { %7700 = vmatprep.mubr.msk.bf16.mxu0 %vm728_vm2, %v1918_v50  ;;  %v9687_v16 = vsel %vm496_vm0, 0, %v2316_v12 }
  0x9d   : > { %12067 = vst [vmem:[#allocation11_spill] sm:$0xff] %v9687_v16 }
  0xa0   : > { %7625 = vmatmul.mubr.msk.bf16.vlgmr.msra.gmra.mrb[16].mxu1 %vm728_vm2, %v1205_v43  ;;  %v2403_v43 = vrot.slane %v11847_v57, 1 }
  0xa1   : > { %7713 = vmatpush3.bf16.msra.mxu1 %v9427_v19  ;;  %7628 = vmatprep.mubr.msk.bf16.mxu1 %vm728_vm2, %v1208_v20  ;;  %v9557_v19 = vld [vmem:[%s9519_s8 + $0x8] sm:$0xff]   ;;  %v2388_v20 = vsel %vm550_vm1, %v2384_v23, %v2387_v31  ;;  %v9724_v23 = vld [vmem:[%s11810_s4 + $0x20] sm:$0xff]   ;;  %v2319_v31 = vrot.slane %v9681_v11, 7 }
  0xa2   : > { %7714 = vmatprep.subr.bf16.mxu1 %v8594_v2  ;;  %12059 = vst [vmem:[#allocation3_spill] sm:$0xff] %v9557_v19  ;;  %v2312_v42 = vrot.slane %v9557_v19, 7 }
  0xa3   : > { %7701 = vmatmul.mubr.msk.bf16.gmra.mrb[20].mxu0 %vm728_vm2, %v1921_v6  ;;  %v2404_v6 = vor.u32 %v2403_v43, %v11848_v59 }
  0xa4   : > { %7704 = vmatprep.mubr.msk.bf16.mxu0 %vm728_vm2, %v1924_v49  ;;  %v9602_v9 = vsel %vm496_vm0, 0, %v2312_v42  ;;  %v9617_v32 = vsel %vm496_vm0, %v2312_v42, 0  ;;  %v11831_v49 = vshll.u32 %v9651_v37, 16 }
  0xa5   : > { %7715 = vmatpush3.bf16.msra.mxu1 %v8594_v2  ;;  %v11850_v56 = vshll.u32 %v9602_v9, 16  ;;  %v11853_v29 = vshrl.u32 %v9602_v9, 16  ;;  %v11849_v48 = vshll.u32 %v9617_v32, 16  ;;  %v9657_v2 = vsel %vm496_vm0, %v2314_v33, 0 }
  0xa6   : > { %7748 = vmatprep.subr.bf16.mxu1 %v9554_v34  ;;  %v11837_v10 = vshll.u32 %v9657_v2, 16  ;;  %v2408_v22 = vsel %vm550_vm1, %v2404_v6, %v2407_v62  ;;  %v2423_v41 = vrot.slane %v11831_v49, 1  ;;  %v2318_v33 = vrot.slane %v9674_v53, 7 }
  0xa7   : > { %v2393_v50 = vrot.slane %v11850_v56, 1  ;;  %v2397_v55 = vrot.slane %v11849_v48, 1 }
  0xa8   : > { %7629 = vmatmul.mubr.msk.bf16.gmra.mrb[20].mxu1 %vm728_vm2, %v1211_v38  ;;  %v9671_v38 = vsel %vm496_vm0, %v2315_v28, 0  ;;  %v2417_v25 = vrot.slane %v11837_v10, 1 }
  0xa9   : > { %7632 = vmatprep.mubr.msk.bf16.mxu1 %vm728_vm2, %v1214_v36  ;;  %v2394_v26 = vor.u32 %v2393_v50, %v11853_v29  ;;  %v2413_v36 = vrot.slane %v11838_v1, 1  ;;  %v11830_v42 = vshll.u32 %v9671_v38, 16  ;;  %v11829_v50 = vshrl.u32 %v9687_v16, 16 }
  0xab   : > { %7705 = vmatmul.mubr.msk.bf16.gmra.mrb[24].mxu0 %vm728_vm2, %v1927_v15  ;;  %v2398_v8 = vsel %vm550_vm1, %v2394_v26, %v2397_v55  ;;  %v11834_v15 = vshrl.u32 %v9651_v37, 16  ;;  %v2414_v47 = vor.u32 %v2413_v36, %v11839_v40  ;;  %v2427_v4 = vrot.slane %v11830_v42, 1 }
  0xac   : > { %7708 = vmatprep.mubr.msk.bf16.mxu0 %vm728_vm2, %v1930_v39  ;;  %v9693_v39 = vsel %vm496_vm0, 0, %v2317_v63 }
  0xad   : > { %12068 = vst [vmem:[#allocation12_spill] sm:$0xff] %v9693_v39  ;;  %v11823_v17 = vshll.u32 %v9693_v39, 16  ;;  %v2424_v45 = vor.u32 %v2423_v41, %v11834_v15  ;;  %v2418_v28 = vsel %vm550_vm1, %v2414_v47, %v2417_v25  ;;  %v11824_v55 = vshrl.u32 %v9693_v39, 16 }
  0xaf   : > { %v2443_v26 = vrot.slane %v11823_v17, 1  ;;  %v2428_v62 = vsel %vm550_vm1, %v2424_v45, %v2427_v4 }
  0xb0   : > { %7633 = vmatmul.mubr.msk.bf16.gmra.mrb[24].mxu1 %vm728_vm2, %v1217_v13  ;;  %v11826_v13 = vshll.u32 %v9687_v16, 16 }
  0xb1   : > { %7636 = vmatprep.mubr.msk.bf16.mxu1 %vm728_vm2, %v1220_v14  ;;  %v9707_v14 = vsel %vm496_vm0, %v2316_v12, 0  ;;  %v9741_v12 = vsel %vm496_vm0, 0, %v2318_v33  ;;  %v2444_v41 = vor.u32 %v2443_v26, %v11824_v55 }
  0xb2   : > { %v2433_v43 = vrot.slane %v11826_v13, 1  ;;  %v11827_v47 = vshll.u32 %v9741_v12, 16  ;;  %v11832_v26 = vshrl.u32 %v9741_v12, 16 }
  0xb3   : > { %7709 = vmatmul.mubr.msk.bf16.gmra.mrb[28].mxu0 %vm728_vm2, %v1933_v5  ;;  %v9715_v5 = vsel %vm496_vm0, %v2317_v63, 0  ;;  %v9745_v63 = vsel %vm496_vm0, 0, %v2319_v31 }
  0xb4   : > { %12069 = vst [vmem:[#allocation13_spill] sm:$0xff] %v9715_v5  ;;  %v11822_v6 = vshll.u32 %v9715_v5, 16  ;;  %v2434_v36 = vor.u32 %v2433_v43, %v11829_v50  ;;  %v11828_v45 = vshll.u32 %v9745_v63, 16  ;;  %v2453_v55 = vrot.slane %v11827_v47, 1 }
  0xb5   : > { %v3021_v11 = vrot.slane %v9715_v5, 1  ;;  %v3023_v5 = vrot.slane %v9741_v12, 1 }
  0xb8   : > { %7637 = vmatmul.mubr.msk.bf16.gmra.mrb[28].mxu1 %vm728_vm2, %v1223_v58  ;;  %v9728_v58 = vld [vmem:[%s9519_s8 + $0x50] sm:$0xff]  }
  0xb9   : > { %7716 = vmatprep.mubr.msk.bf16.mxu1 %vm728_vm2, %v2388_v20  ;;  %12071 = vst [vmem:[#allocation15_spill] sm:$0xff] %v9728_v58  ;;  %v11825_v20 = vshll.u32 %v9707_v14, 16  ;;  %v2321_v4 = vrot.slane %v9728_v58, 7  ;;  %v3018_v58 = vrot.slane %v9707_v14, 1 }
  0xbb   : > { %v9787_v13 = vsel %vm496_vm0, 0, %v2321_v4  ;;  %v9805_v49 = vsel %vm496_vm0, %v2321_v4, 0 }
  0xbc   : > { %v11841_v50 = vshll.u32 %v9787_v13, 16  ;;  %v11846_v4 = vshrl.u32 %v9787_v13, 16  ;;  %v11845_v10 = vshll.u32 %v9805_v49, 16 }
  0xc0   : > { %7717 = vmatmul.mubr.msk.bf16.vlgmr.msra.gmra.mrb[32].mxu1 %vm728_vm2, %v2398_v8  ;;  %v2437_v8 = vrot.slane %v11825_v20, 1  ;;  %v11836_v20 = vshrl.u32 %v9745_v63, 16 }
  0xc1   : > { %7749 = vmatpush3.bf16.msra.mxu1 %v9554_v34  ;;  %7720 = vmatprep.mubr.msk.bf16.mxu1 %vm728_vm2, %v2408_v22  ;;  %v9719_v34 = vld [vmem:[%s9519_s8 + $0x48] sm:$0xff]   ;;  %v9753_v22 = vsel %vm496_vm0, %v2318_v33, 0  ;;  %v9768_v33 = vld [vmem:[%s9519_s8 + $0x58] sm:$0xff]  }
  0xc2   : > { %7750 = vmatprep.subr.bf16.mxu1 %v8605_v51  ;;  %12070 = vst [vmem:[#allocation14_spill] sm:$0xff] %v9719_v34  ;;  %v2320_v25 = vrot.slane %v9719_v34, 7  ;;  %12072 = vst [vmem:[#allocation16_spill] sm:$0xff] %v9768_v33  ;;  %v2438_v43 = vsel %vm550_vm1, %v2434_v36, %v2437_v8  ;;  %v2463_v36 = vrot.slane %v11828_v45, 1  ;;  %v3020_v34 = vrot.slane %v9693_v39, 1 }
  0xc4   : > { %v9797_v45 = vsel %vm496_vm0, %v2320_v25, 0  ;;  %v2464_v42 = vor.u32 %v2463_v36, %v11836_v20  ;;  %v9817_v36 = vld [vmem:[%s9519_s8 + $0x70] sm:$0xff]   ;;  %v2483_v20 = vrot.slane %v11841_v50, 1 }
  0xc5   : > { %7751 = vmatpush3.bf16.msra.mxu1 %v8605_v51  ;;  %v2447_v51 = vrot.slane %v11822_v6, 1  ;;  %v9774_v6 = vld [vmem:[%s9519_s8 + $0x60] sm:$0xff]   ;;  %v11844_v15 = vshll.u32 %v9797_v45, 16  ;;  %12075 = vst [vmem:[#allocation19_spill] sm:$0xff] %v9817_v36 }
  0xc6   : > { %7784 = vmatprep.subr.bf16.mxu1 %v9724_v23  ;;  %12073 = vst [vmem:[#allocation17_spill] sm:$0xff] %v9774_v6  ;;  %v2484_v50 = vor.u32 %v2483_v20, %v11846_v4 }
  0xc7   : > { %v2448_v17 = vsel %vm550_vm1, %v2444_v41, %v2447_v51  ;;  %v2454_v51 = vor.u32 %v2453_v55, %v11832_v26  ;;  %v2323_v55 = vrot.slane %v9774_v6, 7  ;;  %v9810_v26 = vld [vmem:[%s9519_s8 + $0x68] sm:$0xff]  }
  0xc8   : > { %7721 = vmatmul.mubr.msk.bf16.gmra.mrb[36].mxu1 %vm728_vm2, %v2418_v28  ;;  %v9765_v28 = vsel %vm496_vm0, %v2319_v31, 0  ;;  %v9781_v31 = vsel %vm496_vm0, 0, %v2320_v25  ;;  %12074 = vst [vmem:[#allocation18_spill] sm:$0xff] %v9810_v26 }
  0xc9   : > { %7724 = vmatprep.mubr.msk.bf16.mxu1 %vm728_vm2, %v2428_v62  ;;  %v11833_v62 = vshll.u32 %v9753_v22, 16  ;;  %v11835_v8 = vshll.u32 %v9765_v28, 16  ;;  %v11840_v41 = vshll.u32 %v9781_v31, 16  ;;  %v11843_v25 = vshrl.u32 %v9781_v31, 16 }
  0xcb   : > { %v2457_v47 = vrot.slane %v11833_v62, 1  ;;  %v2473_v62 = vrot.slane %v11840_v41, 1  ;;  %v9829_v41 = vsel %vm496_vm0, 0, %v2323_v55 }
  0xcc   : > { %v11857_v59 = vshrl.u32 %v9829_v41, 16 }
  0xd0   : > { %7725 = vmatmul.mubr.msk.bf16.gmra.mrb[40].mxu1 %vm728_vm2, %v2438_v43  ;;  %v2467_v43 = vrot.slane %v11835_v8, 1  ;;  %v2458_v8 = vsel %vm550_vm1, %v2454_v51, %v2457_v47  ;;  %v2474_v47 = vor.u32 %v2473_v62, %v11843_v25  ;;  %v2477_v51 = vrot.slane %v11844_v15, 1 }
  0xd1   : > { %7728 = vmatprep.mubr.msk.bf16.mxu1 %vm728_vm2, %v2448_v17  ;;  %v2322_v17 = vrot.slane %v9768_v33, 7  ;;  %v11851_v62 = vshll.u32 %v9829_v41, 16  ;;  %v2324_v25 = vrot.slane %v9810_v26, 7  ;;  %v9851_v15 = vsel %vm496_vm0, %v2323_v55, 0 }
  0xd2   : > { %v2468_v1 = vsel %vm550_vm1, %v2464_v42, %v2467_v43  ;;  %v2487_v42 = vrot.slane %v11845_v10, 1  ;;  %v2478_v20 = vsel %vm550_vm1, %v2474_v47, %v2477_v51  ;;  %v11858_v55 = vshll.u32 %v9851_v15, 16 }
  0xd3   : > { %v9826_v40 = vsel %vm496_vm0, 0, %v2322_v17  ;;  %v2503_v48 = vrot.slane %v11851_v62, 1  ;;  %v9865_v56 = vsel %vm496_vm0, 0, %v2324_v25  ;;  %v2326_v62 = vrot.slane %v9843_v21, 7 }
  0xd4   : > { %v11852_v43 = vshll.u32 %v9826_v40, 16  ;;  %v2488_v10 = vsel %vm550_vm1, %v2484_v50, %v2487_v42  ;;  %v11855_v4 = vshrl.u32 %v9826_v40, 16  ;;  %v11860_v42 = vshll.u32 %v9865_v56, 16 }
  0xd5   : > { %v2507_v29 = vrot.slane %v11858_v55, 1  ;;  %v3014_v26 = vrot.slane %v9651_v37, 1  ;;  %v3017_v33 = vrot.slane %v9687_v16, 1 }
  0xd6   : > { %v2493_v57 = vrot.slane %v11852_v43, 1  ;;  %v2504_v43 = vor.u32 %v2503_v48, %v11857_v59  ;;  %v2513_v18 = vrot.slane %v11860_v42, 1  ;;  %v9895_v59 = vsel %vm496_vm0, 0, %v2326_v62 }
  0xd7   : > { %v11865_v42 = vshll.u32 %v9895_v59, 16 }
  0xd8   : > { %7729 = vmatmul.mubr.msk.bf16.gmra.mrb[44].mxu1 %vm728_vm2, %v2458_v8  ;;  %v9846_v8 = vsel %vm496_vm0, %v2322_v17, 0  ;;  %v2494_v50 = vor.u32 %v2493_v57, %v11855_v4 }
  0xd9   : > { %7732 = vmatprep.mubr.msk.bf16.mxu1 %vm728_vm2, %v2468_v1  ;;  %v2325_v1 = vrot.slane %v9817_v36, 7  ;;  %v11854_v17 = vshll.u32 %v9846_v8, 16  ;;  %v3012_v36 = vrot.slane %v9657_v2, 1 }
  0xdb   : > { %v9868_v47 = vsel %vm496_vm0, 0, %v2325_v1  ;;  %v2497_v51 = vrot.slane %v11854_v17, 1  ;;  %v9887_v57 = vsel %vm496_vm0, %v2325_v1, 0  ;;  %v11863_v17 = vshrl.u32 %v9865_v56, 16 }
  0xdc   : > { %v11868_v55 = vshrl.u32 %v9868_v47, 16  ;;  %v11867_v27 = vshll.u32 %v9887_v57, 16 }
  0xdd   : > { %v2498_v4 = vsel %vm550_vm1, %v2494_v50, %v2497_v51  ;;  %v2514_v50 = vor.u32 %v2513_v18, %v11863_v17  ;;  %v2533_v18 = vrot.slane %v11865_v42, 1  ;;  %v3009_v42 = vrot.slane %v9630_v7, 1 }
  0xe0   : > { %7733 = vmatmul.mubr.msk.bf16.gmra.mrb[48].mxu1 %vm728_vm2, %v2478_v20  ;;  %v9883_v20 = vsel %vm496_vm0, %v2324_v25, 0  ;;  %v2508_v25 = vsel %vm550_vm1, %v2504_v43, %v2507_v29  ;;  %v2527_v43 = vrot.slane %v11867_v27, 1 }
  0xe1   : > { %7736 = vmatprep.mubr.msk.bf16.mxu1 %vm728_vm2, %v2488_v10  ;;  %v11861_v10 = vshll.u32 %v9868_v47, 16  ;;  %v11862_v48 = vshll.u32 %v9883_v20, 16 }
  0xe3   : > { %v2523_v1 = vrot.slane %v11861_v10, 1  ;;  %v2517_v51 = vrot.slane %v11862_v48, 1  ;;  %v9914_v10 = vsel %vm496_vm0, %v2326_v62, 0 }
  0xe4   : > { %v11864_v48 = vshll.u32 %v9914_v10, 16 }
  0xe5   : > { %v2524_v29 = vor.u32 %v2523_v1, %v11868_v55 }
  0xe6   : > { %v2537_v62 = vrot.slane %v11864_v48, 1  ;;  %v3008_v48 = vrot.slane %v9609_v44, 1 }
  0xe7   : > { %v2528_v17 = vsel %vm550_vm1, %v2524_v29, %v2527_v43  ;;  %v3003_v29 = vrot.slane %v9590_v60, 1 }
  0xe8   : > { %7737 = vmatmul.mubr.msk.bf16.gmra.mrb[52].mxu1 %vm728_vm2, %v2498_v4  ;;  %v2518_v4 = vsel %vm550_vm1, %v2514_v50, %v2517_v51  ;;  %v8614_v51 = vld [vmem:[%s11810_s4 + $0x28] sm:$0xff]  }
  0xe9   : > { %7740 = vmatprep.mubr.msk.bf16.mxu1 %vm728_vm2, %v2508_v25  ;;  %v11866_v25 = vshrl.u32 %v9895_v59, 16 }
  0xeb   : > { %v2534_v1 = vor.u32 %v2533_v18, %v11866_v25 }
  0xed   : > { %v2538_v50 = vsel %vm550_vm1, %v2534_v1, %v2537_v62 }
  0xf0   : > { %7741 = vmatmul.mubr.msk.bf16.gmra.mrb[56].mxu1 %vm728_vm2, %v2518_v4 }
  0xf1   : > { %7744 = vmatprep.mubr.msk.bf16.mxu1 %vm728_vm2, %v2528_v17  ;;  %v8615_v17 = vld [vmem:[%s11810_s4 + $0x30] sm:$0xff]  }
  0xf8   : > { %7745 = vmatmul.mubr.msk.bf16.gmra.mrb[60].mxu1 %vm728_vm2, %v2538_v50  ;;  %v3005_v50 = vrot.slane %v9602_v9, 1 }
  0xf9   : > { %7752 = vmatprep.mubr.msk.bf16.mxu1 %vm728_vm2, %v9573_v30 }
 0x100   : > { %7753 = vmatmul.mubr.msk.bf16.vlgmr.msra.gmra.mrb[32].mxu1 %vm728_vm2, %v9602_v9 }
 0x101   : > { %7785 = vmatpush3.bf16.msra.mxu1 %v9724_v23  ;;  %7756 = vmatprep.mubr.msk.bf16.mxu1 %vm728_vm2, %v9609_v44  ;;  %v3002_v23 = vrot.slane %v9573_v30, 1 }
 0x102   : > { %7786 = vmatprep.subr.bf16.mxu1 %v8614_v51 }
 0x103   : > { %v3004_v62 = vsel %vm1175_vm3, %v3002_v23, %v3003_v29  ;;  %v3010_v23 = vsel %vm1175_vm3, %v3008_v48, %v3009_v42  ;;  %v8616_v29 = vld [vmem:[%s11810_s4 + $0x38] sm:$0xff]   ;;  %v9991_v42 = vld [vmem:[%s11810_s4 + $0x40] sm:$0xff]  }
 0x104   : > { %12077 = vst [vmem:[#allocation21_spill] sm:$0xff] %v9991_v42 }
 0x105   : > { %7787 = vmatpush3.bf16.msra.mxu1 %v8614_v51  ;;  %v3006_v51 = vrot.slane %v9617_v32, 1 }
 0x106   : > { %7820 = vmatprep.subr.bf16.mxu1 %v8615_v17 }
 0x107   : > { %v3007_v46 = vsel %vm1175_vm3, %v3005_v50, %v3006_v51  ;;  %v3015_v50 = vrot.slane %v9671_v38, 1 }
 0x108   : > { %7757 = vmatmul.mubr.msk.bf16.gmra.mrb[36].mxu1 %vm728_vm2, %v9647_v24 }
 0x109   : > { %7760 = vmatprep.mubr.msk.bf16.mxu1 %vm728_vm2, %v9651_v37  ;;  %v3016_v6 = vsel %vm1175_vm3, %v3014_v26, %v3015_v50  ;;  %v3019_v26 = vsel %vm1175_vm3, %v3017_v33, %v3018_v58  ;;  %v3022_v50 = vsel %vm1175_vm3, %v3020_v34, %v3021_v11  ;;  %v3026_v11 = vrot.slane %v9745_v63, 1 }
 0x10a   : > { %v3027_v34 = vrot.slane %v9765_v28, 1 }
 0x110   : > { %7761 = vmatmul.mubr.msk.bf16.gmra.mrb[40].mxu1 %vm728_vm2, %v9687_v16  ;;  %v3024_v16 = vrot.slane %v9753_v22, 1 }
 0x111   : > { %7764 = vmatprep.mubr.msk.bf16.mxu1 %vm728_vm2, %v9693_v39 }
 0x118   : > { %7765 = vmatmul.mubr.msk.bf16.gmra.mrb[44].mxu1 %vm728_vm2, %v9741_v12 }
 0x119   : > { %7768 = vmatprep.mubr.msk.bf16.mxu1 %vm728_vm2, %v9745_v63 }
 0x120   : > { %7769 = vmatmul.mubr.msk.bf16.gmra.mrb[48].mxu1 %vm728_vm2, %v9781_v31 }
 0x121   : > { %7772 = vmatprep.mubr.msk.bf16.mxu1 %vm728_vm2, %v9787_v13 }
 0x128   : > { %7773 = vmatmul.mubr.msk.bf16.gmra.mrb[52].mxu1 %vm728_vm2, %v9826_v40 }
 0x129   : > { %7776 = vmatprep.mubr.msk.bf16.mxu1 %vm728_vm2, %v9829_v41 }
 0x130   : > { %7777 = vmatmul.mubr.msk.bf16.gmra.mrb[56].mxu1 %vm728_vm2, %v9865_v56 }
 0x131   : > { %7780 = vmatprep.mubr.msk.bf16.mxu1 %vm728_vm2, %v9868_v47 }
 0x133   : > { %v7574_v43 = vpop.f32.mrb[0].mxu1 }
 0x134   : > { %v1016_v4 = vpop.f32.mrb[1].mxu1 }
 0x135   : > { %v7575_v18 = vpop.f32.mrb[2].mxu1 }
 0x136   : > { %v1019_v1 = vpop.f32.mrb[3].mxu1 }
 0x138   : > { %7781 = vmatmul.mubr.msk.bf16.gmra.mrb[60].mxu1 %vm728_vm2, %v9895_v59 }
 0x139   : > { %7788 = vmatprep.mubr.msk.bf16.mxu1 %vm728_vm2, %v3004_v62  ;;  %v3011_v62 = vrot.slane %v9647_v24, 1 }
 0x13b   : > { %v7578_v25 = vpop.f32.mrb[4].mxu1 }
 0x13c   : > { %v1032_v27 = vpop.f32.mrb[5].mxu1 }
 0x13d   : > { %v7579_v55 = vpop.f32.mrb[6].mxu1 }
 0x13e   : > { %v1035_v21 = vpop.f32.mrb[7].mxu1 }
 0x140   : > { %7789 = vmatmul.mubr.msk.bf16.vlgmr.msra.gmra.mrb[32].mxu1 %vm728_vm2, %v3007_v46 }
 0x141   : > { %7821 = vmatpush3.bf16.msra.mxu1 %v8615_v17  ;;  %7792 = vmatprep.mubr.msk.bf16.mxu1 %vm728_vm2, %v3010_v23  ;;  %v3013_v17 = vsel %vm1175_vm3, %v3011_v62, %v3012_v36 }
 0x142   : > { %7822 = vmatprep.subr.bf16.mxu1 %v8616_v29 }
 0x143   : > { %v7582_v48 = vpop.f32.mrb[8].mxu1 }
 0x144   : > { %v1048_v51 = vpop.f32.mrb[9].mxu1 }
 0x145   : > { %v7583_v46 = vpop.f32.mrb[10].mxu1  ;;  %7823 = vmatpush3.bf16.msra.mxu1 %v8616_v29 }
 0x146   : > { %v1051_v23 = vpop.f32.mrb[11].mxu1  ;;  %7856 = vmatprep.subr.bf16.mxu1 %v9991_v42 }
 0x148   : > { %7793 = vmatmul.mubr.msk.bf16.gmra.mrb[36].mxu1 %vm728_vm2, %v3013_v17 }
 0x149   : > { %7796 = vmatprep.mubr.msk.bf16.mxu1 %vm728_vm2, %v3016_v6 }
 0x14b   : > { %v7586_v53 = vpop.f32.mrb[12].mxu1 }
 0x14c   : > { %v1064_v36 = vpop.f32.mrb[13].mxu1 }
 0x14d   : > { %v10002_v29 = vpop.f32.mrb[14].mxu1 }
 0x14e   : > { %v10005_v62 = vpop.f32.mrb[15].mxu1  ;;  %v7682_v17 = vpop.f32.mrb[0].mxu0 }
 0x14f   : > { %v10008_v6 = vadd.f32 %v7682_v17, %v7574_v43  ;;  %v2033_v42 = vpop.f32.mrb[1].mxu0 }
 0x150   : > { %7797 = vmatmul.mubr.msk.bf16.gmra.mrb[40].mxu1 %vm728_vm2, %v3019_v26  ;;  %v10011_v3 = vadd.f32 %v2033_v42, %v1016_v4  ;;  %v7683_v39 = vpop.f32.mrb[2].mxu0  ;;  %v3025_v26 = vsel %vm1175_vm3, %v3023_v5, %v3024_v16  ;;  %v3028_v4 = vsel %vm1175_vm3, %v3026_v11, %v3027_v34  ;;  %v3032_v5 = vrot.slane %v9787_v13, 1 }
 0x151   : > { %12078 = vst [vmem:[#allocation22_spill] sm:$0xff] %v10008_v6  ;;  %7800 = vmatprep.mubr.msk.bf16.mxu1 %vm728_vm2, %v3022_v50  ;;  %v10016_v58 = vadd.f32 %v7683_v39, %v7575_v18  ;;  %v2036_v33 = vpop.f32.mrb[3].mxu0  ;;  %v3029_v18 = vrot.slane %v9781_v31, 1 }
 0x152   : > { %12079 = vst [vmem:[#allocation23_spill] sm:$0xff] %v10011_v3  ;;  %v10020_v43 = vadd.f32 %v2036_v33, %v1019_v1  ;;  %v3030_v1 = vrot.slane %v9797_v45, 1 }
 0x153   : > { %12080 = vst [vmem:[#allocation24_spill] sm:$0xff] %v10016_v58 }
 0x154   : > { %12081 = vst [vmem:[#allocation25_spill] sm:$0xff] %v10020_v43  ;;  %v3031_v34 = vsel %vm1175_vm3, %v3029_v18, %v3030_v1  ;;  %v3038_v1 = vrot.slane %v9829_v41, 1 }
 0x156   : > { %v7686_v42 = vpop.f32.mrb[4].mxu0 }
 0x157   : > { %v10024_v17 = vadd.f32 %v7686_v42, %v7578_v25  ;;  %v2049_v50 = vpop.f32.mrb[5].mxu0  ;;  %v3033_v25 = vrot.slane %v9805_v49, 1 }
 0x158   : > { %7801 = vmatmul.mubr.msk.bf16.gmra.mrb[44].mxu1 %vm728_vm2, %v3025_v26  ;;  %v10027_v3 = vadd.f32 %v2049_v50, %v1032_v27  ;;  %v7687_v39 = vpop.f32.mrb[6].mxu0 }
 0x159   : > { %12082 = vst [vmem:[#allocation26_spill] sm:$0xff] %v10024_v17  ;;  %7804 = vmatprep.mubr.msk.bf16.mxu1 %vm728_vm2, %v3028_v4  ;;  %v10032_v33 = vadd.f32 %v7687_v39, %v7579_v55  ;;  %v2052_v16 = vpop.f32.mrb[7].mxu0  ;;  %v3034_v27 = vsel %vm1175_vm3, %v3032_v5, %v3033_v25  ;;  %v3035_v39 = vrot.slane %v9826_v40, 1 }
 0x15a   : > { %12083 = vst [vmem:[#allocation27_spill] sm:$0xff] %v10027_v3  ;;  %v10036_v11 = vadd.f32 %v2052_v16, %v1035_v21  ;;  %v3036_v21 = vrot.slane %v9846_v8, 1 }
 0x15b   : > { %12084 = vst [vmem:[#allocation28_spill] sm:$0xff] %v10032_v33  ;;  %v12100_v33 = vshrl.u32 %v9609_v44, 16 }
 0x15c   : > { %12085 = vst [vmem:[#allocation29_spill] sm:$0xff] %v10036_v11  ;;  %v3037_v25 = vsel %vm1175_vm3, %v3035_v39, %v3036_v21  ;;  %v3311_v39 = vshrl.u32 %v9590_v60, 16 }
 0x15d   : > { %v3326_v3 = vrot.slane %v12100_v33, 1  ;;  %v12106_v33 = vshll.u32 %v9647_v24, 16 }
 0x15e   : > { %v7690_v26 = vpop.f32.mrb[8].mxu0 }
 0x15f   : > { %v10040_v42 = vadd.f32 %v7690_v26, %v7582_v48  ;;  %v2065_v4 = vpop.f32.mrb[9].mxu0  ;;  %v3039_v48 = vrot.slane %v9851_v15, 1 }
 0x160   : > { %7805 = vmatmul.mubr.msk.bf16.gmra.mrb[48].mxu1 %vm728_vm2, %v3031_v34  ;;  %v10043_v50 = vadd.f32 %v2065_v4, %v1048_v51  ;;  %v7691_v55 = vpop.f32.mrb[10].mxu0 }
 0x161   : > { %12086 = vst [vmem:[#allocation30_spill] sm:$0xff] %v10040_v42  ;;  %7808 = vmatprep.mubr.msk.bf16.mxu1 %vm728_vm2, %v3034_v27  ;;  %v10048_v16 = vadd.f32 %v7691_v55, %v7583_v46  ;;  %v2068_v18 = vpop.f32.mrb[11].mxu0  ;;  %v3040_v51 = vsel %vm1175_vm3, %v3038_v1, %v3039_v48  ;;  %v3041_v27 = vrot.slane %v9865_v56, 1  ;;  %v3042_v46 = vrot.slane %v9883_v20, 1 }
 0x162   : > { %12087 = vst [vmem:[#allocation31_spill] sm:$0xff] %v10043_v50  ;;  %v10052_v5 = vadd.f32 %v2068_v18, %v1051_v23  ;;  %v3044_v55 = vrot.slane %v9868_v47, 1  ;;  %v3320_v1 = vshrl.u32 %v9617_v32, 16 }
 0x163   : > { %12088 = vst [vmem:[#allocation32_spill] sm:$0xff] %v10048_v16  ;;  %v3045_v16 = vrot.slane %v9887_v57, 1 }
 0x164   : > { %12089 = vst [vmem:[#allocation33_spill] sm:$0xff] %v10052_v5 }
 0x166   : > { %v7694_v34 = vpop.f32.mrb[12].mxu0 }
 0x167   : > { %v10057_v26 = vadd.f32 %v7694_v34, %v7586_v53  ;;  %v2081_v4 = vpop.f32.mrb[13].mxu0  ;;  %v3046_v34 = vsel %vm1175_vm3, %v3044_v55, %v3045_v16  ;;  %v3329_v55 = vshrl.u32 %v9630_v7, 16 }
 0x168   : > { %7809 = vmatmul.mubr.msk.bf16.gmra.mrb[52].mxu1 %vm728_vm2, %v3037_v25  ;;  %v10063_v23 = vadd.f32 %v2081_v4, %v1064_v36  ;;  %v7695_v18 = vpop.f32.mrb[14].mxu0  ;;  %v3043_v25 = vsel %vm1175_vm3, %v3041_v27, %v3042_v46  ;;  %v12094_v36 = vshrl.u32 %v9573_v30, 16  ;;  %v12099_v27 = vshll.u32 %v9617_v32, 16 }
 0x169   : > { %12090 = vst [vmem:[#allocation34_spill] sm:$0xff] %v10057_v26  ;;  %7812 = vmatprep.mubr.msk.bf16.mxu1 %vm728_vm2, %v3040_v51  ;;  %v10068_v21 = vadd.f32 %v7695_v18, %v10002_v29  ;;  %v2084_v53 = vpop.f32.mrb[15].mxu0  ;;  %v12095_v51 = vshll.u32 %v9573_v30, 16  ;;  %v3313_v26 = vrot.slane %v3311_v39, 1  ;;  %v12096_v29 = vshll.u32 %v9590_v60, 16 }
 0x16a   : > { %12091 = vst [vmem:[#allocation35_spill] sm:$0xff] %v10063_v23  ;;  %v10072_v48 = vadd.f32 %v2084_v53, %v10005_v62  ;;  %v3308_v4 = vrot.slane %v12094_v36, 1  ;;  %v12098_v62 = vshll.u32 %v9602_v9, 16  ;;  %v3323_v16 = vrot.slane %v12099_v27, 2 }
 0x16b   : > { %12092 = vst [vmem:[#allocation36_spill] sm:$0xff] %v10068_v21  ;;  %v3309_v23 = vrot.slane %v12095_v51, 2  ;;  %v3314_v18 = vrot.slane %v12096_v29, 2  ;;  %v12097_v21 = vshrl.u32 %v9602_v9, 16  ;;  %v3047_v51 = vrot.slane %v9895_v59, 1 }
 0x16c   : > { %12093 = vst [vmem:[#allocation37_spill] sm:$0xff] %v10072_v48  ;;  %v3318_v53 = vrot.slane %v12098_v62, 2  ;;  %v3322_v48 = vrot.slane %v3320_v1, 1  ;;  %v3338_v27 = vshrl.u32 %v9657_v2, 16  ;;  %v3331_v43 = vrot.slane %v3329_v55, 1 }
 0x16d   : > { %v3317_v5 = vrot.slane %v12097_v21, 1  ;;  %v3048_v21 = vrot.slane %v9914_v10, 1  ;;  %v3310_v29 = vor.u32 %v3309_v23, %v3308_v4  ;;  %v3315_v62 = vor.u32 %v3314_v18, %v3313_v26 }
 0x16e   : > { %v7698_v46 = vpop.f32.mrb[16].mxu0  ;;  %v3324_v42 = vor.u32 %v3323_v16, %v3322_v48  ;;  %v12105_v48 = vshrl.u32 %v9647_v24, 16 }
 0x16f   : > { %v2097_v36 = vpop.f32.mrb[17].mxu0  ;;  %v3319_v1 = vor.u32 %v3318_v53, %v3317_v5  ;;  %v3049_v26 = vsel %vm1175_vm3, %v3047_v51, %v3048_v21  ;;  %v10111_v53 = vrot.slane %v12106_v33, 2 }
 0x170   : > { %7813 = vmatmul.mubr.msk.bf16.gmra.mrb[56].mxu1 %vm728_vm2, %v3043_v25  ;;  %v7699_v39 = vpop.f32.mrb[18].mxu0  ;;  %v12101_v25 = vshll.u32 %v9609_v44, 16  ;;  %v10107_v18 = vrot.slane %v12105_v48, 1 }
 0x171   : > { %7816 = vmatprep.mubr.msk.bf16.mxu1 %vm728_vm2, %v3046_v34  ;;  %v2100_v50 = vpop.f32.mrb[19].mxu0  ;;  %v12102_v34 = vshll.u32 %v9630_v7, 16 }
 0x172   : > { %v3327_v17 = vrot.slane %v12101_v25, 2 }
 0x173   : > { %v7626_v11 = vpop.f32.mrb[16].mxu1  ;;  %v3332_v58 = vrot.slane %v12102_v34, 2  ;;  %v3325_v34 = vsel %vm1482_vm4, %v3319_v1, %v3324_v42 }
 0x174   : > { %v10100_v6 = vadd.f32 %v7698_v46, %v7626_v11  ;;  %v1387_v23 = vpop.f32.mrb[17].mxu1  ;;  %v3316_v11 = vsel %vm1482_vm4, %v3310_v29, %v3315_v62  ;;  %v10116_v46 = vrot.slane %v3338_v27, 1  ;;  %v11897_v29 = vunpack.c.h.bf16 %v9530_v35 }
 0x175   : > { %v10102_v4 = vadd.f32 %v2097_v36, %v1387_v23  ;;  %v7627_v5 = vpop.f32.mrb[18].mxu1  ;;  %v12108_v36 = vshll.u32 %v9657_v2, 16  ;;  %v3328_v23 = vor.u32 %v3327_v17, %v3326_v3  ;;  %v3333_v48 = vor.u32 %v3332_v58, %v3331_v43 }
 0x176   : > { %12103 = vst [vmem:[#allocation38_spill] sm:$0xff] %v10100_v6  ;;  %v10113_v16 = vadd.f32 %v7699_v39, %v7627_v5  ;;  %v1390_v55 = vpop.f32.mrb[19].mxu1  ;;  %v7702_v21 = vpop.f32.mrb[20].mxu0  ;;  %v11898_v5 = vunpack.c.l.bf16 %v9530_v35  ;;  %v11905_v62 = vunpack.c.l.bf16 %v9557_v19  ;;  %v3347_v3 = vshrl.u32 %v9671_v38, 16 }
 0x177   : > { %12104 = vst [vmem:[#allocation39_spill] sm:$0xff] %v10102_v4  ;;  %v10120_v25 = vrot.slane %v12108_v36, 2  ;;  %v10122_v51 = vadd.f32 %v2100_v50, %v1390_v55  ;;  %v2113_v39 = vpop.f32.mrb[21].mxu0  ;;  %v3337_v50 = vor.u32 %v10111_v53, %v10107_v18  ;;  %v11900_v58 = vunpack.c.l.bf16 %v9561_v54 }
 0x178   : > { %12107 = vst [vmem:[#allocation40_spill] sm:$0xff] %v10113_v16  ;;  %7817 = vmatmul.mubr.msk.bf16.gmra.mrb[60].mxu1 %vm728_vm2, %v3049_v26  ;;  %v7703_v33 = vpop.f32.mrb[22].mxu0  ;;  %v11899_v43 = vunpack.c.h.bf16 %v9561_v54  ;;  %v8487_v1 = vpack.i.bf16 %v11897_v29, %v11898_v5  ;;  %v3334_v53 = vsel %vm1482_vm4, %v3328_v23, %v3333_v48  ;;  %v3356_v27 = vshrl.u32 %v9707_v14, 16 }
 0x179   : > { %12109 = vst [vmem:[#allocation41_spill] sm:$0xff] %v10122_v51  ;;  %7824 = vmatprep.mubr.msk.bf16.mxu1 %vm728_vm2, %v3316_v11  ;;  %v2116_v17 = vpop.f32.mrb[23].mxu0  ;;  %v3342_v42 = vor.u32 %v10120_v25, %v10116_v46  ;;  %v12110_v11 = vshrl.u32 %v9651_v37, 16  ;;  %v12112_v23 = vunpack.c.h.bf16 %v9557_v19 }
 0x17a   : > { %v8497_v46 = vpack.i.bf16 %v11899_v43, %v11900_v58  ;;  %8488 = vrot.lane.b32.xlu0 %v8487_v1, %s8861_s29  ;;  %v12114_v43 = vshll.u32 %v9651_v37, 16  ;;  %v12115_v58 = vshll.u32 %v9671_v38, 16  ;;  %v3358_v51 = vrot.slane %v3356_v27, 1  ;;  %v12132_v27 = vld [vmem:[#allocation12_spill] sm:$0xff] }
 0x17b   : > { %v7630_v18 = vpop.f32.mrb[20].mxu1  ;;  %v3344_v36 = vrot.slane %v12110_v11, 1  ;;  %v8492_v48 = vpack.i.bf16 %v12112_v23, %v11905_v62  ;;  %v8618_v23 = vld [vmem:[%s11810_s4 + $0x48] sm:$0xff]   ;;  %v12122_v11 = vld [vmem:[#allocation13_spill] sm:$0xff]  ;;  %v3343_v4 = vsel %vm1482_vm4, %v3337_v50, %v3342_v42 }
 0x17c   : > { %v10152_v25 = vadd.f32 %v7702_v21, %v7630_v18  ;;  %v1403_v29 = vpop.f32.mrb[21].mxu1  ;;  %v3345_v21 = vrot.slane %v12114_v43, 2  ;;  %v3349_v18 = vrot.slane %v3347_v3, 1  ;;  %v3350_v54 = vrot.slane %v12115_v58, 2  ;;  %8498 = vrot.lane.b32.xlu1 %v8497_v46, %s8861_s29  ;;  %v12120_v46 = vld [vmem:[#allocation11_spill] sm:$0xff]  ;;  %v12131_v43 = vld [vmem:[#allocation9_spill] sm:$0xff] }
 0x17d   : > { %v10161_v55 = vadd.f32 %v2113_v39, %v1403_v29  ;;  %v7631_v26 = vpop.f32.mrb[22].mxu1  ;;  %v12117_v39 = vunpack.c.l.bf16 %v9587_v52  ;;  %v12118_v29 = vunpack.c.h.bf16 %v9587_v52  ;;  %v3365_v19 = vshrl.u32 %v12122_v11, 16  ;;  %v12138_v3 = vld [vmem:[#allocation10_spill] sm:$0xff] }
 0x17e   : > { %12111 = vst [vmem:[#allocation42_spill] sm:$0xff] %v10152_v25  ;;  %v10168_v1 = vadd.f32 %v7703_v33, %v7631_v26  ;;  %v1406_v35 = vpop.f32.mrb[23].mxu1  ;;  %v7706_v58 = vpop.f32.mrb[24].mxu0  ;;  %v12121_v33 = vshrl.u32 %v12120_v46, 16  ;;  %8493 = vrot.lane.b32.xlu0 %v8492_v48, %s8861_s29  ;;  %v12135_v42 = vshll.u32 %v12122_v11, 16 }
 0x17f   : > { %12113 = vst [vmem:[#allocation43_spill] sm:$0xff] %v10161_v55  ;;  %v8502_v62 = vpack.i.bf16 %v12118_v29, %v12117_v39  ;;  %v10179_v5 = vadd.f32 %v2116_v17, %v1406_v35  ;;  %v12123_v55 = vshll.u32 %v12120_v46, 16  ;;  %v12124_v39 = vunpack.c.l.bf16 %v9596_v61  ;;  %v12126_v17 = vld [vmem:[#allocation8_spill] sm:$0xff] }
 0x180   : > { %12116 = vst [vmem:[#allocation44_spill] sm:$0xff] %v10168_v1  ;;  %v3353_v26 = vrot.slane %v12121_v33, 1  ;;  %7825 = vmatmul.mubr.msk.bf16.vlgmr.msra.gmra.mrb[32].mxu1 %vm728_vm2, %v3325_v34  ;;  %v2129_v1 = vpop.f32.mrb[25].mxu0  ;;  %v12125_v29 = vunpack.c.h.bf16 %v9596_v61  ;;  %v12127_v33 = vld [vmem:[#allocation21_spill] sm:$0xff]  ;;  %v3346_v34 = vor.u32 %v3345_v21, %v3344_v36  ;;  %v12133_v36 = vshrl.u32 %v12132_v27, 16 }
 0x181   : > { %12119 = vst [vmem:[#allocation45_spill] sm:$0xff] %v10179_v5  ;;  %v3354_v25 = vrot.slane %v12123_v55, 2  ;;  %7857 = vmatpush3.bf16.msra.mxu1 %v12127_v33  ;;  %v7707_v52 = vpop.f32.mrb[26].mxu0  ;;  %7828 = vmatprep.mubr.msk.bf16.mxu1 %vm728_vm2, %v3334_v53  ;;  %v3351_v5 = vor.u32 %v3350_v54, %v3349_v18  ;;  %v12128_v55 = vshll.u32 %v9707_v14, 16  ;;  %v12134_v18 = vshll.u32 %v12132_v27, 16 }
 0x182   : > { %v8507_v35 = vpack.i.bf16 %v12125_v29, %v12124_v39  ;;  %v2132_v16 = vpop.f32.mrb[27].mxu0  ;;  %7858 = vmatprep.subr.bf16.mxu1 %v8618_v23  ;;  %8503 = vrot.lane.b32.xlu1 %v8502_v62, %s8861_s29  ;;  %v12129_v39 = vunpack.c.l.bf16 %v9623_v0  ;;  %v12130_v29 = vunpack.c.h.bf16 %v9623_v0  ;;  %v3362_v21 = vrot.slane %v12133_v36, 1  ;;  %v12141_v0 = vld [vmem:[#allocation14_spill] sm:$0xff] }
 0x183   : > { %v3359_v48 = vrot.slane %v12128_v55, 2  ;;  %v7634_v54 = vpop.f32.mrb[24].mxu1  ;;  %v3363_v55 = vrot.slane %v12134_v18, 2  ;;  %v3367_v50 = vrot.slane %v3365_v19, 1  ;;  %v3368_v62 = vrot.slane %v12135_v42, 2 }
 0x184   : > { %v8512_v33 = vpack.i.bf16 %v12130_v29, %v12129_v39  ;;  %v10212_v61 = vadd.f32 %v7706_v58, %v7634_v54  ;;  %v1419_v6 = vpop.f32.mrb[25].mxu1  ;;  %8508 = vrot.lane.b32.xlu0 %v8507_v35, %s8861_s29  ;;  %v12136_v39 = vunpack.c.l.bf16 %v12126_v17  ;;  %v12137_v29 = vunpack.c.h.bf16 %v12126_v17 }
 0x185   : > { %v10221_v27 = vadd.f32 %v2129_v1, %v1419_v6  ;;  %v7635_v19 = vpop.f32.mrb[26].mxu1  ;;  %v3352_v18 = vsel %vm1482_vm4, %v3346_v34, %v3351_v5  ;;  %v3355_v42 = vor.u32 %v3354_v25, %v3353_v26  ;;  %v3360_v58 = vor.u32 %v3359_v48, %v3358_v51  ;;  %7859 = vmatpush3.bf16.msra.mxu1 %v8618_v23  ;;  %v12145_v48 = vld [vmem:[#allocation15_spill] sm:$0xff] }
 0x186   : > { %v8517_v53 = vpack.i.bf16 %v12137_v29, %v12136_v39  ;;  %v10224_v54 = vadd.f32 %v7707_v52, %v7635_v19  ;;  %v1422_v35 = vpop.f32.mrb[27].mxu1  ;;  %8513 = vrot.lane.b32.xlu1 %v8512_v33, %s8861_s29  ;;  %v12139_v17 = vunpack.c.l.bf16 %v12131_v43  ;;  %v12140_v39 = vunpack.c.h.bf16 %v12131_v43  ;;  %v7710_v5 = vpop.f32.mrb[28].mxu0 }
 0x187   : > { %v11919_v36 = vunpack.c.l.bf16 %v12141_v0  ;;  %v11918_v6 = vunpack.c.h.bf16 %v12141_v0  ;;  %v10233_v1 = vadd.f32 %v2132_v16, %v1422_v35  ;;  %v3364_v25 = vor.u32 %v3363_v55, %v3362_v21  ;;  %v2145_v23 = vpop.f32.mrb[29].mxu0 }
 0x188   : > { %v8522_v29 = vpack.i.bf16 %v12140_v39, %v12139_v17  ;;  %v3369_v51 = vor.u32 %v3368_v62, %v3367_v50  ;;  %v3374_v52 = vshrl.u32 %v9753_v22, 16  ;;  %7829 = vmatmul.mubr.msk.bf16.gmra.mrb[36].mxu1 %vm728_vm2, %v3343_v4  ;;  %8518 = vrot.lane.b32.xlu0 %v8517_v53, %s8861_s29  ;;  %v12143_v26 = vunpack.c.l.bf16 %v12138_v3  ;;  %v7711_v19 = vpop.f32.mrb[30].mxu0 }
 0x189   : > { %12142 = vst [vmem:[#allocation11_spill] sm:$0xff] %v10233_v1  ;;  %v12144_v17 = vunpack.c.h.bf16 %v12138_v3  ;;  %7832 = vmatprep.mubr.msk.bf16.mxu1 %vm728_vm2, %v3352_v18  ;;  %v3361_v21 = vsel %vm1482_vm4, %v3355_v42, %v3360_v58  ;;  %v12146_v55 = vshrl.u32 %v9741_v12, 16  ;;  %v3383_v50 = vshrl.u32 %v9765_v28, 16  ;;  %v2148_v53 = vpop.f32.mrb[31].mxu0  ;;  %v12154_v18 = vld [vmem:[#allocation17_spill] sm:$0xff] }
 0x18a   : > { %v12147_v62 = vshll.u32 %v9741_v12, 16  ;;  %8523 = vrot.lane.b32.xlu1 %v8522_v29, %s8861_s29  ;;  %v8532_v39 = vpack.i.bf16 %v11918_v6, %v11919_v36  ;;  %v12149_v16 = vshll.u32 %v9753_v22, 16  ;;  %v12152_v6 = vunpack.c.l.bf16 %v12145_v48 }
 0x18b   : > { %v8527_v34 = vpack.i.bf16 %v12144_v17, %v12143_v26  ;;  %v3371_v4 = vrot.slane %v12146_v55, 1  ;;  %v12148_v26 = vld [vmem:[#allocation16_spill] sm:$0xff]  ;;  %v7638_v58 = vpop.f32.mrb[28].mxu1  ;;  %v3370_v17 = vsel %vm1482_vm4, %v3364_v25, %v3369_v51  ;;  %v3376_v55 = vrot.slane %v3374_v52, 1 }
 0x18c   : > { %v3372_v35 = vrot.slane %v12147_v62, 2  ;;  %v3377_v33 = vrot.slane %v12149_v16, 2  ;;  %v12150_v62 = vshrl.u32 %v9745_v63, 16  ;;  %v10263_v29 = vadd.f32 %v7710_v5, %v7638_v58  ;;  %v1435_v43 = vpop.f32.mrb[29].mxu1 }
 0x18d   : > { %8528 = vrot.lane.b32.xlu0 %v8527_v34, %s8861_s29  ;;  %v12153_v36 = vunpack.c.h.bf16 %v12145_v48  ;;  %v10272_v51 = vadd.f32 %v2145_v23, %v1435_v43  ;;  %v7639_v52 = vpop.f32.mrb[30].mxu1  ;;  %v12155_v16 = vshll.u32 %v9745_v63, 16  ;;  %v3385_v5 = vrot.slane %v3383_v50, 1  ;;  %v12159_v43 = vld [vmem:[#allocation18_spill] sm:$0xff] }
 0x18e   : > { %v3380_v3 = vrot.slane %v12150_v62, 1  ;;  %12151 = vst [vmem:[#allocation13_spill] sm:$0xff] %v10263_v29  ;;  %v12156_v58 = vshll.u32 %v9765_v28, 16  ;;  %v10278_v34 = vadd.f32 %v7711_v19, %v7639_v52  ;;  %v1438_v1 = vpop.f32.mrb[31].mxu1  ;;  %8533 = vrot.lane.b32.xlu1 %v8532_v39, %s8861_s29  ;;  %v3392_v50 = vshrl.u32 %v9797_v45, 16 }
 0x18f   : > { %v8537_v42 = vpack.i.bf16 %v12153_v36, %v12152_v6  ;;  %v3381_v62 = vrot.slane %v12155_v16, 2  ;;  %v12157_v36 = vunpack.c.l.bf16 %v12148_v26  ;;  %v12158_v6 = vunpack.c.h.bf16 %v12148_v26  ;;  %v12162_v16 = vld [vmem:[#allocation19_spill] sm:$0xff] }
 0x190   : > { %v3386_v29 = vrot.slane %v12156_v58, 2  ;;  %v10287_v48 = vadd.f32 %v2148_v53, %v1438_v1  ;;  %7833 = vmatmul.mubr.msk.bf16.gmra.mrb[40].mxu1 %vm728_vm2, %v3361_v21  ;;  %v12160_v19 = vunpack.c.l.bf16 %v12154_v18  ;;  %v12161_v39 = vunpack.c.h.bf16 %v12154_v18 }
 0x191   : > { %v8542_v25 = vpack.i.bf16 %v12158_v6, %v12157_v36  ;;  %8538 = vrot.lane.b32.xlu0 %v8537_v42, %s8861_s29  ;;  %7836 = vmatprep.mubr.msk.bf16.mxu1 %vm728_vm2, %v3370_v17  ;;  %v3373_v6 = vor.u32 %v3372_v35, %v3371_v4  ;;  %v3378_v1 = vor.u32 %v3377_v33, %v3376_v55  ;;  %v3401_v23 = vshrl.u32 %v9805_v49, 16 }
 0x192   : > { %v8547_v52 = vpack.i.bf16 %v12161_v39, %v12160_v19  ;;  %v3382_v53 = vor.u32 %v3381_v62, %v3380_v3  ;;  %v3387_v0 = vor.u32 %v3386_v29, %v3385_v5  ;;  %v12163_v21 = vunpack.c.l.bf16 %v12159_v43  ;;  %v12165_v19 = vld [vmem:[#allocation20_spill] sm:$0xff] }
 0x193   : > { %8543 = vrot.lane.b32.xlu1 %v8542_v25, %s8861_s29  ;;  %v12164_v42 = vunpack.c.h.bf16 %v12159_v43  ;;  %v12166_v36 = vshrl.u32 %v9781_v31, 16  ;;  %v12167_v33 = vshll.u32 %v9781_v31, 16  ;;  %v3394_v4 = vrot.slane %v3392_v50, 1 }
 0x194   : > { %v12168_v35 = vshll.u32 %v9797_v45, 16  ;;  %v12169_v29 = vunpack.c.l.bf16 %v12162_v16  ;;  %v12170_v25 = vunpack.c.h.bf16 %v12162_v16  ;;  %v3379_v5 = vsel %vm1482_vm4, %v3373_v6, %v3378_v1 }
 0x195   : > { %v8552_v18 = vpack.i.bf16 %v12164_v42, %v12163_v21  ;;  %v3389_v17 = vrot.slane %v12166_v36, 1  ;;  %v3390_v3 = vrot.slane %v12167_v33, 2  ;;  %8548 = vrot.lane.b32.xlu0 %v8547_v52, %s8861_s29  ;;  %v3388_v21 = vsel %vm1482_vm4, %v3382_v53, %v3387_v0 }
 0x196   : > { %v3395_v55 = vrot.slane %v12168_v35, 2  ;;  %v8557_v62 = vpack.i.bf16 %v12170_v25, %v12169_v29  ;;  %v12171_v36 = vshrl.u32 %v9787_v13, 16  ;;  %v12172_v33 = vshll.u32 %v9787_v13, 16 }
 0x197   : > { %v3403_v58 = vrot.slane %v3401_v23, 1  ;;  %v12173_v35 = vshll.u32 %v9805_v49, 16  ;;  %8553 = vrot.lane.b32.xlu1 %v8552_v18, %s8861_s29  ;;  %v12174_v52 = vunpack.c.l.bf16 %v12165_v19  ;;  %v12175_v29 = vunpack.c.h.bf16 %v12165_v19 }
 0x198   : > { %v3398_v42 = vrot.slane %v12171_v36, 1  ;;  %v3399_v50 = vrot.slane %v12172_v33, 2  ;;  %v3391_v6 = vor.u32 %v3390_v3, %v3389_v17  ;;  %v3396_v1 = vor.u32 %v3395_v55, %v3394_v4  ;;  %7837 = vmatmul.mubr.msk.bf16.gmra.mrb[44].mxu1 %vm728_vm2, %v3379_v5 }
 0x199   : > { %v3404_v39 = vrot.slane %v12173_v35, 2  ;;  %v8562_v25 = vpack.i.bf16 %v12175_v29, %v12174_v52  ;;  %v3410_v0 = vshrl.u32 %v9846_v8, 16  ;;  %8558 = vrot.lane.b32.xlu0 %v8557_v62, %s8861_s29  ;;  %7840 = vmatprep.mubr.msk.bf16.mxu1 %vm728_vm2, %v3388_v21  ;;  %v3419_v23 = vshrl.u32 %v9851_v15, 16 }
 0x19a   : > { %v3400_v53 = vor.u32 %v3399_v50, %v3398_v42  ;;  %v3397_v18 = vsel %vm1482_vm4, %v3391_v6, %v3396_v1  ;;  %v12176_v33 = vshrl.u32 %v9826_v40, 16  ;;  %v12177_v3 = vshll.u32 %v9826_v40, 16 }
 0x19b   : > { %v3405_v36 = vor.u32 %v3404_v39, %v3403_v58  ;;  %8563 = vrot.lane.b32.xlu1 %v8562_v25, %s8861_s29  ;;  %v3412_v55 = vrot.slane %v3410_v0, 1  ;;  %v12178_v5 = vshll.u32 %v9846_v8, 16  ;;  %v12179_v21 = vshrl.u32 %v9829_v41, 16 }
 0x19c   : > { %v3407_v17 = vrot.slane %v12176_v33, 1  ;;  %v3408_v4 = vrot.slane %v12177_v3, 2  ;;  %v12180_v42 = vshll.u32 %v9829_v41, 16  ;;  %v3421_v39 = vrot.slane %v3419_v23, 1 }
 0x19d   : > { %v3413_v62 = vrot.slane %v12178_v5, 2  ;;  %v3416_v35 = vrot.slane %v12179_v21, 1  ;;  %v12181_v50 = vshll.u32 %v9851_v15, 16  ;;  %v3406_v29 = vsel %vm1482_vm4, %v3400_v53, %v3405_v36 }
 0x19e   : > { %v3417_v58 = vrot.slane %v12180_v42, 2  ;;  %v3428_v25 = vshrl.u32 %v9883_v20, 16  ;;  %v3409_v6 = vor.u32 %v3408_v4, %v3407_v17  ;;  %v3437_v3 = vshrl.u32 %v9887_v57, 16 }
 0x19f   : > { %v3422_v52 = vrot.slane %v12181_v50, 2  ;;  %v3414_v1 = vor.u32 %v3413_v62, %v3412_v55  ;;  %v12182_v5 = vshrl.u32 %v9865_v56, 16  ;;  %v12183_v21 = vshll.u32 %v9865_v56, 16 }
 0x1a0   : > { %7841 = vmatmul.mubr.msk.bf16.gmra.mrb[48].mxu1 %vm728_vm2, %v3397_v18  ;;  %v3418_v0 = vor.u32 %v3417_v58, %v3416_v35  ;;  %v3430_v50 = vrot.slane %v3428_v25, 1  ;;  %v12184_v53 = vshll.u32 %v9883_v20, 16  ;;  %v12185_v17 = vshrl.u32 %v9868_v47, 16 }
 0x1a1   : > { %7844 = vmatprep.mubr.msk.bf16.mxu1 %vm728_vm2, %v3406_v29  ;;  %v3423_v33 = vor.u32 %v3422_v52, %v3421_v39  ;;  %v3425_v23 = vrot.slane %v12182_v5, 1  ;;  %v3426_v42 = vrot.slane %v12183_v21, 2  ;;  %v3415_v18 = vsel %vm1482_vm4, %v3409_v6, %v3414_v1 }
 0x1a2   : > { %v3431_v36 = vrot.slane %v12184_v53, 2  ;;  %v3434_v4 = vrot.slane %v12185_v17, 1  ;;  %v12186_v55 = vshll.u32 %v9868_v47, 16  ;;  %v3439_v35 = vrot.slane %v3437_v3, 1 }
 0x1a3   : > { %v3424_v29 = vsel %vm1482_vm4, %v3418_v0, %v3423_v33  ;;  %v12187_v58 = vshll.u32 %v9887_v57, 16  ;;  %v3427_v52 = vor.u32 %v3426_v42, %v3425_v23  ;;  %v3446_v6 = vshrl.u32 %v9914_v10, 16 }
 0x1a4   : > { %v3435_v62 = vrot.slane %v12186_v55, 2  ;;  %v3432_v25 = vor.u32 %v3431_v36, %v3430_v50  ;;  %v12188_v5 = vshrl.u32 %v9895_v59, 16  ;;  %v12189_v3 = vshll.u32 %v9895_v59, 16 }
 0x1a5   : > { %v3440_v39 = vrot.slane %v12187_v58, 2  ;;  %v3448_v17 = vrot.slane %v3446_v6, 1  ;;  %v12190_v55 = vshll.u32 %v9914_v10, 16  ;;  %v3710_v36 = vrot.slane %v9573_v30, 2 }
 0x1a6   : > { %v3436_v1 = vor.u32 %v3435_v62, %v3434_v4  ;;  %v3433_v33 = vsel %vm1482_vm4, %v3427_v52, %v3432_v25  ;;  %v3443_v21 = vrot.slane %v12188_v5, 1  ;;  %v3444_v53 = vrot.slane %v12189_v3, 2 }
 0x1a7   : > { %v3441_v0 = vor.u32 %v3440_v39, %v3439_v35  ;;  %v3713_v35 = vrot.slane %v9602_v9, 2  ;;  %v3714_v58 = vrot.slane %v9617_v32, 2  ;;  %v3716_v39 = vrot.slane %v9609_v44, 2 }
 0x1a8   : > { %7845 = vmatmul.mubr.msk.bf16.gmra.mrb[52].mxu1 %vm728_vm2, %v3415_v18  ;;  %v3449_v18 = vrot.slane %v12190_v55, 2  ;;  %v3445_v42 = vor.u32 %v3444_v53, %v3443_v21  ;;  %v3717_v52 = vrot.slane %v9630_v7, 2  ;;  %v3719_v25 = vrot.slane %v9647_v24, 2 }
 0x1a9   : > { %7848 = vmatprep.mubr.msk.bf16.mxu1 %vm728_vm2, %v3424_v29  ;;  %v3442_v23 = vsel %vm1482_vm4, %v3436_v1, %v3441_v0  ;;  %v3711_v29 = vrot.slane %v9590_v60, 2  ;;  %v3715_v30 = vsel %vm1885_vm5, %v3713_v35, %v3714_v58  ;;  %v3720_v6 = vrot.slane %v9657_v2, 2  ;;  %v12194_v58 = vld [vmem:[#allocation24_spill] sm:$0xff] }
 0x1aa   : > { %v3450_v50 = vor.u32 %v3449_v18, %v3448_v17  ;;  %v3718_v60 = vsel %vm1885_vm5, %v3716_v39, %v3717_v52  ;;  %v3722_v9 = vrot.slane %v9651_v37, 2  ;;  %v3723_v32 = vrot.slane %v9671_v38, 2  ;;  %v8620_v52 = vld [vmem:[%s11811_s5 + $0x18] sm:$0xff]  }
 0x1ab   : > { %v3712_v62 = vsel %vm1885_vm5, %v3710_v36, %v3711_v29  ;;  %v3721_v44 = vsel %vm1885_vm5, %v3719_v25, %v3720_v6  ;;  %v3725_v1 = vrot.slane %v12120_v46, 2  ;;  %v3726_v0 = vrot.slane %v9707_v14, 2  ;;  %v12193_v29 = vld [vmem:[#allocation23_spill] sm:$0xff]  ;;  %v12195_v25 = vld [vmem:[#allocation25_spill] sm:$0xff] }
 0x1ac   : > { %v3451_v4 = vsel %vm1482_vm4, %v3445_v42, %v3450_v50  ;;  %v3724_v7 = vsel %vm1885_vm5, %v3722_v9, %v3723_v32  ;;  %v3729_v2 = vrot.slane %v12122_v11, 2  ;;  %v3731_v5 = vrot.slane %v9741_v12, 2 }
 0x1ad   : > { %v3727_v37 = vsel %vm1885_vm5, %v3725_v1, %v3726_v0  ;;  %v3732_v21 = vrot.slane %v9753_v22, 2  ;;  %v3734_v46 = vrot.slane %v9745_v63, 2  ;;  %v3735_v14 = vrot.slane %v9765_v28, 2 }
 0x1ae   : > { %v3737_v53 = vrot.slane %v9781_v31, 2  ;;  %v3738_v17 = vrot.slane %v9797_v45, 2  ;;  %v3740_v12 = vrot.slane %v9787_v13, 2  ;;  %v3741_v22 = vrot.slane %v9805_v49, 2 }
 0x1af   : > { %v3733_v3 = vsel %vm1885_vm5, %v3731_v5, %v3732_v21  ;;  %v3736_v11 = vsel %vm1885_vm5, %v3734_v46, %v3735_v14  ;;  %v3743_v55 = vrot.slane %v9826_v40, 2  ;;  %v3744_v18 = vrot.slane %v9846_v8, 2  ;;  %v12198_v14 = vld [vmem:[#allocation28_spill] sm:$0xff] }
 0x1b0   : > { %7849 = vmatmul.mubr.msk.bf16.gmra.mrb[56].mxu1 %vm728_vm2, %v3433_v33  ;;  %v12191_v33 = vld [vmem:[#allocation12_spill] sm:$0xff]  ;;  %v3739_v63 = vsel %vm1885_vm5, %v3737_v53, %v3738_v17  ;;  %v3742_v28 = vsel %vm1885_vm5, %v3740_v12, %v3741_v22  ;;  %v3746_v31 = vrot.slane %v9829_v41, 2  ;;  %v3747_v45 = vrot.slane %v9851_v15, 2  ;;  %v12199_v17 = vld [vmem:[#allocation29_spill] sm:$0xff] }
 0x1b1   : > { %7852 = vmatprep.mubr.msk.bf16.mxu1 %vm728_vm2, %v3442_v23  ;;  %v3728_v24 = vrot.slane %v12191_v33, 2  ;;  %v3745_v13 = vsel %vm1885_vm5, %v3743_v55, %v3744_v18  ;;  %v3749_v23 = vrot.slane %v9865_v56, 2  ;;  %v3750_v42 = vrot.slane %v9883_v20, 2  ;;  %v10454_v20 = vld [vmem:[%s11809_s3] ss:$0 sm:$0xff] }
 0x1b2   : > { %v3748_v49 = vsel %vm1885_vm5, %v3746_v31, %v3747_v45  ;;  %v3752_v40 = vrot.slane %v9868_v47, 2  ;;  %v3753_v8 = vrot.slane %v9887_v57, 2  ;;  %v3755_v50 = vrot.slane %v9895_v59, 2  ;;  %v8619_v47 = vld [vmem:[%s11811_s5 + $0x10] sm:$0xff]   ;;  %v12192_v57 = vld [vmem:[#allocation22_spill] sm:$0xff] }
 0x1b3   : > { %v3730_v38 = vsel %vm1885_vm5, %v3728_v24, %v3729_v2  ;;  %v3751_v41 = vsel %vm1885_vm5, %v3749_v23, %v3750_v42  ;;  %v3756_v36 = vrot.slane %v9914_v10, 2  ;;  %7892 = vmatprep.subr.bf16.mxu0 %v8619_v47  ;;  %v10458_v59 = vadd.f32 %v12192_v57, %v10454_v20  ;;  %v12196_v24 = vld [vmem:[#allocation26_spill] sm:$0xff]  ;;  %v12201_v42 = vld [vmem:[#allocation31_spill] sm:$0xff] }
 0x1b4   : > { %v3754_v15 = vsel %vm1885_vm5, %v3752_v40, %v3753_v8  ;;  %7893 = vmatpush3.bf16.msra.mxu0 %v8619_v47  ;;  %v10467_v39 = vadd.f32 %v12194_v58, %v10454_v20  ;;  %v10475_v6 = vadd.f32 %v12195_v25, %v10454_v20  ;;  %v10481_v2 = vadd.f32 %v12196_v24, %v10454_v20  ;;  %v12204_v58 = vld [vmem:[#allocation34_spill] sm:$0xff] }
 0x1b5   : > { %v3757_v56 = vsel %vm1885_vm5, %v3755_v50, %v3756_v36  ;;  %7894 = vmatprep.subr.bf16.mxu0 %v8620_v52  ;;  %v10495_v12 = vadd.f32 %v12199_v17, %v10454_v20  ;;  %v10505_v40 = vadd.f32 %v12201_v42, %v10454_v20  ;;  %v12202_v50 = vld [vmem:[#allocation32_spill] sm:$0xff] }
 0x1b6   : > { %v10509_v36 = vadd.f32 %v12202_v50, %v10454_v20 }
 0x1b8   : > { %7853 = vmatmul.mubr.msk.bf16.gmra.mrb[60].mxu1 %vm728_vm2, %v3451_v4  ;;  %v10462_v4 = vadd.f32 %v12193_v29, %v10454_v20  ;;  %7895 = vmatpush3.bf16.msra.mxu0 %v8620_v52  ;;  %v10520_v52 = vadd.f32 %v12204_v58, %v10454_v20  ;;  %v12215_v58 = vld [vmem:[#allocation45_spill] sm:$0xff] }
 0x1b9   : > { %7860 = vmatprep.mubr.msk.bf16.mxu1 %vm728_vm2, %v3712_v62 }
 0x1c0   : > { %7861 = vmatmul.mubr.msk.bf16.vlgmr.msra.gmra.mrb[32].mxu1 %vm728_vm2, %v3715_v30 }
 0x1c1   : > { %7864 = vmatprep.mubr.msk.bf16.mxu1 %vm728_vm2, %v3718_v60 }
 0x1c8   : > { %7865 = vmatmul.mubr.msk.bf16.gmra.mrb[36].mxu1 %vm728_vm2, %v3721_v44 }
 0x1c9   : > { %7868 = vmatprep.mubr.msk.bf16.mxu1 %vm728_vm2, %v3724_v7 }
 0x1d0   : > { %7869 = vmatmul.mubr.msk.bf16.gmra.mrb[40].mxu1 %vm728_vm2, %v3727_v37 }
 0x1d1   : > { %7872 = vmatprep.mubr.msk.bf16.mxu1 %vm728_vm2, %v3730_v38  ;;  %v12197_v38 = vld [vmem:[#allocation27_spill] sm:$0xff] }
 0x1d2   : > { %v10485_v5 = vadd.f32 %v12197_v38, %v10454_v20 }
 0x1d8   : > { %7873 = vmatmul.mubr.msk.bf16.gmra.mrb[44].mxu1 %vm728_vm2, %v3733_v3  ;;  %v10490_v3 = vadd.f32 %v12198_v14, %v10454_v20 }
 0x1d9   : > { %7876 = vmatprep.mubr.msk.bf16.mxu1 %vm728_vm2, %v3736_v11 }
 0x1e0   : > { %7877 = vmatmul.mubr.msk.bf16.gmra.mrb[48].mxu1 %vm728_vm2, %v3739_v63 }
 0x1e1   : > { %7880 = vmatprep.mubr.msk.bf16.mxu1 %vm728_vm2, %v3742_v28 }
 0x1e8   : > { %7881 = vmatmul.mubr.msk.bf16.gmra.mrb[52].mxu1 %vm728_vm2, %v3745_v13 }
 0x1e9   : > { %7884 = vmatprep.mubr.msk.bf16.mxu1 %vm728_vm2, %v3748_v49  ;;  %v12200_v49 = vld [vmem:[#allocation30_spill] sm:$0xff] }
 0x1ea   : > { %v10501_v23 = vadd.f32 %v12200_v49, %v10454_v20 }
 0x1ec   : > { %v10515_v57 = vpop.permute.xlu0 %8488 }
 0x1ee   : > { %v10553_v42 = vpop.permute.xlu1 %8498 }
 0x1f0   : > { %7885 = vmatmul.mubr.msk.bf16.gmra.mrb[56].mxu1 %vm728_vm2, %v3751_v41 }
 0x1f1   : > { %7888 = vmatprep.mubr.msk.bf16.mxu1 %vm728_vm2, %v3754_v15 }
 0x1f8   : > { %7889 = vmatmul.mubr.msk.bf16.gmra.mrb[60].mxu1 %vm728_vm2, %v3757_v56  ;;  %v12203_v56 = vld [vmem:[#allocation33_spill] sm:$0xff] }
 0x1f9   : > { %v10513_v47 = vadd.f32 %v12203_v56, %v10454_v20  ;;  %v12214_v56 = vld [vmem:[#allocation44_spill] sm:$0xff] }
 0x293   : > { %v7862_v10 = vpop.f32.mrb[32].mxu1 }
 0x294   : > { %v4018_v62 = vadd.f32 %v7862_v10, %v10458_v59  ;;  %v3857_v35 = vpop.f32.mrb[33].mxu1 }
 0x295   : > { %v4016_v30 = vadd.f32 %v3857_v35, %v10462_v4  ;;  %v7863_v60 = vpop.f32.mrb[34].mxu1 }
 0x296   : > { %v7057_v9 = vmul.f32 -1.442695, %v4018_v62  ;;  %v4019_v32 = vadd.f32 %v7863_v60, %v10467_v39  ;;  %v3860_v44 = vpop.f32.mrb[35].mxu1 }
 0x297   : > { %v7055_v7 = vmul.f32 -1.442695, %v4016_v30  ;;  %v4017_v1 = vadd.f32 %v3860_v44, %v10475_v6  ;;  %v12205_v30 = vld [vmem:[#allocation35_spill] sm:$0xff] }
 0x298   : > { %8645 = vpow2.f32 %v7057_v9  ;;  %v7058_v0 = vmul.f32 -1.442695, %v4019_v32  ;;  %v10524_v60 = vadd.f32 %v12205_v30, %v10454_v20  ;;  %v10569_v30 = vadd.f32 %v12215_v58, %v10454_v20 }
 0x299   : > { %8647 = vpow2.f32 %v7055_v7  ;;  %v7056_v33 = vmul.f32 -1.442695, %v4017_v1  ;;  %v12206_v7 = vld [vmem:[#allocation36_spill] sm:$0xff]  ;;  %v8501_v58 = vunpack.i.h.bf16 %v10553_v42 }
 0x29a   : > { %8649 = vpow2.f32 %v7058_v0  ;;  %v10529_v1 = vadd.f32 %v12206_v7, %v10454_v20 }
 0x29b   : > { %8651 = vpow2.f32 %v7056_v33  ;;  %v7866_v37 = vpop.f32.mrb[36].mxu1 }
 0x29c   : > { %v4022_v21 = vadd.f32 %v7866_v37, %v10481_v2  ;;  %v3873_v46 = vpop.f32.mrb[37].mxu1 }
 0x29d   : > { %v4020_v11 = vadd.f32 %v3873_v46, %v10485_v5  ;;  %v7867_v53 = vpop.f32.mrb[38].mxu1  ;;  %v12207_v46 = vld [vmem:[#allocation37_spill] sm:$0xff] }
 0x29e   : > { %v7061_v22 = vmul.f32 -1.442695, %v4022_v21  ;;  %v4023_v63 = vadd.f32 %v7867_v53, %v10490_v3  ;;  %v3876_v28 = vpop.f32.mrb[39].mxu1  ;;  %v10535_v14 = vadd.f32 %v12207_v46, %v10454_v20  ;;  %v12208_v53 = vld [vmem:[#allocation38_spill] sm:$0xff] }
 0x29f   : > { %v7059_v55 = vmul.f32 -1.442695, %v4020_v11  ;;  %v4021_v18 = vadd.f32 %v3876_v28, %v10495_v12  ;;  %v10539_v17 = vadd.f32 %v12208_v53, %v10454_v20 }
 0x2a0   : > { %8653 = vpow2.f32 %v7061_v22  ;;  %v7062_v31 = vmul.f32 -1.442695, %v4023_v63  ;;  %v12209_v22 = vld [vmem:[#allocation39_spill] sm:$0xff] }
 0x2a1   : > { %8655 = vpow2.f32 %v7059_v55  ;;  %v7060_v45 = vmul.f32 -1.442695, %v4021_v18  ;;  %v10543_v63 = vadd.f32 %v12209_v22, %v10454_v20  ;;  %v8494_v55 = vpop.permute.xlu0 %8493  ;;  %v12210_v18 = vld [vmem:[#allocation40_spill] sm:$0xff] }
 0x2a2   : > { %v8646_v13 = vpop.eup %8645  ;;  %8657 = vpow2.f32 %v7062_v31  ;;  %v10547_v31 = vadd.f32 %v12210_v18, %v10454_v20 }
 0x2a3   : > { %v8648_v8 = vpop.eup %8647  ;;  %v4146_v41 = vadd.f32 1.0, %v8646_v13  ;;  %8659 = vpow2.f32 %v7060_v45  ;;  %v7870_v15 = vpop.f32.mrb[40].mxu1  ;;  %v12211_v45 = vld [vmem:[#allocation41_spill] sm:$0xff] }
 0x2a4   : > { %v8650_v10 = vpop.eup %8649  ;;  %v4144_v29 = vadd.f32 1.0, %v8648_v8  ;;  %v4026_v62 = vadd.f32 %v7870_v15, %v10501_v23  ;;  %v3889_v35 = vpop.f32.mrb[41].mxu1  ;;  %v10551_v13 = vadd.f32 %v12211_v45, %v10454_v20  ;;  %v12212_v8 = vld [vmem:[#allocation42_spill] sm:$0xff]  ;;  %v12213_v15 = vld [vmem:[#allocation43_spill] sm:$0xff] }
 0x2a5   : > { %v8652_v25 = vpop.eup %8651  ;;  %8661 = vrcp.f32 %v4146_v41  ;;  %v4147_v9 = vadd.f32 1.0, %v8650_v10  ;;  %v4024_v32 = vadd.f32 %v3889_v35, %v10505_v40  ;;  %v7871_v44 = vpop.f32.mrb[42].mxu1  ;;  %v10557_v41 = vadd.f32 %v12212_v8, %v10454_v20 }
 0x2a6   : > { %8663 = vrcp.f32 %v4144_v29  ;;  %v4145_v0 = vadd.f32 1.0, %v8652_v25  ;;  %v7065_v33 = vmul.f32 -1.442695, %v4026_v62  ;;  %v4027_v24 = vadd.f32 %v7871_v44, %v10509_v36  ;;  %v3892_v37 = vpop.f32.mrb[43].mxu1  ;;  %v10608_v19 = vpop.permute.xlu0 %8508 }
 0x2a7   : > { %8665 = vrcp.f32 %v4147_v9  ;;  %v7063_v38 = vmul.f32 -1.442695, %v4024_v32  ;;  %v4025_v21 = vadd.f32 %v3892_v37, %v10513_v47  ;;  %v10561_v50 = vadd.f32 %v12213_v15, %v10454_v20 }
 0x2a8   : > { %8667 = vrcp.f32 %v4145_v0  ;;  %v7066_v11 = vmul.f32 -1.442695, %v4027_v24  ;;  %v10565_v10 = vadd.f32 %v12214_v56, %v10454_v20  ;;  %v10573_v25 = vadd.f32 %v10212_v61, %v10454_v20 }
 0x2a9   : > { %8669 = vpow2.f32 %v7065_v33  ;;  %v7064_v28 = vmul.f32 -1.442695, %v4025_v21  ;;  %v8495_v0 = vunpack.i.l.bf16 %v8494_v55  ;;  %v10586_v15 = vadd.f32 %v10221_v27, %v10454_v20 }
 0x2aa   : > { %v8654_v49 = vpop.eup %8653  ;;  %8671 = vpow2.f32 %v7063_v38  ;;  %v8496_v38 = vunpack.i.h.bf16 %v8494_v55  ;;  %v8504_v55 = vpop.permute.xlu1 %8503  ;;  %v10590_v56 = vadd.f32 %v10224_v54, %v10454_v20 }
 0x2ab   : > { %v8656_v29 = vpop.eup %8655  ;;  %v4150_v62 = vadd.f32 1.0, %v8654_v49  ;;  %8673 = vpow2.f32 %v7066_v11  ;;  %v7874_v35 = vpop.f32.mrb[44].mxu1 }
 0x2ac   : > { %v8658_v9 = vpop.eup %8657  ;;  %v4148_v32 = vadd.f32 1.0, %v8656_v29  ;;  %8675 = vpow2.f32 %v7064_v28  ;;  %v4030_v44 = vadd.f32 %v7874_v35, %v10520_v52  ;;  %v3905_v7 = vpop.f32.mrb[45].mxu1  ;;  %v8490_v28 = vunpack.i.l.bf16 %v10515_v57 }
 0x2ad   : > { %v8660_v33 = vpop.eup %8659  ;;  %8677 = vrcp.f32 %v4150_v62  ;;  %v4151_v24 = vadd.f32 1.0, %v8658_v9  ;;  %v4028_v37 = vadd.f32 %v3905_v7, %v10524_v60  ;;  %v7875_v21 = vpop.f32.mrb[46].mxu1  ;;  %v8491_v62 = vunpack.i.h.bf16 %v10515_v57 }
 0x2ae   : > { %8679 = vrcp.f32 %v4148_v32  ;;  %v4149_v46 = vadd.f32 1.0, %v8660_v33  ;;  %v7069_v11 = vmul.f32 -1.442695, %v4030_v44  ;;  %v4031_v61 = vadd.f32 %v7875_v21, %v10529_v1  ;;  %v3908_v53 = vpop.f32.mrb[47].mxu1 }
 0x2af   : > { %v10578_v22 = vpop.eup %8661  ;;  %8681 = vrcp.f32 %v4151_v24  ;;  %v7067_v18 = vmul.f32 -1.442695, %v4028_v37  ;;  %v4029_v45 = vadd.f32 %v3908_v53, %v10535_v14  ;;  %v8500_v44 = vunpack.i.l.bf16 %v10553_v42 }
 0x2b0   : > { %12216 = vst [vmem:[#allocation21_spill] sm:$0xff] %v10578_v22  ;;  %v10582_v49 = vpop.eup %8663  ;;  %8683 = vrcp.f32 %v4149_v46  ;;  %v7070_v8 = vmul.f32 -1.442695, %v4031_v61  ;;  %v4402_v32 = vmul.f32 %v10578_v22, %v8495_v0  ;;  %v8505_v24 = vunpack.i.l.bf16 %v8504_v55 }
 0x2b1   : > { %12217 = vst [vmem:[#allocation12_spill] sm:$0xff] %v10582_v49  ;;  %v10592_v29 = vpop.eup %8665  ;;  %8685 = vpow2.f32 %v7069_v11  ;;  %v7068_v35 = vmul.f32 -1.442695, %v4029_v45  ;;  %v4400_v54 = vmul.f32 %v10582_v49, %v8490_v28  ;;  %v8506_v42 = vunpack.i.h.bf16 %v8504_v55  ;;  %v10605_v28 = vpop.permute.xlu1 %8513 }
 0x2b2   : > { %12218 = vst [vmem:[#allocation22_spill] sm:$0xff] %v10592_v29  ;;  %v10596_v9 = vpop.eup %8667  ;;  %8687 = vpow2.f32 %v7067_v18  ;;  %v4403_v27 = vmul.f32 %v10592_v29, %v8496_v38 }
 0x2b3   : > { %12219 = vst [vmem:[#allocation23_spill] sm:$0xff] %v10596_v9  ;;  %v8670_v7 = vpop.eup %8669  ;;  %v4401_v33 = vmul.f32 %v10596_v9, %v8491_v62  ;;  %8689 = vpow2.f32 %v7070_v8  ;;  %v7878_v57 = vpop.f32.mrb[48].mxu1 }
 0x2b4   : > { %v8672_v37 = vpop.eup %8671  ;;  %v4154_v21 = vadd.f32 1.0, %v8670_v7  ;;  %8691 = vpow2.f32 %v7068_v35  ;;  %v4034_v46 = vadd.f32 %v7878_v57, %v10539_v17  ;;  %v3921_v11 = vpop.f32.mrb[49].mxu1  ;;  %v4433_v61 = vpack.c.bf16 %v4403_v27, %v4402_v32 }
 0x2b5   : > { %v8674_v0 = vpop.eup %8673  ;;  %v4152_v53 = vadd.f32 1.0, %v8672_v37  ;;  %v4032_v38 = vadd.f32 %v3921_v11, %v10543_v63  ;;  %v7879_v18 = vpop.f32.mrb[50].mxu1  ;;  %v4432_v45 = vpack.c.bf16 %v4401_v33, %v4400_v54 }
 0x2b6   : > { %v8676_v62 = vpop.eup %8675  ;;  %8693 = vrcp.f32 %v4154_v21  ;;  %v4155_v8 = vadd.f32 1.0, %v8674_v0  ;;  %v7073_v16 = vmul.f32 -1.442695, %v4034_v46  ;;  %v4035_v7 = vadd.f32 %v7879_v18, %v10547_v31  ;;  %v3924_v35 = vpop.f32.mrb[51].mxu1 }
 0x2b7   : > { %v10610_v57 = vpop.eup %8677  ;;  %8695 = vrcp.f32 %v4152_v53  ;;  %v4153_v32 = vadd.f32 1.0, %v8676_v62  ;;  %v7071_v27 = vmul.f32 -1.442695, %v4032_v38  ;;  %v4033_v55 = vadd.f32 %v3924_v35, %v10551_v13 }
 0x2b8   : > { %12220 = vst [vmem:[#allocation24_spill] sm:$0xff] %v10610_v57  ;;  %v10613_v37 = vpop.eup %8679  ;;  %8697 = vrcp.f32 %v4155_v8  ;;  %v7074_v54 = vmul.f32 -1.442695, %v4035_v7  ;;  %v4465_v33 = vrot.slane %v4433_v61, 7  ;;  %v4464_v0 = vrot.slane %v4432_v45, 7 }
 0x2b9   : > { %12221 = vst [vmem:[#allocation25_spill] sm:$0xff] %v10613_v37  ;;  %v10616_v46 = vpop.eup %8681  ;;  %8699 = vrcp.f32 %v4153_v32  ;;  %v7072_v11 = vmul.f32 -1.442695, %v4033_v55  ;;  %v4406_v53 = vmul.f32 %v10610_v57, %v8505_v24  ;;  %v8516_v61 = vunpack.i.h.bf16 %v10605_v28 }
 0x2ba   : > { %12222 = vst [vmem:[#allocation26_spill] sm:$0xff] %v10616_v46  ;;  %v10619_v43 = vpop.eup %8683  ;;  %8701 = vpow2.f32 %v7073_v16  ;;  %v4407_v38 = vmul.f32 %v10616_v46, %v8506_v42  ;;  %4482 = vrot.lane.b32.xlu1 %v4465_v33, %s8862_s15  ;;  %v4404_v8 = vmul.f32 %v10613_v37, %v8500_v44  ;;  %4480 = vrot.lane.b32.xlu0 %v4464_v0, %s8862_s15  ;;  %v8511_v16 = vunpack.i.h.bf16 %v10608_v19  ;;  %v10633_v33 = vld [vmem:[%s11811_s5] sm:$0xff]   ;;  %v8519_v46 = vpop.permute.xlu0 %8518 }
 0x2bb   : > { %12223 = vst [vmem:[#allocation27_spill] sm:$0xff] %v10619_v43  ;;  %v8686_v62 = vpop.eup %8685  ;;  %v4405_v7 = vmul.f32 %v10619_v43, %v8501_v58  ;;  %8703 = vpow2.f32 %v7071_v27  ;;  %v7882_v45 = vpop.f32.mrb[52].mxu1  ;;  %7928 = vmatprep.subr.bf16.mxu0 %v10633_v33 }
 0x2bc   : > { %v8688_v35 = vpop.eup %8687  ;;  %v4158_v24 = vadd.f32 1.0, %v8686_v62  ;;  %8705 = vpow2.f32 %v7074_v54  ;;  %v4038_v42 = vadd.f32 %v7882_v45, %v10557_v41  ;;  %v3937_v32 = vpop.f32.mrb[53].mxu1  ;;  %v4435_v55 = vpack.c.bf16 %v4407_v38, %v4406_v53 }
 0x2bd   : > { %v8690_v44 = vpop.eup %8689  ;;  %v4156_v58 = vadd.f32 1.0, %v8688_v35  ;;  %8707 = vpow2.f32 %v7072_v11  ;;  %v4036_v27 = vadd.f32 %v3937_v32, %v10561_v50  ;;  %v7883_v0 = vpop.f32.mrb[54].mxu1  ;;  %v4434_v18 = vpack.c.bf16 %v4405_v7, %v4404_v8 }
 0x2be   : > { %v8692_v21 = vpop.eup %8691  ;;  %8709 = vrcp.f32 %v4158_v24  ;;  %v4159_v62 = vadd.f32 1.0, %v8690_v44  ;;  %v7077_v54 = vmul.f32 -1.442695, %v4038_v42  ;;  %v4039_v45 = vadd.f32 %v7883_v0, %v10565_v10  ;;  %v3940_v26 = vpop.f32.mrb[55].mxu1  ;;  %v12226_v44 = vld [vmem:[#allocation11_spill] sm:$0xff] }
 0x2bf   : > { %8711 = vrcp.f32 %v4156_v58  ;;  %v4157_v53 = vadd.f32 1.0, %v8692_v21  ;;  %v7075_v38 = vmul.f32 -1.442695, %v4036_v27  ;;  %v4037_v43 = vadd.f32 %v3940_v26, %v10569_v30  ;;  %v10639_v35 = vpop.permute.xlu1 %8523  ;;  %v12227_v21 = vld [vmem:[#allocation13_spill] sm:$0xff] }
 0x2c0   : > { %v10641_v11 = vpop.eup %8693  ;;  %8713 = vrcp.f32 %v4159_v62  ;;  %v7078_v8 = vmul.f32 -1.442695, %v4039_v45  ;;  %v4467_v7 = vrot.slane %v4435_v55, 7  ;;  %v4466_v24 = vrot.slane %v4434_v18, 7 }
 0x2c1   : > { %12224 = vst [vmem:[#allocation28_spill] sm:$0xff] %v10641_v11  ;;  %v10643_v32 = vpop.eup %8695  ;;  %8715 = vrcp.f32 %v4157_v53  ;;  %v7076_v42 = vmul.f32 -1.442695, %v4037_v43  ;;  %v10647_v0 = vadd.f32 %v12226_v44, %v10454_v20  ;;  %v10651_v58 = vadd.f32 %v12227_v21, %v10454_v20 }
 0x2c2   : > { %12225 = vst [vmem:[#allocation29_spill] sm:$0xff] %v10643_v32  ;;  %v10653_v26 = vpop.eup %8697  ;;  %8717 = vpow2.f32 %v7077_v54  ;;  %4486 = vrot.lane.b32.xlu1 %v4467_v7, %s8862_s15  ;;  %4484 = vrot.lane.b32.xlu0 %v4466_v24, %s8862_s15  ;;  %v8525_v18 = vunpack.i.l.bf16 %v10639_v35  ;;  %v10660_v43 = vadd.f32 %v10272_v51, %v10454_v20  ;;  %v10664_v55 = vadd.f32 %v10278_v34, %v10454_v20 }
 0x2c3   : > { %12228 = vst [vmem:[#allocation30_spill] sm:$0xff] %v10653_v26  ;;  %v10666_v27 = vpop.eup %8699  ;;  %8719 = vpow2.f32 %v7075_v38  ;;  %v12230_v62 = vunpack.i.l.bf16 %v10605_v28  ;;  %v4411_v45 = vmul.f32 %v10653_v26, %v8516_v61  ;;  %v7886_v53 = vpop.f32.mrb[56].mxu1  ;;  %v8526_v7 = vunpack.i.h.bf16 %v10639_v35 }
 0x2c4   : > { %12229 = vst [vmem:[#allocation31_spill] sm:$0xff] %v10666_v27  ;;  %v8702_v24 = vpop.eup %8701  ;;  %8721 = vpow2.f32 %v7078_v8  ;;  %v12231_v51 = vunpack.i.l.bf16 %v10608_v19  ;;  %v4409_v34 = vmul.f32 %v10666_v27, %v8511_v16  ;;  %v4042_v21 = vadd.f32 %v7886_v53, %v10573_v25  ;;  %v3953_v38 = vpop.f32.mrb[57].mxu1 }
 0x2c5   : > { %v4410_v54 = vmul.f32 %v10641_v11, %v12230_v62  ;;  %v8704_v28 = vpop.eup %8703  ;;  %v4162_v37 = vadd.f32 1.0, %v8702_v24  ;;  %8723 = vpow2.f32 %v7076_v42  ;;  %v4040_v61 = vadd.f32 %v3953_v38, %v10586_v15  ;;  %v7887_v62 = vpop.f32.mrb[58].mxu1 }
 0x2c6   : > { %v4408_v44 = vmul.f32 %v10643_v32, %v12231_v51  ;;  %v8706_v35 = vpop.eup %8705  ;;  %v4160_v11 = vadd.f32 1.0, %v8704_v28  ;;  %v4043_v8 = vadd.f32 %v7887_v62, %v10590_v56  ;;  %v8521_v19 = vunpack.i.h.bf16 %v8519_v46  ;;  %v3956_v57 = vpop.f32.mrb[59].mxu1 }
 0x2c7   : > { %v4437_v26 = vpack.c.bf16 %v4411_v45, %v4410_v54  ;;  %v8708_v32 = vpop.eup %8707  ;;  %8725 = vrcp.f32 %v4162_v37  ;;  %v4163_v16 = vadd.f32 1.0, %v8706_v35  ;;  %v7081_v53 = vmul.f32 -1.442695, %v4042_v21  ;;  %v10681_v9 = vpop.permute.xlu1 %8533 }
 0x2c8   : > { %v4436_v51 = vpack.c.bf16 %v4409_v34, %v4408_v44  ;;  %v4041_v27 = vadd.f32 %v3956_v57, %v10647_v0  ;;  %v10683_v42 = vpop.eup %8709  ;;  %8727 = vrcp.f32 %v4160_v11  ;;  %v4161_v24 = vadd.f32 1.0, %v8708_v32  ;;  %v10685_v38 = vpop.permute.xlu0 %8528 }
 0x2c9   : > { %12232 = vst [vmem:[#allocation32_spill] sm:$0xff] %v10683_v42  ;;  %v7079_v54 = vmul.f32 -1.442695, %v4040_v61  ;;  %v4469_v45 = vrot.slane %v4437_v26, 7  ;;  %v10687_v28 = vpop.eup %8711  ;;  %8729 = vrcp.f32 %v4163_v16  ;;  %v7082_v44 = vmul.f32 -1.442695, %v4043_v8 }
 0x2ca   : > { %12233 = vst [vmem:[#allocation33_spill] sm:$0xff] %v10687_v28  ;;  %v4468_v34 = vrot.slane %v4436_v51, 7  ;;  %v10691_v37 = vadd.f32 %v10287_v48, %v10454_v20  ;;  %v10693_v57 = vpop.eup %8713  ;;  %8731 = vrcp.f32 %v4161_v24  ;;  %v8520_v21 = vunpack.i.l.bf16 %v8519_v46 }
 0x2cb   : > { %12234 = vst [vmem:[#allocation34_spill] sm:$0xff] %v10693_v57  ;;  %v7080_v62 = vmul.f32 -1.442695, %v4041_v27  ;;  %4490 = vrot.lane.b32.xlu1 %v4469_v45, %s8862_s15  ;;  %v8535_v11 = vunpack.i.l.bf16 %v10681_v9  ;;  %v10697_v32 = vpop.eup %8715  ;;  %8733 = vpow2.f32 %v7081_v53  ;;  %v4414_v26 = vmul.f32 %v10683_v42, %v8525_v18  ;;  %v7890_v48 = vpop.f32.mrb[60].mxu1 }
 0x2cc   : > { %12235 = vst [vmem:[#allocation35_spill] sm:$0xff] %v10697_v32  ;;  %v4415_v61 = vmul.f32 %v10693_v57, %v8526_v7  ;;  %4488 = vrot.lane.b32.xlu0 %v4468_v34, %s8862_s15  ;;  %v8530_v20 = vunpack.i.l.bf16 %v10685_v38  ;;  %v8718_v35 = vpop.eup %8717  ;;  %8735 = vpow2.f32 %v7079_v54  ;;  %v4413_v46 = vmul.f32 %v10697_v32, %v8521_v19  ;;  %v3969_v8 = vpop.f32.mrb[61].mxu1 }
 0x2cd   : > { %v4046_v27 = vadd.f32 %v7890_v48, %v10651_v58  ;;  %v8536_v51 = vunpack.i.h.bf16 %v10681_v9  ;;  %v8720_v16 = vpop.eup %8719  ;;  %v4166_v53 = vadd.f32 1.0, %v8718_v35  ;;  %8737 = vpow2.f32 %v7082_v44  ;;  %v7891_v7 = vpop.f32.mrb[62].mxu1 }
 0x2ce   : > { %v4044_v18 = vadd.f32 %v3969_v8, %v10660_v43  ;;  %v4439_v24 = vpack.c.bf16 %v4415_v61, %v4414_v26  ;;  %v8722_v45 = vpop.eup %8721  ;;  %v4164_v34 = vadd.f32 1.0, %v8720_v16  ;;  %v4412_v57 = vmul.f32 %v10687_v28, %v8520_v21  ;;  %v3972_v19 = vpop.f32.mrb[63].mxu1 }
 0x2cf   : > { %8739 = vpow2.f32 %v7080_v62  ;;  %v4047_v54 = vadd.f32 %v7891_v7, %v10664_v55  ;;  %v8724_v32 = vpop.eup %8723  ;;  %v4167_v48 = vadd.f32 1.0, %v8722_v45  ;;  %v7085_v42 = vmul.f32 -1.442695, %v4046_v27 }
 0x2d0   : > { %8741 = vrcp.f32 %v4166_v53  ;;  %v4045_v9 = vadd.f32 %v3972_v19, %v10691_v37  ;;  %v4165_v44 = vadd.f32 1.0, %v8724_v32  ;;  %v7083_v35 = vmul.f32 -1.442695, %v4044_v18 }
 0x2d1   : > { %8743 = vrcp.f32 %v4164_v34  ;;  %v4471_v8 = vrot.slane %v4439_v24, 7  ;;  %v10710_v29 = vpop.eup %8725  ;;  %v7086_v26 = vmul.f32 -1.442695, %v4047_v54  ;;  %v8531_v21 = vunpack.i.h.bf16 %v10685_v38  ;;  %v8544_v24 = vpop.permute.xlu1 %8543 }
 0x2d2   : > { %12236 = vst [vmem:[#allocation36_spill] sm:$0xff] %v10710_v29  ;;  %8745 = vrcp.f32 %v4167_v48  ;;  %v4438_v62 = vpack.c.bf16 %v4413_v46, %v4412_v57  ;;  %v10713_v61 = vpop.eup %8727  ;;  %v7084_v16 = vmul.f32 -1.442695, %v4045_v9  ;;  %v4418_v18 = vmul.f32 %v10710_v29, %v8535_v11 }
 0x2d3   : > { %12237 = vst [vmem:[#allocation37_spill] sm:$0xff] %v10713_v61  ;;  %8747 = vrcp.f32 %v4165_v44  ;;  %4494 = vrot.lane.b32.xlu1 %v4471_v8, %s8862_s15  ;;  %v10716_v27 = vpop.eup %8729  ;;  %v4416_v57 = vmul.f32 %v10713_v61, %v8530_v20  ;;  %v8546_v9 = vunpack.i.h.bf16 %v8544_v24  ;;  %v8545_v11 = vunpack.i.l.bf16 %v8544_v24 }
 0x2d4   : > { %12238 = vst [vmem:[#allocation38_spill] sm:$0xff] %v10716_v27  ;;  %8749 = vpow2.f32 %v7085_v42  ;;  %v4470_v53 = vrot.slane %v4438_v62, 7  ;;  %v10718_v32 = vpop.eup %8731  ;;  %v4419_v7 = vmul.f32 %v10716_v27, %v8536_v51  ;;  %v8539_v42 = vpop.permute.xlu0 %8538 }
 0x2d5   : > { %12239 = vst [vmem:[#allocation39_spill] sm:$0xff] %v10718_v32  ;;  %8751 = vpow2.f32 %v7083_v35  ;;  %v8734_v38 = vpop.eup %8733  ;;  %v4417_v46 = vmul.f32 %v10718_v32, %v8531_v21  ;;  %v8541_v8 = vunpack.i.h.bf16 %v8539_v42  ;;  %v8540_v62 = vunpack.i.l.bf16 %v8539_v42 }
 0x2d6   : > { %8753 = vpow2.f32 %v7086_v26  ;;  %4492 = vrot.lane.b32.xlu0 %v4470_v53, %s8862_s15  ;;  %v8736_v45 = vpop.eup %8735  ;;  %v4170_v34 = vadd.f32 1.0, %v8734_v38  ;;  %v4441_v54 = vpack.c.bf16 %v4419_v7, %v4418_v18 }
 0x2d7   : > { %8755 = vpow2.f32 %v7084_v16  ;;  %v8738_v19 = vpop.eup %8737  ;;  %v4168_v48 = vadd.f32 1.0, %v8736_v45  ;;  %v4440_v44 = vpack.c.bf16 %v4417_v46, %v4416_v57 }
 0x2d8   : > { %8757 = vrcp.f32 %v4170_v34  ;;  %v4171_v35 = vadd.f32 1.0, %v8738_v19  ;;  %v4473_v26 = vrot.slane %v4441_v54, 7  ;;  %v8554_v54 = vpop.permute.xlu1 %8553 }
 0x2d9   : > { %v8740_v51 = vpop.eup %8739  ;;  %8759 = vrcp.f32 %v4168_v48  ;;  %v4472_v53 = vrot.slane %v4440_v44, 7 }
 0x2da   : > { %v10725_v20 = vpop.eup %8741  ;;  %v4169_v21 = vadd.f32 1.0, %v8740_v51  ;;  %8761 = vrcp.f32 %v4171_v35  ;;  %4498 = vrot.lane.b32.xlu1 %v4473_v26, %s8862_s15  ;;  %v8549_v51 = vpop.permute.xlu0 %8548 }
 0x2db   : > { %12240 = vst [vmem:[#allocation40_spill] sm:$0xff] %v10725_v20  ;;  %v10727_v38 = vpop.eup %8743  ;;  %4496 = vrot.lane.b32.xlu0 %v4472_v53, %s8862_s15  ;;  %v4422_v7 = vmul.f32 %v10725_v20, %v8545_v11  ;;  %v8556_v53 = vunpack.i.h.bf16 %v8554_v54 }
 0x2dc   : > { %12241 = vst [vmem:[#allocation41_spill] sm:$0xff] %v10727_v38  ;;  %v10730_v16 = vpop.eup %8745  ;;  %8763 = vrcp.f32 %v4169_v21  ;;  %v4420_v46 = vmul.f32 %v10727_v38, %v8540_v62 }
 0x2dd   : > { %12242 = vst [vmem:[#allocation42_spill] sm:$0xff] %v10730_v16  ;;  %v10733_v18 = vpop.eup %8747  ;;  %v4423_v24 = vmul.f32 %v10730_v16, %v8546_v9  ;;  %v8555_v16 = vunpack.i.l.bf16 %v8554_v54 }
 0x2de   : > { %12243 = vst [vmem:[#allocation43_spill] sm:$0xff] %v10733_v18  ;;  %v8750_v57 = vpop.eup %8749  ;;  %v4421_v45 = vmul.f32 %v10733_v18, %v8541_v8  ;;  %v8551_v8 = vunpack.i.h.bf16 %v8549_v51 }
 0x2df   : > { %v8752_v34 = vpop.eup %8751  ;;  %v4174_v42 = vadd.f32 1.0, %v8750_v57  ;;  %v4443_v19 = vpack.c.bf16 %v4423_v24, %v4422_v7  ;;  %v8550_v57 = vunpack.i.l.bf16 %v8549_v51 }
 0x2e0   : > { %v8754_v48 = vpop.eup %8753  ;;  %v4172_v44 = vadd.f32 1.0, %v8752_v34  ;;  %v4442_v35 = vpack.c.bf16 %v4421_v45, %v4420_v46 }
 0x2e1   : > { %v8756_v26 = vpop.eup %8755  ;;  %8765 = vrcp.f32 %v4174_v42  ;;  %v4175_v21 = vadd.f32 1.0, %v8754_v48  ;;  %v4475_v11 = vrot.slane %v4443_v19, 7  ;;  %v8564_v19 = vpop.permute.xlu1 %8563 }
 0x2e2   : > { %8767 = vrcp.f32 %v4172_v44  ;;  %v4173_v9 = vadd.f32 1.0, %v8756_v26  ;;  %v4474_v20 = vrot.slane %v4442_v35, 7  ;;  %v10739_v62 = vpop.eup %8757  ;;  %v8559_v48 = vpop.permute.xlu0 %8558  ;;  %v8566_v35 = vunpack.i.h.bf16 %v8564_v19 }
 0x2e3   : > { %12244 = vst [vmem:[#allocation44_spill] sm:$0xff] %v10739_v62  ;;  %8769 = vrcp.f32 %v4175_v21  ;;  %4502 = vrot.lane.b32.xlu1 %v4475_v11, %s8862_s15  ;;  %v10742_v7 = vpop.eup %8759  ;;  %v4426_v45 = vmul.f32 %v10739_v62, %v8555_v16  ;;  %v8565_v26 = vunpack.i.l.bf16 %v8564_v19  ;;  %v8561_v11 = vunpack.i.h.bf16 %v8559_v48 }
 0x2e4   : > { %12245 = vst [vmem:[#allocation45_spill] sm:$0xff] %v10742_v7  ;;  %8771 = vrcp.f32 %v4173_v9  ;;  %4500 = vrot.lane.b32.xlu0 %v4474_v20, %s8862_s15  ;;  %v10745_v24 = vpop.eup %8761  ;;  %v4424_v42 = vmul.f32 %v10742_v7, %v8550_v57  ;;  %v8560_v9 = vunpack.i.l.bf16 %v8559_v48 }
 0x2e5   : > { %12246 = vst [vmem:[#allocation11_spill] sm:$0xff] %v10745_v24  ;;  %v4427_v34 = vmul.f32 %v10745_v24, %v8556_v53 }
 0x2e6   : > { %v10747_v46 = vpop.eup %8763 }
 0x2e7   : > { %12247 = vst [vmem:[#allocation13_spill] sm:$0xff] %v10747_v46  ;;  %v4425_v54 = vmul.f32 %v10747_v46, %v8551_v8  ;;  %v4445_v44 = vpack.c.bf16 %v4427_v34, %v4426_v45 }
 0x2e9   : > { %v4444_v51 = vpack.c.bf16 %v4425_v54, %v4424_v42  ;;  %v4477_v21 = vrot.slane %v4445_v44, 7 }
 0x2eb   : > { %v10753_v20 = vpop.eup %8765  ;;  %v4476_v18 = vrot.slane %v4444_v51, 7  ;;  %4506 = vrot.lane.b32.xlu1 %v4477_v21, %s8862_s15  ;;  %v8622_v51 = vld [vmem:[%s11811_s5 + $0x8] sm:$0xff]  }
 0x2ec   : > { %12248 = vst [vmem:[#allocation46_spill] sm:$0xff] %v10753_v20  ;;  %v10755_v38 = vpop.eup %8767  ;;  %v4430_v8 = vmul.f32 %v10753_v20, %v8565_v26 }
 0x2ed   : > { %12249 = vst [vmem:[#allocation47_spill] sm:$0xff] %v10755_v38  ;;  %v10758_v16 = vpop.eup %8769  ;;  %4504 = vrot.lane.b32.xlu0 %v4476_v18, %s8862_s15  ;;  %v4428_v45 = vmul.f32 %v10755_v38, %v8560_v9 }
 0x2ee   : > { %12250 = vst [vmem:[#allocation48_spill] sm:$0xff] %v10758_v16  ;;  %v10761_v53 = vpop.eup %8771  ;;  %v4431_v57 = vmul.f32 %v10758_v16, %v8566_v35 }
 0x2ef   : > { %12251 = vst [vmem:[#allocation49_spill] sm:$0xff] %v10761_v53  ;;  %v4429_v34 = vmul.f32 %v10761_v53, %v8561_v11 }
 0x2f0   : > { %v4447_v42 = vpack.c.bf16 %v4431_v57, %v4430_v8 }
 0x2f1   : > { %v4446_v54 = vpack.c.bf16 %v4429_v34, %v4428_v45 }
 0x2f2   : > { %v4479_v19 = vrot.slane %v4447_v42, 7 }
 0x2f3   : > { %v4478_v48 = vrot.slane %v4446_v54, 7 }
 0x2f4   : > { %4510 = vrot.lane.b32.xlu1 %v4479_v19, %s8862_s15  ;;  %v10908_v19 = vld [vmem:[%s11811_s5 + $0x20] sm:$0xff]  }
 0x2f5   : > { %4508 = vrot.lane.b32.xlu0 %v4478_v48, %s8862_s15  ;;  %12256 = vst [vmem:[#allocation54_spill] sm:$0xff] %v10908_v19  ;;  %s11594_s15 = scalar_lea.vmem %s11812_s6, %s8936_s9 }
 0x2f8   : > { %6235 = vrot.lane.b32.xlu1 %v10475_v6, %s8863_s18 }
 0x2f9   : > { %6233 = vrot.lane.b32.xlu0 %v10462_v4, %s8863_s18 }
 0x2fc   : > { %6239 = vrot.lane.b32.xlu1 %v10467_v39, %s8863_s18 }
 0x2fd   : > { %6237 = vrot.lane.b32.xlu0 %v10458_v59, %s8863_s18 }
 0x300   : > { %6243 = vrot.lane.b32.xlu1 %v10495_v12, %s8863_s18 }
 0x301   : > { %6241 = vrot.lane.b32.xlu0 %v10485_v5, %s8863_s18 }
 0x304   : > { %6247 = vrot.lane.b32.xlu1 %v10490_v3, %s8863_s18 }
 0x305   : > { %6245 = vrot.lane.b32.xlu0 %v10481_v2, %s8863_s18 }
 0x308   : > { %6251 = vrot.lane.b32.xlu1 %v10513_v47, %s8863_s18 }
 0x309   : > { %6249 = vrot.lane.b32.xlu0 %v10505_v40, %s8863_s18 }
 0x30c   : > { %6255 = vrot.lane.b32.xlu1 %v10509_v36, %s8863_s18 }
 0x30d   : > { %6253 = vrot.lane.b32.xlu0 %v10501_v23, %s8863_s18 }
 0x310   : > { %6259 = vrot.lane.b32.xlu1 %v10535_v14, %s8863_s18 }
 0x311   : > { %6257 = vrot.lane.b32.xlu0 %v10524_v60, %s8863_s18 }
 0x314   : > { %6263 = vrot.lane.b32.xlu1 %v10529_v1, %s8863_s18 }
 0x315   : > { %6261 = vrot.lane.b32.xlu0 %v10520_v52, %s8863_s18 }
 0x318   : > { %6267 = vrot.lane.b32.xlu1 %v10551_v13, %s8863_s18 }
 0x319   : > { %6265 = vrot.lane.b32.xlu0 %v10543_v63, %s8863_s18 }
 0x31c   : > { %6271 = vrot.lane.b32.xlu1 %v10547_v31, %s8863_s18 }
 0x31d   : > { %6269 = vrot.lane.b32.xlu0 %v10539_v17, %s8863_s18 }
 0x320   : > { %6275 = vrot.lane.b32.xlu1 %v10569_v30, %s8863_s18 }
 0x321   : > { %6273 = vrot.lane.b32.xlu0 %v10561_v50, %s8863_s18 }
 0x324   : > { %6279 = vrot.lane.b32.xlu1 %v10565_v10, %s8863_s18 }
 0x325   : > { %6277 = vrot.lane.b32.xlu0 %v10557_v41, %s8863_s18 }
 0x328   : > { %6283 = vrot.lane.b32.xlu1 %v10647_v0, %s8863_s18 }
 0x329   : > { %6281 = vrot.lane.b32.xlu0 %v10586_v15, %s8863_s18 }
 0x32c   : > { %6287 = vrot.lane.b32.xlu1 %v10590_v56, %s8863_s18  ;;  %v4483_v59 = vpop.permute.xlu1 %4482  ;;  %v4481_v3 = vpop.permute.xlu0 %4480 }
 0x32d   : > { %6285 = vrot.lane.b32.xlu0 %v10573_v25, %s8863_s18  ;;  %v10826_v4 = vsel %vm496_vm0, 0, %v4483_v59  ;;  %v10829_v39 = vsel %vm496_vm0, %v4483_v59, 0  ;;  %v10848_v52 = vsel %vm496_vm0, 0, %v4481_v3  ;;  %v10851_v60 = vsel %vm496_vm0, %v4481_v3, 0 }
 0x32e   : > { %12252 = vst [vmem:[#allocation50_spill] sm:$0xff] %v10829_v39  ;;  %v4574_v6 = vshrl.u32 %v10826_v4, 16  ;;  %v4576_v2 = vshll.u32 %v10826_v4, 16  ;;  %v4580_v5 = vshll.u32 %v10829_v39, 16  ;;  %v5505_v12 = vshrl.u32 %v10829_v39, 16  ;;  %12253 = vst [vmem:[#allocation51_spill] sm:$0xff] %v10851_v60 }
 0x32f   : > { %v11975_v14 = vshll.u32 %v10848_v52, 16  ;;  %v4570_v31 = vshll.u32 %v10851_v60, 16  ;;  %v11976_v30 = vshrl.u32 %v10848_v52, 16 }
 0x330   : > { %6291 = vrot.lane.b32.xlu1 %v10691_v37, %s8863_s18  ;;  %v10837_v23 = vrot.slane %v4574_v6, 1  ;;  %v10839_v40 = vrot.slane %v4576_v2, 2  ;;  %v10843_v36 = vrot.slane %v5505_v12, 1  ;;  %v10845_v47 = vrot.slane %v4580_v5, 2 }
 0x331   : > { %6289 = vrot.lane.b32.xlu0 %v10660_v43, %s8863_s18  ;;  %v4578_v17 = vrot.slane %v4576_v2, 1  ;;  %v4568_v50 = vrot.slane %v11975_v14, 1  ;;  %v4572_v0 = vrot.slane %v4570_v31, 1 }
 0x333   : > { %v4579_v15 = vor.u32 %v4578_v17, %v4574_v6  ;;  %v4569_v43 = vor.u32 %v4568_v50, %v11976_v30 }
 0x334   : > { %6295 = vrot.lane.b32.xlu1 %v10664_v55, %s8863_s18  ;;  %v4487_v13 = vpop.permute.xlu1 %4486  ;;  %v4485_v41 = vpop.permute.xlu0 %4484  ;;  %v4582_v55 = vrot.slane %v4580_v5, 1 }
 0x335   : > { %6293 = vrot.lane.b32.xlu0 %v10651_v58, %s8863_s18  ;;  %v10866_v10 = vsel %vm496_vm0, 0, %v4487_v13  ;;  %v10870_v25 = vsel %vm496_vm0, 0, %v4485_v41  ;;  %v10879_v37 = vsel %vm496_vm0, %v4485_v41, 0  ;;  %v10882_v18 = vsel %vm496_vm0, %v4487_v13, 0 }
 0x336   : > { %v11967_v56 = vshll.u32 %v10866_v10, 16  ;;  %v11970_v58 = vshll.u32 %v10870_v25, 16  ;;  %12254 = vst [vmem:[#allocation52_spill] sm:$0xff] %v10879_v37  ;;  %12255 = vst [vmem:[#allocation53_spill] sm:$0xff] %v10882_v18  ;;  %v4573_v44 = vsel %vm550_vm1, %v4569_v43, %v4572_v0  ;;  %v4583_v35 = vsel %vm550_vm1, %v4579_v15, %v4582_v55 }
 0x337   : > { %7896 = vmatprep.mubr.msk.bf16.mxu0 %vm728_vm2, %v4573_v44  ;;  %v11972_v11 = vshrl.u32 %v10870_v25, 16  ;;  %v4590_v9 = vshll.u32 %v10879_v37, 16  ;;  %v11968_v57 = vshrl.u32 %v10866_v10, 16  ;;  %v4600_v45 = vshll.u32 %v10882_v18, 16 }
 0x338   : > { %v4588_v26 = vrot.slane %v11970_v58, 1  ;;  %v4598_v21 = vrot.slane %v11967_v56, 1  ;;  %7897 = vmatmul.mubr.msk.bf16.vlgmr.msra.gmra.mrb[32].mxu0 %vm728_vm2, %v4583_v35 }
 0x339   : > { %7929 = vmatpush3.bf16.msra.mxu0 %v10633_v33  ;;  %v4592_v2 = vrot.slane %v4590_v9, 1  ;;  %v4602_v3 = vrot.slane %v4600_v45, 1 }
 0x33a   : > { %v4589_v54 = vor.u32 %v4588_v26, %v11972_v11  ;;  %7930 = vmatprep.subr.bf16.mxu0 %v8622_v51  ;;  %v4599_v6 = vor.u32 %v4598_v21, %v11968_v57 }
 0x33c   : > { %v4593_v41 = vsel %vm550_vm1, %v4589_v54, %v4592_v2  ;;  %v4603_v15 = vsel %vm550_vm1, %v4599_v6, %v4602_v3 }
 0x33d   : > { %v4491_v8 = vpop.permute.xlu1 %4490  ;;  %7931 = vmatpush3.bf16.msra.mxu0 %v8622_v51  ;;  %7900 = vmatprep.mubr.msk.bf16.mxu0 %vm728_vm2, %v4593_v41 }
 0x33e   : > { %v10901_v34 = vsel %vm496_vm0, 0, %v4491_v8  ;;  %v4489_v42 = vpop.permute.xlu0 %4488  ;;  %v10926_v17 = vsel %vm496_vm0, %v4491_v8, 0  ;;  %7964 = vmatprep.subr.bf16.mxu0 %v10908_v19 }
 0x33f   : > { %v11961_v48 = vshll.u32 %v10901_v34, 16  ;;  %v10912_v59 = vsel %vm496_vm0, 0, %v4489_v42  ;;  %v10915_v33 = vsel %vm496_vm0, %v4489_v42, 0  ;;  %12258 = vst [vmem:[#allocation56_spill] sm:$0xff] %v10926_v17  ;;  %v11962_v44 = vshrl.u32 %v10901_v34, 16 }
 0x340   : > { %12257 = vst [vmem:[#allocation55_spill] sm:$0xff] %v10915_v33  ;;  %v11965_v5 = vshll.u32 %v10912_v59, 16  ;;  %v11979_v12 = vshll.u32 %v10915_v33, 16  ;;  %v11966_v13 = vshrl.u32 %v10912_v59, 16  ;;  %7901 = vmatmul.mubr.msk.bf16.gmra.mrb[36].mxu0 %vm728_vm2, %v4603_v15  ;;  %v4620_v51 = vshll.u32 %v10926_v17, 16 }
 0x341   : > { %v4618_v0 = vrot.slane %v11961_v48, 1 }
 0x342   : > { %v4608_v50 = vrot.slane %v11965_v5, 1  ;;  %v4612_v35 = vrot.slane %v11979_v12, 1  ;;  %v4622_v2 = vrot.slane %v4620_v51, 1  ;;  %v5496_v5 = vshrl.u32 %v10851_v60, 16 }
 0x343   : > { %v4619_v54 = vor.u32 %v4618_v0, %v11962_v44  ;;  %v5532_v12 = vshrl.u32 %v10915_v33, 16  ;;  %v11050_v30 = vrot.slane %v4620_v51, 2 }
 0x344   : > { %v4609_v55 = vor.u32 %v4608_v50, %v11966_v13  ;;  %v11005_v63 = vrot.slane %v5496_v5, 1 }
 0x345   : > { %v4495_v43 = vpop.permute.xlu1 %4494  ;;  %v4623_v15 = vsel %vm550_vm1, %v4619_v54, %v4622_v2  ;;  %v11068_v24 = vrot.slane %v5532_v12, 1 }
 0x346   : > { %v10945_v26 = vsel %vm496_vm0, 0, %v4495_v43  ;;  %v4613_v42 = vsel %vm550_vm1, %v4609_v55, %v4612_v35  ;;  %v10962_v50 = vsel %vm496_vm0, %v4495_v43, 0 }
 0x347   : > { %v11963_v21 = vshll.u32 %v10945_v26, 16  ;;  %7904 = vmatprep.mubr.msk.bf16.mxu0 %vm728_vm2, %v4613_v42  ;;  %12260 = vst [vmem:[#allocation58_spill] sm:$0xff] %v10962_v50  ;;  %v11971_v48 = vshrl.u32 %v10945_v26, 16  ;;  %v11978_v43 = vshll.u32 %v10962_v50, 16  ;;  %v12268_v12 = vshll.u32 %v10962_v50, 16 }
 0x348   : > { %v4493_v8 = vpop.permute.xlu0 %4492  ;;  %7905 = vmatmul.mubr.msk.bf16.gmra.mrb[40].mxu0 %vm728_vm2, %v4623_v15 }
 0x349   : > { %v10952_v6 = vsel %vm496_vm0, 0, %v4493_v8  ;;  %v10958_v3 = vsel %vm496_vm0, %v4493_v8, 0  ;;  %v4638_v55 = vrot.slane %v11963_v21, 1  ;;  %v4642_v57 = vrot.slane %v11978_v43, 1 }
 0x34a   : > { %12259 = vst [vmem:[#allocation57_spill] sm:$0xff] %v10958_v3  ;;  %v11964_v41 = vshll.u32 %v10952_v6, 16  ;;  %v11969_v35 = vshrl.u32 %v10952_v6, 16  ;;  %v11977_v42 = vshll.u32 %v10958_v3, 16  ;;  %v5550_v38 = vshrl.u32 %v10958_v3, 16 }
 0x34b   : > { %v4639_v15 = vor.u32 %v4638_v55, %v11971_v48 }
 0x34c   : > { %v4628_v0 = vrot.slane %v11964_v41, 1  ;;  %v4499_v8 = vpop.permute.xlu1 %4498  ;;  %v4632_v13 = vrot.slane %v11977_v42, 1  ;;  %v11091_v32 = vrot.slane %v5550_v38, 1 }
 0x34d   : > { %v10975_v44 = vsel %vm496_vm0, 0, %v4499_v8  ;;  %v4497_v54 = vpop.permute.xlu0 %4496  ;;  %v10996_v58 = vsel %vm496_vm0, %v4499_v8, 0  ;;  %v4643_v11 = vsel %vm550_vm1, %v4639_v15, %v4642_v57 }
 0x34e   : > { %v4629_v2 = vor.u32 %v4628_v0, %v11969_v35  ;;  %v11973_v21 = vshll.u32 %v10975_v44, 16  ;;  %v10981_v41 = vsel %vm496_vm0, 0, %v4497_v54  ;;  %v10992_v0 = vsel %vm496_vm0, %v4497_v54, 0  ;;  %12262 = vst [vmem:[#allocation60_spill] sm:$0xff] %v10996_v58 }
 0x34f   : > { %v11974_v56 = vshll.u32 %v10981_v41, 16  ;;  %12261 = vst [vmem:[#allocation59_spill] sm:$0xff] %v10992_v0  ;;  %v5523_v35 = vshrl.u32 %v10882_v18, 16  ;;  %v11009_v54 = vrot.slane %v4570_v31, 2  ;;  %v11980_v8 = vshrl.u32 %v10981_v41, 16 }
 0x350   : > { %v4633_v55 = vsel %vm550_vm1, %v4629_v2, %v4632_v13  ;;  %v4658_v1 = vrot.slane %v11973_v21, 1  ;;  %v11986_v13 = vshll.u32 %v10992_v0, 16  ;;  %v11983_v57 = vshrl.u32 %v10975_v44, 16 }
 0x351   : > { %v4648_v48 = vrot.slane %v11974_v56, 1  ;;  %7908 = vmatprep.mubr.msk.bf16.mxu0 %vm728_vm2, %v4633_v55  ;;  %v5514_v55 = vshrl.u32 %v10879_v37, 16  ;;  %v4660_v15 = vshll.u32 %v10996_v58, 16  ;;  %v11020_v56 = vrot.slane %v5523_v35, 1 }
 0x352   : > { %7909 = vmatmul.mubr.msk.bf16.gmra.mrb[44].mxu0 %vm728_vm2, %v4643_v11  ;;  %v11024_v31 = vrot.slane %v4600_v45, 2  ;;  %v11028_v11 = vrot.slane %v4590_v9, 2  ;;  %v4659_v35 = vor.u32 %v4658_v1, %v11983_v57  ;;  %v5541_v45 = vshrl.u32 %v10926_v17, 16 }
 0x353   : > { %v4649_v14 = vor.u32 %v4648_v48, %v11980_v8  ;;  %v4652_v9 = vrot.slane %v11986_v13, 1  ;;  %v11046_v8 = vrot.slane %v5514_v55, 1  ;;  %v5559_v55 = vshrl.u32 %v10962_v50, 16 }
 0x355   : > { %v4503_v2 = vpop.permute.xlu1 %4502  ;;  %v4653_v16 = vsel %vm550_vm1, %v4649_v14, %v4652_v9 }
 0x356   : > { %v11018_v5 = vsel %vm496_vm0, 0, %v4503_v2  ;;  %v4501_v21 = vpop.permute.xlu0 %4500  ;;  %v11054_v1 = vsel %vm496_vm0, %v4503_v2, 0  ;;  %7912 = vmatprep.mubr.msk.bf16.mxu0 %vm728_vm2, %v4653_v16  ;;  %v11066_v2 = vrot.slane %v5541_v45, 1  ;;  %v5577_v16 = vshrl.u32 %v10996_v58, 16 }
 0x357   : > { %v11034_v42 = vsel %vm496_vm0, 0, %v4501_v21  ;;  %v11037_v43 = vsel %vm496_vm0, %v4501_v21, 0  ;;  %v4662_v21 = vrot.slane %v4660_v15, 1  ;;  %12264 = vst [vmem:[#allocation62_spill] sm:$0xff] %v11054_v1  ;;  %v12265_v20 = vshll.u32 %v11018_v5, 16 }
 0x358   : > { %12263 = vst [vmem:[#allocation61_spill] sm:$0xff] %v11037_v43  ;;  %v11995_v48 = vshll.u32 %v11034_v42, 16  ;;  %v4670_v53 = vshll.u32 %v11037_v43, 16  ;;  %v12266_v14 = vshrl.u32 %v11034_v42, 16  ;;  %v5595_v29 = vshrl.u32 %v11054_v1, 16 }
 0x359   : > { %v4663_v51 = vsel %vm550_vm1, %v4659_v35, %v4662_v21  ;;  %v4678_v46 = vrot.slane %v12265_v20, 1  ;;  %v4680_v20 = vshll.u32 %v11054_v1, 16  ;;  %v11082_v21 = vrot.slane %v12268_v12, 2 }
 0x35a   : > { %v4668_v13 = vrot.slane %v11995_v48, 1  ;;  %v4672_v57 = vrot.slane %v4670_v53, 1  ;;  %7913 = vmatmul.mubr.msk.bf16.gmra.mrb[48].mxu0 %vm728_vm2, %v4663_v51  ;;  %v12267_v48 = vshll.u32 %v10915_v33, 16  ;;  %v5568_v51 = vshrl.u32 %v10992_v0, 16 }
 0x35b   : > { %v12269_v35 = vshll.u32 %v10958_v3, 16  ;;  %v12270_v12 = vshrl.u32 %v11018_v5, 16  ;;  %v11108_v38 = vrot.slane %v5577_v16, 1  ;;  %v5586_v16 = vshrl.u32 %v11037_v43, 16 }
 0x35c   : > { %v4669_v9 = vor.u32 %v4668_v13, %v12266_v14  ;;  %v11075_v7 = vrot.slane %v12267_v48, 2  ;;  %v11089_v14 = vrot.slane %v5559_v55, 1  ;;  %v11113_v49 = vrot.slane %v5568_v51, 1 }
 0x35d   : > { %v4507_v45 = vpop.permute.xlu1 %4506  ;;  %v11095_v27 = vrot.slane %v12269_v35, 2  ;;  %v4679_v61 = vor.u32 %v4678_v46, %v12270_v12  ;;  %v4682_v35 = vrot.slane %v4680_v20, 1  ;;  %v11135_v50 = vrot.slane %v5595_v29, 1 }
 0x35e   : > { %v11086_v62 = vsel %vm496_vm0, 0, %v4507_v45  ;;  %v4673_v48 = vsel %vm550_vm1, %v4669_v9, %v4672_v57  ;;  %v11102_v28 = vsel %vm496_vm0, %v4507_v45, 0  ;;  %v11110_v9 = vrot.slane %v4660_v15, 2 }
 0x35f   : > { %v4505_v13 = vpop.permute.xlu0 %4504  ;;  %7916 = vmatprep.mubr.msk.bf16.mxu0 %vm728_vm2, %v4673_v48  ;;  %12271 = vst [vmem:[#allocation63_spill] sm:$0xff] %v11102_v28  ;;  %v12273_v45 = vshrl.u32 %v10848_v52, 16  ;;  %v12274_v57 = vshll.u32 %v10848_v52, 16  ;;  %v4700_v15 = vshll.u32 %v11102_v28, 16  ;;  %v4683_v1 = vsel %vm550_vm1, %v4679_v61, %v4682_v35 }
 0x360   : > { %v11106_v55 = vsel %vm496_vm0, 0, %v4505_v13  ;;  %v11116_v46 = vsel %vm496_vm0, %v4505_v13, 0  ;;  %v12275_v13 = vshll.u32 %v10992_v0, 16  ;;  %v5613_v61 = vshrl.u32 %v11102_v28, 16 }
 0x361   : > { %v12024_v48 = vshll.u32 %v11106_v55, 16  ;;  %12272 = vst [vmem:[#allocation64_spill] sm:$0xff] %v11116_v46  ;;  %v11120_v12 = vrot.slane %v12273_v45, 1  ;;  %v11124_v22 = vrot.slane %v12274_v57, 2  ;;  %v11137_v45 = vrot.slane %v4680_v20, 2 }
 0x362   : > { %v11133_v58 = vrot.slane %v12275_v13, 2  ;;  %7917 = vmatmul.mubr.msk.bf16.gmra.mrb[52].mxu0 %vm728_vm2, %v4683_v1  ;;  %v12276_v57 = vshll.u32 %v11086_v62, 16  ;;  %v5604_v13 = vshrl.u32 %v11116_v46, 16  ;;  %v11155_v3 = vrot.slane %v5586_v16, 1 }
 0x363   : > { %v4688_v51 = vrot.slane %v12024_v48, 1  ;;  %v4690_v48 = vshll.u32 %v11116_v46, 16  ;;  %v11157_v28 = vrot.slane %v4670_v53, 2  ;;  %v4702_v35 = vrot.slane %v4700_v15, 1 }
 0x364   : > { %v4698_v43 = vrot.slane %v12276_v57, 1  ;;  %v5495_v57 = vor.u32 %v11124_v22, %v11120_v12  ;;  %v12278_v17 = vshrl.u32 %v11106_v55, 16  ;;  %v12280_v37 = vshrl.u32 %v11086_v62, 16 }
 0x365   : > { %v11170_v22 = vrot.slane %v4700_v15, 2  ;;  %v4692_v12 = vrot.slane %v4690_v48, 1  ;;  %v11174_v60 = vrot.slane %v5613_v61, 1  ;;  %v11185_v15 = vrot.slane %v4690_v48, 2 }
 0x366   : > { %v4511_v0 = vpop.permute.xlu1 %4510  ;;  %v4689_v33 = vor.u32 %v4688_v51, %v12278_v17  ;;  %v4699_v39 = vor.u32 %v4698_v43, %v12280_v37  ;;  %v11176_v17 = vrot.slane %v5604_v13, 1 }
 0x367   : > { %v11148_v29 = vsel %vm496_vm0, 0, %v4511_v0  ;;  %v11151_v20 = vsel %vm496_vm0, %v4511_v0, 0  ;;  %v4509_v1 = vpop.permute.xlu0 %4508  ;;  %12281 = vst [vmem:[#allocation67_spill] sm:$0xff] %v11170_v22  ;;  %12282 = vst [vmem:[#allocation68_spill] sm:$0xff] %v11174_v60 }
 0x368   : > { %12277 = vst [vmem:[#allocation65_spill] sm:$0xff] %v11151_v20  ;;  %v11163_v18 = vsel %vm496_vm0, 0, %v4509_v1  ;;  %v11166_v0 = vsel %vm496_vm0, %v4509_v1, 0  ;;  %v4720_v53 = vshll.u32 %v11151_v20, 16  ;;  %v5631_v51 = vshrl.u32 %v11151_v20, 16 }
 0x369   : > { %12279 = vst [vmem:[#allocation66_spill] sm:$0xff] %v11166_v0  ;;  %v12048_v16 = vshll.u32 %v11163_v18, 16  ;;  %v4710_v46 = vshll.u32 %v11166_v0, 16  ;;  %v5622_v19 = vshrl.u32 %v11166_v0, 16  ;;  %v4693_v37 = vsel %vm550_vm1, %v4689_v33, %v4692_v12 }
 0x36a   : > { %v4714_v61 = vshrl.u32 %v11148_v29, 16  ;;  %7920 = vmatprep.mubr.msk.bf16.mxu0 %vm728_vm2, %v4693_v37  ;;  %v4703_v13 = vsel %vm550_vm1, %v4699_v39, %v4702_v35  ;;  %v12283_v20 = vshll.u32 %v11148_v29, 16  ;;  %v4722_v60 = vrot.slane %v4720_v53, 1 }
 0x36b   : > { %v4708_v43 = vrot.slane %v12048_v16, 1  ;;  %v11192_v1 = vrot.slane %v4720_v53, 2  ;;  %v4712_v0 = vrot.slane %v4710_v46, 1  ;;  %7921 = vmatmul.mubr.msk.bf16.gmra.mrb[56].mxu0 %vm728_vm2, %v4703_v13  ;;  %v12284_v33 = vshrl.u32 %v11163_v18, 16 }
 0x36c   : > { %v4718_v22 = vrot.slane %v12283_v20, 1  ;;  %v11197_v48 = vrot.slane %v5631_v51, 1  ;;  %v5500_v39 = vor.u32 %v11009_v54, %v11005_v63  ;;  %v12285_v35 = vor.u32 %v10845_v47, %v10843_v36 }
 0x36d   : > { %v4709_v12 = vor.u32 %v4708_v43, %v12284_v33  ;;  %v12286_v20 = vor.u32 %v10839_v40, %v10837_v23  ;;  %v11212_v37 = vrot.slane %v5622_v19, 1  ;;  %v12287_v43 = vshrl.u32 %v10870_v25, 16 }
 0x36e   : > { %v4719_v16 = vor.u32 %v4718_v22, %v4714_v61  ;;  %v12288_v22 = vshll.u32 %v10870_v25, 16  ;;  %v11219_v63 = vrot.slane %v4710_v46, 2  ;;  %v11224_v23 = vsel %vm1482_vm4, %v5495_v57, %v5500_v39 }
 0x36f   : > { %v11210_v53 = vsel %vm1482_vm4, %v12286_v20, %v12285_v35  ;;  %v4713_v51 = vsel %vm550_vm1, %v4709_v12, %v4712_v0  ;;  %v5511_v13 = vrot.slane %v12287_v43, 1  ;;  %v5518_v40 = vor.u32 %v11028_v11, %v11046_v8 }
 0x370   : > { %v5512_v33 = vrot.slane %v12288_v22, 2  ;;  %7924 = vmatprep.mubr.msk.bf16.mxu0 %vm728_vm2, %v4713_v51  ;;  %v4723_v36 = vsel %vm550_vm1, %v4719_v16, %v4722_v60  ;;  %v12289_v19 = vshrl.u32 %v10866_v10, 16  ;;  %v12290_v0 = vshll.u32 %v10866_v10, 16 }
 0x371   : > { %v5527_v46 = vor.u32 %v11024_v31, %v11020_v56  ;;  %v12291_v35 = vshrl.u32 %v10912_v59, 16  ;;  %v12292_v60 = vshll.u32 %v10912_v59, 16  ;;  %v5536_v16 = vor.u32 %v11075_v7, %v11068_v24 }
 0x372   : > { %v5513_v47 = vor.u32 %v5512_v33, %v5511_v13  ;;  %v5520_v54 = vrot.slane %v12289_v19, 1  ;;  %v5521_v12 = vrot.slane %v12290_v0, 2  ;;  %v12293_v8 = vshrl.u32 %v10901_v34, 16 }
 0x373   : > { %v5529_v20 = vrot.slane %v12291_v35, 1  ;;  %v5530_v57 = vrot.slane %v12292_v60, 2  ;;  %v12294_v43 = vshll.u32 %v10901_v34, 16  ;;  %v5545_v56 = vor.u32 %v11050_v30, %v11066_v2  ;;  %7925 = vmatmul.mubr.msk.bf16.gmra.mrb[60].mxu0 %vm728_vm2, %v4723_v36 }
 0x374   : > { %v5538_v11 = vrot.slane %v12293_v8, 1  ;;  %v11243_v39 = vsel %vm1482_vm4, %v5513_v47, %v5518_v40  ;;  %v5522_v51 = vor.u32 %v5521_v12, %v5520_v54  ;;  %v12295_v22 = vshrl.u32 %v10952_v6, 16  ;;  %7932 = vmatprep.mubr.msk.bf16.mxu0 %vm728_vm2, %v10848_v52 }
 0x375   : > { %v5539_v13 = vrot.slane %v12294_v43, 2  ;;  %v5531_v31 = vor.u32 %v5530_v57, %v5529_v20  ;;  %v12296_v19 = vshll.u32 %v10952_v6, 16  ;;  %v5554_v24 = vor.u32 %v11095_v27, %v11091_v32 }
 0x376   : > { %v5547_v33 = vrot.slane %v12295_v22, 1  ;;  %v11257_v40 = vsel %vm1482_vm4, %v5522_v51, %v5527_v46  ;;  %v12297_v54 = vshrl.u32 %v10945_v26, 16  ;;  %v12298_v30 = vshll.u32 %v10945_v26, 16 }
 0x377   : > { %v5548_v7 = vrot.slane %v12296_v19, 2  ;;  %v5540_v47 = vor.u32 %v5539_v13, %v5538_v11  ;;  %v11266_v12 = vsel %vm1482_vm4, %v5531_v31, %v5536_v16  ;;  %v5563_v27 = vor.u32 %v11082_v21, %v11089_v14 }
 0x378   : > { %v5556_v0 = vrot.slane %v12297_v54, 1  ;;  %v5557_v2 = vrot.slane %v12298_v30, 2  ;;  %v12299_v32 = vshrl.u32 %v10981_v41, 16  ;;  %v12300_v60 = vshll.u32 %v10981_v41, 16 }
 0x379   : > { %v5549_v35 = vor.u32 %v5548_v7, %v5547_v33  ;;  %v11273_v46 = vsel %vm1482_vm4, %v5540_v47, %v5545_v56  ;;  %v5572_v8 = vor.u32 %v11133_v58, %v11113_v49  ;;  %v12301_v11 = vshrl.u32 %v10975_v44, 16 }
 0x37a   : > { %v5565_v36 = vrot.slane %v12299_v32, 1  ;;  %v5558_v20 = vor.u32 %v5557_v2, %v5556_v0  ;;  %v5566_v57 = vrot.slane %v12300_v60, 2  ;;  %v12302_v21 = vshll.u32 %v10975_v44, 16 }
 0x37b   : > { %v11280_v16 = vsel %vm1482_vm4, %v5549_v35, %v5554_v24  ;;  %v5574_v51 = vrot.slane %v12301_v11, 1  ;;  %v5581_v43 = vor.u32 %v11110_v9, %v11108_v38  ;;  %v12303_v31 = vshrl.u32 %v11034_v42, 16  ;;  %v8624_v9 = vld [vmem:[%s11811_s5 + $0x28] sm:$0xff]   ;;  %7933 = vmatmul.mubr.msk.bf16.vlgmr.msra.gmra.mrb[32].mxu0 %vm728_vm2, %v10826_v4 }
 0x37c   : > { %v5575_v14 = vrot.slane %v12302_v21, 2  ;;  %v11289_v13 = vsel %vm1482_vm4, %v5558_v20, %v5563_v27  ;;  %v5567_v56 = vor.u32 %v5566_v57, %v5565_v36  ;;  %v12304_v49 = vshll.u32 %v11034_v42, 16  ;;  %v12312_v11 = vld [vmem:[#allocation67_spill] sm:$0xff]  ;;  %v12313_v21 = vld [vmem:[#allocation54_spill] sm:$0xff]  ;;  %7936 = vmatprep.mubr.msk.bf16.mxu0 %vm728_vm2, %v10870_v25 }
 0x37d   : > { %v5583_v22 = vrot.slane %v12303_v31, 1  ;;  %v5590_v19 = vor.u32 %v11157_v28, %v11155_v3  ;;  %v12305_v7 = vshrl.u32 %v11018_v5, 16  ;;  %v12306_v47 = vshll.u32 %v11018_v5, 16  ;;  %7965 = vmatpush3.bf16.msra.mxu0 %v12313_v21  ;;  %v12321_v21 = vld [vmem:[#allocation55_spill] sm:$0xff] }
 0x37e   : > { %v5584_v58 = vrot.slane %v12304_v49, 2  ;;  %v5576_v33 = vor.u32 %v5575_v14, %v5574_v51  ;;  %v11305_v54 = vsel %vm1482_vm4, %v5567_v56, %v5572_v8  ;;  %v5599_v30 = vor.u32 %v11137_v45, %v11135_v50  ;;  %v12311_v8 = vld [vmem:[#allocation68_spill] sm:$0xff]  ;;  %7966 = vmatprep.subr.bf16.mxu0 %v8624_v9 }
 0x37f   : > { %v5592_v24 = vrot.slane %v12305_v7, 1  ;;  %v5593_v38 = vrot.slane %v12306_v47, 2  ;;  %v12307_v2 = vshrl.u32 %v11106_v55, 16  ;;  %v12308_v27 = vshll.u32 %v11106_v55, 16 }
 0x380   : > { %v5585_v0 = vor.u32 %v5584_v58, %v5583_v22  ;;  %v11312_v3 = vsel %vm1482_vm4, %v5576_v33, %v5581_v43  ;;  %v5608_v36 = vor.u32 %v11185_v15, %v11176_v17  ;;  %v12309_v50 = vshrl.u32 %v11086_v62, 16  ;;  %v8625_v22 = vld [vmem:[%s11811_s5 + $0x30] sm:$0xff]  }
 0x381   : > { %v5601_v28 = vrot.slane %v12307_v2, 1  ;;  %v5594_v35 = vor.u32 %v5593_v38, %v5592_v24  ;;  %v5602_v32 = vrot.slane %v12308_v27, 2  ;;  %v12310_v60 = vshll.u32 %v11086_v62, 16  ;;  %7967 = vmatpush3.bf16.msra.mxu0 %v8624_v9  ;;  %v12319_v27 = vld [vmem:[#allocation52_spill] sm:$0xff] }
 0x382   : > { %v11321_v20 = vsel %vm1482_vm4, %v5585_v0, %v5590_v19  ;;  %v5610_v45 = vrot.slane %v12309_v50, 1  ;;  %v5617_v51 = vor.u32 %v12312_v11, %v12311_v8  ;;  %v12314_v14 = vshrl.u32 %v11163_v18, 16  ;;  %8000 = vmatprep.subr.bf16.mxu0 %v8625_v22  ;;  %v8626_v50 = vld [vmem:[%s11811_s5 + $0x38] sm:$0xff]  }
 0x383   : > { %v5611_v57 = vrot.slane %v12310_v60, 2  ;;  %v11333_v17 = vsel %vm1482_vm4, %v5594_v35, %v5599_v30  ;;  %v5603_v15 = vor.u32 %v5602_v32, %v5601_v28  ;;  %v12315_v56 = vshll.u32 %v11163_v18, 16  ;;  %7937 = vmatmul.mubr.msk.bf16.gmra.mrb[36].mxu0 %vm728_vm2, %v10866_v10  ;;  %v12318_v28 = vld [vmem:[#allocation50_spill] sm:$0xff]  ;;  %v12320_v8 = vld [vmem:[#allocation53_spill] sm:$0xff] }
 0x384   : > { %v5619_v43 = vrot.slane %v12314_v14, 1  ;;  %v5626_v58 = vor.u32 %v11219_v63, %v11212_v37  ;;  %v5628_v33 = vrot.slane %v4714_v61, 1  ;;  %v12316_v19 = vshll.u32 %v11148_v29, 16  ;;  %7940 = vmatprep.mubr.msk.bf16.mxu0 %vm728_vm2, %v10912_v59 }
 0x385   : > { %v5620_v31 = vrot.slane %v12315_v56, 2  ;;  %v5612_v49 = vor.u32 %v5611_v57, %v5610_v45  ;;  %v11349_v24 = vsel %vm1482_vm4, %v5603_v15, %v5608_v36  ;;  %v5635_v38 = vor.u32 %v11192_v1, %v11197_v48  ;;  %v12317_v1 = vld [vmem:[#allocation51_spill] sm:$0xff]  ;;  %v8627_v57 = vld [vmem:[%s11811_s5 + $0x40] sm:$0xff]  }
 0x386   : > { %v5629_v7 = vrot.slane %v12316_v19, 2  ;;  %v5188_v48 = vrot.slane %v12317_v1, 1  ;;  %v5187_v63 = vrot.slane %v10848_v52, 1  ;;  %v5190_v2 = vrot.slane %v10826_v4, 1 }
 0x387   : > { %v5621_v47 = vor.u32 %v5620_v31, %v5619_v43  ;;  %v11354_v0 = vsel %vm1482_vm4, %v5612_v49, %v5617_v51  ;;  %v5191_v35 = vrot.slane %v12318_v28, 1  ;;  %v5194_v32 = vrot.slane %v12319_v27, 1  ;;  %v12322_v31 = vld [vmem:[#allocation56_spill] sm:$0xff] }
 0x388   : > { %v5630_v30 = vor.u32 %v5629_v7, %v5628_v33  ;;  %v5189_v9 = vsel %vm1175_vm3, %v5187_v63, %v5188_v48  ;;  %v5193_v36 = vrot.slane %v10870_v25, 1  ;;  %v5197_v11 = vrot.slane %v12320_v8, 1  ;;  %v12325_v63 = vld [vmem:[#allocation59_spill] sm:$0xff] }
 0x389   : > { %v11357_v37 = vsel %vm1482_vm4, %v5621_v47, %v5626_v58  ;;  %v5192_v45 = vsel %vm1175_vm3, %v5190_v2, %v5191_v35  ;;  %v5196_v51 = vrot.slane %v10866_v10, 1  ;;  %v5200_v15 = vrot.slane %v12321_v21, 1  ;;  %v12323_v58 = vld [vmem:[#allocation57_spill] sm:$0xff] }
 0x38a   : > { %v11360_v61 = vsel %vm1482_vm4, %v5630_v30, %v5635_v38  ;;  %v5195_v60 = vsel %vm1175_vm3, %v5193_v36, %v5194_v32  ;;  %v5199_v14 = vrot.slane %v10912_v59, 1  ;;  %v5202_v49 = vrot.slane %v10901_v34, 1  ;;  %v12324_v38 = vld [vmem:[#allocation58_spill] sm:$0xff]  ;;  %v12326_v36 = vld [vmem:[#allocation60_spill] sm:$0xff] }
 0x38b   : > { %7941 = vmatmul.mubr.msk.bf16.gmra.mrb[40].mxu0 %vm728_vm2, %v10901_v34  ;;  %v5198_v43 = vsel %vm1175_vm3, %v5196_v51, %v5197_v11  ;;  %v5206_v33 = vrot.slane %v12323_v58, 1  ;;  %v5205_v19 = vrot.slane %v10952_v6, 1  ;;  %v5209_v30 = vrot.slane %v12324_v38, 1 }
 0x38c   : > { %7944 = vmatprep.mubr.msk.bf16.mxu0 %vm728_vm2, %v10952_v6  ;;  %v5201_v56 = vsel %vm1175_vm3, %v5199_v14, %v5200_v15  ;;  %v5208_v48 = vrot.slane %v10945_v26, 1  ;;  %v5211_v2 = vrot.slane %v10981_v41, 1  ;;  %v5217_v51 = vrot.slane %v11034_v42, 1 }
 0x38d   : > { %v5207_v47 = vsel %vm1175_vm3, %v5205_v19, %v5206_v33  ;;  %v5223_v19 = vrot.slane %v11106_v55, 1 }
 0x38e   : > { %v5210_v35 = vsel %vm1175_vm3, %v5208_v48, %v5209_v30  ;;  %v12330_v30 = vld [vmem:[#allocation63_spill] sm:$0xff] }
 0x38f   : > { %v5227_v48 = vrot.slane %v12330_v30, 1 }
 0x393   : > { %7945 = vmatmul.mubr.msk.bf16.gmra.mrb[44].mxu0 %vm728_vm2, %v10945_v26 }
 0x394   : > { %7948 = vmatprep.mubr.msk.bf16.mxu0 %vm728_vm2, %v10981_v41 }
 0x39b   : > { %7949 = vmatmul.mubr.msk.bf16.gmra.mrb[48].mxu0 %vm728_vm2, %v10975_v44 }
 0x39c   : > { %7952 = vmatprep.mubr.msk.bf16.mxu0 %vm728_vm2, %v11034_v42 }
 0x3a3   : > { %7953 = vmatmul.mubr.msk.bf16.gmra.mrb[52].mxu0 %vm728_vm2, %v11018_v5 }
 0x3a4   : > { %7956 = vmatprep.mubr.msk.bf16.mxu0 %vm728_vm2, %v11106_v55 }
 0x3ab   : > { %7957 = vmatmul.mubr.msk.bf16.gmra.mrb[56].mxu0 %vm728_vm2, %v11086_v62 }
 0x3ac   : > { %7960 = vmatprep.mubr.msk.bf16.mxu0 %vm728_vm2, %v11163_v18 }
 0x3b3   : > { %7961 = vmatmul.mubr.msk.bf16.gmra.mrb[60].mxu0 %vm728_vm2, %v11148_v29 }
 0x3b4   : > { %7968 = vmatprep.mubr.msk.bf16.mxu0 %vm728_vm2, %v5189_v9  ;;  %v5212_v9 = vrot.slane %v12325_v63, 1 }
 0x3b6   : > { %v5213_v32 = vsel %vm1175_vm3, %v5211_v2, %v5212_v9  ;;  %v5226_v9 = vrot.slane %v11086_v62, 1  ;;  %v12331_v2 = vld [vmem:[#allocation66_spill] sm:$0xff] }
 0x3bb   : > { %7969 = vmatmul.mubr.msk.bf16.vlgmr.msra.gmra.mrb[32].mxu0 %vm728_vm2, %v5192_v45  ;;  %v5214_v45 = vrot.slane %v10975_v44, 1 }
 0x3bc   : > { %8001 = vmatpush3.bf16.msra.mxu0 %v8625_v22  ;;  %7972 = vmatprep.mubr.msk.bf16.mxu0 %vm728_vm2, %v5195_v60  ;;  %v5203_v22 = vrot.slane %v12322_v31, 1  ;;  %v12327_v60 = vld [vmem:[#allocation61_spill] sm:$0xff] }
 0x3bd   : > { %8002 = vmatprep.subr.bf16.mxu0 %v8626_v50  ;;  %v5218_v11 = vrot.slane %v12327_v60, 1 }
 0x3be   : > { %v5204_v7 = vsel %vm1175_vm3, %v5202_v49, %v5203_v22  ;;  %v5220_v22 = vrot.slane %v11018_v5, 1  ;;  %v12329_v49 = vld [vmem:[#allocation64_spill] sm:$0xff] }
 0x3bf   : > { %v5219_v14 = vsel %vm1175_vm3, %v5217_v51, %v5218_v11  ;;  %v5224_v33 = vrot.slane %v12329_v49, 1  ;;  %v12332_v11 = vld [vmem:[#allocation65_spill] sm:$0xff] }
 0x3c0   : > { %8003 = vmatpush3.bf16.msra.mxu0 %v8626_v50  ;;  %v5215_v50 = vrot.slane %v12326_v36, 1  ;;  %v5233_v51 = vrot.slane %v12332_v11, 1 }
 0x3c1   : > { %8036 = vmatprep.subr.bf16.mxu0 %v8627_v57 }
 0x3c2   : > { %v5216_v15 = vsel %vm1175_vm3, %v5214_v45, %v5215_v50  ;;  %v5228_v50 = vsel %vm1175_vm3, %v5226_v9, %v5227_v48 }
 0x3c3   : > { %7973 = vmatmul.mubr.msk.bf16.gmra.mrb[36].mxu0 %vm728_vm2, %v5198_v43  ;;  %v12328_v43 = vld [vmem:[#allocation62_spill] sm:$0xff] }
 0x3c4   : > { %7976 = vmatprep.mubr.msk.bf16.mxu0 %vm728_vm2, %v5201_v56  ;;  %v5221_v56 = vrot.slane %v12328_v43, 1 }
 0x3cb   : > { %7977 = vmatmul.mubr.msk.bf16.gmra.mrb[40].mxu0 %vm728_vm2, %v5204_v7  ;;  %v5222_v7 = vsel %vm1175_vm3, %v5220_v22, %v5221_v56  ;;  %v8628_v56 = vld [vmem:[%s11811_s5 + $0x48] sm:$0xff]   ;;  %v5935_v22 = vrot.slane %v12330_v30, 2  ;;  %v6236_v30 = vpop.permute.xlu1 %6235 }
 0x3cc   : > { %7980 = vmatprep.mubr.msk.bf16.mxu0 %vm728_vm2, %v5207_v47  ;;  %v5225_v47 = vsel %vm1175_vm3, %v5223_v19, %v5224_v33  ;;  %v5934_v33 = vrot.slane %v11086_v62, 2  ;;  %v5941_v19 = vrot.slane %v12332_v11, 2  ;;  %v6234_v62 = vpop.permute.xlu0 %6233 }
 0x3d0   : > { %v6238_v48 = vpop.permute.xlu0 %6237 }
 0x3d3   : > { %7981 = vmatmul.mubr.msk.bf16.gmra.mrb[44].mxu0 %vm728_vm2, %v5210_v35  ;;  %v5230_v35 = vrot.slane %v12331_v2, 1 }
 0x3d4   : > { %7984 = vmatprep.mubr.msk.bf16.mxu0 %vm728_vm2, %v5213_v32  ;;  %v5229_v32 = vrot.slane %v11163_v18, 1  ;;  %v6242_v9 = vpop.permute.xlu0 %6241 }
 0x3d6   : > { %v5231_v45 = vsel %vm1175_vm3, %v5229_v32, %v5230_v35 }
 0x3d8   : > { %v6246_v35 = vpop.permute.xlu0 %6245 }
 0x3db   : > { %7985 = vmatmul.mubr.msk.bf16.gmra.mrb[48].mxu0 %vm728_vm2, %v5216_v15  ;;  %v5232_v15 = vrot.slane %v11148_v29, 1 }
 0x3dc   : > { %7988 = vmatprep.mubr.msk.bf16.mxu0 %vm728_vm2, %v5219_v14 }
 0x3dd   : > { %v5234_v14 = vsel %vm1175_vm3, %v5232_v15, %v5233_v51 }
 0x3e3   : > { %7989 = vmatmul.mubr.msk.bf16.gmra.mrb[52].mxu0 %vm728_vm2, %v5222_v7  ;;  %v5940_v7 = vrot.slane %v11148_v29, 2 }
 0x3e4   : > { %7992 = vmatprep.mubr.msk.bf16.mxu0 %vm728_vm2, %v5225_v47 }
 0x3e5   : > { %v5942_v47 = vsel %vm1885_vm5, %v5940_v7, %v5941_v19  ;;  %v12344_v7 = vld [vmem:[#allocation25_spill] sm:$0xff] }
 0x3eb   : > { %7993 = vmatmul.mubr.msk.bf16.gmra.mrb[56].mxu0 %vm728_vm2, %v5228_v50  ;;  %v6250_v50 = vpop.permute.xlu0 %6249 }
 0x3ec   : > { %7996 = vmatprep.mubr.msk.bf16.mxu0 %vm728_vm2, %v5231_v45 }
 0x3ef   : > { %v6254_v51 = vpop.permute.xlu0 %6253 }
 0x3f3   : > { %7997 = vmatmul.mubr.msk.bf16.gmra.mrb[60].mxu0 %vm728_vm2, %v5234_v14 }
 0x3f4   : > { %8004 = vmatprep.mubr.msk.bf16.mxu0 %vm728_vm2, %v11224_v23  ;;  %v5895_v23 = vrot.slane %v10848_v52, 2 }
 0x3fb   : > { %8005 = vmatmul.mubr.msk.bf16.vlgmr.msra.gmra.mrb[32].mxu0 %vm728_vm2, %v11210_v53  ;;  %v5896_v53 = vrot.slane %v12317_v1, 2  ;;  %v5917_v1 = vrot.slane %v12324_v38, 2  ;;  %v5929_v38 = vrot.slane %v12328_v43, 2  ;;  %v5938_v43 = vrot.slane %v12331_v2, 2 }
 0x3fc   : > { %8037 = vmatpush3.bf16.msra.mxu0 %v8627_v57  ;;  %8008 = vmatprep.mubr.msk.bf16.mxu0 %vm728_vm2, %v11243_v39 }
 0x3fd   : > { %8038 = vmatprep.subr.bf16.mxu0 %v8628_v56  ;;  %v5897_v39 = vsel %vm1885_vm5, %v5895_v23, %v5896_v53 }
 0x400   : > { %8039 = vmatpush3.bf16.msra.mxu0 %v8628_v56  ;;  %v11561_v56 = vpop.permute.xlu0 %6257 }
 0x403   : > { %8009 = vmatmul.mubr.msk.bf16.gmra.mrb[36].mxu0 %vm728_vm2, %v11257_v40  ;;  %v5898_v40 = vrot.slane %v10826_v4, 2  ;;  %v5908_v4 = vrot.slane %v12321_v21, 2  ;;  %v5922_v21 = vrot.slane %v10975_v44, 2  ;;  %v5931_v44 = vrot.slane %v11106_v55, 2 }
 0x404   : > { %8012 = vmatprep.mubr.msk.bf16.mxu0 %vm728_vm2, %v11266_v12  ;;  %v5899_v12 = vrot.slane %v12318_v28, 2  ;;  %v5916_v28 = vrot.slane %v10945_v26, 2  ;;  %v5925_v26 = vrot.slane %v11034_v42, 2 }
 0x406   : > { %v5918_v57 = vsel %vm1885_vm5, %v5916_v28, %v5917_v1 }
 0x40b   : > { %8013 = vmatmul.mubr.msk.bf16.gmra.mrb[40].mxu0 %vm728_vm2, %v11273_v46  ;;  %v5902_v46 = vrot.slane %v12319_v27, 2  ;;  %v5920_v27 = vrot.slane %v12325_v63, 2  ;;  %v5928_v63 = vrot.slane %v11018_v5, 2  ;;  %v5937_v5 = vrot.slane %v11163_v18, 2  ;;  %v6240_v18 = vpop.permute.xlu1 %6239 }
 0x40c   : > { %8016 = vmatprep.mubr.msk.bf16.mxu0 %vm728_vm2, %v11280_v16  ;;  %v5901_v16 = vrot.slane %v10870_v25, 2 }
 0x40d   : > { %v5939_v55 = vsel %vm1885_vm5, %v5937_v5, %v5938_v43 }
 0x40e   : > { %v5903_v52 = vsel %vm1885_vm5, %v5901_v16, %v5902_v46  ;;  %v11565_v16 = vpop.permute.xlu0 %6261 }
 0x40f   : > { %v6244_v2 = vpop.permute.xlu1 %6243 }
 0x413   : > { %8017 = vmatmul.mubr.msk.bf16.gmra.mrb[44].mxu0 %vm728_vm2, %v11289_v13  ;;  %v5900_v13 = vsel %vm1885_vm5, %v5898_v40, %v5899_v12  ;;  %v6248_v32 = vpop.permute.xlu1 %6247 }
 0x414   : > { %8020 = vmatprep.mubr.msk.bf16.mxu0 %vm728_vm2, %v11305_v54  ;;  %v5905_v54 = vrot.slane %v12320_v8, 2  ;;  %v5923_v8 = vrot.slane %v12326_v36, 2  ;;  %v5932_v36 = vrot.slane %v12329_v49, 2  ;;  %v5936_v49 = vsel %vm1885_vm5, %v5934_v33, %v5935_v22 }
 0x416   : > { %v5933_v42 = vsel %vm1885_vm5, %v5931_v44, %v5932_v36 }
 0x417   : > { %v11557_v45 = vpop.permute.xlu1 %6251 }
 0x41b   : > { %8021 = vmatmul.mubr.msk.bf16.gmra.mrb[48].mxu0 %vm728_vm2, %v11312_v3  ;;  %v5904_v3 = vrot.slane %v10866_v10, 2  ;;  %v5913_v10 = vrot.slane %v10952_v6, 2  ;;  %v11559_v15 = vpop.permute.xlu1 %6255 }
 0x41c   : > { %8024 = vmatprep.mubr.msk.bf16.mxu0 %vm728_vm2, %v11321_v20  ;;  %v5907_v20 = vrot.slane %v10912_v59, 2 }
 0x41e   : > { %v5909_v25 = vsel %vm1885_vm5, %v5907_v20, %v5908_v4  ;;  %v12333_v4 = vld [vmem:[#allocation21_spill] sm:$0xff] }
 0x41f   : > { %v11563_v12 = vpop.permute.xlu1 %6259  ;;  %v6395_v20 = vsub.f32 1.0, %v12333_v4 }
 0x423   : > { %8025 = vmatmul.mubr.msk.bf16.gmra.mrb[52].mxu0 %vm728_vm2, %v11333_v17  ;;  %v5906_v17 = vsel %vm1885_vm5, %v5904_v3, %v5905_v54  ;;  %v11567_v3 = vpop.permute.xlu1 %6263 }
 0x424   : > { %8028 = vmatprep.mubr.msk.bf16.mxu0 %vm728_vm2, %v11349_v24  ;;  %v5911_v24 = vrot.slane %v12322_v31, 2  ;;  %v5926_v31 = vrot.slane %v12327_v60, 2  ;;  %v5930_v60 = vsel %vm1885_vm5, %v5928_v63, %v5929_v38 }
 0x427   : > { %v11585_v43 = vpop.permute.xlu1 %6267 }
 0x42b   : > { %8029 = vmatmul.mubr.msk.bf16.gmra.mrb[56].mxu0 %vm728_vm2, %v11354_v0  ;;  %v5910_v0 = vrot.slane %v10901_v34, 2  ;;  %v5919_v34 = vrot.slane %v10981_v41, 2  ;;  %v5927_v41 = vsel %vm1885_vm5, %v5925_v26, %v5926_v31 }
 0x42c   : > { %8032 = vmatprep.mubr.msk.bf16.mxu0 %vm728_vm2, %v11357_v37  ;;  %v5914_v37 = vrot.slane %v12323_v58, 2  ;;  %v5924_v58 = vsel %vm1885_vm5, %v5922_v21, %v5923_v8  ;;  %v12337_v8 = vld [vmem:[#allocation3_spill] sm:$0xff] }
 0x42d   : > { %v5921_v6 = vsel %vm1885_vm5, %v5919_v34, %v5920_v27  ;;  %v12338_v21 = vunpack.c.l.bf16 %v12337_v8  ;;  %v12341_v44 = vunpack.c.h.bf16 %v12337_v8  ;;  %v12352_v8 = vld [vmem:[#allocation28_spill] sm:$0xff] }
 0x42e   : > { %v5915_v59 = vsel %vm1885_vm5, %v5913_v10, %v5914_v37  ;;  %v12335_v37 = vld [vmem:[#allocation22_spill] sm:$0xff] }
 0x42f   : > { %v6396_v10 = vsub.f32 1.0, %v12335_v37  ;;  %v6427_v31 = vmul.f32 %v6395_v20, %v12338_v21  ;;  %v6403_v21 = vsub.f32 1.0, %v12352_v8 }
 0x433   : > { %8033 = vmatmul.mubr.msk.bf16.gmra.mrb[60].mxu0 %vm728_vm2, %v11360_v61  ;;  %v5912_v61 = vsel %vm1885_vm5, %v5910_v0, %v5911_v24 }
 0x434   : > { %8040 = vmatprep.mubr.msk.bf16.mxu0 %vm728_vm2, %v5897_v39 }
 0x43b   : > { %8041 = vmatmul.mubr.msk.bf16.vlgmr.msra.gmra.mrb[32].mxu0 %vm728_vm2, %v5900_v13 }
 0x43c   : > { %8044 = vmatprep.mubr.msk.bf16.mxu0 %vm728_vm2, %v5903_v52 }
 0x443   : > { %8045 = vmatmul.mubr.msk.bf16.gmra.mrb[36].mxu0 %vm728_vm2, %v5906_v17  ;;  %v12334_v17 = vld [vmem:[#allocation12_spill] sm:$0xff] }
 0x444   : > { %8048 = vmatprep.mubr.msk.bf16.mxu0 %vm728_vm2, %v5909_v25  ;;  %v6393_v25 = vsub.f32 1.0, %v12334_v17 }
 0x44b   : > { %8049 = vmatmul.mubr.msk.bf16.gmra.mrb[40].mxu0 %vm728_vm2, %v5912_v61  ;;  %v12336_v61 = vld [vmem:[#allocation23_spill] sm:$0xff] }
 0x44c   : > { %8052 = vmatprep.mubr.msk.bf16.mxu0 %vm728_vm2, %v5915_v59  ;;  %v6394_v59 = vsub.f32 1.0, %v12336_v61 }
 0x453   : > { %8053 = vmatmul.mubr.msk.bf16.gmra.mrb[44].mxu0 %vm728_vm2, %v5918_v57 }
 0x454   : > { %8056 = vmatprep.mubr.msk.bf16.mxu0 %vm728_vm2, %v5921_v6  ;;  %v11573_v6 = vpop.permute.xlu0 %6265 }
 0x45b   : > { %8057 = vmatmul.mubr.msk.bf16.gmra.mrb[48].mxu0 %vm728_vm2, %v5924_v58 }
 0x45c   : > { %8060 = vmatprep.mubr.msk.bf16.mxu0 %vm728_vm2, %v5927_v41  ;;  %v12339_v41 = vld [vmem:[#allocation2_spill] sm:$0xff] }
 0x45d   : > { %v12340_v38 = vunpack.c.l.bf16 %v12339_v41 }
 0x45f   : > { %v6425_v63 = vmul.f32 %v6393_v25, %v12340_v38 }
 0x463   : > { %8061 = vmatmul.mubr.msk.bf16.gmra.mrb[52].mxu0 %vm728_vm2, %v5930_v60  ;;  %v6428_v60 = vmul.f32 %v6396_v10, %v12341_v44 }
 0x464   : > { %8064 = vmatprep.mubr.msk.bf16.mxu0 %vm728_vm2, %v5933_v42  ;;  %v12342_v42 = vunpack.c.h.bf16 %v12339_v41 }
 0x466   : > { %v6426_v22 = vmul.f32 %v6394_v59, %v12342_v42 }
 0x46b   : > { %8065 = vmatmul.mubr.msk.bf16.gmra.mrb[56].mxu0 %vm728_vm2, %v5936_v49 }
 0x46c   : > { %8068 = vmatprep.mubr.msk.bf16.mxu0 %vm728_vm2, %v5939_v55  ;;  %v12343_v55 = vld [vmem:[#allocation24_spill] sm:$0xff] }
 0x46d   : > { %v6399_v19 = vsub.f32 1.0, %v12343_v55 }
 0x473   : > { %8069 = vmatmul.mubr.msk.bf16.gmra.mrb[60].mxu0 %vm728_vm2, %v5942_v47  ;;  %v6397_v47 = vsub.f32 1.0, %v12344_v7 }
 0x50e   : > { %v8042_v11 = vpop.f32.mrb[32].mxu0 }
 0x50f   : > { %v6331_v29 = vadd.f32 %v8042_v11, %v6238_v48  ;;  %v6042_v14 = vpop.f32.mrb[33].mxu0 }
 0x510   : > { %v6329_v53 = vadd.f32 %v6234_v62, %v6042_v14  ;;  %v8043_v23 = vpop.f32.mrb[34].mxu0 }
 0x511   : > { %8773 = vtanh.f32 %v6331_v29  ;;  %v6332_v39 = vadd.f32 %v8043_v23, %v6240_v18  ;;  %v6045_v40 = vpop.f32.mrb[35].mxu0 }
 0x512   : > { %8775 = vtanh.f32 %v6329_v53  ;;  %v6330_v46 = vadd.f32 %v6236_v30, %v6045_v40 }
 0x513   : > { %8777 = vtanh.f32 %v6332_v39 }
 0x514   : > { %8779 = vtanh.f32 %v6330_v46  ;;  %v11599_v46 = vpop.permute.xlu0 %6269 }
 0x516   : > { %v8046_v13 = vpop.f32.mrb[36].mxu0 }
 0x517   : > { %v6335_v52 = vadd.f32 %v8046_v13, %v6246_v35  ;;  %v6058_v54 = vpop.f32.mrb[37].mxu0 }
 0x518   : > { %v6333_v24 = vadd.f32 %v6242_v9, %v6058_v54  ;;  %v8047_v0 = vpop.f32.mrb[38].mxu0  ;;  %v12346_v54 = vld [vmem:[#allocation27_spill] sm:$0xff]  ;;  %v11628_v42 = vpop.permute.xlu0 %6273 }
 0x519   : > { %8781 = vtanh.f32 %v6335_v52  ;;  %v6336_v1 = vadd.f32 %v8047_v0, %v6248_v32  ;;  %v6061_v28 = vpop.f32.mrb[39].mxu0  ;;  %v12345_v32 = vld [vmem:[#allocation26_spill] sm:$0xff] }
 0x51a   : > { %8783 = vtanh.f32 %v6333_v24  ;;  %v6334_v27 = vadd.f32 %v6244_v2, %v6061_v28  ;;  %v6400_v11 = vsub.f32 1.0, %v12345_v32 }
 0x51b   : > { %v8774_v34 = vpop.eup %8773  ;;  %8785 = vtanh.f32 %v6336_v1 }
 0x51c   : > { %v8776_v57 = vpop.eup %8775  ;;  %v6459_v26 = vmul.f32 %v8774_v34, %v12333_v4  ;;  %8787 = vtanh.f32 %v6334_v27  ;;  %v6398_v4 = vsub.f32 1.0, %v12346_v54 }
 0x51d   : > { %v8778_v58 = vpop.eup %8777  ;;  %v6457_v36 = vmul.f32 %v8776_v57, %v12334_v17  ;;  %v11607_v17 = vpop.permute.xlu1 %6271 }
 0x51e   : > { %v8780_v33 = vpop.eup %8779  ;;  %v6491_v5 = vadd.f32 %v6459_v26, %v6427_v31  ;;  %v6460_v49 = vmul.f32 %v8778_v58, %v12335_v37  ;;  %v8050_v62 = vpop.f32.mrb[40].mxu0  ;;  %v12353_v31 = vld [vmem:[#allocation29_spill] sm:$0xff] }
 0x51f   : > { %v6489_v30 = vadd.f32 %v6457_v36, %v6425_v63  ;;  %v6458_v48 = vmul.f32 %v8780_v33, %v12336_v61  ;;  %v6339_v18 = vadd.f32 %v8050_v62, %v6254_v51  ;;  %v6074_v9 = vpop.f32.mrb[41].mxu0  ;;  %v6401_v26 = vsub.f32 1.0, %v12353_v31 }
 0x520   : > { %v7232_v2 = vpack.c.bf16 %v6491_v5, %v6491_v5  ;;  %v6492_v35 = vadd.f32 %v6460_v49, %v6428_v60  ;;  %v6337_v29 = vadd.f32 %v6250_v50, %v6074_v9  ;;  %v8051_v14 = vpop.f32.mrb[42].mxu0  ;;  %v12355_v5 = vld [vmem:[#allocation30_spill] sm:$0xff] }
 0x521   : > { %v7230_v53 = vpack.c.bf16 %v6489_v30, %v6489_v30  ;;  %v6490_v23 = vadd.f32 %v6458_v48, %v6426_v22  ;;  %8789 = vtanh.f32 %v6339_v18  ;;  %v6340_v39 = vadd.f32 %v8051_v14, %v11559_v15  ;;  %v6077_v40 = vpop.f32.mrb[43].mxu0  ;;  %v12347_v15 = vld [vmem:[#allocation5_spill] sm:$0xff]  ;;  %v11633_v48 = vpop.permute.xlu1 %6275  ;;  %v12356_v18 = vld [vmem:[#allocation31_spill] sm:$0xff] }
 0x522   : > { %6652 = vst.msk [vmem:[%s11594_s15 + $0x8] sm:$0xf] %vm6649_vm6, %v7232_v2  ;;  %v7233_v51 = vpack.c.bf16 %v6492_v35, %v6492_v35  ;;  %8791 = vtanh.f32 %v6337_v29  ;;  %v6338_v13 = vadd.f32 %v11557_v45, %v6077_v40  ;;  %v12348_v25 = vunpack.c.l.bf16 %v12347_v15  ;;  %v12349_v45 = vld [vmem:[#allocation4_spill] sm:$0xff] }
 0x523   : > { %v8782_v52 = vpop.eup %8781  ;;  %6650 = vst.msk [vmem:[%s11594_s15] sm:$0xf] %vm6649_vm6, %v7230_v53  ;;  %v7231_v50 = vpack.c.bf16 %v6490_v23, %v6490_v23  ;;  %8793 = vtanh.f32 %v6340_v39  ;;  %v12350_v10 = vunpack.c.l.bf16 %v12349_v45  ;;  %v12351_v1 = vunpack.c.h.bf16 %v12347_v15  ;;  %v12359_v23 = vld [vmem:[#allocation6_spill] sm:$0xff] }
 0x524   : > { %v8784_v20 = vpop.eup %8783  ;;  %6653 = vst.msk [vmem:[%s11594_s15 + $0xc] sm:$0xf] %vm6649_vm6, %v7233_v51  ;;  %v6431_v24 = vmul.f32 %v6399_v19, %v12348_v25  ;;  %v6463_v0 = vmul.f32 %v8782_v52, %v12343_v55  ;;  %8795 = vtanh.f32 %v6338_v13  ;;  %v12354_v38 = vunpack.c.h.bf16 %v12349_v45  ;;  %v12363_v25 = vld [vmem:[#allocation32_spill] sm:$0xff] }
 0x525   : > { %v8786_v37 = vpop.eup %8785  ;;  %6651 = vst.msk [vmem:[%s11594_s15 + $0x4] sm:$0xf] %vm6649_vm6, %v7231_v50  ;;  %v6429_v61 = vmul.f32 %v6397_v47, %v12350_v10  ;;  %v6461_v59 = vmul.f32 %v8784_v20, %v12344_v7  ;;  %v6432_v28 = vmul.f32 %v6400_v11, %v12351_v1  ;;  %v6404_v49 = vsub.f32 1.0, %v12355_v5  ;;  %v6278_v50 = vpop.permute.xlu0 %6277  ;;  %v12364_v10 = vld [vmem:[#allocation33_spill] sm:$0xff] }
 0x526   : > { %v8788_v27 = vpop.eup %8787  ;;  %v6495_v34 = vadd.f32 %v6463_v0, %v6431_v24  ;;  %v6464_v57 = vmul.f32 %v8786_v37, %v12345_v32  ;;  %v8054_v58 = vpop.f32.mrb[44].mxu0  ;;  %v6430_v63 = vmul.f32 %v6398_v4, %v12354_v38  ;;  %v6402_v9 = vsub.f32 1.0, %v12356_v18 }
 0x527   : > { %v6493_v41 = vadd.f32 %v6461_v59, %v6429_v61  ;;  %v6462_v36 = vmul.f32 %v8788_v27, %v12346_v54  ;;  %v6343_v44 = vadd.f32 %v8054_v58, %v11565_v16  ;;  %v6090_v60 = vpop.f32.mrb[45].mxu0  ;;  %v12360_v39 = vunpack.c.l.bf16 %v12359_v23 }
 0x528   : > { %v7236_v22 = vpack.c.bf16 %v6495_v34, %v6495_v34  ;;  %v6496_v33 = vadd.f32 %v6464_v57, %v6432_v28  ;;  %v6341_v55 = vadd.f32 %v11561_v56, %v6090_v60  ;;  %v8055_v19 = vpop.f32.mrb[46].mxu0  ;;  %v12362_v20 = vunpack.c.h.bf16 %v12359_v23  ;;  %v6280_v28 = vpop.permute.xlu1 %6279  ;;  %v12365_v57 = vld [vmem:[#allocation34_spill] sm:$0xff] }
 0x529   : > { %v7234_v7 = vpack.c.bf16 %v6493_v41, %v6493_v41  ;;  %v6494_v47 = vadd.f32 %v6462_v36, %v6430_v63  ;;  %8797 = vtanh.f32 %v6343_v44  ;;  %v6344_v62 = vadd.f32 %v8055_v19, %v11567_v3  ;;  %v6093_v30 = vpop.f32.mrb[47].mxu0  ;;  %v12357_v3 = vld [vmem:[#allocation7_spill] sm:$0xff] }
 0x52a   : > { %6656 = vst.msk [vmem:[%s11594_s15 + $0x18] sm:$0xf] %vm6649_vm6, %v7236_v22  ;;  %v7237_v16 = vpack.c.bf16 %v6496_v33, %v6496_v33  ;;  %8799 = vtanh.f32 %v6341_v55  ;;  %v6342_v2 = vadd.f32 %v11563_v12, %v6093_v30  ;;  %v12358_v11 = vunpack.c.l.bf16 %v12357_v3  ;;  %v12366_v63 = vld [vmem:[#allocation35_spill] sm:$0xff]  ;;  %v11669_v33 = vpop.permute.xlu0 %6281 }
 0x52b   : > { %v8790_v56 = vpop.eup %8789  ;;  %6654 = vst.msk [vmem:[%s11594_s15 + $0x10] sm:$0xf] %vm6649_vm6, %v7234_v7  ;;  %v7235_v35 = vpack.c.bf16 %v6494_v47, %v6494_v47  ;;  %8801 = vtanh.f32 %v6344_v62  ;;  %v6433_v12 = vmul.f32 %v6401_v26, %v12360_v39  ;;  %v12361_v51 = vunpack.c.h.bf16 %v12357_v3 }
 0x52c   : > { %v8792_v32 = vpop.eup %8791  ;;  %6657 = vst.msk [vmem:[%s11594_s15 + $0x1c] sm:$0xf] %vm6649_vm6, %v7237_v16  ;;  %v6435_v29 = vmul.f32 %v6403_v21, %v12358_v11  ;;  %v6467_v14 = vmul.f32 %v8790_v56, %v12352_v8  ;;  %8803 = vtanh.f32 %v6342_v2  ;;  %v6434_v15 = vmul.f32 %v6402_v9, %v12362_v20  ;;  %v11681_v16 = vpop.permute.xlu1 %6283 }
 0x52d   : > { %v8794_v53 = vpop.eup %8793  ;;  %6655 = vst.msk [vmem:[%s11594_s15 + $0x14] sm:$0xf] %vm6649_vm6, %v7235_v35  ;;  %v6465_v40 = vmul.f32 %v8792_v32, %v12353_v31  ;;  %v6436_v13 = vmul.f32 %v6404_v49, %v12361_v51  ;;  %v6407_v24 = vsub.f32 1.0, %v12363_v25  ;;  %v6405_v61 = vsub.f32 1.0, %v12364_v10  ;;  %v12374_v51 = vld [vmem:[#allocation37_spill] sm:$0xff] }
 0x52e   : > { %v8796_v52 = vpop.eup %8795  ;;  %v6499_v54 = vadd.f32 %v6467_v14, %v6435_v29  ;;  %v6468_v4 = vmul.f32 %v8794_v53, %v12355_v5  ;;  %v8058_v0 = vpop.f32.mrb[48].mxu0  ;;  %v6408_v8 = vsub.f32 1.0, %v12365_v57  ;;  %v6406_v36 = vsub.f32 1.0, %v12366_v63  ;;  %v12373_v14 = vld [vmem:[#allocation36_spill] sm:$0xff] }
 0x52f   : > { %v6497_v37 = vadd.f32 %v6465_v40, %v6433_v12  ;;  %v6466_v45 = vmul.f32 %v8796_v52, %v12356_v18  ;;  %v6347_v59 = vadd.f32 %v8058_v0, %v11599_v46  ;;  %v6106_v1 = vpop.f32.mrb[49].mxu0  ;;  %v6411_v53 = vsub.f32 1.0, %v12373_v14 }
 0x530   : > { %v7240_v27 = vpack.c.bf16 %v6499_v54, %v6499_v54  ;;  %v6500_v34 = vadd.f32 %v6468_v4, %v6436_v13  ;;  %v6345_v21 = vadd.f32 %v11573_v6, %v6106_v1  ;;  %v8059_v31 = vpop.f32.mrb[50].mxu0  ;;  %v6409_v13 = vsub.f32 1.0, %v12374_v51 }
 0x531   : > { %v7238_v26 = vpack.c.bf16 %v6497_v37, %v6497_v37  ;;  %v6498_v58 = vadd.f32 %v6466_v45, %v6434_v15  ;;  %8805 = vtanh.f32 %v6347_v59  ;;  %v6348_v41 = vadd.f32 %v8059_v31, %v11607_v17  ;;  %v6109_v38 = vpop.f32.mrb[51].mxu0  ;;  %v12367_v17 = vld [vmem:[#allocation9_spill] sm:$0xff] }
 0x532   : > { %6660 = vst.msk [vmem:[%s11594_s15 + $0x28] sm:$0xf] %vm6649_vm6, %v7240_v27  ;;  %v7241_v46 = vpack.c.bf16 %v6500_v34, %v6500_v34  ;;  %8807 = vtanh.f32 %v6345_v21  ;;  %v6346_v44 = vadd.f32 %v11585_v43, %v6109_v38  ;;  %v12368_v5 = vunpack.c.l.bf16 %v12367_v17  ;;  %v12369_v43 = vld [vmem:[#allocation8_spill] sm:$0xff]  ;;  %v12377_v27 = vld [vmem:[#allocation14_spill] sm:$0xff] }
 0x533   : > { %v8798_v60 = vpop.eup %8797  ;;  %6658 = vst.msk [vmem:[%s11594_s15 + $0x20] sm:$0xf] %vm6649_vm6, %v7238_v26  ;;  %v7239_v6 = vpack.c.bf16 %v6498_v58, %v6498_v58  ;;  %8809 = vtanh.f32 %v6348_v41  ;;  %v12370_v7 = vunpack.c.l.bf16 %v12369_v43  ;;  %v12371_v9 = vunpack.c.h.bf16 %v12367_v17  ;;  %v12381_v41 = vld [vmem:[#allocation40_spill] sm:$0xff] }
 0x534   : > { %v8800_v22 = vpop.eup %8799  ;;  %6661 = vst.msk [vmem:[%s11594_s15 + $0x2c] sm:$0xf] %vm6649_vm6, %v7241_v46  ;;  %v6439_v49 = vmul.f32 %v6407_v24, %v12368_v5  ;;  %v6471_v55 = vmul.f32 %v8798_v60, %v12363_v25  ;;  %8811 = vtanh.f32 %v6346_v44  ;;  %v12372_v35 = vunpack.c.h.bf16 %v12369_v43  ;;  %v6286_v24 = vpop.permute.xlu0 %6285 }
 0x535   : > { %v8802_v19 = vpop.eup %8801  ;;  %6659 = vst.msk [vmem:[%s11594_s15 + $0x24] sm:$0xf] %vm6649_vm6, %v7239_v6  ;;  %v6437_v47 = vmul.f32 %v6405_v61, %v12370_v7  ;;  %v6469_v62 = vmul.f32 %v8800_v22, %v12364_v10  ;;  %v6440_v2 = vmul.f32 %v6408_v8, %v12371_v9  ;;  %v12376_v61 = vld [vmem:[#allocation39_spill] sm:$0xff]  ;;  %v12378_v34 = vunpack.c.l.bf16 %v12377_v27  ;;  %v12383_v6 = vld [vmem:[#allocation41_spill] sm:$0xff] }
 0x536   : > { %v8804_v30 = vpop.eup %8803  ;;  %v6503_v18 = vadd.f32 %v6471_v55, %v6439_v49  ;;  %v6472_v56 = vmul.f32 %v8802_v19, %v12365_v57  ;;  %v6438_v32 = vmul.f32 %v6406_v36, %v12372_v35  ;;  %v8062_v3 = vpop.f32.mrb[52].mxu0  ;;  %v6410_v59 = vsub.f32 1.0, %v12376_v61 }
 0x537   : > { %v6501_v11 = vadd.f32 %v6469_v62, %v6437_v47  ;;  %v6470_v29 = vmul.f32 %v8804_v30, %v12366_v63  ;;  %v6351_v23 = vadd.f32 %v8062_v3, %v6278_v50  ;;  %v6122_v39 = vpop.f32.mrb[53].mxu0  ;;  %v12375_v50 = vld [vmem:[#allocation38_spill] sm:$0xff]  ;;  %v6443_v57 = vmul.f32 %v6411_v53, %v12378_v34  ;;  %v12386_v53 = vld [vmem:[#allocation43_spill] sm:$0xff] }
 0x538   : > { %v7244_v12 = vpack.c.bf16 %v6503_v18, %v6503_v18  ;;  %v6504_v40 = vadd.f32 %v6472_v56, %v6440_v2  ;;  %v6349_v52 = vadd.f32 %v11628_v42, %v6122_v39  ;;  %v8063_v54 = vpop.f32.mrb[54].mxu0  ;;  %v6412_v37 = vsub.f32 1.0, %v12375_v50  ;;  %v6290_v47 = vpop.permute.xlu0 %6289  ;;  %v12385_v18 = vld [vmem:[#allocation42_spill] sm:$0xff] }
 0x539   : > { %v7242_v4 = vpack.c.bf16 %v6501_v11, %v6501_v11  ;;  %v6502_v20 = vadd.f32 %v6470_v29, %v6438_v32  ;;  %8813 = vtanh.f32 %v6351_v23  ;;  %v6352_v15 = vadd.f32 %v8063_v54, %v6280_v28  ;;  %v6125_v25 = vpop.f32.mrb[55].mxu0  ;;  %v6288_v28 = vpop.permute.xlu1 %6287 }
 0x53a   : > { %6664 = vst.msk [vmem:[%s11594_s15 + $0x38] sm:$0xf] %vm6649_vm6, %v7244_v12  ;;  %v7245_v0 = vpack.c.bf16 %v6504_v40, %v6504_v40  ;;  %8815 = vtanh.f32 %v6349_v52  ;;  %v6350_v45 = vadd.f32 %v11633_v48, %v6125_v25  ;;  %v12379_v48 = vld [vmem:[#allocation10_spill] sm:$0xff]  ;;  %v6415_v38 = vsub.f32 1.0, %v12381_v41 }
 0x53b   : > { %v8806_v10 = vpop.eup %8805  ;;  %6662 = vst.msk [vmem:[%s11594_s15 + $0x30] sm:$0xf] %vm6649_vm6, %v7242_v4  ;;  %v7243_v42 = vpack.c.bf16 %v6502_v20, %v6502_v20  ;;  %8817 = vtanh.f32 %v6352_v15  ;;  %v12380_v31 = vunpack.c.l.bf16 %v12379_v48  ;;  %v12382_v36 = vunpack.c.h.bf16 %v12377_v27  ;;  %v12389_v20 = vld [vmem:[#allocation15_spill] sm:$0xff]  ;;  %v12393_v27 = vld [vmem:[#allocation44_spill] sm:$0xff] }
 0x53c   : > { %v8808_v1 = vpop.eup %8807  ;;  %6665 = vst.msk [vmem:[%s11594_s15 + $0x3c] sm:$0xf] %vm6649_vm6, %v7245_v0  ;;  %v6475_v8 = vmul.f32 %v8806_v10, %v12373_v14  ;;  %8819 = vtanh.f32 %v6350_v45  ;;  %v6413_v22 = vsub.f32 1.0, %v12383_v6  ;;  %v12384_v49 = vunpack.c.h.bf16 %v12379_v48  ;;  %v6294_v0 = vpop.permute.xlu0 %6293 }
 0x53d   : > { %v8810_v21 = vpop.eup %8809  ;;  %6663 = vst.msk [vmem:[%s11594_s15 + $0x34] sm:$0xf] %vm6649_vm6, %v7243_v42  ;;  %v6441_v26 = vmul.f32 %v6409_v13, %v12380_v31  ;;  %v6473_v58 = vmul.f32 %v8808_v1, %v12374_v51  ;;  %v6444_v44 = vmul.f32 %v6412_v37, %v12382_v36  ;;  %v6416_v9 = vsub.f32 1.0, %v12385_v18  ;;  %v6292_v29 = vpop.permute.xlu1 %6291  ;;  %v12387_v51 = vld [vmem:[#allocation16_spill] sm:$0xff] }
 0x53e   : > { %v8812_v46 = vpop.eup %8811  ;;  %v6507_v63 = vadd.f32 %v6475_v8, %v6443_v57  ;;  %v6476_v60 = vmul.f32 %v8810_v21, %v12375_v50  ;;  %v8066_v17 = vpop.f32.mrb[56].mxu0  ;;  %v6442_v55 = vmul.f32 %v6410_v59, %v12384_v49  ;;  %v6414_v23 = vsub.f32 1.0, %v12386_v53 }
 0x53f   : > { %v6505_v5 = vadd.f32 %v6473_v58, %v6441_v26  ;;  %v6474_v19 = vmul.f32 %v8812_v46, %v12376_v61  ;;  %v6355_v43 = vadd.f32 %v8066_v17, %v6286_v24  ;;  %v6138_v7 = vpop.f32.mrb[57].mxu0  ;;  %v12388_v13 = vunpack.c.l.bf16 %v12387_v51  ;;  %v12394_v26 = vld [vmem:[#allocation45_spill] sm:$0xff] }
 0x540   : > { %v7248_v62 = vpack.c.bf16 %v6507_v63, %v6507_v63  ;;  %v6508_v30 = vadd.f32 %v6476_v60, %v6444_v44  ;;  %v6353_v2 = vadd.f32 %v11669_v33, %v6138_v7  ;;  %v8067_v56 = vpop.f32.mrb[58].mxu0  ;;  %v12390_v15 = vunpack.c.l.bf16 %v12389_v20  ;;  %v12397_v7 = vld [vmem:[#allocation18_spill] sm:$0xff] }
 0x541   : > { %v7246_v35 = vpack.c.bf16 %v6505_v5, %v6505_v5  ;;  %v6506_v32 = vadd.f32 %v6474_v19, %v6442_v55  ;;  %8821 = vtanh.f32 %v6355_v43  ;;  %v6356_v3 = vadd.f32 %v8067_v56, %v6288_v28  ;;  %v6141_v11 = vpop.f32.mrb[59].mxu0  ;;  %v6296_v21 = vpop.permute.xlu1 %6295  ;;  %v12396_v55 = vld [vmem:[#allocation13_spill] sm:$0xff] }
 0x542   : > { %6668 = vst.msk [vmem:[%s11594_s15 + $0x48] sm:$0xf] %vm6649_vm6, %v7248_v62  ;;  %v7249_v14 = vpack.c.bf16 %v6508_v30, %v6508_v30  ;;  %8823 = vtanh.f32 %v6353_v2  ;;  %v6354_v39 = vadd.f32 %v11681_v16, %v6141_v11  ;;  %v6447_v52 = vmul.f32 %v6415_v38, %v12388_v13 }
 0x543   : > { %v8814_v12 = vpop.eup %8813  ;;  %6666 = vst.msk [vmem:[%s11594_s15 + $0x40] sm:$0xf] %vm6649_vm6, %v7246_v35  ;;  %v7247_v33 = vpack.c.bf16 %v6506_v32, %v6506_v32  ;;  %8825 = vtanh.f32 %v6356_v3  ;;  %v6445_v16 = vmul.f32 %v6413_v22, %v12390_v15  ;;  %v12391_v37 = vunpack.c.h.bf16 %v12387_v51  ;;  %v12403_v51 = vld [vmem:[#allocation46_spill] sm:$0xff] }
 0x544   : > { %v8816_v40 = vpop.eup %8815  ;;  %6669 = vst.msk [vmem:[%s11594_s15 + $0x4c] sm:$0xf] %vm6649_vm6, %v7249_v14  ;;  %v6479_v54 = vmul.f32 %v8814_v12, %v12381_v41  ;;  %8827 = vtanh.f32 %v6354_v39  ;;  %v12392_v42 = vunpack.c.h.bf16 %v12389_v20  ;;  %v6419_v34 = vsub.f32 1.0, %v12393_v27 }
 0x545   : > { %v8818_v4 = vpop.eup %8817  ;;  %6667 = vst.msk [vmem:[%s11594_s15 + $0x44] sm:$0xf] %vm6649_vm6, %v7247_v33  ;;  %v6477_v25 = vmul.f32 %v8816_v40, %v12383_v6  ;;  %v6448_v45 = vmul.f32 %v6416_v9, %v12391_v37  ;;  %v6417_v58 = vsub.f32 1.0, %v12394_v26  ;;  %v12395_v6 = vld [vmem:[#allocation11_spill] sm:$0xff]  ;;  %v6418_v19 = vsub.f32 1.0, %v12396_v55  ;;  %v12399_v9 = vld [vmem:[#allocation17_spill] sm:$0xff] }
 0x546   : > { %v8820_v24 = vpop.eup %8819  ;;  %v6511_v50 = vadd.f32 %v6479_v54, %v6447_v52  ;;  %v6480_v10 = vmul.f32 %v8818_v4, %v12385_v18  ;;  %v6446_v61 = vmul.f32 %v6414_v23, %v12392_v42  ;;  %v8070_v59 = vpop.f32.mrb[60].mxu0  ;;  %v6420_v22 = vsub.f32 1.0, %v12395_v6  ;;  %v12404_v4 = vld [vmem:[#allocation47_spill] sm:$0xff] }
 0x547   : > { %v6509_v1 = vadd.f32 %v6477_v25, %v6445_v16  ;;  %v6478_v28 = vmul.f32 %v8820_v24, %v12386_v53  ;;  %v6359_v57 = vadd.f32 %v8070_v59, %v6294_v0  ;;  %v6154_v8 = vpop.f32.mrb[61].mxu0  ;;  %v12400_v2 = vunpack.c.l.bf16 %v12399_v9  ;;  %v12405_v16 = vld [vmem:[#allocation48_spill] sm:$0xff] }
 0x548   : > { %v7252_v48 = vpack.c.bf16 %v6511_v50, %v6511_v50  ;;  %v6512_v31 = vadd.f32 %v6480_v10, %v6448_v45  ;;  %v6357_v41 = vadd.f32 %v6290_v47, %v6154_v8  ;;  %v8071_v38 = vpop.f32.mrb[62].mxu0  ;;  %v12398_v47 = vunpack.c.l.bf16 %v12397_v7  ;;  %v12406_v50 = vld [vmem:[#allocation49_spill] sm:$0xff]  ;;  %v12407_v10 = vld [vmem:[#allocation20_spill] sm:$0xff] }
 0x549   : > { %v7250_v46 = vpack.c.bf16 %v6509_v1, %v6509_v1  ;;  %v6510_v63 = vadd.f32 %v6478_v28, %v6446_v61  ;;  %8829 = vtanh.f32 %v6359_v57  ;;  %v6360_v36 = vadd.f32 %v8071_v38, %v6296_v21  ;;  %v6157_v44 = vpop.f32.mrb[63].mxu0  ;;  %v12409_v28 = vld [vmem:[#allocation19_spill] sm:$0xff] }
 0x54a   : > { %6672 = vst.msk [vmem:[%s11594_s15 + $0x58] sm:$0xf] %vm6649_vm6, %v7252_v48  ;;  %v7253_v60 = vpack.c.bf16 %v6512_v31, %v6512_v31  ;;  %8831 = vtanh.f32 %v6357_v41  ;;  %v6358_v17 = vadd.f32 %v6292_v29, %v6157_v44  ;;  %v6451_v62 = vmul.f32 %v6419_v34, %v12398_v47 }
 0x54b   : > { %v8822_v5 = vpop.eup %8821  ;;  %6670 = vst.msk [vmem:[%s11594_s15 + $0x50] sm:$0xf] %vm6649_vm6, %v7250_v46  ;;  %v7251_v49 = vpack.c.bf16 %v6510_v63, %v6510_v63  ;;  %8833 = vtanh.f32 %v6360_v36  ;;  %v6449_v56 = vmul.f32 %v6417_v58, %v12400_v2  ;;  %v12401_v11 = vunpack.c.h.bf16 %v12397_v7 }
 0x54c   : > { %v8824_v43 = vpop.eup %8823  ;;  %6673 = vst.msk [vmem:[%s11594_s15 + $0x5c] sm:$0xf] %vm6649_vm6, %v7253_v60  ;;  %v6483_v30 = vmul.f32 %v8822_v5, %v12393_v27  ;;  %8835 = vtanh.f32 %v6358_v17  ;;  %v12402_v23 = vunpack.c.h.bf16 %v12399_v9  ;;  %v6423_v13 = vsub.f32 1.0, %v12403_v51 }
 0x54d   : > { %v8826_v18 = vpop.eup %8825  ;;  %6671 = vst.msk [vmem:[%s11594_s15 + $0x54] sm:$0xf] %vm6649_vm6, %v7251_v49  ;;  %v6481_v35 = vmul.f32 %v8824_v43, %v12394_v26  ;;  %v6452_v29 = vmul.f32 %v6420_v22, %v12401_v11  ;;  %v6421_v20 = vsub.f32 1.0, %v12404_v4  ;;  %v6424_v25 = vsub.f32 1.0, %v12405_v16 }
 0x54e   : > { %v8828_v32 = vpop.eup %8827  ;;  %v6515_v3 = vadd.f32 %v6483_v30, %v6451_v62  ;;  %v6484_v14 = vmul.f32 %v8826_v18, %v12395_v6  ;;  %v6450_v39 = vmul.f32 %v6418_v19, %v12402_v23  ;;  %v6422_v37 = vsub.f32 1.0, %v12406_v50 }
 0x54f   : > { %v6513_v53 = vadd.f32 %v6481_v35, %v6449_v56  ;;  %v6482_v12 = vmul.f32 %v8828_v32, %v12396_v55  ;;  %v12408_v42 = vunpack.c.l.bf16 %v12407_v10  ;;  %v12410_v27 = vunpack.c.l.bf16 %v12409_v28 }
 0x550   : > { %v7256_v33 = vpack.c.bf16 %v6515_v3, %v6515_v3  ;;  %v6516_v40 = vadd.f32 %v6484_v14, %v6452_v29  ;;  %v12411_v48 = vunpack.c.h.bf16 %v12407_v10  ;;  %v12412_v41 = vunpack.c.h.bf16 %v12409_v28 }
 0x551   : > { %v7254_v52 = vpack.c.bf16 %v6513_v53, %v6513_v53  ;;  %v6514_v54 = vadd.f32 %v6482_v12, %v6450_v39  ;;  %v6455_v61 = vmul.f32 %v6423_v13, %v12408_v42  ;;  %v6453_v34 = vmul.f32 %v6421_v20, %v12410_v27 }
 0x552   : > { %6676 = vst.msk [vmem:[%s11594_s15 + $0x68] sm:$0xf] %vm6649_vm6, %v7256_v33  ;;  %v7257_v15 = vpack.c.bf16 %v6516_v40, %v6516_v40  ;;  %v6456_v31 = vmul.f32 %v6424_v25, %v12411_v48  ;;  %v6454_v38 = vmul.f32 %v6422_v37, %v12412_v41 }
 0x553   : > { %v8830_v24 = vpop.eup %8829  ;;  %6674 = vst.msk [vmem:[%s11594_s15 + $0x60] sm:$0xf] %vm6649_vm6, %v7254_v52  ;;  %v7255_v0 = vpack.c.bf16 %v6514_v54, %v6514_v54 }
 0x554   : > { %v8832_v45 = vpop.eup %8831  ;;  %6677 = vst.msk [vmem:[%s11594_s15 + $0x6c] sm:$0xf] %vm6649_vm6, %v7257_v15  ;;  %v6487_v59 = vmul.f32 %v8830_v24, %v12403_v51 }
 0x555   : > { %v8834_v1 = vpop.eup %8833  ;;  %6675 = vst.msk [vmem:[%s11594_s15 + $0x64] sm:$0xf] %vm6649_vm6, %v7255_v0  ;;  %v6485_v57 = vmul.f32 %v8832_v45, %v12404_v4 }
 0x556   : > { %v8836_v8 = vpop.eup %8835  ;;  %v6519_v21 = vadd.f32 %v6487_v59, %v6455_v61  ;;  %v6488_v26 = vmul.f32 %v8834_v1, %v12405_v16 }
 0x557   : > { %v6517_v58 = vadd.f32 %v6485_v57, %v6453_v34  ;;  %v6486_v46 = vmul.f32 %v8836_v8, %v12406_v50 }
 0x558   : > { %v7260_v63 = vpack.c.bf16 %v6519_v21, %v6519_v21  ;;  %v6520_v36 = vadd.f32 %v6488_v26, %v6456_v31 }
 0x559   : > { %v7258_v44 = vpack.c.bf16 %v6517_v58, %v6517_v58  ;;  %v6518_v60 = vadd.f32 %v6486_v46, %v6454_v38 }
 0x55a   : > { %6680 = vst.msk [vmem:[%s11594_s15 + $0x78] sm:$0xf] %vm6649_vm6, %v7260_v63  ;;  %v7261_v6 = vpack.c.bf16 %v6520_v36, %v6520_v36 }
 0x55b   : > { %6678 = vst.msk [vmem:[%s11594_s15 + $0x70] sm:$0xf] %vm6649_vm6, %v7258_v44  ;;  %v7259_v22 = vpack.c.bf16 %v6518_v60, %v6518_v60 }
 0x55c   : > { %6681 = vst.msk [vmem:[%s11594_s15 + $0x7c] sm:$0xf] %vm6649_vm6, %v7261_v6 }
 0x55d   : > { %6679 = vst.msk [vmem:[%s11594_s15 + $0x74] sm:$0xf] %vm6649_vm6, %v7259_v22 }
 0x55e PF: > { %s16_s23 = sadd.s32 1, %s8859_s23   ;;  %s12413_s21 = smov %s8855_s22 }
 0x55f   : > { %p13_p5 = scmp.ge.s32.totalorder %s16_s23, 4   ;;  %s12414_s22 = smov %s12416_s24 }
 0x561   :  { %15 = sbr.rel (!%p13_p5) target bundleno = 2 (0x2), region = 89 }

</bundles_post_ra>
